<compile_context>
chip_gen: v6e
topology: v6e:2x2x1
jax: 0.10.0
libtpu: 0.0.40
codegen_flags: <defaults>
</compile_context>

<pallas_src>
import math

import jax
import jax.numpy as jnp
from jax.experimental import pallas as pl
from jax.experimental.pallas import tpu as pltpu

_BN_EPS = 1e-5


def _make_kernel(num_heads: int, head_dim: int, out_dim: int, tile_n: int):
    scale = 1.0 / math.sqrt(head_dim)

    def kernel(h_ref, adj_ref, wqkv_ref, wo_ref, bo_ref, g1_ref, be1_ref,
               w1_ref, b1_ref, w2_ref, b2_ref, g2_ref, be2_ref,
               out_ref, q_scr, kT_scr, v_scr, h1_scr):
        i = pl.program_id(0)
        last = pl.num_programs(0) - 1

        # ---- step 0: fused QKV projection for ALL nodes, K^T cached ----
        @pl.when(i == 0)
        def _():
            h_bf = h_ref[...].astype(jnp.bfloat16)
            qkv = jnp.dot(h_bf, wqkv_ref[...],
                          preferred_element_type=jnp.float32)       # (N, 3D)
            q_scr[...] = qkv[:, :out_dim].astype(jnp.bfloat16)
            kT_scr[...] = qkv[:, out_dim:2 * out_dim].T.astype(jnp.bfloat16)
            v_scr[...] = qkv[:, 2 * out_dim:].astype(jnp.bfloat16)

        # ---- per dst-row tile: masked multi-head attention ----
        row0 = pl.multiple_of(i * tile_n, tile_n)
        q_t = q_scr[pl.ds(row0, tile_n), :]                 # (T, D) bf16
        kT = kT_scr[...]                                    # (D, N) bf16
        v = v_scr[...]                                      # (N, D) bf16
        adj = adj_ref[...].astype(jnp.float32)              # (T, N) f32

        col = jax.lax.broadcasted_iota(jnp.int32, (1, out_dim), 1)
        wv = jnp.zeros((tile_n, out_dim), jnp.float32)
        z = jnp.zeros((tile_n, out_dim), jnp.float32)
        for t in range(num_heads):                          # static head count
            lo = t * head_dim
            sel = (col >= lo) & (col < lo + head_dim)       # disjoint head mask
            m32 = jnp.where(sel, 1.0, 0.0).astype(jnp.float32)
            mbf = m32.astype(jnp.bfloat16)
            # s[dst, src] = <Q_h[dst], K_h[src]>  (masked q -> only head-h cols)
            s = jnp.dot(q_t * mbf, kT, preferred_element_type=jnp.float32)
            p = jnp.exp(jnp.clip(s * scale, -5.0, 5.0)) * adj
            wv = wv + jnp.dot(p.astype(jnp.bfloat16), v * mbf,
                              preferred_element_type=jnp.float32)
            z = z + jnp.sum(p, axis=-1, keepdims=True) * m32
        # possible_empty=False semantics: an isolated node (z == 0) is NaN,
        # identical to the PyTorch module; the driver adds self-loops.
        head_out = wv * pl.reciprocal(z, approx=True)

        # ---- O projection, dropout(p=0) identity, residual ----
        o = jnp.dot(head_out.astype(jnp.bfloat16), wo_ref[...],
                    preferred_element_type=jnp.float32) + bo_ref[...]
        h_t = h_ref[pl.ds(row0, tile_n), :]
        h1_scr[pl.ds(row0, tile_n), :] = h_t + o

        # ---- last tile: BatchNorm1d #1 -> FFN -> residual -> BatchNorm1d #2 ----
        @pl.when(i == last)
        def _():
            h1 = h1_scr[...]
            m1 = jnp.mean(h1, axis=0, keepdims=True)
            v1 = jnp.mean(jnp.square(h1 - m1), axis=0, keepdims=True)
            h1n = ((h1 - m1) * jax.lax.rsqrt(v1 + _BN_EPS)
                   * g1_ref[...] + be1_ref[...])

            f = jnp.dot(h1n.astype(jnp.bfloat16), w1_ref[...],
                        preferred_element_type=jnp.float32) + b1_ref[...]
            f = jnp.maximum(f, 0.0)
            f = jnp.dot(f.astype(jnp.bfloat16), w2_ref[...],
                        preferred_element_type=jnp.float32) + b2_ref[...]
            h2 = h1n + f

            m2 = jnp.mean(h2, axis=0, keepdims=True)
            v2 = jnp.mean(jnp.square(h2 - m2), axis=0, keepdims=True)
            out_ref[...] = ((h2 - m2) * jax.lax.rsqrt(v2 + _BN_EPS)
                            * g2_ref[...] + be2_ref[...])

    return kernel


def graph_transformer_layer(h, adj, params, num_heads, *, tile_n=128):
    """Fused GraphTransformerLayer forward.

    h:   (N, in_dim)  float32 node features
    adj: (N, N)       adj[dst, src] = number of edges src -> dst
    params: dict of weights in math orientation (x @ W + b)
    """
    n, in_dim = h.shape
    out_dim = params["wo"].shape[1]
    head_dim = out_dim // num_heads
    assert in_dim == out_dim, "residual connection requires in_dim == out_dim"
    tile_n = min(tile_n, n)
    assert n % tile_n == 0
    n_tiles = n // tile_n

    bf = jnp.bfloat16
    wqkv = jnp.concatenate(
        [params["wq"], params["wk"], params["wv"]], axis=1).astype(bf)
    wo = params["wo"].astype(bf)
    w1 = params["w1"].astype(bf)
    w2 = params["w2"].astype(bf)
    adj_bf = adj.astype(bf)   # small integer edge counts: exact in bf16

    inputs = (h, adj_bf, wqkv, wo, params["bo"], params["g1"], params["be1"],
              w1, params["b1"], w2, params["b2"], params["g2"], params["be2"])

    in_specs = [
        pl.BlockSpec((n, in_dim), lambda i: (0, 0)),        # h: resident
        pl.BlockSpec((tile_n, n), lambda i: (i, 0)),        # adj: pipelined rows
    ] + [pl.BlockSpec(x.shape, lambda i: (0, 0)) for x in inputs[2:]]
    out_spec = pl.BlockSpec((n, out_dim), lambda i: (0, 0))

    flops = int(2 * n * in_dim * 3 * out_dim                     # fused QKV
                + num_heads * 2 * (2 * n * n * out_dim)          # scores + P@V
                + 2 * n * out_dim * out_dim                      # O proj
                + 2 * n * out_dim * (2 * out_dim)                # FFN layer 1
                + 2 * n * (2 * out_dim) * out_dim)               # FFN layer 2
    transcendentals = int(num_heads * n * n + 3 * n * out_dim)
    bytes_accessed = int(sum(int(x.size) * x.dtype.itemsize for x in inputs)
                         + n * out_dim * 4)

    return pl.pallas_call(
        _make_kernel(num_heads, head_dim, out_dim, tile_n),
        out_shape=jax.ShapeDtypeStruct((n, out_dim), jnp.float32),
        grid=(n_tiles,),
        in_specs=in_specs,
        out_specs=out_spec,
        scratch_shapes=[
            pltpu.VMEM((n, out_dim), bf),            # Q (all nodes)
            pltpu.VMEM((out_dim, n), bf),            # K^T (lane-dense)
            pltpu.VMEM((n, out_dim), bf),            # V
            pltpu.VMEM((n, out_dim), jnp.float32),   # pre-BN activations
        ],
        compiler_params=pltpu.CompilerParams(
            dimension_semantics=("arbitrary",),
            vmem_limit_bytes=32 * 1024 * 1024),
        cost_estimate=pl.CostEstimate(flops=flops,
                                      transcendentals=transcendentals,
                                      bytes_accessed=bytes_accessed),
    )(*inputs)


# ----------------------------- pure-JAX reference -----------------------------

def _batchnorm_train(x, gamma, beta):
    m = jnp.mean(x, axis=0, keepdims=True)
    v = jnp.mean(jnp.square(x - m), axis=0, keepdims=True)
    return (x - m) / jnp.sqrt(v + _BN_EPS) * gamma + beta


def reference_forward(h, src, dst, params, num_heads):
    """Edge-list (DGL-style) reference of GraphTransformerLayer.forward."""
    n, _ = h.shape
    out_dim = params["wo"].shape[1]
    d = out_dim // num_heads
    scale = 1.0 / math.sqrt(d)

    q = (h @ params["wq"]).reshape(n, num_heads, d)
    k = (h @ params["wk"]).reshape(n, num_heads, d)
    v = (h @ params["wv"]).reshape(n, num_heads, d)

    score = jnp.sum(k[src] * q[dst], axis=-1, keepdims=True)        # (E, H, 1)
    score = jnp.exp(jnp.clip(score * scale, -5.0, 5.0))
    wv = jnp.zeros((n, num_heads, d), jnp.float32).at[dst].add(v[src] * score)
    z = jnp.zeros((n, num_heads, 1), jnp.float32).at[dst].add(score)
    head_out = wv / z                                               # possible_empty=False

    hh = head_out.reshape(n, out_dim)
    hh = hh @ params["wo"] + params["bo"]
    hh = h + hh
    hh = _batchnorm_train(hh, params["g1"], params["be1"])
    h_in2 = hh
    f = jnp.maximum(hh @ params["w1"] + params["b1"], 0.0)
    f = f @ params["w2"] + params["b2"]
    hh = h_in2 + f
    return _batchnorm_train(hh, params["g2"], params["be2"])


if __name__ == "__main__":
    key = jax.random.PRNGKey(0)
    (k_h, k_src, k_dst, k_wq, k_wk, k_wv, k_wo, k_bo,
     k_g1, k_be1, k_w1, k_b1, k_w2, k_b2, k_g2, k_be2) = jax.random.split(key, 16)

    N = 256          # nodes
    E = 2048         # random directed edges (self-loops added below)
    IN_DIM = OUT_DIM = 128
    NUM_HEADS = 4    # head_dim = 32

    h = jax.random.normal(k_h, (N, IN_DIM), jnp.float32)
    src = jax.random.randint(k_src, (E,), 0, N)
    dst = jax.random.randint(k_dst, (E,), 0, N)
    # self-loops so every node has >= 1 incoming edge (z > 0, matches
    # possible_empty=False semantics without 0/0)
    src = jnp.concatenate([src, jnp.arange(N, dtype=src.dtype)])
    dst = jnp.concatenate([dst, jnp.arange(N, dtype=dst.dtype)])
    # dense multi-adjacency counts: adj[dst, src] = #edges src -> dst
    adj = jnp.zeros((N, N), jnp.float32).at[dst, src].add(1.0)

    def w(k, shape, s):
        return s * jax.random.normal(k, shape, jnp.float32)

    params = {
        "wq": w(k_wq, (IN_DIM, OUT_DIM), 0.05),
        "wk": w(k_wk, (IN_DIM, OUT_DIM), 0.05),
        "wv": w(k_wv, (IN_DIM, OUT_DIM), 0.10),
        "wo": w(k_wo, (OUT_DIM, OUT_DIM), 0.10),
        "bo": w(k_bo, (1, OUT_DIM), 0.10),
        "g1": 1.0 + w(k_g1, (1, OUT_DIM), 0.10),
        "be1": w(k_be1, (1, OUT_DIM), 0.10),
        "w1": w(k_w1, (OUT_DIM, 2 * OUT_DIM), 0.10),
        "b1": w(k_b1, (1, 2 * OUT_DIM), 0.10),
        "w2": w(k_w2, (2 * OUT_DIM, OUT_DIM), 0.10),
        "b2": w(k_b2, (1, OUT_DIM), 0.10),
        "g2": 1.0 + w(k_g2, (1, OUT_DIM), 0.10),
        "be2": w(k_be2, (1, OUT_DIM), 0.10),
    }

    out = graph_transformer_layer(h, adj, params, NUM_HEADS)
    out = jax.block_until_ready(out)

    ref = reference_forward(h, src, dst, params, NUM_HEADS)
    ref = jax.block_until_ready(ref)

    assert out.shape == (N, OUT_DIM)
    assert out.dtype == jnp.float32
    assert bool(jnp.all(jnp.isfinite(out)))
    assert bool(jnp.allclose(out, ref, atol=5e-2, rtol=5e-2)), \
        float(jnp.max(jnp.abs(out - ref)))

    print("KERNEL_OK")
</pallas_src>

<mosaic_0001>
module attributes {stable_mosaic.version = 11 : i64} {
  func.func @kernel(%arg0: i32, %arg1: memref<256x128xf32, #tpu.memory_space<vmem>>, %arg2: memref<128x256xbf16, #tpu.memory_space<vmem>>, %arg3: memref<128x384xbf16, #tpu.memory_space<vmem>>, %arg4: memref<128x128xbf16, #tpu.memory_space<vmem>>, %arg5: memref<1x128xf32, #tpu.memory_space<vmem>>, %arg6: memref<1x128xf32, #tpu.memory_space<vmem>>, %arg7: memref<1x128xf32, #tpu.memory_space<vmem>>, %arg8: memref<128x256xbf16, #tpu.memory_space<vmem>>, %arg9: memref<1x256xf32, #tpu.memory_space<vmem>>, %arg10: memref<256x128xbf16, #tpu.memory_space<vmem>>, %arg11: memref<1x128xf32, #tpu.memory_space<vmem>>, %arg12: memref<1x128xf32, #tpu.memory_space<vmem>>, %arg13: memref<1x128xf32, #tpu.memory_space<vmem>>, %arg14: memref<256x128xf32, #tpu.memory_space<vmem>>, %arg15: memref<256x128xbf16, #tpu.memory_space<vmem>>, %arg16: memref<128x256xbf16, #tpu.memory_space<vmem>>, %arg17: memref<256x128xbf16, #tpu.memory_space<vmem>>, %arg18: memref<256x128xf32, #tpu.memory_space<vmem>>) attributes {dimension_semantics = [#tpu.dimension_semantics<arbitrary>], iteration_bounds = array<i64: 2>, scalar_prefetch = 0 : i64, scratch_operands = 4 : i64, tpu.core_type = #tpu.core_type<tc>, window_params = [{pipeline_mode = #tpu.pipeline_mode<synchronous>, transform_indices = @transform_0, window_bounds = array<i64: 256, 128>}, {transform_indices = @transform_1, window_bounds = array<i64: 128, 256>}, {pipeline_mode = #tpu.pipeline_mode<synchronous>, transform_indices = @transform_2, window_bounds = array<i64: 128, 384>}, {pipeline_mode = #tpu.pipeline_mode<synchronous>, transform_indices = @transform_3, window_bounds = array<i64: 128, 128>}, {pipeline_mode = #tpu.pipeline_mode<synchronous>, transform_indices = @transform_4, window_bounds = array<i64: 1, 128>}, {pipeline_mode = #tpu.pipeline_mode<synchronous>, transform_indices = @transform_5, window_bounds = array<i64: 1, 128>}, {pipeline_mode = #tpu.pipeline_mode<synchronous>, transform_indices = @transform_6, window_bounds = array<i64: 1, 128>}, {pipeline_mode = #tpu.pipeline_mode<synchronous>, transform_indices = @transform_7, window_bounds = array<i64: 128, 256>}, {pipeline_mode = #tpu.pipeline_mode<synchronous>, transform_indices = @transform_8, window_bounds = array<i64: 1, 256>}, {pipeline_mode = #tpu.pipeline_mode<synchronous>, transform_indices = @transform_9, window_bounds = array<i64: 256, 128>}, {pipeline_mode = #tpu.pipeline_mode<synchronous>, transform_indices = @transform_10, window_bounds = array<i64: 1, 128>}, {pipeline_mode = #tpu.pipeline_mode<synchronous>, transform_indices = @transform_11, window_bounds = array<i64: 1, 128>}, {pipeline_mode = #tpu.pipeline_mode<synchronous>, transform_indices = @transform_12, window_bounds = array<i64: 1, 128>}, {pipeline_mode = #tpu.pipeline_mode<synchronous>, transform_indices = @transform_13, window_bounds = array<i64: 256, 128>}]} {
    %c0_i32 = arith.constant 0 : i32
    %0 = arith.cmpi eq, %arg0, %c0_i32 : i32
    %1 = arith.extui %0 : i1 to i32
    %c0_i32_0 = arith.constant 0 : i32
    %2 = arith.cmpi ne, %1, %c0_i32_0 : i32
    scf.if %2 {
      %c0_53 = arith.constant 0 : index
      %c0_54 = arith.constant 0 : index
      %154 = vector.load %arg1[%c0_53, %c0_54] : memref<256x128xf32, #tpu.memory_space<vmem>>, vector<256x128xf32>
      %155 = arith.truncf %154 : vector<256x128xf32> to vector<256x128xbf16>
      %c0_55 = arith.constant 0 : index
      %c0_56 = arith.constant 0 : index
      %156 = vector.load %arg3[%c0_55, %c0_56] : memref<128x384xbf16, #tpu.memory_space<vmem>>, vector<128x384xbf16>
      %cst_57 = arith.constant dense<0.000000e+00> : vector<256x384xf32>
      %157 = tpu.matmul %155, %156, %cst_57 {dimension_numbers = #tpu.dot_dimension_numbers<[1], [0], [0], [1], [0, 0, 1, 1], [], []>} : vector<256x128xbf16>, vector<128x384xbf16>, vector<256x384xf32> -> vector<256x384xf32>
      %158 = vector.extract_strided_slice %157 {offsets = [0, 0], sizes = [256, 128], strides = [1, 1]} : vector<256x384xf32> to vector<256x128xf32>
      %159 = arith.truncf %158 : vector<256x128xf32> to vector<256x128xbf16>
      %c0_58 = arith.constant 0 : index
      %c0_59 = arith.constant 0 : index
      %160 = vector.load %arg15[%c0_58, %c0_59] : memref<256x128xbf16, #tpu.memory_space<vmem>>, vector<256x128xbf16>
      tpu.vector_store %arg15[%c0_58, %c0_59], %159 {strides = array<i32>} : memref<256x128xbf16, #tpu.memory_space<vmem>>, vector<256x128xbf16>,
      %161 = vector.extract_strided_slice %157 {offsets = [0, 128], sizes = [256, 128], strides = [1, 1]} : vector<256x384xf32> to vector<256x128xf32>
      %162 = tpu.transpose %161, [1, 0] : vector<256x128xf32> -> vector<128x256xf32>
      %163 = arith.truncf %162 : vector<128x256xf32> to vector<128x256xbf16>
      %c0_60 = arith.constant 0 : index
      %c0_61 = arith.constant 0 : index
      %164 = vector.load %arg16[%c0_60, %c0_61] : memref<128x256xbf16, #tpu.memory_space<vmem>>, vector<128x256xbf16>
      tpu.vector_store %arg16[%c0_60, %c0_61], %163 {strides = array<i32>} : memref<128x256xbf16, #tpu.memory_space<vmem>>, vector<128x256xbf16>,
      %165 = vector.extract_strided_slice %157 {offsets = [0, 256], sizes = [256, 128], strides = [1, 1]} : vector<256x384xf32> to vector<256x128xf32>
      %166 = arith.truncf %165 : vector<256x128xf32> to vector<256x128xbf16>
      %c0_62 = arith.constant 0 : index
      %c0_63 = arith.constant 0 : index
      %167 = vector.load %arg17[%c0_62, %c0_63] : memref<256x128xbf16, #tpu.memory_space<vmem>>, vector<256x128xbf16>
      tpu.vector_store %arg17[%c0_62, %c0_63], %166 {strides = array<i32>} : memref<256x128xbf16, #tpu.memory_space<vmem>>, vector<256x128xbf16>,
    } else {
    }
    %c128_i32 = arith.constant 128 : i32
    %3 = arith.muli %arg0, %c128_i32 : i32
    %4 = tpu.assume_multiple %3, 128 : i32
    %5 = arith.index_cast %4 : i32 to index
    %c0 = arith.constant 0 : index
    %6 = vector.load %arg15[%5, %c0] : memref<256x128xbf16, #tpu.memory_space<vmem>>, vector<128x128xbf16>
    %c0_1 = arith.constant 0 : index
    %c0_2 = arith.constant 0 : index
    %7 = vector.load %arg16[%c0_1, %c0_2] : memref<128x256xbf16, #tpu.memory_space<vmem>>, vector<128x256xbf16>
    %c0_3 = arith.constant 0 : index
    %c0_4 = arith.constant 0 : index
    %8 = vector.load %arg17[%c0_3, %c0_4] : memref<256x128xbf16, #tpu.memory_space<vmem>>, vector<256x128xbf16>
    %c0_5 = arith.constant 0 : index
    %c0_6 = arith.constant 0 : index
    %9 = vector.load %arg2[%c0_5, %c0_6] : memref<128x256xbf16, #tpu.memory_space<vmem>>, vector<128x256xbf16>
    %10 = arith.extf %9 : vector<128x256xbf16> to vector<128x256xf32>
    %11 = tpu.iota {dimensions = array<i32: 1>} : vector<1x128xi32>
    %cst = arith.constant 0.000000e+00 : f32
    %12 = vector.broadcast %cst : f32 to vector<128x128xf32>
    %cst_7 = arith.constant 0.000000e+00 : f32
    %13 = vector.broadcast %cst_7 : f32 to vector<128x128xf32>
    %c0_i32_8 = arith.constant 0 : i32
    %14 = vector.broadcast %c0_i32_8 : i32 to vector<1x128xi32>
    %15 = arith.cmpi sge, %11, %14 : vector<1x128xi32>
    %c32_i32 = arith.constant 32 : i32
    %16 = vector.broadcast %c32_i32 : i32 to vector<1x128xi32>
    %17 = arith.cmpi slt, %11, %16 : vector<1x128xi32>
    %18 = arith.andi %15, %17 : vector<1x128xi1>
    %cst_9 = arith.constant 1.000000e+00 : f32
    %cst_10 = arith.constant 0.000000e+00 : f32
    %19 = vector.broadcast %cst_9 : f32 to vector<1x128xf32>
    %20 = vector.broadcast %cst_10 : f32 to vector<1x128xf32>
    %21 = arith.select %18, %19, %20 : vector<1x128xi1>, vector<1x128xf32>
    %22 = arith.truncf %21 : vector<1x128xf32> to vector<1x128xbf16>
    %23 = vector.broadcast %22 : vector<1x128xbf16> to vector<128x128xbf16>
    %24 = arith.mulf %6, %23 : vector<128x128xbf16>
    %cst_11 = arith.constant dense<0.000000e+00> : vector<128x256xf32>
    %25 = tpu.matmul %24, %7, %cst_11 {dimension_numbers = #tpu.dot_dimension_numbers<[1], [0], [0], [1], [0, 0, 1, 1], [], []>} : vector<128x128xbf16>, vector<128x256xbf16>, vector<128x256xf32> -> vector<128x256xf32>
    %cst_12 = arith.constant 0.176776692 : f32
    %26 = vector.broadcast %cst_12 : f32 to vector<128x256xf32>
    %27 = arith.mulf %25, %26 : vector<128x256xf32>
    %cst_13 = arith.constant -5.000000e+00 : f32
    %cst_14 = arith.constant 5.000000e+00 : f32
    %28 = vector.broadcast %cst_13 : f32 to vector<128x256xf32>
    %29 = arith.maximumf %28, %27 : vector<128x256xf32>
    %30 = vector.broadcast %cst_14 : f32 to vector<128x256xf32>
    %31 = arith.minimumf %30, %29 : vector<128x256xf32>
    %32 = math.exp %31 : vector<128x256xf32>
    %33 = arith.mulf %32, %10 : vector<128x256xf32>
    %34 = arith.truncf %33 : vector<128x256xf32> to vector<128x256xbf16>
    %35 = vector.broadcast %22 : vector<1x128xbf16> to vector<256x128xbf16>
    %36 = arith.mulf %8, %35 : vector<256x128xbf16>
    %cst_15 = arith.constant dense<0.000000e+00> : vector<128x128xf32>
    %37 = tpu.matmul %34, %36, %cst_15 {dimension_numbers = #tpu.dot_dimension_numbers<[1], [0], [0], [1], [0, 0, 1, 1], [], []>} : vector<128x256xbf16>, vector<256x128xbf16>, vector<128x128xf32> -> vector<128x128xf32>
    %38 = arith.addf %12, %37 : vector<128x128xf32>
    %cst_16 = arith.constant dense<0.000000e+00> : vector<128xf32>
    %39 = vector.multi_reduction <add>, %33, %cst_16 [1] : vector<128x256xf32> to vector<128xf32>
    %40 = vector.shape_cast %39 : vector<128xf32> to vector<128x1xf32>
    %41 = vector.broadcast %40 : vector<128x1xf32> to vector<128x128xf32>
    %42 = vector.broadcast %21 : vector<1x128xf32> to vector<128x128xf32>
    %43 = arith.mulf %41, %42 : vector<128x128xf32>
    %44 = arith.addf %13, %43 : vector<128x128xf32>
    %c32_i32_17 = arith.constant 32 : i32
    %45 = vector.broadcast %c32_i32_17 : i32 to vector<1x128xi32>
    %46 = arith.cmpi sge, %11, %45 : vector<1x128xi32>
    %c64_i32 = arith.constant 64 : i32
    %47 = vector.broadcast %c64_i32 : i32 to vector<1x128xi32>
    %48 = arith.cmpi slt, %11, %47 : vector<1x128xi32>
    %49 = arith.andi %46, %48 : vector<1x128xi1>
    %cst_18 = arith.constant 1.000000e+00 : f32
    %cst_19 = arith.constant 0.000000e+00 : f32
    %50 = vector.broadcast %cst_18 : f32 to vector<1x128xf32>
    %51 = vector.broadcast %cst_19 : f32 to vector<1x128xf32>
    %52 = arith.select %49, %50, %51 : vector<1x128xi1>, vector<1x128xf32>
    %53 = arith.truncf %52 : vector<1x128xf32> to vector<1x128xbf16>
    %54 = vector.broadcast %53 : vector<1x128xbf16> to vector<128x128xbf16>
    %55 = arith.mulf %6, %54 : vector<128x128xbf16>
    %cst_20 = arith.constant dense<0.000000e+00> : vector<128x256xf32>
    %56 = tpu.matmul %55, %7, %cst_20 {dimension_numbers = #tpu.dot_dimension_numbers<[1], [0], [0], [1], [0, 0, 1, 1], [], []>} : vector<128x128xbf16>, vector<128x256xbf16>, vector<128x256xf32> -> vector<128x256xf32>
    %cst_21 = arith.constant 0.176776692 : f32
    %57 = vector.broadcast %cst_21 : f32 to vector<128x256xf32>
    %58 = arith.mulf %56, %57 : vector<128x256xf32>
    %cst_22 = arith.constant -5.000000e+00 : f32
    %cst_23 = arith.constant 5.000000e+00 : f32
    %59 = vector.broadcast %cst_22 : f32 to vector<128x256xf32>
    %60 = arith.maximumf %59, %58 : vector<128x256xf32>
    %61 = vector.broadcast %cst_23 : f32 to vector<128x256xf32>
    %62 = arith.minimumf %61, %60 : vector<128x256xf32>
    %63 = math.exp %62 : vector<128x256xf32>
    %64 = arith.mulf %63, %10 : vector<128x256xf32>
    %65 = arith.truncf %64 : vector<128x256xf32> to vector<128x256xbf16>
    %66 = vector.broadcast %53 : vector<1x128xbf16> to vector<256x128xbf16>
    %67 = arith.mulf %8, %66 : vector<256x128xbf16>
    %cst_24 = arith.constant dense<0.000000e+00> : vector<128x128xf32>
    %68 = tpu.matmul %65, %67, %cst_24 {dimension_numbers = #tpu.dot_dimension_numbers<[1], [0], [0], [1], [0, 0, 1, 1], [], []>} : vector<128x256xbf16>, vector<256x128xbf16>, vector<128x128xf32> -> vector<128x128xf32>
    %69 = arith.addf %38, %68 : vector<128x128xf32>
    %cst_25 = arith.constant dense<0.000000e+00> : vector<128xf32>
    %70 = vector.multi_reduction <add>, %64, %cst_25 [1] : vector<128x256xf32> to vector<128xf32>
    %71 = vector.shape_cast %70 : vector<128xf32> to vector<128x1xf32>
    %72 = vector.broadcast %71 : vector<128x1xf32> to vector<128x128xf32>
    %73 = vector.broadcast %52 : vector<1x128xf32> to vector<128x128xf32>
    %74 = arith.mulf %72, %73 : vector<128x128xf32>
    %75 = arith.addf %44, %74 : vector<128x128xf32>
    %c64_i32_26 = arith.constant 64 : i32
    %76 = vector.broadcast %c64_i32_26 : i32 to vector<1x128xi32>
    %77 = arith.cmpi sge, %11, %76 : vector<1x128xi32>
    %c96_i32 = arith.constant 96 : i32
    %78 = vector.broadcast %c96_i32 : i32 to vector<1x128xi32>
    %79 = arith.cmpi slt, %11, %78 : vector<1x128xi32>
    %80 = arith.andi %77, %79 : vector<1x128xi1>
    %cst_27 = arith.constant 1.000000e+00 : f32
    %cst_28 = arith.constant 0.000000e+00 : f32
    %81 = vector.broadcast %cst_27 : f32 to vector<1x128xf32>
    %82 = vector.broadcast %cst_28 : f32 to vector<1x128xf32>
    %83 = arith.select %80, %81, %82 : vector<1x128xi1>, vector<1x128xf32>
    %84 = arith.truncf %83 : vector<1x128xf32> to vector<1x128xbf16>
    %85 = vector.broadcast %84 : vector<1x128xbf16> to vector<128x128xbf16>
    %86 = arith.mulf %6, %85 : vector<128x128xbf16>
    %cst_29 = arith.constant dense<0.000000e+00> : vector<128x256xf32>
    %87 = tpu.matmul %86, %7, %cst_29 {dimension_numbers = #tpu.dot_dimension_numbers<[1], [0], [0], [1], [0, 0, 1, 1], [], []>} : vector<128x128xbf16>, vector<128x256xbf16>, vector<128x256xf32> -> vector<128x256xf32>
    %cst_30 = arith.constant 0.176776692 : f32
    %88 = vector.broadcast %cst_30 : f32 to vector<128x256xf32>
    %89 = arith.mulf %87, %88 : vector<128x256xf32>
    %cst_31 = arith.constant -5.000000e+00 : f32
    %cst_32 = arith.constant 5.000000e+00 : f32
    %90 = vector.broadcast %cst_31 : f32 to vector<128x256xf32>
    %91 = arith.maximumf %90, %89 : vector<128x256xf32>
    %92 = vector.broadcast %cst_32 : f32 to vector<128x256xf32>
    %93 = arith.minimumf %92, %91 : vector<128x256xf32>
    %94 = math.exp %93 : vector<128x256xf32>
    %95 = arith.mulf %94, %10 : vector<128x256xf32>
    %96 = arith.truncf %95 : vector<128x256xf32> to vector<128x256xbf16>
    %97 = vector.broadcast %84 : vector<1x128xbf16> to vector<256x128xbf16>
    %98 = arith.mulf %8, %97 : vector<256x128xbf16>
    %cst_33 = arith.constant dense<0.000000e+00> : vector<128x128xf32>
    %99 = tpu.matmul %96, %98, %cst_33 {dimension_numbers = #tpu.dot_dimension_numbers<[1], [0], [0], [1], [0, 0, 1, 1], [], []>} : vector<128x256xbf16>, vector<256x128xbf16>, vector<128x128xf32> -> vector<128x128xf32>
    %100 = arith.addf %69, %99 : vector<128x128xf32>
    %cst_34 = arith.constant dense<0.000000e+00> : vector<128xf32>
    %101 = vector.multi_reduction <add>, %95, %cst_34 [1] : vector<128x256xf32> to vector<128xf32>
    %102 = vector.shape_cast %101 : vector<128xf32> to vector<128x1xf32>
    %103 = vector.broadcast %102 : vector<128x1xf32> to vector<128x128xf32>
    %104 = vector.broadcast %83 : vector<1x128xf32> to vector<128x128xf32>
    %105 = arith.mulf %103, %104 : vector<128x128xf32>
    %106 = arith.addf %75, %105 : vector<128x128xf32>
    %c96_i32_35 = arith.constant 96 : i32
    %107 = vector.broadcast %c96_i32_35 : i32 to vector<1x128xi32>
    %108 = arith.cmpi sge, %11, %107 : vector<1x128xi32>
    %c128_i32_36 = arith.constant 128 : i32
    %109 = vector.broadcast %c128_i32_36 : i32 to vector<1x128xi32>
    %110 = arith.cmpi slt, %11, %109 : vector<1x128xi32>
    %111 = arith.andi %108, %110 : vector<1x128xi1>
    %cst_37 = arith.constant 1.000000e+00 : f32
    %cst_38 = arith.constant 0.000000e+00 : f32
    %112 = vector.broadcast %cst_37 : f32 to vector<1x128xf32>
    %113 = vector.broadcast %cst_38 : f32 to vector<1x128xf32>
    %114 = arith.select %111, %112, %113 : vector<1x128xi1>, vector<1x128xf32>
    %115 = arith.truncf %114 : vector<1x128xf32> to vector<1x128xbf16>
    %116 = vector.broadcast %115 : vector<1x128xbf16> to vector<128x128xbf16>
    %117 = arith.mulf %6, %116 : vector<128x128xbf16>
    %cst_39 = arith.constant dense<0.000000e+00> : vector<128x256xf32>
    %118 = tpu.matmul %117, %7, %cst_39 {dimension_numbers = #tpu.dot_dimension_numbers<[1], [0], [0], [1], [0, 0, 1, 1], [], []>} : vector<128x128xbf16>, vector<128x256xbf16>, vector<128x256xf32> -> vector<128x256xf32>
    %cst_40 = arith.constant 0.176776692 : f32
    %119 = vector.broadcast %cst_40 : f32 to vector<128x256xf32>
    %120 = arith.mulf %118, %119 : vector<128x256xf32>
    %cst_41 = arith.constant -5.000000e+00 : f32
    %cst_42 = arith.constant 5.000000e+00 : f32
    %121 = vector.broadcast %cst_41 : f32 to vector<128x256xf32>
    %122 = arith.maximumf %121, %120 : vector<128x256xf32>
    %123 = vector.broadcast %cst_42 : f32 to vector<128x256xf32>
    %124 = arith.minimumf %123, %122 : vector<128x256xf32>
    %125 = math.exp %124 : vector<128x256xf32>
    %126 = arith.mulf %125, %10 : vector<128x256xf32>
    %127 = arith.truncf %126 : vector<128x256xf32> to vector<128x256xbf16>
    %128 = vector.broadcast %115 : vector<1x128xbf16> to vector<256x128xbf16>
    %129 = arith.mulf %8, %128 : vector<256x128xbf16>
    %cst_43 = arith.constant dense<0.000000e+00> : vector<128x128xf32>
    %130 = tpu.matmul %127, %129, %cst_43 {dimension_numbers = #tpu.dot_dimension_numbers<[1], [0], [0], [1], [0, 0, 1, 1], [], []>} : vector<128x256xbf16>, vector<256x128xbf16>, vector<128x128xf32> -> vector<128x128xf32>
    %131 = arith.addf %100, %130 : vector<128x128xf32>
    %cst_44 = arith.constant dense<0.000000e+00> : vector<128xf32>
    %132 = vector.multi_reduction <add>, %126, %cst_44 [1] : vector<128x256xf32> to vector<128xf32>
    %133 = vector.shape_cast %132 : vector<128xf32> to vector<128x1xf32>
    %134 = vector.broadcast %133 : vector<128x1xf32> to vector<128x128xf32>
    %135 = vector.broadcast %114 : vector<1x128xf32> to vector<128x128xf32>
    %136 = arith.mulf %134, %135 : vector<128x128xf32>
    %137 = arith.addf %106, %136 : vector<128x128xf32>
    %138 = tpu.reciprocal %137 {approx = true} : vector<128x128xf32> -> vector<128x128xf32>
    %139 = arith.mulf %131, %138 : vector<128x128xf32>
    %140 = arith.truncf %139 : vector<128x128xf32> to vector<128x128xbf16>
    %c0_45 = arith.constant 0 : index
    %c0_46 = arith.constant 0 : index
    %141 = vector.load %arg4[%c0_45, %c0_46] : memref<128x128xbf16, #tpu.memory_space<vmem>>, vector<128x128xbf16>
    %cst_47 = arith.constant dense<0.000000e+00> : vector<128x128xf32>
    %142 = tpu.matmul %140, %141, %cst_47 {dimension_numbers = #tpu.dot_dimension_numbers<[1], [0], [0], [1], [0, 0, 1, 1], [], []>} : vector<128x128xbf16>, vector<128x128xbf16>, vector<128x128xf32> -> vector<128x128xf32>
    %c0_48 = arith.constant 0 : index
    %c0_49 = arith.constant 0 : index
    %143 = vector.load %arg5[%c0_48, %c0_49] : memref<1x128xf32, #tpu.memory_space<vmem>>, vector<1x128xf32>
    %144 = vector.broadcast %143 : vector<1x128xf32> to vector<128x128xf32>
    %145 = arith.addf %142, %144 : vector<128x128xf32>
    %146 = arith.index_cast %4 : i32 to index
    %c0_50 = arith.constant 0 : index
    %147 = vector.load %arg1[%146, %c0_50] : memref<256x128xf32, #tpu.memory_space<vmem>>, vector<128x128xf32>
    %148 = arith.addf %147, %145 : vector<128x128xf32>
    %149 = arith.index_cast %4 : i32 to index
    %c0_51 = arith.constant 0 : index
    %150 = vector.load %arg18[%149, %c0_51] : memref<256x128xf32, #tpu.memory_space<vmem>>, vector<128x128xf32>
    tpu.vector_store %arg18[%149, %c0_51], %148 {strides = array<i32>} : memref<256x128xf32, #tpu.memory_space<vmem>>, vector<128x128xf32>,
    %c1_i32 = arith.constant 1 : i32
    %151 = arith.cmpi eq, %arg0, %c1_i32 : i32
    %152 = arith.extui %151 : i1 to i32
    %c0_i32_52 = arith.constant 0 : i32
    %153 = arith.cmpi ne, %152, %c0_i32_52 : i32
    scf.if %153 {
      %c0_53 = arith.constant 0 : index
      %c0_54 = arith.constant 0 : index
      %154 = vector.load %arg18[%c0_53, %c0_54] : memref<256x128xf32, #tpu.memory_space<vmem>>, vector<256x128xf32>
      %cst_55 = arith.constant dense<0.000000e+00> : vector<128xf32>
      %155 = vector.multi_reduction <add>, %154, %cst_55 [0] : vector<256x128xf32> to vector<128xf32>
      %156 = vector.shape_cast %155 : vector<128xf32> to vector<1x128xf32>
      %cst_56 = arith.constant 2.560000e+02 : f32
      %157 = vector.broadcast %cst_56 : f32 to vector<1x128xf32>
      %158 = arith.divf %156, %157 : vector<1x128xf32>
      %159 = vector.broadcast %158 : vector<1x128xf32> to vector<256x128xf32>
      %160 = arith.subf %154, %159 : vector<256x128xf32>
      %161 = arith.mulf %160, %160 : vector<256x128xf32>
      %cst_57 = arith.constant dense<0.000000e+00> : vector<128xf32>
      %162 = vector.multi_reduction <add>, %161, %cst_57 [0] : vector<256x128xf32> to vector<128xf32>
      %163 = vector.shape_cast %162 : vector<128xf32> to vector<1x128xf32>
      %cst_58 = arith.constant 2.560000e+02 : f32
      %164 = vector.broadcast %cst_58 : f32 to vector<1x128xf32>
      %165 = arith.divf %163, %164 : vector<1x128xf32>
      %166 = vector.broadcast %158 : vector<1x128xf32> to vector<256x128xf32>
      %167 = arith.subf %154, %166 : vector<256x128xf32>
      %cst_59 = arith.constant 9.99999974E-6 : f32
      %168 = vector.broadcast %cst_59 : f32 to vector<1x128xf32>
      %169 = arith.addf %165, %168 : vector<1x128xf32>
      %170 = math.rsqrt %169 : vector<1x128xf32>
      %171 = vector.broadcast %170 : vector<1x128xf32> to vector<256x128xf32>
      %172 = arith.mulf %167, %171 : vector<256x128xf32>
      %c0_60 = arith.constant 0 : index
      %c0_61 = arith.constant 0 : index
      %173 = vector.load %arg6[%c0_60, %c0_61] : memref<1x128xf32, #tpu.memory_space<vmem>>, vector<1x128xf32>
      %174 = vector.broadcast %173 : vector<1x128xf32> to vector<256x128xf32>
      %175 = arith.mulf %172, %174 : vector<256x128xf32>
      %c0_62 = arith.constant 0 : index
      %c0_63 = arith.constant 0 : index
      %176 = vector.load %arg7[%c0_62, %c0_63] : memref<1x128xf32, #tpu.memory_space<vmem>>, vector<1x128xf32>
      %177 = vector.broadcast %176 : vector<1x128xf32> to vector<256x128xf32>
      %178 = arith.addf %175, %177 : vector<256x128xf32>
      %179 = arith.truncf %178 : vector<256x128xf32> to vector<256x128xbf16>
      %c0_64 = arith.constant 0 : index
      %c0_65 = arith.constant 0 : index
      %180 = vector.load %arg8[%c0_64, %c0_65] : memref<128x256xbf16, #tpu.memory_space<vmem>>, vector<128x256xbf16>
      %cst_66 = arith.constant dense<0.000000e+00> : vector<256x256xf32>
      %181 = tpu.matmul %179, %180, %cst_66 {dimension_numbers = #tpu.dot_dimension_numbers<[1], [0], [0], [1], [0, 0, 1, 1], [], []>} : vector<256x128xbf16>, vector<128x256xbf16>, vector<256x256xf32> -> vector<256x256xf32>
      %c0_67 = arith.constant 0 : index
      %c0_68 = arith.constant 0 : index
      %182 = vector.load %arg9[%c0_67, %c0_68] : memref<1x256xf32, #tpu.memory_space<vmem>>, vector<1x256xf32>
      %183 = vector.broadcast %182 : vector<1x256xf32> to vector<256x256xf32>
      %184 = arith.addf %181, %183 : vector<256x256xf32>
      %cst_69 = arith.constant 0.000000e+00 : f32
      %185 = vector.broadcast %cst_69 : f32 to vector<256x256xf32>
      %186 = arith.maximumf %184, %185 : vector<256x256xf32>
      %187 = arith.truncf %186 : vector<256x256xf32> to vector<256x256xbf16>
      %c0_70 = arith.constant 0 : index
      %c0_71 = arith.constant 0 : index
      %188 = vector.load %arg10[%c0_70, %c0_71] : memref<256x128xbf16, #tpu.memory_space<vmem>>, vector<256x128xbf16>
      %cst_72 = arith.constant dense<0.000000e+00> : vector<256x128xf32>
      %189 = tpu.matmul %187, %188, %cst_72 {dimension_numbers = #tpu.dot_dimension_numbers<[1], [0], [0], [1], [0, 0, 1, 1], [], []>} : vector<256x256xbf16>, vector<256x128xbf16>, vector<256x128xf32> -> vector<256x128xf32>
      %c0_73 = arith.constant 0 : index
      %c0_74 = arith.constant 0 : index
      %190 = vector.load %arg11[%c0_73, %c0_74] : memref<1x128xf32, #tpu.memory_space<vmem>>, vector<1x128xf32>
      %191 = vector.broadcast %190 : vector<1x128xf32> to vector<256x128xf32>
      %192 = arith.addf %189, %191 : vector<256x128xf32>
      %193 = arith.addf %178, %192 : vector<256x128xf32>
      %cst_75 = arith.constant dense<0.000000e+00> : vector<128xf32>
      %194 = vector.multi_reduction <add>, %193, %cst_75 [0] : vector<256x128xf32> to vector<128xf32>
      %195 = vector.shape_cast %194 : vector<128xf32> to vector<1x128xf32>
      %cst_76 = arith.constant 2.560000e+02 : f32
      %196 = vector.broadcast %cst_76 : f32 to vector<1x128xf32>
      %197 = arith.divf %195, %196 : vector<1x128xf32>
      %198 = vector.broadcast %197 : vector<1x128xf32> to vector<256x128xf32>
      %199 = arith.subf %193, %198 : vector<256x128xf32>
      %200 = arith.mulf %199, %199 : vector<256x128xf32>
      %cst_77 = arith.constant dense<0.000000e+00> : vector<128xf32>
      %201 = vector.multi_reduction <add>, %200, %cst_77 [0] : vector<256x128xf32> to vector<128xf32>
      %202 = vector.shape_cast %201 : vector<128xf32> to vector<1x128xf32>
      %cst_78 = arith.constant 2.560000e+02 : f32
      %203 = vector.broadcast %cst_78 : f32 to vector<1x128xf32>
      %204 = arith.divf %202, %203 : vector<1x128xf32>
      %205 = vector.broadcast %197 : vector<1x128xf32> to vector<256x128xf32>
      %206 = arith.subf %193, %205 : vector<256x128xf32>
      %cst_79 = arith.constant 9.99999974E-6 : f32
      %207 = vector.broadcast %cst_79 : f32 to vector<1x128xf32>
      %208 = arith.addf %204, %207 : vector<1x128xf32>
      %209 = math.rsqrt %208 : vector<1x128xf32>
      %210 = vector.broadcast %209 : vector<1x128xf32> to vector<256x128xf32>
      %211 = arith.mulf %206, %210 : vector<256x128xf32>
      %c0_80 = arith.constant 0 : index
      %c0_81 = arith.constant 0 : index
      %212 = vector.load %arg12[%c0_80, %c0_81] : memref<1x128xf32, #tpu.memory_space<vmem>>, vector<1x128xf32>
      %213 = vector.broadcast %212 : vector<1x128xf32> to vector<256x128xf32>
      %214 = arith.mulf %211, %213 : vector<256x128xf32>
      %c0_82 = arith.constant 0 : index
      %c0_83 = arith.constant 0 : index
      %215 = vector.load %arg13[%c0_82, %c0_83] : memref<1x128xf32, #tpu.memory_space<vmem>>, vector<1x128xf32>
      %216 = vector.broadcast %215 : vector<1x128xf32> to vector<256x128xf32>
      %217 = arith.addf %214, %216 : vector<256x128xf32>
      %c0_84 = arith.constant 0 : index
      %c0_85 = arith.constant 0 : index
      %218 = vector.load %arg14[%c0_84, %c0_85] : memref<256x128xf32, #tpu.memory_space<vmem>>, vector<256x128xf32>
      tpu.vector_store %arg14[%c0_84, %c0_85], %217 {strides = array<i32>} : memref<256x128xf32, #tpu.memory_space<vmem>>, vector<256x128xf32>,
    } else {
    }
    return
  }
  func.func @transform_0(%arg0: i32) -> (i32, i32) {
    %c0_i32 = arith.constant 0 : i32
    %c0_i32_0 = arith.constant 0 : i32
    %c0_i32_1 = arith.constant 0 : i32
    return %c0_i32, %c0_i32_0 : i32, i32
  }
  func.func @transform_1(%arg0: i32) -> (i32, i32) {
    %c0_i32 = arith.constant 0 : i32
    %c0_i32_0 = arith.constant 0 : i32
    return %arg0, %c0_i32 : i32, i32
  }
  func.func @transform_2(%arg0: i32) -> (i32, i32) {
    %c0_i32 = arith.constant 0 : i32
    %c0_i32_0 = arith.constant 0 : i32
    %c0_i32_1 = arith.constant 0 : i32
    return %c0_i32, %c0_i32_0 : i32, i32
  }
  func.func @transform_3(%arg0: i32) -> (i32, i32) {
    %c0_i32 = arith.constant 0 : i32
    %c0_i32_0 = arith.constant 0 : i32
    %c0_i32_1 = arith.constant 0 : i32
    return %c0_i32, %c0_i32_0 : i32, i32
  }
  func.func @transform_4(%arg0: i32) -> (i32, i32) {
    %c0_i32 = arith.constant 0 : i32
    %c0_i32_0 = arith.constant 0 : i32
    %c0_i32_1 = arith.constant 0 : i32
    return %c0_i32, %c0_i32_0 : i32, i32
  }
  func.func @transform_5(%arg0: i32) -> (i32, i32) {
    %c0_i32 = arith.constant 0 : i32
    %c0_i32_0 = arith.constant 0 : i32
    %c0_i32_1 = arith.constant 0 : i32
    return %c0_i32, %c0_i32_0 : i32, i32
  }
  func.func @transform_6(%arg0: i32) -> (i32, i32) {
    %c0_i32 = arith.constant 0 : i32
    %c0_i32_0 = arith.constant 0 : i32
    %c0_i32_1 = arith.constant 0 : i32
    return %c0_i32, %c0_i32_0 : i32, i32
  }
  func.func @transform_7(%arg0: i32) -> (i32, i32) {
    %c0_i32 = arith.constant 0 : i32
    %c0_i32_0 = arith.constant 0 : i32
    %c0_i32_1 = arith.constant 0 : i32
    return %c0_i32, %c0_i32_0 : i32, i32
  }
  func.func @transform_8(%arg0: i32) -> (i32, i32) {
    %c0_i32 = arith.constant 0 : i32
    %c0_i32_0 = arith.constant 0 : i32
    %c0_i32_1 = arith.constant 0 : i32
    return %c0_i32, %c0_i32_0 : i32, i32
  }
  func.func @transform_9(%arg0: i32) -> (i32, i32) {
    %c0_i32 = arith.constant 0 : i32
    %c0_i32_0 = arith.constant 0 : i32
    %c0_i32_1 = arith.constant 0 : i32
    return %c0_i32, %c0_i32_0 : i32, i32
  }
  func.func @transform_10(%arg0: i32) -> (i32, i32) {
    %c0_i32 = arith.constant 0 : i32
    %c0_i32_0 = arith.constant 0 : i32
    %c0_i32_1 = arith.constant 0 : i32
    return %c0_i32, %c0_i32_0 : i32, i32
  }
  func.func @transform_11(%arg0: i32) -> (i32, i32) {
    %c0_i32 = arith.constant 0 : i32
    %c0_i32_0 = arith.constant 0 : i32
    %c0_i32_1 = arith.constant 0 : i32
    return %c0_i32, %c0_i32_0 : i32, i32
  }
  func.func @transform_12(%arg0: i32) -> (i32, i32) {
    %c0_i32 = arith.constant 0 : i32
    %c0_i32_0 = arith.constant 0 : i32
    %c0_i32_1 = arith.constant 0 : i32
    return %c0_i32, %c0_i32_0 : i32, i32
  }
  func.func @transform_13(%arg0: i32) -> (i32, i32) {
    %c0_i32 = arith.constant 0 : i32
    %c0_i32_0 = arith.constant 0 : i32
    %c0_i32_1 = arith.constant 0 : i32
    return %c0_i32, %c0_i32_0 : i32, i32
  }
}

</mosaic_0001>

<bundles_post_ra>
// kernel: tpu_custom_call.1
= control target key start
LH: loop header
LB: loop body
LE: loop exit
PB: predicated region body
PF: predicated region fallthrough
CT: control target
= control target key end

     0   :  { %s11201_s0 = inlined_call_operand.hbm [shape: f32[256,128], index: 0, kind: input, shape index: {}]   ;;  %s11202_s1 = inlined_call_operand.hbm [shape: bf16[256,256], index: 1, kind: input, shape index: {}]   ;;  %s11203_s2 = inlined_call_operand.hbm [shape: bf16[128,384], index: 2, kind: input, shape index: {}]   ;;  %s11204_s3 = inlined_call_operand.hbm [shape: bf16[128,128], index: 3, kind: input, shape index: {}]   ;;  %s11205_s4 = inlined_call_operand.vmem [shape: f32[1,128], index: 4, kind: input, shape index: {}]   ;;  %s11206_s5 = inlined_call_operand.vmem [shape: f32[1,128], index: 5, kind: input, shape index: {}]   ;;  %s11207_s6 = inlined_call_operand.vmem [shape: f32[1,128], index: 6, kind: input, shape index: {}]   ;;  %s11208_s7 = inlined_call_operand.hbm [shape: bf16[128,256], index: 7, kind: input, shape index: {}]   ;;  %s11209_s8 = inlined_call_operand.vmem [shape: f32[1,256], index: 8, kind: input, shape index: {}]   ;;  %s11210_s9 = inlined_call_operand.hbm [shape: bf16[256,128], index: 9, kind: input, shape index: {}]   ;;  %s11211_s10 = inlined_call_operand.vmem [shape: f32[1,128], index: 10, kind: input, shape index: {}]   ;;  %s11212_s11 = inlined_call_operand.vmem [shape: f32[1,128], index: 11, kind: input, shape index: {}]   ;;  %s11213_s12 = inlined_call_operand.vmem [shape: f32[1,128], index: 12, kind: input, shape index: {}]   ;;  %s11214_s13 = inlined_call_operand.hbm [shape: f32[256,128], index: 13, kind: output, shape index: {}]  }
   0x1   :  { %11308 = sst [smem:[#allocation91_spill]] %s11201_s0 }
   0x2   :  { %11309 = sst [smem:[#allocation92_spill]] %s11203_s2 }
   0x3   :  { %11310 = sst [smem:[#allocation93_spill]] %s11204_s3 }
   0x4   :  { %18 = vsyncpa [#allocation7], 0 }
   0x5   :  { %19 = vsyncpa [#allocation10], 0 }
   0x6   :  { %21 = vsyncpa [#allocation10 + $0x1], 0 }
   0x7   :  { %22 = vsyncpa [#allocation13], 0 }
   0x8   :  { %23 = vsyncpa [#allocation16], 0 }
   0x9   :  { %24 = vsyncpa [#allocation8], 0  ;;  %s8509_s25 = smov 0   ;;  %s8511_s26 = smov 0  }
   0xa   :  { %s8513_s27 = smov 0   ;;  %s8515_s28 = smov 0  }
   0xb LB: > { %s8528_s29 = sadd.s32 4294967295, %s8418_s28   ;;  %p71_p0 = scmp.ne.s32.totalorder %s8410_s26, %s8406_s25  ;;  %s8418_s28 = sphi %s8515_s28, %s11492_s28   ;;  %s8414_s27 = sphi %s8513_s27, %s11491_s27   ;;  %s8410_s26 = sphi %s8511_s26, %s11490_s26   ;;  %s8406_s25 = sphi %s8509_s25, %s11489_s25  }
   0xc   : > { %p11215_p1 = scmp.eq.s32.totalorder %s8528_s29, 0  ;;  %p6300_p2 = scmp.ge.s32.totalorder %s8418_s28, 1 }
   0xd   : > { %p334_p3 = scmp.lt.s32.totalorder %s8418_s28, 3  ;;  %s8420_s15 = smov [#allocation11]  }
   0xe   : > { %p8537_p5 = por %p11215_p1, %p71_p0  ;;  %s359_s16 = sshll.u32 %s8420_s15, 4  ;;  %s360_s16 = int_to_ptr.vmem [resolvable:$true] %s359_s16 }
   0xf   : > { %p8541_p6 = pnand %p6300_p2, %p334_p3  ;;  %s8421_s18 = smov [#allocation12]  }
  0x10   : > { %s11311_s30 = scalar_select %p8537_p5, 1, 0 }
  0x11   : > { %s11312_s14 = scalar_select %p8541_p6, 1, 0 }
  0x12   : > { %p7542_p7 = pneg %p8541_p6  ;;  %s372_s19 = sshll.u32 %s8421_s18, 4  ;;  %s373_s19 = int_to_ptr.vmem [resolvable:$true] %s372_s19 }
  0x13   : > { %s8193_s21 = scalar_lea.vmem %s360_s16, 3072  ;;  %p8201_p13 = scmp.lt.s32.totalorder %s360_s16, %s360_s16 }
  0x14   : > { %p8549_p8 = pnand %p7542_p7, %p11215_p1  ;;  %p8194_p10 = scmp.ne.s32.totalorder %s360_s16, %s8193_s21 }
  0x15   : > { %p8202_p0 = scmp.lt.s32.totalorder %s8193_s21, %s8193_s21 }
  0x16   : > { %p8555_p9 = pneg %p8549_p8 }
  0x17   : > { %p8203_p2 = por %p8202_p0, %p8201_p13 }
  0x18   : > { %p8196_p11 = pnand %p8194_p10, %p8555_p9 }
  0x1a   : > { %p8197_p12 = pneg %p8196_p11 }
  0x1c   : > { %p8204_p3 = pnand %p8203_p2, %p8197_p12 }
  0x1e   : > { %8207 = shalt.err (!%p8204_p3)
}
  0x1f   : > { %s8422_s22 = smov 192   ;;  %s8423_s23 = smov 12  }
  0x20   : > { %s11315_s2 = sld [smem:[#allocation92_spill]]  ;;  %s8219_s15 = scalar_lea.vmem %s373_s19, 1024 }
  0x21   : > { %p8220_p7 = scmp.ne.s32.totalorder %s373_s19, %s8219_s15  ;;  %p8227_p11 = scmp.lt.s32.totalorder %s373_s19, %s373_s19 }
  0x22   : > { %p8228_p1 = scmp.lt.s32.totalorder %s8219_s15, %s8219_s15 }
  0x23   : > { %p8222_p4 = pnand %p8220_p7, %p8555_p9 }
  0x24   : > { %p8229_p5 = por %p8228_p1, %p8227_p11 }
  0x25   : > { %p8223_p10 = pneg %p8222_p4 }
  0x26   : > { %7548 = dma.hbm_to_vmem [thread:$0]  (!%p8549_p8), %s11315_s2, 3072, %s360_s16, [#allocation10], %s8422_s22, %s8422_s22, %s8423_s23  }
  0x27   : > { %p8230_p13 = pnand %p8229_p5, %p8223_p10 }
  0x29   : > { %8233 = shalt.err (!%p8230_p13)
}
  0x2a   : > { %s11217_s18 = smov 64   ;;  %s11218_s21 = smov 4  }
  0x2b   : > { %s11316_s3 = sld [smem:[#allocation93_spill]]  ;;  %s8426_s22 = smov [#allocation6]  }
  0x2c   : > { %s346_s23 = sshll.u32 %s8426_s22, 4  ;;  %s347_s23 = int_to_ptr.vmem [resolvable:$true] %s346_s23 }
  0x2d   : > { %s8245_s25 = scalar_lea.vmem %s347_s23, 4096  ;;  %p8253_p12 = scmp.lt.s32.totalorder %s347_s23, %s347_s23 }
  0x2e   : > { %p8246_p4 = scmp.ne.s32.totalorder %s347_s23, %s8245_s25  ;;  %p8254_p0 = scmp.lt.s32.totalorder %s8245_s25, %s8245_s25 }
  0x30   : > { %p8248_p1 = pnand %p8246_p4, %p8555_p9  ;;  %p8255_p2 = por %p8254_p0, %p8253_p12 }
  0x31   : > { %7551 = dma.hbm_to_vmem [thread:$0]  (!%p8549_p8), %s11316_s3, 1024, %s373_s19, [#allocation13], %s11217_s18, %s11217_s18, %s11218_s21  }
  0x32   : > { %p8249_p5 = pneg %p8248_p1 }
  0x34   : > { %p8256_p3 = pnand %p8255_p2, %p8249_p5 }
  0x36   : > { %8259 = shalt.err (!%p8256_p3)
}
  0x37   : > { %s11219_s15 = smov 128   ;;  %s11220_s2 = smov 8  }
  0x38   : > { %s11317_s0 = sld [smem:[#allocation91_spill]]  ;;  %s8429_s16 = smov [#allocation14]  }
  0x39   : > { %s394_s22 = sshll.u32 %s8429_s16, 4  ;;  %s8430_s18 = smov [#allocation15]   ;;  %s395_s22 = int_to_ptr.vmem [resolvable:$true] %s394_s22 }
  0x3a   : > { %s410_s25 = sshll.u32 %s8430_s18, 4  ;;  %s8271_s21 = scalar_lea.vmem %s395_s22, 2048  ;;  %s411_s25 = int_to_ptr.vmem [resolvable:$true] %s410_s25 }
  0x3b   : > { %p8272_p7 = scmp.ne.s32.totalorder %s395_s22, %s8271_s21  ;;  %p8279_p13 = scmp.lt.s32.totalorder %s395_s22, %s395_s22 }
  0x3c   : > { %p8280_p4 = scmp.lt.s32.totalorder %s8271_s21, %s8271_s21 }
  0x3d   : > { %p8274_p10 = pnand %p8272_p7, %p8555_p9 }
  0x3e   : > { %7545 = dma.hbm_to_vmem [thread:$0]  (!%p8549_p8), %s11317_s0, 4096, %s347_s23, [#allocation7], %s11219_s15, %s11219_s15, %s11220_s2  }
  0x3f   : > { %p8275_p11 = pneg %p8274_p10  ;;  %p8281_p1 = por %p8280_p4, %p8279_p13 }
  0x41   : > { %p8282_p5 = pnand %p8281_p1, %p8275_p11 }
  0x43   : > { %8285 = shalt.err (!%p8282_p5)
}
  0x44   : > { %7554 = dma.hbm_to_vmem [thread:$0]  (!%p8549_p8), %s11208_s7, 2048, %s395_s22, [#allocation13], %s11219_s15, %s11219_s15, %s11220_s2  }
  0x45   : > { %s8297_s18 = scalar_lea.vmem %s411_s25, 2048  ;;  %p8305_p3 = scmp.lt.s32.totalorder %s411_s25, %s411_s25 }
  0x46   : > { %p8298_p12 = scmp.ne.s32.totalorder %s411_s25, %s8297_s18  ;;  %p8306_p7 = scmp.lt.s32.totalorder %s8297_s18, %s8297_s18 }
  0x48   : > { %p8300_p0 = pnand %p8298_p12, %p8555_p9  ;;  %p8307_p10 = por %p8306_p7, %p8305_p3 }
  0x4a   : > { %p8301_p2 = pneg %p8300_p0 }
  0x4c   : > { %p8308_p11 = pnand %p8307_p10, %p8301_p2 }
  0x4e   : > { %8311 = shalt.err (!%p8308_p11)
}
  0x4f   : > { %s11318_s21 = smov 4   ;;  %s11319_s24 = smov 64  }
  0x50   : > { %7557 = dma.hbm_to_vmem [thread:$0]  (!%p8549_p8), %s11210_s9, 2048, %s411_s25, [#allocation16], %s11319_s24, %s11319_s24, %s11318_s21  }
  0x51   : > { %s8607_s20 = sadd.s32 1, %s8418_s28   ;;  %s58_s22 = sadd.s32 1, %s8414_s27 }
  0x52   : > { %s55_s17 = ssub.s32 %s8418_s28, %s8607_s20  ;;  %p65_p13 = scmp.ne.s32.totalorder %s8414_s27, %s8410_s26 }
  0x53   : > { %p56_p9 = scmp.eq.s32.totalorder %s55_s17, 0  ;;  %p66_p4 = scmp.eq.s32.totalorder %s8418_s28, 0 }
  0x54   : > { %p7567_p1 = scmp.lt.s32.totalorder %s8418_s28, 2  ;;  %s433_s18 = sand.u32 1, %s8418_s28  }
  0x55   : > { %s8617_s19 = scalar_select %p56_p9, %s8414_s27, %s58_s22  }
  0x56   : > { %p67_p5 = por %p66_p4, %p65_p13  ;;  %s435_s16 = sand.u32 1, %s8414_s27  }
  0x57   : > { %s6307_s23 = sshll.u32 %s435_s16, 7  ;;  %s6721_s15 = sshll.u32 %s8418_s28, 11 }
  0x58   : > { %s8625_s25 = scalar_lea.hbm %s11202_s1, %s6721_s15  ;;  %s437_s21 = scalar_lea.vmem [#allocation9], %s6307_s23 }
  0x59   : > { %s445_s24 = sshll.u32 %s437_s21, 4  ;;  %p8627_p8 = pnand %p7567_p1, %p67_p5  ;;  %s8631_s24 = int_to_ptr.vmem [resolvable:$true] %s445_s24 }
  0x5a   : > { %s8633_s22 = scalar_lea.sflag [#allocation10], %s433_s18  ;;  %s8312_s28 = scalar_lea.hbm %s8625_s25, 2048 }
  0x5b   : > { %p8313_p12 = scmp.ne.s32.totalorder %s8625_s25, %s8312_s28  ;;  %p8314_p0 = pneg %p8627_p8 }
  0x5c   : > { %s8317_s15 = scalar_lea.hbm %s11202_s1, 4096  ;;  %p8318_p7 = scmp.lt.s32.totalorder %s8625_s25, %s11202_s1 }
  0x5d   : > { %p8315_p2 = pnand %p8314_p0, %p8313_p12  ;;  %p8319_p10 = scmp.lt.s32.totalorder %s8317_s15, %s8312_s28 }
  0x5f   : > { %p8316_p3 = pneg %p8315_p2  ;;  %p8320_p11 = por %p8319_p10, %p8318_p7 }
  0x61   : > { %p8321_p9 = pnand %p8320_p11, %p8316_p3 }
  0x63   : > { %8324 = shalt.err (!%p8321_p9)
}
  0x64   : > { %s8325_s18 = scalar_lea.vmem %s8631_s24, 2048  ;;  %s8431_s21 = smov [#allocation9]  }
  0x65   : > { %p8326_p13 = scmp.ne.s32.totalorder %s8631_s24, %s8325_s18  ;;  %s8330_s3 = sshll.u32 %s8431_s21, 4  ;;  %s8331_s3 = int_to_ptr.vmem [resolvable:$false] %s8330_s3 }
  0x66   : > { %s8332_s0 = scalar_lea.vmem %s8331_s3, 4096  ;;  %p8333_p5 = scmp.lt.s32.totalorder %s8631_s24, %s8331_s3 }
  0x67   : > { %p8328_p4 = pnand %p8326_p13, %p8314_p0  ;;  %p8334_p12 = scmp.lt.s32.totalorder %s8332_s0, %s8325_s18 }
  0x69   : > { %p8329_p1 = pneg %p8328_p4  ;;  %p8335_p2 = por %p8334_p12, %p8333_p5 }
  0x6b   : > { %p8336_p6 = pnand %p8335_p2, %p8329_p1 }
  0x6d   : > { %8339 = shalt.err (!%p8336_p6)
}
  0x6e   : > { %s11321_s28 = smov 8   ;;  %s11322_s2 = smov 128  }
  0x6f   : > { %7561 = dma.hbm_to_vmem [thread:$0]  (!%p8627_p8), %s8625_s25, 2048, %s8631_s24, %s8633_s22, %s11322_s2, %s11322_s2, %s11321_s28  }
  0x70   : > { %p11323_p0 = scmp.ne.s32.totalorder %s11312_s14, 0 }
  0x72   : > { %457 = sbr.rel (%p11323_p0) target bundleno = 2618 (0xa3a), region = 72 }
  0x77   : > { %p11324_p3 = scmp.eq.s32.totalorder %s8528_s29, 0 }
  0x79   : > { %8381 = dma.done.wait (%p11324_p3), [#allocation7], 4096   ;;  %p11325_p7 = pmov %p11324_p3 }
  0x7a   : > { %s463_s3 = sand.u32 1, %s8528_s29   ;;  %s465_s17 = sand.u32 1, %s8410_s26  }
  0x7b   : > { %8383 = vsyncadd (%p11325_p7), [#allocation7], 4294963200  ;;  %s6313_s15 = sshll.u32 %s465_s17, 7  ;;  %s464_s16 = scalar_lea.sflag [#allocation10], %s463_s3 }
  0x7c   : > { %s8665_s23 = scalar_lea.vmem [#allocation9], %s6313_s15  ;;  %p11326_p6 = scmp.ne.s32.totalorder %s11311_s30, 0 }
  0x7e   : > { %8385 = dma.done.wait (%p11326_p6), %s464_s16, 2048  }
  0x7f   : > { %8387 = vsyncadd (%p11326_p6), %s464_s16, 4294965248  ;;  %p11327_p8 = pmov %p11324_p3 }
  0x80   : > { %p11328_p10 = pmov %p11324_p3 }
  0x81   : > { %8389 = dma.done.wait (%p11327_p8), [#allocation10], 3072  }
  0x82   : > { %8391 = vsyncadd (%p11328_p10), [#allocation10], 4294964224  ;;  %p11329_p11 = pmov %p11324_p3 }
  0x83   : > { %p11330_p9 = pmov %p11324_p3 }
  0x84   : > { %8393 = dma.done.wait (%p11329_p11), [#allocation13], 3072  }
  0x85   : > { %8395 = vsyncadd (%p11330_p9), [#allocation13], 4294964224  ;;  %p11331_p13 = pmov %p11324_p3 }
  0x86   : > { %p11332_p4 = pmov %p11324_p3 }
  0x87   : > { %8397 = dma.done.wait (%p11331_p13), [#allocation16], 2048  }
  0x88   : > { %8399 = vsyncadd (%p11332_p4), [#allocation16], 4294965248  ;;  %p11333_p1 = scmp.ne.s32.totalorder %s8528_s29, 0 }
  0x8a   : > { %526 = sbr.rel (%p11333_p1) target bundleno = 628 (0x274), region = 100 }
  0x8f   : > { %v7737_v0 = vld [vmem:[#allocation11 + $0xac] ss:$12 sps:$4 sm:$0xff]   ;;  %v7739_v1 = vld [vmem:[#allocation11 + $0xa8] ss:$12 sps:$4 sm:$0xff]   ;;  %v8432_v2 = vmov 0   ;;  %v527_v17 = vld [vmem:[#allocation6] sm:$0xff] }
  0x90   : > { %767 = vmatprep.mubr.bf16.mxu0 %v8432_v2  ;;  %887 = vmatprep.mubr.bf16.mxu1 %v8432_v2  ;;  %v7740_v3 = vld [vmem:[#allocation11 + $0x94] ss:$12 sps:$4 sm:$0xff]   ;;  %v7742_v4 = vld [vmem:[#allocation11 + $0x90] ss:$12 sps:$4 sm:$0xff]   ;;  %v7745_v6 = vld [vmem:[#allocation11 + $0x78] ss:$12 sps:$4 sm:$0xff]  }
  0x91   : > { %735 = vmatprep.subr.bf16.mxu0 %v7737_v0  ;;  %7484 = vmatprep.subr.bf16.mxu1 %v7737_v0  ;;  %v7743_v5 = vld [vmem:[#allocation11 + $0x7c] ss:$12 sps:$4 sm:$0xff]   ;;  %v7746_v7 = vld [vmem:[#allocation11 + $0x64] ss:$12 sps:$4 sm:$0xff]   ;;  %v7748_v8 = vld [vmem:[#allocation11 + $0x60] ss:$12 sps:$4 sm:$0xff]  }
  0x92   : > { %736 = vmatpush1.bf16.msra.mxu0 %v7739_v1  ;;  %7492 = vmatpush1.bf16.msra.mxu1 %v7739_v1  ;;  %v7749_v9 = vld [vmem:[#allocation11 + $0x4c] ss:$12 sps:$4 sm:$0xff]   ;;  %v7751_v10 = vld [vmem:[#allocation11 + $0x48] ss:$12 sps:$4 sm:$0xff]   ;;  %v7754_v12 = vld [vmem:[#allocation11 + $0x30] ss:$12 sps:$4 sm:$0xff]  }
  0x93   : > { %737 = vmatprep.subr.bf16.mxu0 %v7740_v3  ;;  %7485 = vmatprep.subr.bf16.mxu1 %v7740_v3  ;;  %v7752_v11 = vld [vmem:[#allocation11 + $0x34] ss:$12 sps:$4 sm:$0xff]   ;;  %v7755_v13 = vld [vmem:[#allocation11 + $0x1c] ss:$12 sps:$4 sm:$0xff]   ;;  %v7757_v14 = vld [vmem:[#allocation11 + $0x18] ss:$12 sps:$4 sm:$0xff]  }
  0x94   : > { %v7758_v15 = vld [vmem:[#allocation11 + $0x4] ss:$12 sps:$4 sm:$0xff]   ;;  %v7760_v16 = vld [vmem:[#allocation11] ss:$12 sps:$4 sm:$0xff]   ;;  %v530_v26 = vld [vmem:[#allocation6 + $0x18] sm:$0xff] }
  0x95   : > { %v528_v18 = vld [vmem:[#allocation6 + $0x8] sm:$0xff]  ;;  %v551_v19 = vld [vmem:[#allocation6 + $0xc0] sm:$0xff]  ;;  %v7761_v21 = vld [vmem:[#allocation11 + $0xb0] ss:$12 sps:$4 sm:$0xff]  }
  0x96   : > { %738 = vmatpush1.bf16.msra.mxu0 %v7742_v4  ;;  %7493 = vmatpush1.bf16.msra.mxu1 %v7742_v4  ;;  %v552_v20 = vld [vmem:[#allocation6 + $0xc8] sm:$0xff]  ;;  %v559_v22 = vpack.c.bf16 %v528_v18, %v527_v17  ;;  %v7762_v24 = vld [vmem:[#allocation11 + $0x98] ss:$12 sps:$4 sm:$0xff]   ;;  %v529_v25 = vld [vmem:[#allocation6 + $0x10] sm:$0xff] }
  0x97   : > { %739 = vmatprep.subr.bf16.mxu0 %v7743_v5  ;;  %7486 = vmatprep.subr.bf16.mxu1 %v7743_v5  ;;  %v8687_v23 = vpack.c.bf16 %v552_v20, %v551_v19  ;;  %v553_v27 = vld [vmem:[#allocation6 + $0xd0] sm:$0xff]  ;;  %v554_v28 = vld [vmem:[#allocation6 + $0xd8] sm:$0xff]  ;;  %v7763_v29 = vld [vmem:[#allocation11 + $0x80] ss:$12 sps:$4 sm:$0xff]   ;;  %v560_v30 = vpack.c.bf16 %v530_v26, %v529_v25 }
  0x98   : > { %v8692_v31 = vpack.c.bf16 %v554_v28, %v553_v27  ;;  %v7764_v32 = vld [vmem:[#allocation11 + $0x68] ss:$12 sps:$4 sm:$0xff]   ;;  %v531_v33 = vld [vmem:[#allocation6 + $0x20] sm:$0xff]  ;;  %v7765_v37 = vld [vmem:[#allocation11 + $0x50] ss:$12 sps:$4 sm:$0xff]  }
  0x99   : > { %v532_v34 = vld [vmem:[#allocation6 + $0x28] sm:$0xff]  ;;  %v555_v35 = vld [vmem:[#allocation6 + $0xe0] sm:$0xff]  ;;  %v533_v41 = vld [vmem:[#allocation6 + $0x30] sm:$0xff] }
  0x9a   : > { %740 = vmatpush1.bf16.msra.mxu0 %v7745_v6  ;;  %7494 = vmatpush1.bf16.msra.mxu1 %v7745_v6  ;;  %v556_v36 = vld [vmem:[#allocation6 + $0xe8] sm:$0xff]  ;;  %v561_v38 = vpack.c.bf16 %v532_v34, %v531_v33  ;;  %v7766_v40 = vld [vmem:[#allocation11 + $0x38] ss:$12 sps:$4 sm:$0xff]   ;;  %v557_v43 = vld [vmem:[#allocation6 + $0xf0] sm:$0xff] }
  0x9b   : > { %741 = vmatprep.subr.bf16.mxu0 %v7746_v7  ;;  %7487 = vmatprep.subr.bf16.mxu1 %v7746_v7  ;;  %v8697_v39 = vpack.c.bf16 %v556_v36, %v555_v35  ;;  %v534_v42 = vld [vmem:[#allocation6 + $0x38] sm:$0xff]  ;;  %v7767_v45 = vld [vmem:[#allocation11 + $0x20] ss:$12 sps:$4 sm:$0xff]   ;;  %v7768_v48 = vld [vmem:[#allocation11 + $0x8] ss:$12 sps:$4 sm:$0xff]  }
  0x9c   : > { %v558_v44 = vld [vmem:[#allocation6 + $0xf8] sm:$0xff]  ;;  %v562_v46 = vpack.c.bf16 %v534_v42, %v533_v41  ;;  %v535_v49 = vld [vmem:[#allocation6 + $0x40] sm:$0xff]  ;;  %v536_v50 = vld [vmem:[#allocation6 + $0x48] sm:$0xff] }
  0x9d   : > { %v8702_v47 = vpack.c.bf16 %v558_v44, %v557_v43  ;;  %v563_v51 = vpack.c.bf16 %v536_v50, %v535_v49  ;;  %v537_v52 = vld [vmem:[#allocation6 + $0x50] sm:$0xff]  ;;  %v538_v53 = vld [vmem:[#allocation6 + $0x58] sm:$0xff]  ;;  %v539_v55 = vld [vmem:[#allocation6 + $0x60] sm:$0xff] }
  0x9e   : > { %742 = vmatpush1.bf16.msra.mxu0 %v7748_v8  ;;  %7495 = vmatpush1.bf16.msra.mxu1 %v7748_v8  ;;  %v564_v54 = vpack.c.bf16 %v538_v53, %v537_v52  ;;  %v540_v56 = vld [vmem:[#allocation6 + $0x68] sm:$0xff]  ;;  %v541_v58 = vld [vmem:[#allocation6 + $0x70] sm:$0xff]  ;;  %v542_v59 = vld [vmem:[#allocation6 + $0x78] sm:$0xff] }
  0x9f   : > { %743 = vmatprep.subr.bf16.mxu0 %v7749_v9  ;;  %7488 = vmatprep.subr.bf16.mxu1 %v7749_v9  ;;  %v565_v57 = vpack.c.bf16 %v540_v56, %v539_v55  ;;  %v566_v60 = vpack.c.bf16 %v542_v59, %v541_v58  ;;  %v543_v61 = vld [vmem:[#allocation6 + $0x80] sm:$0xff]  ;;  %v544_v62 = vld [vmem:[#allocation6 + $0x88] sm:$0xff]  ;;  %v545_v0 = vld [vmem:[#allocation6 + $0x90] sm:$0xff] }
  0xa0   : > { %v567_v63 = vpack.c.bf16 %v544_v62, %v543_v61  ;;  %v546_v1 = vld [vmem:[#allocation6 + $0x98] sm:$0xff]  ;;  %v547_v3 = vld [vmem:[#allocation6 + $0xa0] sm:$0xff]  ;;  %v548_v4 = vld [vmem:[#allocation6 + $0xa8] sm:$0xff] }
  0xa1   : > { %v568_v5 = vpack.c.bf16 %v546_v1, %v545_v0  ;;  %v569_v6 = vpack.c.bf16 %v548_v4, %v547_v3  ;;  %v549_v7 = vld [vmem:[#allocation6 + $0xb0] sm:$0xff]  ;;  %v550_v8 = vld [vmem:[#allocation6 + $0xb8] sm:$0xff] }
  0xa2   : > { %744 = vmatpush1.bf16.msra.mxu0 %v7751_v10  ;;  %7496 = vmatpush1.bf16.msra.mxu1 %v7751_v10  ;;  %v570_v9 = vpack.c.bf16 %v550_v8, %v549_v7 }
  0xa3   : > { %745 = vmatprep.subr.bf16.mxu0 %v7752_v11  ;;  %7489 = vmatprep.subr.bf16.mxu1 %v7752_v11 }
  0xa6   : > { %746 = vmatpush1.bf16.msra.mxu0 %v7754_v12  ;;  %7497 = vmatpush1.bf16.msra.mxu1 %v7754_v12 }
  0xa7   : > { %747 = vmatprep.subr.bf16.mxu0 %v7755_v13  ;;  %7490 = vmatprep.subr.bf16.mxu1 %v7755_v13 }
  0xaa   : > { %748 = vmatpush1.bf16.msra.mxu0 %v7757_v14  ;;  %7498 = vmatpush1.bf16.msra.mxu1 %v7757_v14 }
  0xab   : > { %749 = vmatprep.subr.bf16.mxu0 %v7758_v15  ;;  %7491 = vmatprep.subr.bf16.mxu1 %v7758_v15 }
  0xae   : > { %750 = vmatpush1.bf16.msra.mxu0 %v7760_v16  ;;  %7499 = vmatpush1.bf16.msra.mxu1 %v7760_v16 }
  0xaf   : > { %7404 = vmatprep.subr.bf16.mxu1 %v7761_v21 }
  0xb1   : > { %768 = vmatmul.mubr.bf16.vlgmr.msra.gmra.mxu0 %v559_v22  ;;  %888 = vmatmul.mubr.bf16.vlgmr.msra.gmra.mxu1 %v8687_v23 }
  0xb2   : > { %777 = vmatprep.mubr.bf16.mxu0 %v8432_v2  ;;  %897 = vmatprep.mubr.bf16.mxu1 %v8432_v2 }
  0xb3   : > { %7405 = vmatpush3.bf16.msra.mxu1 %v7761_v21 }
  0xb4   : > { %7406 = vmatprep.subr.bf16.mxu1 %v7762_v24 }
  0xb7   : > { %7407 = vmatpush3.bf16.msra.mxu1 %v7762_v24 }
  0xb8   : > { %7408 = vmatprep.subr.bf16.mxu1 %v7763_v29 }
  0xb9   : > { %778 = vmatmul.mubr.bf16.gmra.mxu0 %v560_v30  ;;  %898 = vmatmul.mubr.bf16.gmra.mxu1 %v8692_v31 }
  0xba   : > { %787 = vmatprep.mubr.bf16.mxu0 %v8432_v2  ;;  %907 = vmatprep.mubr.bf16.mxu1 %v8432_v2 }
  0xbb   : > { %7409 = vmatpush3.bf16.msra.mxu1 %v7763_v29 }
  0xbc   : > { %7410 = vmatprep.subr.bf16.mxu1 %v7764_v32 }
  0xbf   : > { %7411 = vmatpush3.bf16.msra.mxu1 %v7764_v32 }
  0xc0   : > { %7412 = vmatprep.subr.bf16.mxu1 %v7765_v37 }
  0xc1   : > { %788 = vmatmul.mubr.bf16.gmra.mxu0 %v561_v38  ;;  %908 = vmatmul.mubr.bf16.gmra.mxu1 %v8697_v39 }
  0xc2   : > { %797 = vmatprep.mubr.bf16.mxu0 %v8432_v2  ;;  %917 = vmatprep.mubr.bf16.mxu1 %v8432_v2 }
  0xc3   : > { %7413 = vmatpush3.bf16.msra.mxu1 %v7765_v37 }
  0xc4   : > { %7414 = vmatprep.subr.bf16.mxu1 %v7766_v40 }
  0xc7   : > { %7415 = vmatpush3.bf16.msra.mxu1 %v7766_v40 }
  0xc8   : > { %7416 = vmatprep.subr.bf16.mxu1 %v7767_v45 }
  0xc9   : > { %798 = vmatmul.mubr.bf16.gmra.mxu0 %v562_v46  ;;  %918 = vmatmul.mubr.bf16.gmra.mxu1 %v8702_v47 }
  0xca   : > { %807 = vmatprep.mubr.bf16.mxu0 %v8432_v2  ;;  %7420 = vmatprep.mubr.bf16.mxu1 %v559_v22 }
  0xcb   : > { %7417 = vmatpush3.bf16.msra.mxu1 %v7767_v45 }
  0xcc   : > { %7418 = vmatprep.subr.bf16.mxu1 %v7768_v48 }
  0xcf   : > { %7419 = vmatpush3.bf16.msra.mxu1 %v7768_v48 }
  0xd1   : > { %808 = vmatmul.mubr.bf16.gmra.mxu0 %v563_v51 }
  0xd2   : > { %817 = vmatprep.mubr.bf16.mxu0 %v8432_v2  ;;  %7421 = vmatmul.mubr.bf16.vlgmr.msra.gmra.mxu1 %v560_v30 }
  0xd3   : > { %7424 = vmatprep.mubr.bf16.mxu1 %v561_v38 }
  0xd9   : > { %818 = vmatmul.mubr.bf16.gmra.mxu0 %v564_v54 }
  0xda   : > { %827 = vmatprep.mubr.bf16.mxu0 %v8432_v2  ;;  %7425 = vmatmul.mubr.bf16.gmra.mxu1 %v562_v46 }
  0xdb   : > { %7428 = vmatprep.mubr.bf16.mxu1 %v563_v51 }
  0xe1   : > { %828 = vmatmul.mubr.bf16.gmra.mxu0 %v565_v57 }
  0xe2   : > { %837 = vmatprep.mubr.bf16.mxu0 %v8432_v2  ;;  %7429 = vmatmul.mubr.bf16.gmra.mxu1 %v564_v54 }
  0xe3   : > { %7432 = vmatprep.mubr.bf16.mxu1 %v565_v57 }
  0xe9   : > { %838 = vmatmul.mubr.bf16.gmra.mxu0 %v566_v60 }
  0xea   : > { %847 = vmatprep.mubr.bf16.mxu0 %v8432_v2  ;;  %7433 = vmatmul.mubr.bf16.gmra.mxu1 %v566_v60 }
  0xeb   : > { %7436 = vmatprep.mubr.bf16.mxu1 %v567_v63 }
  0xf1   : > { %848 = vmatmul.mubr.bf16.gmra.mxu0 %v567_v63 }
  0xf2   : > { %857 = vmatprep.mubr.bf16.mxu0 %v8432_v2  ;;  %7437 = vmatmul.mubr.bf16.gmra.mxu1 %v568_v5 }
  0xf3   : > { %7440 = vmatprep.mubr.bf16.mxu1 %v569_v6 }
  0xf9   : > { %858 = vmatmul.mubr.bf16.gmra.mxu0 %v568_v5 }
  0xfa   : > { %867 = vmatprep.mubr.bf16.mxu0 %v8432_v2  ;;  %7441 = vmatmul.mubr.bf16.gmra.mxu1 %v570_v9 }
  0xfb   : > { %7444 = vmatprep.mubr.bf16.mxu1 %v8687_v23 }
 0x101   : > { %868 = vmatmul.mubr.bf16.gmra.mxu0 %v569_v6 }
 0x102   : > { %877 = vmatprep.mubr.bf16.mxu0 %v8432_v2  ;;  %7445 = vmatmul.mubr.bf16.gmra.mxu1 %v8692_v31 }
 0x103   : > { %7448 = vmatprep.mubr.bf16.mxu1 %v8697_v39 }
 0x109   : > { %878 = vmatmul.mubr.bf16.gmra.mxu0 %v570_v9 }
 0x10a   : > { %7449 = vmatmul.mubr.bf16.gmra.mxu1 %v8702_v47 }
 0x171   : > { %v769_v10 = vpop.f32.mrf.mxu0  ;;  %v889_v11 = vpop.f32.mrf.mxu1 }
 0x173   : > { %v8717_v12 = vpop.f32.mrf.mxu0  ;;  %v8719_v13 = vpop.f32.mrf.mxu1 }
 0x175   : > { %v773_v14 = vpop.f32.mrf.mxu0  ;;  %v893_v15 = vpop.f32.mrf.mxu1 }
 0x176   : > { %v6809_v16 = vpack.c.bf16 %v773_v14, %v769_v10  ;;  %v6869_v17 = vpack.c.bf16 %v893_v15, %v889_v11 }
 0x177   : > { %v8721_v18 = vpop.f32.mrf.mxu0  ;;  %v8723_v2 = vpop.f32.mrf.mxu1 }
 0x178   : > { %6810 = vst [vmem:[#allocation2] sm:$0xff] %v6809_v16   ;;  %6977 = vst [vmem:[#allocation2 + $0x60] sm:$0xff] %v6869_v17  }
 0x179   : > { %v779_v19 = vpop.f32.mrf.mxu0  ;;  %v899_v20 = vpop.f32.mrf.mxu1 }
 0x17b   : > { %v8725_v21 = vpop.f32.mrf.mxu0  ;;  %v8727_v22 = vpop.f32.mrf.mxu1 }
 0x17d   : > { %v783_v23 = vpop.f32.mrf.mxu0  ;;  %v903_v24 = vpop.f32.mrf.mxu1 }
 0x17e   : > { %v6814_v25 = vpack.c.bf16 %v783_v23, %v779_v19  ;;  %v6874_v26 = vpack.c.bf16 %v903_v24, %v899_v20 }
 0x17f   : > { %v8729_v27 = vpop.f32.mrf.mxu0  ;;  %v8731_v28 = vpop.f32.mrf.mxu1 }
 0x180   : > { %6966 = vst [vmem:[#allocation2 + $0x8] sm:$0xff] %v6814_v25   ;;  %6978 = vst [vmem:[#allocation2 + $0x68] sm:$0xff] %v6874_v26  }
 0x181   : > { %v789_v29 = vpop.f32.mrf.mxu0  ;;  %v909_v30 = vpop.f32.mrf.mxu1 }
 0x183   : > { %v8733_v31 = vpop.f32.mrf.mxu0  ;;  %v8735_v32 = vpop.f32.mrf.mxu1 }
 0x185   : > { %v793_v33 = vpop.f32.mrf.mxu0  ;;  %v913_v34 = vpop.f32.mrf.mxu1 }
 0x186   : > { %v6819_v35 = vpack.c.bf16 %v793_v33, %v789_v29  ;;  %v6879_v36 = vpack.c.bf16 %v913_v34, %v909_v30 }
 0x187   : > { %v8737_v37 = vpop.f32.mrf.mxu0  ;;  %v8739_v38 = vpop.f32.mrf.mxu1 }
 0x188   : > { %6967 = vst [vmem:[#allocation2 + $0x10] sm:$0xff] %v6819_v35   ;;  %6979 = vst [vmem:[#allocation2 + $0x70] sm:$0xff] %v6879_v36  }
 0x189   : > { %v799_v39 = vpop.f32.mrf.mxu0  ;;  %v919_v40 = vpop.f32.mrf.mxu1 }
 0x18b   : > { %v8741_v41 = vpop.f32.mrf.mxu0  ;;  %v8743_v42 = vpop.f32.mrf.mxu1 }
 0x18d   : > { %v803_v43 = vpop.f32.mrf.mxu0  ;;  %v923_v44 = vpop.f32.mrf.mxu1 }
 0x18e   : > { %v6824_v45 = vpack.c.bf16 %v803_v43, %v799_v39  ;;  %v6884_v46 = vpack.c.bf16 %v923_v44, %v919_v40 }
 0x18f   : > { %v8745_v47 = vpop.f32.mrf.mxu0  ;;  %v8747_v48 = vpop.f32.mrf.mxu1 }
 0x190   : > { %6968 = vst [vmem:[#allocation2 + $0x18] sm:$0xff] %v6824_v45   ;;  %6980 = vst [vmem:[#allocation2 + $0x78] sm:$0xff] %v6884_v46  }
 0x191   : > { %v809_v49 = vpop.f32.mrf.mxu0 }
 0x192   : > { %v7422_v50 = vpop.f32.mrf.mxu1 }
 0x193   : > { %v8749_v51 = vpop.f32.mrf.mxu0 }
 0x194   : > { %v7641_v52 = vpack.i.bf16 %v8719_v13, %v8749_v51  ;;  %v962_v53 = vpop.f32.mrf.mxu1 }
 0x195   : > { %v813_v54 = vpop.f32.mrf.mxu0 }
 0x196   : > { %v6829_v55 = vpack.c.bf16 %v813_v54, %v809_v49  ;;  %v7423_v56 = vpop.f32.mrf.mxu1 }
 0x197   : > { %v8753_v57 = vpop.f32.mrf.mxu0  ;;  %v6894_v58 = vpack.c.bf16 %v7423_v56, %v7422_v50 }
 0x198   : > { %6969 = vst [vmem:[#allocation2 + $0x20] sm:$0xff] %v6829_v55   ;;  %v7643_v59 = vpack.i.bf16 %v8723_v2, %v8753_v57  ;;  %v965_v60 = vpop.f32.mrf.mxu1 }
 0x199   : > { %v819_v61 = vpop.f32.mrf.mxu0  ;;  %6981 = vst [vmem:[#allocation4 + $0x8] sm:$0xff] %v6894_v58   ;;  %v6889_v62 = vpack.c.bf16 %v965_v60, %v962_v53 }
 0x19a   : > { %v7426_v30 = vpop.f32.mrf.mxu1 }
 0x19b   : > { %v8757_v63 = vpop.f32.mrf.mxu0  ;;  %6890 = vst [vmem:[#allocation4] sm:$0xff] %v6889_v62  }
 0x19c   : > { %v7645_v0 = vpack.i.bf16 %v8727_v22, %v8757_v63  ;;  %v978_v35 = vpop.f32.mrf.mxu1 }
 0x19d   : > { %v823_v1 = vpop.f32.mrf.mxu0 }
 0x19e   : > { %v6834_v3 = vpack.c.bf16 %v823_v1, %v819_v61  ;;  %v7427_v40 = vpop.f32.mrf.mxu1 }
 0x19f   : > { %v8761_v4 = vpop.f32.mrf.mxu0  ;;  %v6904_v46 = vpack.c.bf16 %v7427_v40, %v7426_v30 }
 0x1a0   : > { %6970 = vst [vmem:[#allocation2 + $0x28] sm:$0xff] %v6834_v3   ;;  %v7647_v5 = vpack.i.bf16 %v8731_v28, %v8761_v4  ;;  %v981_v44 = vpop.f32.mrf.mxu1 }
 0x1a1   : > { %v829_v6 = vpop.f32.mrf.mxu0  ;;  %v6899_v49 = vpack.c.bf16 %v981_v44, %v978_v35  ;;  %6983 = vst [vmem:[#allocation4 + $0x18] sm:$0xff] %v6904_v46  }
 0x1a2   : > { %v7430_v53 = vpop.f32.mrf.mxu1 }
 0x1a3   : > { %v8765_v7 = vpop.f32.mrf.mxu0  ;;  %6982 = vst [vmem:[#allocation4 + $0x10] sm:$0xff] %v6899_v49  }
 0x1a4   : > { %v7649_v8 = vpack.i.bf16 %v8735_v32, %v8765_v7  ;;  %v994_v55 = vpop.f32.mrf.mxu1 }
 0x1a5   : > { %v833_v9 = vpop.f32.mrf.mxu0 }
 0x1a6   : > { %v6839_v10 = vpack.c.bf16 %v833_v9, %v829_v6  ;;  %v7431_v58 = vpop.f32.mrf.mxu1 }
 0x1a7   : > { %v8769_v11 = vpop.f32.mrf.mxu0  ;;  %v6914_v1 = vpack.c.bf16 %v7431_v58, %v7430_v53 }
 0x1a8   : > { %6971 = vst [vmem:[#allocation2 + $0x30] sm:$0xff] %v6839_v10   ;;  %v7651_v14 = vpack.i.bf16 %v8739_v38, %v8769_v11  ;;  %v997_v61 = vpop.f32.mrf.mxu1 }
 0x1a9   : > { %v839_v15 = vpop.f32.mrf.mxu0  ;;  %v6909_v3 = vpack.c.bf16 %v997_v61, %v994_v55  ;;  %6985 = vst [vmem:[#allocation4 + $0x28] sm:$0xff] %v6914_v1  }
 0x1aa   : > { %v7434_v6 = vpop.f32.mrf.mxu1 }
 0x1ab   : > { %v8773_v16 = vpop.f32.mrf.mxu0  ;;  %6984 = vst [vmem:[#allocation4 + $0x20] sm:$0xff] %v6909_v3  }
 0x1ac   : > { %v7653_v17 = vpack.i.bf16 %v8743_v42, %v8773_v16 }
 0x1ad   : > { %v843_v19 = vpop.f32.mrf.mxu0 }
 0x1ae   : > { %v6844_v20 = vpack.c.bf16 %v843_v19, %v839_v15  ;;  %v1010_v15 = vpop.f32.mrf.mxu1 }
 0x1af   : > { %v8777_v23 = vpop.f32.mrf.mxu0 }
 0x1b0   : > { %6972 = vst [vmem:[#allocation2 + $0x38] sm:$0xff] %v6844_v20   ;;  %v7655_v24 = vpack.i.bf16 %v8747_v48, %v8777_v23  ;;  %v7435_v20 = vpop.f32.mrf.mxu1 }
 0x1b1   : > { %v849_v25 = vpop.f32.mrf.mxu0  ;;  %v6924_v30 = vpack.c.bf16 %v7435_v20, %v7434_v6 }
 0x1b3   : > { %v851_v26 = vpop.f32.mrf.mxu0  ;;  %6987 = vst [vmem:[#allocation4 + $0x38] sm:$0xff] %v6924_v30  }
 0x1b4   : > { %v7625_v29 = vpack.i.bf16 %v851_v26, %v8717_v12  ;;  %v1013_v26 = vpop.f32.mrf.mxu1 }
 0x1b5   : > { %v853_v33 = vpop.f32.mrf.mxu0 }
 0x1b6   : > { %v6849_v34 = vpack.c.bf16 %v853_v33, %v849_v25  ;;  %7626 = vxpose.xlu0.b32.start [1/16] %v7625_v29, 128  ;;  %v6919_v33 = vpack.c.bf16 %v1013_v26, %v1010_v15 }
 0x1b7   : > { %v855_v36 = vpop.f32.mrf.mxu0 }
 0x1b8   : > { %6973 = vst [vmem:[#allocation2 + $0x40] sm:$0xff] %v6849_v34   ;;  %v7627_v39 = vpack.i.bf16 %v855_v36, %v8721_v18  ;;  %v7438_v34 = vpop.f32.mrf.mxu1  ;;  %6986 = vst [vmem:[#allocation4 + $0x30] sm:$0xff] %v6919_v33  }
 0x1b9   : > { %v859_v43 = vpop.f32.mrf.mxu0 }
 0x1ba   : > { %7628 = vxpose.xlu0.b32.cont [2/16] %v7627_v39, 128  ;;  %v1026_v39 = vpop.f32.mrf.mxu1 }
 0x1bb   : > { %v861_v45 = vpop.f32.mrf.mxu0 }
 0x1bc   : > { %v7629_v50 = vpack.i.bf16 %v861_v45, %v8725_v21 }
 0x1bd   : > { %v863_v12 = vpop.f32.mrf.mxu0 }
 0x1be   : > { %v6854_v54 = vpack.c.bf16 %v863_v12, %v859_v43  ;;  %7630 = vxpose.xlu0.b32.cont [3/16] %v7629_v50, 128  ;;  %v7439_v43 = vpop.f32.mrf.mxu1 }
 0x1bf   : > { %v865_v56 = vpop.f32.mrf.mxu0  ;;  %v6934_v45 = vpack.c.bf16 %v7439_v43, %v7438_v34 }
 0x1c0   : > { %6974 = vst [vmem:[#allocation2 + $0x48] sm:$0xff] %v6854_v54   ;;  %v7631_v18 = vpack.i.bf16 %v865_v56, %v8729_v27  ;;  %v1029_v44 = vpop.f32.mrf.mxu1 }
 0x1c1   : > { %v869_v60 = vpop.f32.mrf.mxu0  ;;  %v6929_v46 = vpack.c.bf16 %v1029_v44, %v1026_v39  ;;  %6989 = vst [vmem:[#allocation4 + $0x48] sm:$0xff] %v6934_v45  }
 0x1c2   : > { %7632 = vxpose.xlu0.b32.cont [4/16] %v7631_v18, 128  ;;  %v7442_v49 = vpop.f32.mrf.mxu1 }
 0x1c3   : > { %v871_v62 = vpop.f32.mrf.mxu0  ;;  %6988 = vst [vmem:[#allocation4 + $0x40] sm:$0xff] %v6929_v46  }
 0x1c4   : > { %v7633_v21 = vpack.i.bf16 %v871_v62, %v8733_v31 }
 0x1c5   : > { %v873_v9 = vpop.f32.mrf.mxu0 }
 0x1c6   : > { %v6859_v10 = vpack.c.bf16 %v873_v9, %v869_v60  ;;  %7634 = vxpose.xlu0.b32.cont [5/16] %v7633_v21, 128 }
 0x1c7   : > { %v875_v19 = vpop.f32.mrf.mxu0 }
 0x1c8   : > { %6975 = vst [vmem:[#allocation2 + $0x50] sm:$0xff] %v6859_v10   ;;  %v7635_v27 = vpack.i.bf16 %v875_v19, %v8737_v37 }
 0x1c9   : > { %v879_v25 = vpop.f32.mrf.mxu0 }
 0x1ca   : > { %7636 = vxpose.xlu0.b32.cont [6/16] %v7635_v27, 128 }
 0x1cb   : > { %v881_v29 = vpop.f32.mrf.mxu0 }
 0x1cc   : > { %v7637_v31 = vpack.i.bf16 %v881_v29, %v8741_v41  ;;  %v1042_v41 = vpop.f32.mrf.mxu1 }
 0x1cd   : > { %v883_v35 = vpop.f32.mrf.mxu0 }
 0x1ce   : > { %v6864_v36 = vpack.c.bf16 %v883_v35, %v879_v25  ;;  %7638 = vxpose.xlu0.b32.cont [7/16] %v7637_v31, 128  ;;  %v7443_v50 = vpop.f32.mrf.mxu1 }
 0x1cf   : > { %v885_v40 = vpop.f32.mrf.mxu0 }
 0x1d0   : > { %6976 = vst [vmem:[#allocation2 + $0x58] sm:$0xff] %v6864_v36   ;;  %v7639_v37 = vpack.i.bf16 %v885_v40, %v8745_v47  ;;  %v1045_v53 = vpop.f32.mrf.mxu1  ;;  %v6944_v47 = vpack.c.bf16 %v7443_v50, %v7442_v49 }
 0x1d1   : > { %v6939_v12 = vpack.c.bf16 %v1045_v53, %v1042_v41 }
 0x1d2   : > { %7640 = vxpose.xlu0.b32.cont [8/16] %v7639_v37, 128  ;;  %v7446_v54 = vpop.f32.mrf.mxu1  ;;  %6991 = vst [vmem:[#allocation4 + $0x58] sm:$0xff] %v6944_v47  }
 0x1d3   : > { %6990 = vst [vmem:[#allocation4 + $0x50] sm:$0xff] %v6939_v12  }
 0x1d4   : > { %v1058_v55 = vpop.f32.mrf.mxu1 }
 0x1d6   : > { %7642 = vxpose.xlu0.b32.cont [9/16] %v7641_v52, 128  ;;  %v7447_v56 = vpop.f32.mrf.mxu1 }
 0x1d7   : > { %v6954_v51 = vpack.c.bf16 %v7447_v56, %v7446_v54 }
 0x1d8   : > { %v1061_v13 = vpop.f32.mrf.mxu1 }
 0x1d9   : > { %v6949_v2 = vpack.c.bf16 %v1061_v13, %v1058_v55  ;;  %6993 = vst [vmem:[#allocation4 + $0x68] sm:$0xff] %v6954_v51  }
 0x1da   : > { %7644 = vxpose.xlu0.b32.cont [10/16] %v7643_v59, 128  ;;  %v7450_v52 = vpop.f32.mrf.mxu1 }
 0x1db   : > { %6992 = vst [vmem:[#allocation4 + $0x60] sm:$0xff] %v6949_v2  }
 0x1dc   : > { %v1074_v57 = vpop.f32.mrf.mxu1 }
 0x1de   : > { %7646 = vxpose.xlu0.b32.cont [11/16] %v7645_v0, 128  ;;  %v7451_v59 = vpop.f32.mrf.mxu1 }
 0x1df   : > { %v6964_v63 = vpack.c.bf16 %v7451_v59, %v7450_v52 }
 0x1e0   : > { %v1077_v22 = vpop.f32.mrf.mxu1 }
 0x1e1   : > { %v6959_v28 = vpack.c.bf16 %v1077_v22, %v1074_v57  ;;  %6995 = vst [vmem:[#allocation4 + $0x78] sm:$0xff] %v6964_v63  }
 0x1e2   : > { %7648 = vxpose.xlu0.b32.cont [12/16] %v7647_v5, 128 }
 0x1e3   : > { %6994 = vst [vmem:[#allocation4 + $0x70] sm:$0xff] %v6959_v28  }
 0x1e6   : > { %7650 = vxpose.xlu0.b32.cont [13/16] %v7649_v8, 128 }
 0x1ea   : > { %7652 = vxpose.xlu0.b32.cont [14/16] %v7651_v14, 128 }
 0x1ee   : > { %7654 = vxpose.xlu0.b32.cont [15/16] %v7653_v17, 128 }
 0x1f2   : > { %7656 = vxpose.xlu0.b32.end [16/16] %v7655_v24, 128 }
 0x232   : > { %v7657_v32 = vpop.trf.xlu0 }
 0x233   : > { %v7661_v0 = vunpack.i.h.bf16 %v7657_v32  ;;  %v7658_v4 = vunpack.i.l.bf16 %v7657_v32 }
 0x235   : > { %v6754_v5 = vpack.c.bf16 %v7661_v0, %v7658_v4 }
 0x236   : > { %v7662_v7 = vpop.trf.xlu0 }
 0x237   : > { %1409 = vst [vmem:[#allocation3 + $0x30] sm:$0xff] %v6754_v5  ;;  %v7666_v38 = vunpack.i.h.bf16 %v7662_v7  ;;  %v7663_v8 = vunpack.i.l.bf16 %v7662_v7 }
 0x239   : > { %v6755_v11 = vpack.c.bf16 %v7666_v38, %v7663_v8 }
 0x23a   : > { %v7667_v14 = vpop.trf.xlu0 }
 0x23b   : > { %1410 = vst [vmem:[#allocation3] sm:$0xff] %v6755_v11  ;;  %v7671_v18 = vunpack.i.h.bf16 %v7667_v14  ;;  %v7668_v58 = vunpack.i.l.bf16 %v7667_v14 }
 0x23d   : > { %v6756_v60 = vpack.c.bf16 %v7671_v18, %v7668_v58 }
 0x23e   : > { %v7672_v42 = vpop.trf.xlu0 }
 0x23f   : > { %1411 = vst [vmem:[#allocation3 + $0x58] sm:$0xff] %v6756_v60  ;;  %v7676_v16 = vunpack.i.h.bf16 %v7672_v42  ;;  %v7673_v17 = vunpack.i.l.bf16 %v7672_v42 }
 0x241   : > { %v6757_v48 = vpack.c.bf16 %v7676_v16, %v7673_v17 }
 0x242   : > { %v7677_v23 = vpop.trf.xlu0 }
 0x243   : > { %1412 = vst [vmem:[#allocation3 + $0x18] sm:$0xff] %v6757_v48  ;;  %v7681_v24 = vunpack.i.h.bf16 %v7677_v23  ;;  %v7678_v61 = vunpack.i.l.bf16 %v7677_v23 }
 0x245   : > { %v6758_v62 = vpack.c.bf16 %v7681_v24, %v7678_v61 }
 0x246   : > { %v7682_v1 = vpop.trf.xlu0 }
 0x247   : > { %1413 = vst [vmem:[#allocation3 + $0x50] sm:$0xff] %v6758_v62  ;;  %v7686_v3 = vunpack.i.h.bf16 %v7682_v1  ;;  %v7683_v21 = vunpack.i.l.bf16 %v7682_v1 }
 0x249   : > { %v6759_v6 = vpack.c.bf16 %v7686_v3, %v7683_v21 }
 0x24a   : > { %v7687_v9 = vpop.trf.xlu0 }
 0x24b   : > { %1414 = vst [vmem:[#allocation3 + $0x68] sm:$0xff] %v6759_v6  ;;  %v7691_v10 = vunpack.i.h.bf16 %v7687_v9  ;;  %v7688_v15 = vunpack.i.l.bf16 %v7687_v9 }
 0x24d   : > { %v6760_v19 = vpack.c.bf16 %v7691_v10, %v7688_v15 }
 0x24e   : > { %v7692_v27 = vpop.trf.xlu0 }
 0x24f   : > { %1415 = vst [vmem:[#allocation3 + $0x8] sm:$0xff] %v6760_v19  ;;  %v7696_v20 = vunpack.i.h.bf16 %v7692_v27  ;;  %v7693_v25 = vunpack.i.l.bf16 %v7692_v27 }
 0x251   : > { %v6761_v26 = vpack.c.bf16 %v7696_v20, %v7693_v25 }
 0x252   : > { %v7697_v29 = vpop.trf.xlu0 }
 0x253   : > { %1416 = vst [vmem:[#allocation3 + $0x48] sm:$0xff] %v6761_v26  ;;  %v7701_v30 = vunpack.i.h.bf16 %v7697_v29  ;;  %v7698_v33 = vunpack.i.l.bf16 %v7697_v29 }
 0x255   : > { %v6762_v31 = vpack.c.bf16 %v7701_v30, %v7698_v33 }
 0x256   : > { %v7702_v34 = vpop.trf.xlu0 }
 0x257   : > { %1417 = vst [vmem:[#allocation3 + $0x40] sm:$0xff] %v6762_v31  ;;  %v7706_v35 = vunpack.i.h.bf16 %v7702_v34  ;;  %v7703_v36 = vunpack.i.l.bf16 %v7702_v34 }
 0x259   : > { %v6763_v39 = vpack.c.bf16 %v7706_v35, %v7703_v36 }
 0x25a   : > { %v7707_v40 = vpop.trf.xlu0 }
 0x25b   : > { %1418 = vst [vmem:[#allocation3 + $0x20] sm:$0xff] %v6763_v39  ;;  %v7711_v37 = vunpack.i.h.bf16 %v7707_v40  ;;  %v7708_v43 = vunpack.i.l.bf16 %v7707_v40 }
 0x25d   : > { %v6764_v44 = vpack.c.bf16 %v7711_v37, %v7708_v43 }
 0x25e   : > { %v7712_v45 = vpop.trf.xlu0 }
 0x25f   : > { %1419 = vst [vmem:[#allocation3 + $0x10] sm:$0xff] %v6764_v44  ;;  %v7716_v46 = vunpack.i.h.bf16 %v7712_v45  ;;  %v7713_v49 = vunpack.i.l.bf16 %v7712_v45 }
 0x261   : > { %v6765_v41 = vpack.c.bf16 %v7716_v46, %v7713_v49 }
 0x262   : > { %v7717_v50 = vpop.trf.xlu0 }
 0x263   : > { %1420 = vst [vmem:[#allocation3 + $0x38] sm:$0xff] %v6765_v41  ;;  %v7721_v53 = vunpack.i.h.bf16 %v7717_v50  ;;  %v7718_v47 = vunpack.i.l.bf16 %v7717_v50 }
 0x265   : > { %v6766_v12 = vpack.c.bf16 %v7721_v53, %v7718_v47 }
 0x266   : > { %v7722_v54 = vpop.trf.xlu0 }
 0x267   : > { %1421 = vst [vmem:[#allocation3 + $0x60] sm:$0xff] %v6766_v12  ;;  %v7726_v55 = vunpack.i.h.bf16 %v7722_v54  ;;  %v7723_v56 = vunpack.i.l.bf16 %v7722_v54 }
 0x269   : > { %v6767_v13 = vpack.c.bf16 %v7726_v55, %v7723_v56 }
 0x26a   : > { %v7727_v51 = vpop.trf.xlu0 }
 0x26b   : > { %1422 = vst [vmem:[#allocation3 + $0x70] sm:$0xff] %v6767_v13  ;;  %v7731_v2 = vunpack.i.h.bf16 %v7727_v51  ;;  %v7728_v52 = vunpack.i.l.bf16 %v7727_v51 }
 0x26d   : > { %v6768_v57 = vpack.c.bf16 %v7731_v2, %v7728_v52 }
 0x26e   : > { %v7732_v59 = vpop.trf.xlu0 }
 0x26f   : > { %1423 = vst [vmem:[#allocation3 + $0x78] sm:$0xff] %v6768_v57  ;;  %v7736_v22 = vunpack.i.h.bf16 %v7732_v59  ;;  %v7733_v63 = vunpack.i.l.bf16 %v7732_v59 }
 0x271   : > { %v6769_v28 = vpack.c.bf16 %v7736_v22, %v7733_v63 }
 0x273   : > { %1424 = vst [vmem:[#allocation3 + $0x28] sm:$0xff] %v6769_v28 }
 0x274 PF: > { %v11223_v4 = vmov 0   ;;  %v7772_v5 = vld [vmem:[#allocation3 + $0x64] ss:$16 sps:$4 sm:$0xff]   ;;  %v7774_v7 = vld [vmem:[#allocation3 + $0x60] ss:$16 sps:$4 sm:$0xff]   ;;  %v11222_v14 = vlaneseq  ;;  %v1612_v60 = vld [vmem:[#allocation3 + $0x8] sm:$0xff] }
 0x275   : > { %1889 = vmatprep.mubr.bf16.mxu0 %v11223_v4  ;;  %2395 = vmatprep.mubr.bf16.mxu1 %v11223_v4  ;;  %v7775_v38 = vld [vmem:[#allocation3 + $0x14] ss:$40 sps:$4 sm:$0xff]   ;;  %v1614_v8 = vld [vmem:[#allocation3 + $0x40] sm:$0xff]  ;;  %v7777_v18 = vld [vmem:[#allocation3 + $0x10] ss:$40 sps:$4 sm:$0xff]   ;;  %s8822_s30 = sshll.u32 %s8528_s29, 7 }
 0x276   : > { %v1615_v11 = vld [vmem:[#allocation3 + $0x20] sm:$0xff]  ;;  %v1613_v42 = vld [vmem:[#allocation3 + $0x48] sm:$0xff]  ;;  %v8825_v16 = vand.u32 127, %v11222_v14  ;;  %s1586_s14 = sshra.s32 %s8822_s30, 3  ;;  %v1608_v61 = vld [vmem:[#allocation3 + $0x58] sm:$0xff]  ;;  %v11225_v3 = vmov 0.0  }
 0x277   : > { %v8819_v58 = vcombine.high %v1614_v8, %v1615_v11  ;;  %v8827_v17 = vcombine.low %v1614_v8, %v1615_v11  ;;  %v8831_v48 = vcombine.high %v1612_v60, %v1613_v42  ;;  %v8838_v23 = vcombine.low %v1612_v60, %v1613_v42  ;;  %s6424_s25 = sshll.u32 %s1586_s14, 2  ;;  %v7778_v24 = vld [vmem:[#allocation3 + $0x54] ss:$24 sps:$4 sm:$0xff]   ;;  %v1609_v62 = vld [vmem:[#allocation3 + $0x18] sm:$0xff]  ;;  %v7780_v1 = vld [vmem:[#allocation3 + $0x50] ss:$24 sps:$4 sm:$0xff]  }
 0x278   : > { %11334 = vst [vmem:[#allocation24_spill] sm:$0xff] %v8825_v16  ;;  %vm2290_vm0 = vcmp.ge.s32.totalorder %v8825_v16, 32  ;;  %vm2291_vm1 = vcmp.lt.s32.totalorder %v8825_v16, 64  ;;  %vm1705_vm2 = vcmp.lt.s32.totalorder %v8825_v16, 32  ;;  %v8851_v9 = vcombine.high %v1608_v61, %v1609_v62  ;;  %v8853_v10 = vld [vmem:[#allocation4 + $0x78] sm:$0xf] }
 0x279   : > { %vm2292_vm3 = vmand %vm2290_vm0, %vm2291_vm1  ;;  %v8846_v21 = vsel %vm1705_vm2, 1.0, %v11225_v3  ;;  %v8855_v15 = vld [vmem:[#allocation4 + $0x7c] sm:$0xf]  ;;  %s8857_s24 = scalar_lea.vmem [#allocation2], %s6424_s25  ;;  %v7781_v20 = vld [vmem:[#allocation3 + $0x34] ss:$-48 sps:$4 sm:$0xff]   ;;  %v8869_v29 = vcombine.low %v1608_v61, %v1609_v62 }
 0x27a   : > { %v8813_v32 = vld [vmem:[#allocation3 + $0x7c] ss:$-80 sps:$4 sm:$0xff]   ;;  %v7771_v0 = vld [vmem:[#allocation3 + $0x78] ss:$-80 sps:$4 sm:$0xff]   ;;  %11335 = vst [vmem:[#allocation25_spill] sm:$0xff] %v8846_v21  ;;  %v8849_v6 = vsel %vm2292_vm3, 1.0, %v11225_v3  ;;  %v8863_v25 = vpack.c.bf16 %v8846_v21, %v8846_v21 }
 0x27b   : > { %1857 = vmatprep.subr.bf16.mxu0 %v8813_v32  ;;  %2363 = vmatprep.subr.bf16.mxu1 %v8813_v32  ;;  %11336 = vst [vmem:[#allocation26_spill] sm:$0xff] %v8849_v6  ;;  %v1590_v19 = vld [vmem:[%s8857_s24] sm:$0xf]  ;;  %v1591_v27 = vld [vmem:[%s8857_s24 + $0x4] sm:$0xf]  ;;  %v8867_v26 = vpack.c.bf16 %v8849_v6, %v8849_v6  ;;  %s10134_s21 = scalar_lea.vmem [#allocation6], %s8822_s30 }
 0x27c   : > { %1858 = vmatpush1.bf16.msra.mxu0 %v7771_v0  ;;  %2364 = vmatpush1.bf16.msra.mxu1 %v7771_v0  ;;  %v8871_v30 = vld [vmem:[#allocation4 + $0x38] sm:$0xf]  ;;  %v8873_v33 = vld [vmem:[#allocation4 + $0x3c] sm:$0xf]  ;;  %v1713_v35 = vmul.bf16 %v8863_v25, %v1590_v19  ;;  %v1714_v36 = vmul.bf16 %v8863_v25, %v1591_v27  ;;  %v8885_v37 = vld [vmem:[#allocation4 + $0x70] sm:$0xf] }
 0x27d   : > { %1859 = vmatprep.subr.bf16.mxu0 %v7772_v5  ;;  %2365 = vmatprep.subr.bf16.mxu1 %v7772_v5  ;;  %v2714_v31 = vmul.bf16 %v8867_v26, %v8853_v10  ;;  %v2715_v34 = vmul.bf16 %v8867_v26, %v8855_v15  ;;  %v2299_v39 = vmul.bf16 %v8867_v26, %v1590_v19  ;;  %v8887_v43 = vld [vmem:[#allocation4 + $0x74] sm:$0xf]  ;;  %v7783_v44 = vld [vmem:[#allocation3 + $0x30] ss:$-48 sps:$4 sm:$0xff]   ;;  %v1592_v55 = vld [vmem:[%s8857_s24 + $0x8] sm:$0xf] }
 0x27e   : > { %v2300_v40 = vmul.bf16 %v8867_v26, %v1591_v27  ;;  %v2698_v46 = vmul.bf16 %v8867_v26, %v8871_v30  ;;  %v2699_v49 = vmul.bf16 %v8867_v26, %v8873_v33  ;;  %v2712_v41 = vmul.bf16 %v8867_v26, %v8885_v37  ;;  %v8899_v53 = vld [vmem:[#allocation4 + $0x30] sm:$0xf]  ;;  %v8901_v47 = vld [vmem:[#allocation4 + $0x34] sm:$0xf]  ;;  %v8904_v56 = vld [vmem:[#allocation4 + $0x68] sm:$0xf] }
 0x27f   : > { %v6538_v45 = vcombine.low %v2714_v31, %v2715_v34  ;;  %v2713_v50 = vmul.bf16 %v8867_v26, %v8887_v43  ;;  %v6426_v12 = vcombine.low %v1713_v35, %v1714_v36  ;;  %v8906_v13 = vld [vmem:[#allocation4 + $0x6c] sm:$0xf]  ;;  %v2696_v52 = vmul.bf16 %v8867_v26, %v8899_v53  ;;  %v8918_v0 = vld [vmem:[#allocation4 + $0x28] sm:$0xf]  ;;  %v8925_v11 = vld [vmem:[#allocation4 + $0x60] sm:$0xf] }
 0x280   : > { %1860 = vmatpush1.bf16.msra.mxu0 %v7774_v7  ;;  %2366 = vmatpush1.bf16.msra.mxu1 %v7774_v7  ;;  %v6483_v54 = vcombine.low %v2299_v39, %v2300_v40  ;;  %v1593_v51 = vld [vmem:[%s8857_s24 + $0xc] sm:$0xf]  ;;  %v6530_v2 = vcombine.low %v2698_v46, %v2699_v49  ;;  %v2697_v57 = vmul.bf16 %v8867_v26, %v8901_v47  ;;  %v8939_v19 = vld [vmem:[#allocation4 + $0x20] sm:$0xf]  ;;  %v8941_v27 = vld [vmem:[#allocation4 + $0x24] sm:$0xf] }
 0x281   : > { %1861 = vmatprep.subr.bf16.mxu0 %v7775_v38  ;;  %2367 = vmatprep.subr.bf16.mxu1 %v7775_v38  ;;  %v1715_v59 = vmul.bf16 %v8863_v25, %v1592_v55  ;;  %v6537_v22 = vcombine.low %v2712_v41, %v2713_v50  ;;  %v2710_v63 = vmul.bf16 %v8867_v26, %v8904_v56  ;;  %v8920_v5 = vld [vmem:[#allocation4 + $0x2c] sm:$0xf]  ;;  %v1594_v34 = vld [vmem:[%s8857_s24 + $0x10] sm:$0xf]  ;;  %v8944_v35 = vld [vmem:[#allocation4 + $0x58] sm:$0xf] }
 0x282   : > { %v2711_v28 = vmul.bf16 %v8867_v26, %v8906_v13  ;;  %v1716_v7 = vmul.bf16 %v8863_v25, %v1593_v51  ;;  %v2301_v38 = vmul.bf16 %v8867_v26, %v1592_v55  ;;  %v2302_v8 = vmul.bf16 %v8867_v26, %v1593_v51  ;;  %v8946_v36 = vld [vmem:[#allocation4 + $0x5c] sm:$0xf]  ;;  %v1595_v39 = vld [vmem:[%s8857_s24 + $0x14] sm:$0xf]  ;;  %s10142_s0 = scalar_lea.vmem [#allocation5], %s8822_s30  ;;  %p6678_p5 = scmp.ne.s32.totalorder %s8528_s29, 1 }
 0x283   : > { %v6529_v60 = vcombine.low %v2696_v52, %v2697_v57  ;;  %v2694_v42 = vmul.bf16 %v8867_v26, %v8918_v0  ;;  %v2708_v62 = vmul.bf16 %v8867_v26, %v8925_v11  ;;  %v1717_v46 = vmul.bf16 %v8863_v25, %v1594_v34 }
 0x284   : > { %1862 = vmatpush1.bf16.msra.mxu0 %v7777_v18  ;;  %2368 = vmatpush1.bf16.msra.mxu1 %v7777_v18  ;;  %v8927_v18 = vld [vmem:[#allocation4 + $0x64] sm:$0xf]  ;;  %v6536_v61 = vcombine.low %v2710_v63, %v2711_v28  ;;  %v6484_v31 = vcombine.low %v2301_v38, %v2302_v8  ;;  %v2706_v41 = vmul.bf16 %v8867_v26, %v8944_v35 }
 0x285   : > { %1863 = vmatprep.subr.bf16.mxu0 %v8819_v58  ;;  %2369 = vmatprep.subr.bf16.mxu1 %v8819_v58  ;;  %v2707_v50 = vmul.bf16 %v8867_v26, %v8946_v36  ;;  %v2304_v55 = vmul.bf16 %v8867_v26, %v1595_v39 }
 0x288   : > { %1864 = vmatpush1.bf16.msra.mxu0 %v8827_v17  ;;  %2370 = vmatpush1.bf16.msra.mxu1 %v8827_v17 }
 0x289   : > { %1865 = vmatprep.subr.bf16.mxu0 %v8831_v48  ;;  %2371 = vmatprep.subr.bf16.mxu1 %v8831_v48 }
 0x28c   : > { %1866 = vmatpush1.bf16.msra.mxu0 %v8838_v23  ;;  %2372 = vmatpush1.bf16.msra.mxu1 %v8838_v23 }
 0x28d   : > { %1867 = vmatprep.subr.bf16.mxu0 %v7778_v24  ;;  %2373 = vmatprep.subr.bf16.mxu1 %v7778_v24  ;;  %v2695_v24 = vmul.bf16 %v8867_v26, %v8920_v5 }
 0x28f   : > { %v6528_v40 = vcombine.low %v2694_v42, %v2695_v24  ;;  %v1598_v42 = vld [vmem:[%s8857_s24 + $0x20] sm:$0xf]  ;;  %v1599_v24 = vld [vmem:[%s8857_s24 + $0x24] sm:$0xf] }
 0x290   : > { %1868 = vmatpush1.bf16.msra.mxu0 %v7780_v1  ;;  %2374 = vmatpush1.bf16.msra.mxu1 %v7780_v1  ;;  %v2709_v1 = vmul.bf16 %v8867_v26, %v8927_v18 }
 0x291   : > { %1869 = vmatprep.subr.bf16.mxu0 %v8851_v9  ;;  %2375 = vmatprep.subr.bf16.mxu1 %v8851_v9 }
 0x292   : > { %v6535_v49 = vcombine.low %v2708_v62, %v2709_v1  ;;  %v1722_v62 = vmul.bf16 %v8863_v25, %v1599_v24  ;;  %v2307_v1 = vmul.bf16 %v8867_v26, %v1598_v42 }
 0x294   : > { %1870 = vmatpush1.bf16.msra.mxu0 %v8869_v29  ;;  %2376 = vmatpush1.bf16.msra.mxu1 %v8869_v29 }
 0x295   : > { %1871 = vmatprep.subr.bf16.mxu0 %v7781_v20  ;;  %2377 = vmatprep.subr.bf16.mxu1 %v7781_v20  ;;  %v6427_v20 = vcombine.low %v1715_v59, %v1716_v7  ;;  %v1596_v59 = vld [vmem:[%s8857_s24 + $0x18] sm:$0xf] }
 0x296   : > { %v1719_v63 = vmul.bf16 %v8863_v25, %v1596_v59  ;;  %v2305_v7 = vmul.bf16 %v8867_v26, %v1596_v59 }
 0x298   : > { %1872 = vmatpush1.bf16.msra.mxu0 %v7783_v44  ;;  %2378 = vmatpush1.bf16.msra.mxu1 %v7783_v44  ;;  %v2692_v44 = vmul.bf16 %v8867_v26, %v8939_v19 }
 0x299   : > { %7020 = vmatprep.subr.bf16.mxu0 %v6538_v45  ;;  %v2693_v45 = vmul.bf16 %v8867_v26, %v8941_v27 }
 0x29b   : > { %1890 = vmatmul.mubr.bf16.vlgmr.msra.gmra.mxu0 %v6426_v12  ;;  %2396 = vmatmul.mubr.bf16.vlgmr.msra.gmra.mxu1 %v6483_v54  ;;  %v1718_v12 = vmul.bf16 %v8863_v25, %v1595_v39  ;;  %v2303_v54 = vmul.bf16 %v8867_v26, %v1594_v34  ;;  %v6527_v51 = vcombine.low %v2692_v44, %v2693_v45  ;;  %v1600_v39 = vld [vmem:[%s8857_s24 + $0x28] sm:$0xf] }
 0x29c   : > { %1899 = vmatprep.mubr.bf16.mxu0 %v11223_v4  ;;  %2405 = vmatprep.mubr.bf16.mxu1 %v11223_v4  ;;  %v1723_v44 = vmul.bf16 %v8863_v25, %v1600_v39 }
 0x29d   : > { %7021 = vmatpush3.bf16.msra.mxu0 %v6530_v2  ;;  %v6534_v2 = vcombine.low %v2706_v41, %v2707_v50  ;;  %v6428_v52 = vcombine.low %v1717_v46, %v1718_v12  ;;  %v6485_v57 = vcombine.low %v2303_v54, %v2304_v55  ;;  %v2309_v46 = vmul.bf16 %v8867_v26, %v1600_v39  ;;  %v1602_v12 = vld [vmem:[%s8857_s24 + $0x30] sm:$0xf]  ;;  %v1603_v54 = vld [vmem:[%s8857_s24 + $0x34] sm:$0xf] }
 0x29e   : > { %7022 = vmatprep.subr.bf16.mxu0 %v6537_v22  ;;  %v1597_v22 = vld [vmem:[%s8857_s24 + $0x1c] sm:$0xf]  ;;  %v1725_v55 = vmul.bf16 %v8863_v25, %v1602_v12  ;;  %v2207_v39 = vmul.bf16 %v8863_v25, %v8887_v43  ;;  %v2189_v43 = vmul.bf16 %v8863_v25, %v8920_v5  ;;  %v2187_v5 = vmul.bf16 %v8863_v25, %v8941_v27 }
 0x29f   : > { %v1720_v28 = vmul.bf16 %v8863_v25, %v1597_v22  ;;  %v2306_v38 = vmul.bf16 %v8867_v26, %v1597_v22  ;;  %v1604_v22 = vld [vmem:[%s8857_s24 + $0x38] sm:$0xf] }
 0x2a1   : > { %7023 = vmatpush3.bf16.msra.mxu0 %v6529_v60  ;;  %v6429_v8 = vcombine.low %v1719_v63, %v1720_v28  ;;  %v6486_v60 = vcombine.low %v2305_v7, %v2306_v38  ;;  %v1605_v63 = vld [vmem:[%s8857_s24 + $0x3c] sm:$0xf]  ;;  %v1727_v28 = vmul.bf16 %v8863_v25, %v1604_v22  ;;  %v2313_v38 = vmul.bf16 %v8867_v26, %v1604_v22  ;;  %v1627_v22 = vld [vmem:[#allocation4 + $0x14] sm:$0xf] }
 0x2a2   : > { %7024 = vmatprep.subr.bf16.mxu0 %v6536_v61  ;;  %v1721_v61 = vmul.bf16 %v8863_v25, %v1598_v42  ;;  %v1728_v7 = vmul.bf16 %v8863_v25, %v1605_v63 }
 0x2a3   : > { %1900 = vmatmul.mubr.bf16.gmra.mxu0 %v6427_v20  ;;  %2406 = vmatmul.mubr.bf16.gmra.mxu1 %v6484_v31  ;;  %v2308_v20 = vmul.bf16 %v8867_v26, %v1599_v24  ;;  %v2208_v24 = vmul.bf16 %v8863_v25, %v8853_v10  ;;  %v2190_v10 = vmul.bf16 %v8863_v25, %v8899_v53  ;;  %v1628_v53 = vld [vmem:[#allocation4 + $0x18] sm:$0xf] }
 0x2a4   : > { %1909 = vmatprep.mubr.bf16.mxu0 %v11223_v4  ;;  %2415 = vmatprep.mubr.bf16.mxu1 %v11223_v4  ;;  %v6430_v31 = vcombine.low %v1721_v61, %v1722_v62  ;;  %v2209_v61 = vmul.bf16 %v8863_v25, %v8855_v15  ;;  %v2192_v62 = vmul.bf16 %v8863_v25, %v8871_v30 }
 0x2a5   : > { %7025 = vmatpush3.bf16.msra.mxu0 %v6528_v40  ;;  %v6487_v34 = vcombine.low %v2307_v1, %v2308_v20  ;;  %v1601_v40 = vld [vmem:[%s8857_s24 + $0x2c] sm:$0xf]  ;;  %v2193_v1 = vmul.bf16 %v8863_v25, %v8873_v33  ;;  %v2191_v15 = vmul.bf16 %v8863_v25, %v8901_v47  ;;  %v2204_v33 = vmul.bf16 %v8863_v25, %v8904_v56 }
 0x2a6   : > { %7026 = vmatprep.subr.bf16.mxu0 %v6535_v49  ;;  %v1724_v45 = vmul.bf16 %v8863_v25, %v1601_v40  ;;  %v2310_v49 = vmul.bf16 %v8867_v26, %v1601_v40  ;;  %v6554_v20 = vcombine.low %v2208_v24, %v2209_v61  ;;  %v2690_v47 = vmul.bf16 %v8867_v26, %v1628_v53  ;;  %v1640_v24 = vld [vmem:[#allocation4 + $0x48] sm:$0xf]  ;;  %v1641_v61 = vld [vmem:[#allocation4 + $0x4c] sm:$0xf] }
 0x2a7   : > { %v6545_v40 = vcombine.low %v2190_v10, %v2191_v15  ;;  %v2202_v56 = vmul.bf16 %v8863_v25, %v8925_v11  ;;  %v2201_v11 = vmul.bf16 %v8863_v25, %v8946_v36  ;;  %v2689_v36 = vmul.bf16 %v8867_v26, %v1627_v22 }
 0x2a8   : > { %v6431_v41 = vcombine.low %v1723_v44, %v1724_v45  ;;  %v6488_v50 = vcombine.low %v2309_v46, %v2310_v49  ;;  %7084 = vmatprep.subr.bf16.mxu1 %v6554_v20  ;;  %v2205_v44 = vmul.bf16 %v8863_v25, %v8906_v13  ;;  %v1629_v45 = vld [vmem:[#allocation4 + $0x1c] sm:$0xf]  ;;  %v2203_v13 = vmul.bf16 %v8863_v25, %v8927_v18  ;;  %v1643_v18 = vld [vmem:[#allocation4 + $0x54] sm:$0xf] }
 0x2a9   : > { %7027 = vmatpush3.bf16.msra.mxu0 %v6527_v51  ;;  %v1726_v51 = vmul.bf16 %v8863_v25, %v1603_v54  ;;  %v2691_v49 = vmul.bf16 %v8867_v26, %v1629_v45  ;;  %v2705_v27 = vmul.bf16 %v8867_v26, %v1643_v18  ;;  %v2702_v20 = vmul.bf16 %v8867_v26, %v1640_v24 }
 0x2aa   : > { %7028 = vmatprep.subr.bf16.mxu0 %v6534_v2  ;;  %v2311_v2 = vmul.bf16 %v8867_v26, %v1602_v12  ;;  %v6552_v46 = vcombine.low %v2204_v33, %v2205_v44  ;;  %v6551_v12 = vcombine.low %v2202_v56, %v2203_v13  ;;  %v2196_v10 = vmul.bf16 %v8863_v25, %v1640_v24  ;;  %v1622_v56 = vld [vmem:[#allocation4] sm:$0xf]  ;;  %v1623_v13 = vld [vmem:[#allocation4 + $0x4] sm:$0xf] }
 0x2ab   : > { %1910 = vmatmul.mubr.bf16.gmra.mxu0 %v6428_v52  ;;  %2416 = vmatmul.mubr.bf16.gmra.mxu1 %v6485_v57  ;;  %v2312_v52 = vmul.bf16 %v8867_v26, %v1603_v54  ;;  %v6432_v57 = vcombine.low %v1725_v55, %v1726_v51  ;;  %v2200_v55 = vmul.bf16 %v8863_v25, %v8944_v35  ;;  %v1642_v51 = vld [vmem:[#allocation4 + $0x50] sm:$0xf] }
 0x2ac   : > { %1919 = vmatprep.mubr.bf16.mxu0 %v11223_v4  ;;  %2425 = vmatprep.mubr.bf16.mxu1 %v11223_v4  ;;  %v2197_v15 = vmul.bf16 %v8863_v25, %v1641_v61 }
 0x2ad   : > { %v6489_v59 = vcombine.low %v2311_v2, %v2312_v52  ;;  %v2184_v2 = vmul.bf16 %v8863_v25, %v1628_v53  ;;  %v2704_v52 = vmul.bf16 %v8867_v26, %v1642_v51 }
 0x2b3   : > { %1920 = vmatmul.mubr.bf16.gmra.mxu0 %v6429_v8  ;;  %2426 = vmatmul.mubr.bf16.gmra.mxu1 %v6486_v60  ;;  %v2314_v8 = vmul.bf16 %v8867_v26, %v1605_v63  ;;  %v6433_v60 = vcombine.low %v1727_v28, %v1728_v7  ;;  %v6533_v28 = vcombine.low %v2704_v52, %v2705_v27  ;;  %v1656_v52 = vld [vmem:[%s8665_s23 + $0x10] sm:$0xff]  ;;  %v1657_v27 = vld [vmem:[%s8665_s23 + $0x18] sm:$0xff] }
 0x2b4   : > { %1929 = vmatprep.mubr.bf16.mxu0 %v11223_v4  ;;  %2435 = vmatprep.mubr.bf16.mxu1 %v11223_v4  ;;  %v2198_v7 = vmul.bf16 %v8863_v25, %v1642_v51  ;;  %v2179_v51 = vmul.bf16 %v8863_v25, %v1623_v13 }
 0x2b5   : > { %v6490_v42 = vcombine.low %v2313_v38, %v2314_v8  ;;  %v2199_v38 = vmul.bf16 %v8863_v25, %v1643_v18 }
 0x2bb   : > { %1930 = vmatmul.mubr.bf16.gmra.mxu0 %v6430_v31  ;;  %2436 = vmatmul.mubr.bf16.gmra.mxu1 %v6487_v34  ;;  %v6546_v31 = vcombine.low %v2192_v62, %v2193_v1  ;;  %v2206_v34 = vmul.bf16 %v8863_v25, %v8885_v37  ;;  %v2188_v37 = vmul.bf16 %v8863_v25, %v8918_v0 }
 0x2bc   : > { %1939 = vmatprep.mubr.bf16.mxu0 %v11223_v4  ;;  %2445 = vmatprep.mubr.bf16.mxu1 %v11223_v4  ;;  %v2186_v0 = vmul.bf16 %v8863_v25, %v8939_v19  ;;  %v2185_v19 = vmul.bf16 %v8863_v25, %v1629_v45  ;;  %v6549_v62 = vcombine.low %v2198_v7, %v2199_v38  ;;  %v1638_v45 = vld [vmem:[#allocation4 + $0x40] sm:$0xf] }
 0x2bd   : > { %7085 = vmatpush3.bf16.msra.mxu1 %v6546_v31  ;;  %v6553_v30 = vcombine.low %v2206_v34, %v2207_v39  ;;  %v2703_v31 = vmul.bf16 %v8867_v26, %v1641_v61  ;;  %v1624_v34 = vld [vmem:[#allocation4 + $0x8] sm:$0xf]  ;;  %v1625_v39 = vld [vmem:[#allocation4 + $0xc] sm:$0xf] }
 0x2be   : > { %v6543_v54 = vcombine.low %v2186_v0, %v2187_v5  ;;  %v6542_v63 = vcombine.low %v2184_v2, %v2185_v19  ;;  %v2180_v33 = vmul.bf16 %v8863_v25, %v1624_v34  ;;  %v2181_v44 = vmul.bf16 %v8863_v25, %v1625_v39  ;;  %v1654_v2 = vld [vmem:[%s8665_s23] sm:$0xff]  ;;  %v1655_v19 = vld [vmem:[%s8665_s23 + $0x8] sm:$0xff] }
 0x2bf   : > { %7086 = vmatprep.subr.bf16.mxu1 %v6553_v30  ;;  %v2686_v30 = vmul.bf16 %v8867_v26, %v1624_v34  ;;  %v2685_v0 = vmul.bf16 %v8867_v26, %v1623_v13  ;;  %v1663_v34 = vld [vmem:[%s8665_s23 + $0x48] sm:$0xff] }
 0x2c0   : > { %v9115_v13 = vunpack.c.l.bf16 %v1663_v34 }
 0x2c1   : > { %7087 = vmatpush3.bf16.msra.mxu1 %v6545_v40  ;;  %v2687_v40 = vmul.bf16 %v8867_v26, %v1625_v39 }
 0x2c2   : > { %7088 = vmatprep.subr.bf16.mxu1 %v6552_v46  ;;  %v1639_v46 = vld [vmem:[#allocation4 + $0x44] sm:$0xf]  ;;  %11350 = vst [vmem:[#allocation40_spill] sm:$0xff] %v9115_v13 }
 0x2c3   : > { %1940 = vmatmul.mubr.bf16.gmra.mxu0 %v6431_v41  ;;  %2446 = vmatmul.mubr.bf16.gmra.mxu1 %v6488_v50  ;;  %v6544_v41 = vcombine.low %v2188_v37, %v2189_v43  ;;  %v6526_v50 = vcombine.low %v2690_v47, %v2691_v49  ;;  %v6532_v37 = vcombine.low %v2702_v20, %v2703_v31  ;;  %v1662_v31 = vld [vmem:[%s8665_s23 + $0x40] sm:$0xff] }
 0x2c4   : > { %1949 = vmatprep.mubr.bf16.mxu0 %v11223_v4  ;;  %2455 = vmatprep.mubr.bf16.mxu1 %v11223_v4  ;;  %v6548_v43 = vcombine.low %v2196_v10, %v2197_v15  ;;  %v6524_v53 = vcombine.low %v2686_v30, %v2687_v40  ;;  %v6540_v47 = vcombine.low %v2180_v33, %v2181_v44  ;;  %v1664_v44 = vld [vmem:[%s8665_s23 + $0x50] sm:$0xff] }
 0x2c5   : > { %7089 = vmatpush3.bf16.msra.mxu1 %v6544_v41  ;;  %7029 = vmatpush3.bf16.msra.mxu0 %v6526_v50  ;;  %v2700_v49 = vmul.bf16 %v8867_v26, %v1638_v45  ;;  %v2701_v41 = vmul.bf16 %v8867_v26, %v1639_v46  ;;  %v2684_v50 = vmul.bf16 %v8867_v26, %v1622_v56 }
 0x2c6   : > { %7090 = vmatprep.subr.bf16.mxu1 %v6551_v12  ;;  %7030 = vmatprep.subr.bf16.mxu0 %v6533_v28  ;;  %v9082_v28 = vunpack.c.l.bf16 %v1656_v52 }
 0x2c7   : > { %v6531_v5 = vcombine.low %v2700_v49, %v2701_v41  ;;  %v6523_v12 = vcombine.low %v2684_v50, %v2685_v0  ;;  %v9111_v41 = vunpack.c.h.bf16 %v1662_v31 }
 0x2c9   : > { %7091 = vmatpush3.bf16.msra.mxu1 %v6543_v54  ;;  %v2194_v54 = vmul.bf16 %v8863_v25, %v1638_v45  ;;  %11348 = vst [vmem:[#allocation38_spill] sm:$0xff] %v9111_v41 }
 0x2cb   : > { %1950 = vmatmul.mubr.bf16.gmra.mxu0 %v6432_v57  ;;  %2456 = vmatmul.mubr.bf16.gmra.mxu1 %v6489_v59  ;;  %v6550_v57 = vcombine.low %v2200_v55, %v2201_v11  ;;  %v1626_v59 = vld [vmem:[#allocation4 + $0x10] sm:$0xf]  ;;  %v2195_v55 = vmul.bf16 %v8863_v25, %v1639_v46  ;;  %v2178_v11 = vmul.bf16 %v8863_v25, %v1622_v56  ;;  %v9113_v56 = vunpack.c.l.bf16 %v1662_v31 }
 0x2cc   : > { %1959 = vmatprep.mubr.bf16.mxu0 %v11223_v4  ;;  %2465 = vmatprep.mubr.bf16.mxu1 %v11223_v4  ;;  %v2688_v35 = vmul.bf16 %v8867_v26, %v1626_v59  ;;  %v2182_v8 = vmul.bf16 %v8863_v25, %v1626_v59  ;;  %v9073_v59 = vunpack.c.l.bf16 %v1654_v2 }
 0x2cd   : > { %7092 = vmatprep.subr.bf16.mxu1 %v6550_v57  ;;  %v6547_v26 = vcombine.low %v2194_v54, %v2195_v55  ;;  %v6539_v18 = vcombine.low %v2178_v11, %v2179_v51  ;;  %v1658_v57 = vld [vmem:[%s8665_s23 + $0x20] sm:$0xff]  ;;  %11349 = vst [vmem:[#allocation39_spill] sm:$0xff] %v9113_v56  ;;  %v9242_v56 = vld [vmem:[#allocation3 + $0x10] ss:$40 sps:$4 sm:$0xff]  }
 0x2ce   : > { %7093 = vmatpush3.bf16.msra.mxu1 %v6542_v63  ;;  %11337 = vst [vmem:[#allocation27_spill] sm:$0xff] %v9073_v59  ;;  %v9076_v63 = vunpack.c.h.bf16 %v1654_v2  ;;  %v9092_v24 = vunpack.c.l.bf16 %v1658_v57 }
 0x2cf   : > { %7094 = vmatprep.subr.bf16.mxu1 %v6549_v62 }
 0x2d0   : > { %11338 = vst [vmem:[#allocation28_spill] sm:$0xff] %v9076_v63  ;;  %11344 = vst [vmem:[#allocation34_spill] sm:$0xff] %v9092_v24 }
 0x2d3   : > { %1960 = vmatmul.mubr.bf16.gmra.mxu0 %v6433_v60  ;;  %2466 = vmatmul.mubr.bf16.gmra.mxu1 %v6490_v42  ;;  %v2183_v60 = vmul.bf16 %v8863_v25, %v1627_v22  ;;  %v6525_v42 = vcombine.low %v2688_v35, %v2689_v36  ;;  %v1659_v22 = vld [vmem:[%s8665_s23 + $0x28] sm:$0xff]  ;;  %v9078_v25 = vunpack.c.l.bf16 %v1655_v19  ;;  %v1660_v35 = vld [vmem:[%s8665_s23 + $0x30] sm:$0xff]  ;;  %v1661_v36 = vld [vmem:[%s8665_s23 + $0x38] sm:$0xff] }
 0x2d4   : > { %v9096_v20 = vunpack.c.l.bf16 %v1659_v22  ;;  %v9100_v15 = vunpack.c.h.bf16 %v1659_v22  ;;  %v9102_v30 = vunpack.c.h.bf16 %v1660_v35  ;;  %v9104_v40 = vunpack.c.l.bf16 %v1660_v35 }
 0x2d5   : > { %v6541_v1 = vcombine.low %v2182_v8, %v2183_v60  ;;  %7031 = vmatpush3.bf16.msra.mxu0 %v6525_v42  ;;  %11339 = vst [vmem:[#allocation29_spill] sm:$0xff] %v9078_v25  ;;  %v9086_v8 = vunpack.c.h.bf16 %v1656_v52  ;;  %v9088_v60 = vunpack.c.h.bf16 %v1657_v27  ;;  %v9090_v42 = vunpack.c.l.bf16 %v1657_v27 }
 0x2d6   : > { %7032 = vmatprep.subr.bf16.mxu0 %v6532_v37  ;;  %11346 = vst [vmem:[#allocation36_spill] sm:$0xff] %v9096_v20  ;;  %11347 = vst [vmem:[#allocation37_spill] sm:$0xff] %v9100_v15  ;;  %v9106_v33 = vunpack.c.l.bf16 %v1661_v36  ;;  %v9109_v49 = vunpack.c.h.bf16 %v1661_v36 }
 0x2d7   : > { %7095 = vmatpush3.bf16.msra.mxu1 %v6541_v1  ;;  %11341 = vst [vmem:[#allocation31_spill] sm:$0xff] %v9086_v8  ;;  %11342 = vst [vmem:[#allocation32_spill] sm:$0xff] %v9088_v60  ;;  %v9094_v1 = vunpack.c.h.bf16 %v1658_v57 }
 0x2d8   : > { %7096 = vmatprep.subr.bf16.mxu1 %v6548_v43  ;;  %11343 = vst [vmem:[#allocation33_spill] sm:$0xff] %v9090_v42 }
 0x2d9   : > { %7033 = vmatpush3.bf16.msra.mxu0 %v6524_v53  ;;  %11345 = vst [vmem:[#allocation35_spill] sm:$0xff] %v9094_v1 }
 0x2da   : > { %7034 = vmatprep.subr.bf16.mxu0 %v6531_v5 }
 0x2db   : > { %7097 = vmatpush3.bf16.msra.mxu1 %v6540_v47 }
 0x2dc   : > { %7098 = vmatprep.subr.bf16.mxu1 %v6547_v26  ;;  %v9117_v26 = vunpack.c.h.bf16 %v1663_v34 }
 0x2dd   : > { %7035 = vmatpush3.bf16.msra.mxu0 %v6523_v12 }
 0x2de   : > { %3255 = vmatprep.subr.bf16.mxu0 %v8813_v32  ;;  %v9080_v32 = vunpack.c.h.bf16 %v1655_v19  ;;  %11351 = vst [vmem:[#allocation41_spill] sm:$0xff] %v9117_v26 }
 0x2df   : > { %7099 = vmatpush3.bf16.msra.mxu1 %v6539_v18  ;;  %v9119_v18 = vunpack.c.l.bf16 %v1664_v44 }
 0x2e0   : > { %11340 = vst [vmem:[#allocation30_spill] sm:$0xff] %v9080_v32 }
 0x2e1   : > { %11352 = vst [vmem:[#allocation42_spill] sm:$0xff] %v9119_v18 }
 0x35b   : > { %v1891_v7 = vpop.f32.mrf.mxu0  ;;  %v2397_v38 = vpop.f32.mrf.mxu1 }
 0x35c   : > { %v1970_v61 = vmul.f32 0.17677669, %v1891_v7  ;;  %v2476_v62 = vmul.f32 0.17677669, %v2397_v38 }
 0x35d   : > { %v1893_v39 = vpop.f32.mrf.mxu0  ;;  %v2399_v10 = vpop.f32.mrf.mxu1 }
 0x35e   : > { %v6450_v37 = vclamps-f32 %v1970_v61, 5.0  ;;  %v6491_v43 = vclamps-f32 %v2476_v62, 5.0  ;;  %v1971_v53 = vmul.f32 0.17677669, %v1893_v39  ;;  %v2477_v45 = vmul.f32 0.17677669, %v2399_v10 }
 0x35f   : > { %v1895_v46 = vpop.f32.mrf.mxu0  ;;  %v2401_v47 = vpop.f32.mrf.mxu1 }
 0x360   : > { %v2066_v50 = vmul.f32 1.442695, %v6450_v37  ;;  %v2572_v0 = vmul.f32 1.442695, %v6491_v43  ;;  %v6451_v5 = vclamps-f32 %v1971_v53, 5.0  ;;  %v6492_v12 = vclamps-f32 %v2477_v45, 5.0 }
 0x361   : > { %v1972_v54 = vmul.f32 0.17677669, %v1895_v46  ;;  %v2478_v55 = vmul.f32 0.17677669, %v2401_v47  ;;  %v1897_v11 = vpop.f32.mrf.mxu0  ;;  %v2403_v51 = vpop.f32.mrf.mxu1 }
 0x362   : > { %7792 = vpow2.f32 %v2066_v50  ;;  %v2068_v2 = vmul.f32 1.442695, %v6451_v5  ;;  %v2574_v19 = vmul.f32 1.442695, %v6492_v12  ;;  %v1973_v52 = vmul.f32 0.17677669, %v1897_v11 }
 0x363   : > { %7794 = vpow2.f32 %v2572_v0  ;;  %v6452_v27 = vclamps-f32 %v1972_v54, 5.0  ;;  %v6493_v57 = vclamps-f32 %v2478_v55, 5.0  ;;  %v2479_v22 = vmul.f32 0.17677669, %v2403_v51  ;;  %v1901_v35 = vpop.f32.mrf.mxu0  ;;  %v2407_v36 = vpop.f32.mrf.mxu1 }
 0x364   : > { %7796 = vpow2.f32 %v2068_v2  ;;  %v6453_v7 = vclamps-f32 %v1973_v52, 5.0  ;;  %v1974_v38 = vmul.f32 0.17677669, %v1901_v35  ;;  %v2480_v61 = vmul.f32 0.17677669, %v2407_v36 }
 0x365   : > { %7798 = vpow2.f32 %v2574_v19  ;;  %v2070_v62 = vmul.f32 1.442695, %v6452_v27  ;;  %v2576_v31 = vmul.f32 1.442695, %v6493_v57  ;;  %v6494_v34 = vclamps-f32 %v2479_v22, 5.0  ;;  %v1903_v39 = vpop.f32.mrf.mxu0  ;;  %v2409_v10 = vpop.f32.mrf.mxu1 }
 0x366   : > { %v2072_v37 = vmul.f32 1.442695, %v6453_v7  ;;  %v6454_v43 = vclamps-f32 %v1974_v38, 5.0  ;;  %v6495_v53 = vclamps-f32 %v2480_v61, 5.0  ;;  %v1975_v45 = vmul.f32 0.17677669, %v1903_v39 }
 0x367   : > { %7800 = vpow2.f32 %v2070_v62  ;;  %v2578_v46 = vmul.f32 1.442695, %v6494_v34  ;;  %v2481_v47 = vmul.f32 0.17677669, %v2409_v10  ;;  %v1905_v50 = vpop.f32.mrf.mxu0  ;;  %v2411_v0 = vpop.f32.mrf.mxu1  ;;  %v9121_v5 = vunpack.c.h.bf16 %v1664_v44 }
 0x368   : > { %7802 = vpow2.f32 %v2576_v31  ;;  %v2074_v12 = vmul.f32 1.442695, %v6454_v43  ;;  %v2580_v54 = vmul.f32 1.442695, %v6495_v53  ;;  %v6455_v55 = vclamps-f32 %v1975_v45, 5.0 }
 0x369   : > { %11353 = vst [vmem:[#allocation43_spill] sm:$0xff] %v9121_v5  ;;  %7804 = vpow2.f32 %v2072_v37  ;;  %v6496_v11 = vclamps-f32 %v2481_v47, 5.0  ;;  %v1976_v51 = vmul.f32 0.17677669, %v1905_v50  ;;  %v2482_v2 = vmul.f32 0.17677669, %v2411_v0  ;;  %v1907_v19 = vpop.f32.mrf.mxu0  ;;  %v2413_v52 = vpop.f32.mrf.mxu1 }
 0x36a   : > { %7806 = vpow2.f32 %v2578_v46  ;;  %v2076_v27 = vmul.f32 1.442695, %v6455_v55  ;;  %v1977_v57 = vmul.f32 0.17677669, %v1907_v19  ;;  %v2483_v22 = vmul.f32 0.17677669, %v2413_v52 }
 0x36b   : > { %7808 = vpow2.f32 %v2074_v12  ;;  %v2582_v35 = vmul.f32 1.442695, %v6496_v11  ;;  %v6456_v36 = vclamps-f32 %v1976_v51, 5.0  ;;  %v6497_v7 = vclamps-f32 %v2482_v2, 5.0  ;;  %v1911_v44 = vpop.f32.mrf.mxu0  ;;  %v2417_v38 = vpop.f32.mrf.mxu1 }
 0x36c   : > { %7810 = vpow2.f32 %v2580_v54  ;;  %v6457_v61 = vclamps-f32 %v1977_v57, 5.0  ;;  %v6498_v62 = vclamps-f32 %v2483_v22, 5.0  ;;  %v1978_v31 = vmul.f32 0.17677669, %v1911_v44 }
 0x36d   : > { %7812 = vpow2.f32 %v2076_v27  ;;  %v2078_v34 = vmul.f32 1.442695, %v6456_v36  ;;  %v2584_v39 = vmul.f32 1.442695, %v6497_v7  ;;  %v2484_v10 = vmul.f32 0.17677669, %v2417_v38  ;;  %v1913_v37 = vpop.f32.mrf.mxu0  ;;  %v2419_v43 = vpop.f32.mrf.mxu1 }
 0x36e   : > { %7814 = vpow2.f32 %v2582_v35  ;;  %v2080_v53 = vmul.f32 1.442695, %v6457_v61  ;;  %v2586_v45 = vmul.f32 1.442695, %v6498_v62  ;;  %v6458_v46 = vclamps-f32 %v1978_v31, 5.0 }
 0x36f   : > { %v7793_v47 = vpop.eup %7792  ;;  %7816 = vpow2.f32 %v2078_v34  ;;  %v6499_v50 = vclamps-f32 %v2484_v10, 5.0  ;;  %v1979_v0 = vmul.f32 0.17677669, %v1913_v37  ;;  %v2485_v12 = vmul.f32 0.17677669, %v2419_v43  ;;  %v1915_v55 = vpop.f32.mrf.mxu0 }
 0x370   : > { %v2421_v54 = vpop.f32.mrf.mxu1  ;;  %v9123_v11 = vpop.eup %7794  ;;  %7818 = vpow2.f32 %v2584_v39  ;;  %v2082_v51 = vmul.f32 1.442695, %v6458_v46  ;;  %v1980_v2 = vmul.f32 0.17677669, %v1915_v55 }
 0x371   : > { %v2486_v19 = vmul.f32 0.17677669, %v2421_v54  ;;  %v7797_v52 = vpop.eup %7796  ;;  %7820 = vpow2.f32 %v2080_v53  ;;  %v2588_v27 = vmul.f32 1.442695, %v6499_v50  ;;  %v6459_v57 = vclamps-f32 %v1979_v0, 5.0  ;;  %v1917_v35 = vpop.f32.mrf.mxu0 }
 0x372   : > { %v6500_v22 = vclamps-f32 %v2485_v12, 5.0  ;;  %v2423_v36 = vpop.f32.mrf.mxu1  ;;  %v9125_v7 = vpop.eup %7798  ;;  %7822 = vpow2.f32 %v2586_v45  ;;  %v6460_v44 = vclamps-f32 %v1980_v2, 5.0  ;;  %v1981_v61 = vmul.f32 0.17677669, %v1917_v35 }
 0x373   : > { %v6501_v38 = vclamps-f32 %v2486_v19, 5.0  ;;  %7824 = vpow2.f32 %v2082_v51  ;;  %v2084_v62 = vmul.f32 1.442695, %v6459_v57  ;;  %v2487_v34 = vmul.f32 0.17677669, %v2423_v36  ;;  %v1921_v39 = vpop.f32.mrf.mxu0 }
 0x374   : > { %v2590_v31 = vmul.f32 1.442695, %v6500_v22  ;;  %v2427_v10 = vpop.f32.mrf.mxu1  ;;  %v7801_v37 = vpop.eup %7800  ;;  %7826 = vpow2.f32 %v2588_v27  ;;  %v2086_v43 = vmul.f32 1.442695, %v6460_v44  ;;  %v6461_v46 = vclamps-f32 %v1981_v61, 5.0  ;;  %v9130_v61 = vld [vmem:[%s8665_s23 + $0x58] sm:$0xff] }
 0x375   : > { %v2592_v53 = vmul.f32 1.442695, %v6501_v38  ;;  %v7803_v50 = vpop.eup %7802  ;;  %7828 = vpow2.f32 %v2084_v62  ;;  %v6502_v0 = vclamps-f32 %v2487_v34, 5.0  ;;  %v1982_v12 = vmul.f32 0.17677669, %v1921_v39  ;;  %v1923_v55 = vpop.f32.mrf.mxu0 }
 0x376   : > { %v2488_v45 = vmul.f32 0.17677669, %v2427_v10  ;;  %v2429_v54 = vpop.f32.mrf.mxu1  ;;  %v9127_v2 = vpop.eup %7804  ;;  %7830 = vpow2.f32 %v2590_v31  ;;  %v2088_v51 = vmul.f32 1.442695, %v6461_v46  ;;  %v1983_v19 = vmul.f32 0.17677669, %v1923_v55 }
 0x377   : > { %v2489_v57 = vmul.f32 0.17677669, %v2429_v54  ;;  %v7807_v22 = vpop.eup %7806  ;;  %7832 = vpow2.f32 %v2086_v43  ;;  %v2594_v27 = vmul.f32 1.442695, %v6502_v0  ;;  %v6462_v35 = vclamps-f32 %v1982_v12, 5.0  ;;  %v1925_v44 = vpop.f32.mrf.mxu0 }
 0x378   : > { %v6503_v36 = vclamps-f32 %v2488_v45, 5.0  ;;  %v2431_v38 = vpop.f32.mrf.mxu1  ;;  %v9132_v62 = vpop.eup %7808  ;;  %7834 = vpow2.f32 %v2592_v53  ;;  %v6463_v34 = vclamps-f32 %v1983_v19, 5.0  ;;  %v9135_v10 = vmul.f32 %v7793_v47, %v9073_v59 }
 0x379   : > { %v6504_v39 = vclamps-f32 %v2489_v57, 5.0  ;;  %v9137_v31 = vpop.eup %7810  ;;  %7836 = vpow2.f32 %v2088_v51  ;;  %v2090_v46 = vmul.f32 1.442695, %v6462_v35  ;;  %v9140_v0 = vmul.f32 %v7797_v52, %v9076_v63  ;;  %v1927_v12 = vpop.f32.mrf.mxu0 }
 0x37a   : > { %v2596_v43 = vmul.f32 1.442695, %v6503_v36  ;;  %v2433_v45 = vpop.f32.mrf.mxu1  ;;  %v9142_v55 = vpop.eup %7812  ;;  %7838 = vpow2.f32 %v2594_v27  ;;  %v2092_v54 = vmul.f32 1.442695, %v6463_v34  ;;  %v9145_v53 = vmul.f32 %v7801_v37, %v9078_v25 }
 0x37b   : > { %v9148_v47 = vunpack.c.l.bf16 %v9130_v61  ;;  %v9150_v19 = vpop.eup %7814  ;;  %7840 = vpow2.f32 %v2090_v46  ;;  %v2210_v51 = vadd.f32 %v9140_v0, %v9135_v10  ;;  %v1984_v52 = vmul.f32 0.17677669, %v1925_v44  ;;  %v1931_v35 = vpop.f32.mrf.mxu0 }
 0x37c   : > { %v2490_v57 = vmul.f32 0.17677669, %v2431_v38  ;;  %v2437_v36 = vpop.f32.mrf.mxu1  ;;  %v9154_v14 = vpop.eup %7816  ;;  %7842 = vpow2.f32 %v2596_v43  ;;  %v2598_v27 = vmul.f32 1.442695, %v6504_v39  ;;  %v1985_v34 = vmul.f32 0.17677669, %v1927_v12 }
 0x37d   : > { %11354 = vst [vmem:[#allocation44_spill] sm:$0xff] %v9148_v47  ;;  %v2491_v37 = vmul.f32 0.17677669, %v2433_v45  ;;  %v9156_v4 = vpop.eup %7818  ;;  %7844 = vpow2.f32 %v2092_v54  ;;  %2211 = vadd.xlane.f32.xlu0 %v2210_v51  ;;  %v2162_v46 = vpack.c.bf16 %v9145_v53, %v9135_v10  ;;  %v6464_v3 = vclamps-f32 %v1984_v52, 5.0  ;;  %v1933_v21 = vpop.f32.mrf.mxu0 }
 0x37e   : > { %v6505_v6 = vclamps-f32 %v2490_v57, 5.0  ;;  %v2439_v44 = vpop.f32.mrf.mxu1  ;;  %v9160_v38 = vpop.eup %7820  ;;  %v6465_v16 = vclamps-f32 %v1985_v34, 5.0  ;;  %v2638_v43 = vmul.f32 %v7803_v50, %v9078_v25  ;;  %v2639_v39 = vmul.f32 %v7807_v22, %v9080_v32 }
 0x37f   : > { %v6506_v47 = vclamps-f32 %v2491_v37, 5.0  ;;  %v9164_v12 = vpop.eup %7822  ;;  %v2094_v45 = vmul.f32 1.442695, %v6464_v3  ;;  %v2637_v51 = vmul.f32 %v9125_v7, %v9076_v63  ;;  %v2636_v10 = vmul.f32 %v9123_v11, %v9073_v59  ;;  %v1935_v52 = vpop.f32.mrf.mxu0 }
 0x380   : > { %v2600_v54 = vmul.f32 1.442695, %v6505_v6  ;;  %v2441_v57 = vpop.f32.mrf.mxu1  ;;  %v9170_v5 = vpop.eup %7824  ;;  %7846 = vpow2.f32 %v2598_v27  ;;  %v2096_v34 = vmul.f32 1.442695, %v6465_v16  ;;  %v3105_v37 = vadd.f32 %v2639_v39, %v2638_v43 }
 0x381   : > { %v2133_v50 = vmul.f32 %v9127_v2, %v9080_v32  ;;  %v9174_v22 = vpop.eup %7826  ;;  %7848 = vpow2.f32 %v2094_v45  ;;  %v2602_v3 = vmul.f32 1.442695, %v6506_v47  ;;  %v2669_v6 = vpack.c.bf16 %v2639_v39, %v2637_v51  ;;  %v1937_v7 = vpop.f32.mrf.mxu0 }
 0x382   : > { %v3102_v25 = vadd.f32 %v2637_v51, %v2636_v10  ;;  %v2443_v63 = vpop.f32.mrf.mxu1  ;;  %v9176_v18 = vpop.eup %7828  ;;  %3106 = vadd.xlane.f32.xlu1 %v3105_v37  ;;  %v2668_v11 = vpack.c.bf16 %v2638_v43, %v2636_v10  ;;  %v1986_v27 = vmul.f32 0.17677669, %v1931_v35  ;;  %v2492_v16 = vmul.f32 0.17677669, %v2437_v36 }
 0x383   : > { %v2163_v59 = vpack.c.bf16 %v2133_v50, %v9140_v0  ;;  %v9179_v13 = vpop.eup %7830  ;;  %7850 = vpow2.f32 %v2600_v54  ;;  %2844 = vmatprep.mubr.bf16.mxu0 %v2669_v6  ;;  %v1987_v2 = vmul.f32 0.17677669, %v1933_v21  ;;  %v2493_v45 = vmul.f32 0.17677669, %v2439_v44  ;;  %v1941_v39 = vpop.f32.mrf.mxu0  ;;  %v9188_v54 = vld [vmem:[#allocation3 + $0x78] ss:$-80 sps:$4 sm:$0xff]  }
 0x384   : > { %3103 = vadd.xlane.f32.xlu0 %v3102_v25  ;;  %v2213_v47 = vadd.f32 %v2133_v50, %v9145_v53  ;;  %v9182_v51 = vpop.f32.mrf.mxu1  ;;  %v9184_v32 = vpop.eup %7832  ;;  %7852 = vpow2.f32 %v2096_v34  ;;  %v6466_v43 = vclamps-f32 %v1986_v27, 5.0  ;;  %v6507_v0 = vclamps-f32 %v2492_v16, 5.0  ;;  %2845 = vmatmul.mubr.bf16.vlgmr.msra.gmra.mxu0 %v2668_v11  ;;  %11355 = vst [vmem:[#allocation45_spill] sm:$0xff] %v9188_v54  ;;  %v9197_v6 = vld [vmem:[#allocation3 + $0x64] ss:$16 sps:$4 sm:$0xff]  }
 0x385   : > { %3037 = vmatprep.mubr.bf16.mxu1 %v2163_v59  ;;  %v1988_v35 = vmul.f32 0.17677669, %v1935_v52  ;;  %v9186_v36 = vpop.eup %7834  ;;  %3256 = vmatpush1.bf16.msra.mxu0 %v9188_v54  ;;  %v6467_v21 = vclamps-f32 %v1987_v2, 5.0  ;;  %v6508_v25 = vclamps-f32 %v2493_v45, 5.0  ;;  %v2494_v53 = vmul.f32 0.17677669, %v2441_v57  ;;  %v9191_v10 = vpop.f32.mrf.mxu0 }
 0x386   : > { %3038 = vmatmul.mubr.bf16.vlgmr.msra.gmra.mxu1 %v2162_v46  ;;  %v1989_v44 = vmul.f32 0.17677669, %v1937_v7  ;;  %v9193_v37 = vpop.f32.mrf.mxu1  ;;  %v9195_v59 = vpop.eup %7836  ;;  %7854 = vpow2.f32 %v2602_v3  ;;  %v2098_v34 = vmul.f32 1.442695, %v6466_v43  ;;  %v2604_v52 = vmul.f32 1.442695, %v6507_v0  ;;  %3257 = vmatprep.subr.bf16.mxu0 %v9197_v6 }
 0x387   : > { %v6468_v50 = vclamps-f32 %v1988_v35, 5.0  ;;  %11356 = vst [vmem:[#allocation46_spill] sm:$0xff] %v9197_v6  ;;  %v9200_v46 = vpop.eup %7838  ;;  %v2100_v11 = vmul.f32 1.442695, %v6467_v21  ;;  %v2606_v27 = vmul.f32 1.442695, %v6508_v25  ;;  %v2641_v7 = vmul.f32 %v9150_v19, %v9086_v8  ;;  %v9204_v16 = vpop.f32.mrf.mxu0 }
 0x388   : > { %2214 = vadd.xlane.f32.xlu0 %v2213_v47  ;;  %v6509_v57 = vclamps-f32 %v2494_v53, 5.0  ;;  %v9206_v2 = vpop.f32.mrf.mxu1  ;;  %v9208_v3 = vpop.eup %7840  ;;  %7856 = vpow2.f32 %v2098_v34  ;;  %v6469_v45 = vclamps-f32 %v1989_v44, 5.0  ;;  %v2495_v43 = vmul.f32 0.17677669, %v2443_v63  ;;  %v9216_v19 = vld [vmem:[#allocation3 + $0x60] ss:$16 sps:$4 sm:$0xff]  }
 0x389   : > { %v2643_v0 = vmul.f32 %v9164_v12, %v9088_v60  ;;  %v9212_v35 = vpop.eup %7842  ;;  %7858 = vpow2.f32 %v2604_v52  ;;  %v2102_v47 = vmul.f32 1.442695, %v6468_v50  ;;  %v2134_v21 = vmul.f32 %v9132_v62, %v9082_v28  ;;  %11357 = vst [vmem:[#allocation47_spill] sm:$0xff] %v9216_v19  ;;  %3258 = vmatpush1.bf16.msra.mxu0 %v9216_v19  ;;  %v1947_v25 = vpop.f32.mrf.mxu0  ;;  %v9228_v50 = vld [vmem:[#allocation3 + $0x14] ss:$40 sps:$4 sm:$0xff]  }
 0x38a   : > { %v9219_v53 = vpop.f32.mrf.mxu1  ;;  %v9222_v44 = vunpack.c.h.bf16 %v9130_v61  ;;  %v9224_v63 = vpop.eup %7844  ;;  %v2608_v12 = vmul.f32 1.442695, %v6509_v57  ;;  %v6510_v34 = vclamps-f32 %v2495_v43, 5.0  ;;  %v2135_v52 = vmul.f32 %v9142_v55, %v9086_v8  ;;  %11359 = vst [vmem:[#allocation49_spill] sm:$0xff] %v9228_v50  ;;  %3259 = vmatprep.subr.bf16.mxu0 %v9228_v50 }
 0x38b   : > { %v2671_v6 = vpack.c.bf16 %v2643_v0, %v2641_v7  ;;  %7860 = vpow2.f32 %v2100_v11  ;;  %v2136_v62 = vmul.f32 %v9154_v14, %v9090_v42  ;;  %v2137_v61 = vmul.f32 %v9160_v38, %v9088_v60  ;;  %v9235_v54 = vpop.f32.mrf.mxu0 }
 0x38c   : > { %11358 = vst [vmem:[#allocation48_spill] sm:$0xff] %v9222_v44  ;;  %v1990_v19 = vmul.f32 0.17677669, %v1941_v39  ;;  %7862 = vpow2.f32 %v2606_v27  ;;  %v2104_v57 = vmul.f32 1.442695, %v6469_v45  ;;  %v2216_v43 = vadd.f32 %v2135_v52, %v2134_v21  ;;  %v9238_v8 = vpop.f32.mrf.mxu1 }
 0x38d   : > { %2852 = vmatprep.mubr.bf16.mxu0 %v2671_v6  ;;  %v2496_v55 = vmul.f32 0.17677669, %v9182_v51  ;;  %v9240_v44 = vpop.eup %7846  ;;  %7864 = vpow2.f32 %v2102_v47  ;;  %v2219_v11 = vadd.f32 %v2137_v61, %v2136_v62  ;;  %v2165_v50 = vpack.c.bf16 %v2137_v61, %v2135_v52  ;;  %3260 = vmatpush1.bf16.msra.mxu0 %v9242_v56  ;;  %v9253_v52 = vpop.f32.mrf.mxu0 }
 0x38e   : > { %v6470_v14 = vclamps-f32 %v1990_v19, 5.0  ;;  %v9245_v38 = vpop.eup %7848  ;;  %v2610_v39 = vmul.f32 1.442695, %v6510_v34  ;;  %2217 = vadd.xlane.f32.xlu0 %v2216_v43  ;;  %v2640_v51 = vmul.f32 %v9137_v31, %v9082_v28  ;;  %v2642_v27 = vmul.f32 %v9156_v4, %v9090_v42  ;;  %3261 = vmatprep.subr.bf16.mxu0 %v8819_v58  ;;  %v9258_v4 = vpop.f32.mrf.mxu1 }
 0x38f   : > { %v6511_v6 = vclamps-f32 %v2496_v55, 5.0  ;;  %7866 = vpow2.f32 %v2608_v12  ;;  %2220 = vadd.xlane.f32.xlu1 %v2219_v11  ;;  %3045 = vmatprep.mubr.bf16.mxu1 %v2165_v50  ;;  %v2164_v47 = vpack.c.bf16 %v2136_v62, %v2134_v21  ;;  %v1991_v19 = vmul.f32 0.17677669, %v9191_v10 }
 0x390   : > { %v2106_v45 = vmul.f32 1.442695, %v6470_v14  ;;  %v9255_v34 = vpop.eup %7850  ;;  %7868 = vpow2.f32 %v2104_v57  ;;  %v2670_v61 = vpack.c.bf16 %v2642_v27, %v2640_v51  ;;  %v2497_v31 = vmul.f32 0.17677669, %v9193_v37 }
 0x391   : > { %v3108_v43 = vadd.f32 %v2641_v7, %v2640_v51  ;;  %v9260_v55 = vpop.eup %7852  ;;  %v2612_v12 = vmul.f32 1.442695, %v6511_v6  ;;  %3046 = vmatmul.mubr.bf16.gmra.mxu1 %v2164_v47  ;;  %v6471_v50 = vclamps-f32 %v1991_v19, 5.0  ;;  %v3111_v21 = vadd.f32 %v2643_v0, %v2642_v27  ;;  %3262 = vmatpush1.bf16.msra.mxu0 %v8827_v17  ;;  %v1666_v7 = vld [vmem:[%s8665_s23 + $0x60] sm:$0xff]  ;;  %v9269_v51 = vpop.f32.mrf.mxu0 }
 0x392   : > { %v1992_v10 = vmul.f32 0.17677669, %v9204_v16  ;;  %7870 = vpow2.f32 %v2610_v39  ;;  %2853 = vmatmul.mubr.bf16.gmra.mxu0 %v2670_v61  ;;  %v6512_v62 = vclamps-f32 %v2497_v31, 5.0  ;;  %v2498_v37 = vmul.f32 0.17677669, %v9206_v2  ;;  %3263 = vmatprep.subr.bf16.mxu0 %v8831_v48 }
 0x393   : > { %3109 = vadd.xlane.f32.xlu0 %v3108_v43  ;;  %v1993_v57 = vmul.f32 0.17677669, %v1947_v25  ;;  %v9266_v11 = vpop.eup %7854  ;;  %7872 = vpow2.f32 %v2106_v45  ;;  %v2108_v14 = vmul.f32 1.442695, %v6471_v50  ;;  %3112 = vadd.xlane.f32.xlu1 %v3111_v21  ;;  %v2499_v0 = vmul.f32 0.17677669, %v9219_v53  ;;  %v2461_v25 = vpop.f32.mrf.mxu1 }
 0x394   : > { %v6472_v6 = vclamps-f32 %v1992_v10, 5.0  ;;  %v2614_v16 = vmul.f32 1.442695, %v6512_v62  ;;  %v6513_v39 = vclamps-f32 %v2498_v37, 5.0  ;;  %v2645_v27 = vmul.f32 %v9179_v13, %v9094_v1  ;;  %v9285_v43 = vld [vmem:[#allocation3 + $0x54] ss:$24 sps:$4 sm:$0xff]   ;;  %v1957_v21 = vpop.f32.mrf.mxu0 }
 0x395   : > { %v2647_v2 = vmul.f32 %v9200_v46, %v9100_v15  ;;  %v9276_v47 = vpop.eup %7856  ;;  %7874 = vpow2.f32 %v2612_v12  ;;  %v6473_v45 = vclamps-f32 %v1993_v57, 5.0  ;;  %v2138_v53 = vmul.f32 %v9170_v5, %v9092_v24  ;;  %3264 = vmatpush1.bf16.msra.mxu0 %v8838_v23 }
 0x396   : > { %v9281_v19 = vunpack.c.l.bf16 %v1666_v7  ;;  %v9283_v61 = vpop.eup %7858  ;;  %7876 = vpow2.f32 %v2108_v14  ;;  %v2110_v31 = vmul.f32 1.442695, %v6472_v6  ;;  %3265 = vmatprep.subr.bf16.mxu0 %v9285_v43  ;;  %v9288_v46 = vunpack.c.h.bf16 %v1666_v7  ;;  %v2463_v14 = vpop.f32.mrf.mxu1 }
 0x397   : > { %v2673_v13 = vpack.c.bf16 %v2647_v2, %v2645_v27  ;;  %7878 = vpow2.f32 %v2614_v16  ;;  %v6514_v12 = vclamps-f32 %v2499_v0, 5.0  ;;  %v2139_v5 = vmul.f32 %v9176_v18, %v9094_v1 }
 0x398   : > { %11360 = vst [vmem:[#allocation50_spill] sm:$0xff] %v9281_v19  ;;  %11361 = vst [vmem:[#allocation51_spill] sm:$0xff] %v9288_v46  ;;  %v2140_v50 = vmul.f32 %v9184_v32, %v9096_v20  ;;  %v9294_v10 = vpop.eup %7860  ;;  %v2616_v62 = vmul.f32 1.442695, %v6513_v39  ;;  %v2141_v37 = vmul.f32 %v9195_v59, %v9100_v15  ;;  %v1994_v57 = vmul.f32 0.17677669, %v9235_v54 }
 0x399   : > { %2860 = vmatprep.mubr.bf16.mxu0 %v2673_v13  ;;  %v2500_v7 = vmul.f32 0.17677669, %v9238_v8  ;;  %v9300_v6 = vpop.eup %7862  ;;  %v2112_v0 = vmul.f32 1.442695, %v6473_v45  ;;  %v2222_v18 = vadd.f32 %v2139_v5, %v2138_v53  ;;  %v2644_v32 = vmul.f32 %v9174_v22, %v9092_v24  ;;  %v9306_v39 = vld [vmem:[#allocation3 + $0x50] ss:$24 sps:$4 sm:$0xff]   ;;  %v1961_v24 = vpop.f32.mrf.mxu0 }
 0x39a   : > { %v2646_v16 = vmul.f32 %v9186_v36, %v9096_v20  ;;  %3266 = vmatpush1.bf16.msra.mxu0 %v9306_v39  ;;  %v9309_v59 = vpop.eup %7864  ;;  %7880 = vpow2.f32 %v2110_v31  ;;  %v2225_v54 = vadd.f32 %v2141_v37, %v2140_v50  ;;  %v2167_v8 = vpack.c.bf16 %v2141_v37, %v2139_v5  ;;  %v2467_v5 = vpop.f32.mrf.mxu1 }
 0x39b   : > { %v6474_v13 = vclamps-f32 %v1994_v57, 5.0  ;;  %3267 = vmatprep.subr.bf16.mxu0 %v8851_v9  ;;  %2223 = vadd.xlane.f32.xlu0 %v2222_v18  ;;  %v6515_v45 = vclamps-f32 %v2500_v7, 5.0  ;;  %v2166_v1 = vpack.c.bf16 %v2140_v50, %v2138_v53  ;;  %v1995_v22 = vmul.f32 0.17677669, %v9253_v52 }
 0x39c   : > { %v2672_v15 = vpack.c.bf16 %v2646_v16, %v2644_v32  ;;  %v9313_v36 = vpop.eup %7866  ;;  %7882 = vpow2.f32 %v2616_v62  ;;  %v2618_v20 = vmul.f32 1.442695, %v6514_v12  ;;  %2226 = vadd.xlane.f32.xlu1 %v2225_v54  ;;  %3053 = vmatprep.mubr.bf16.mxu1 %v2167_v8  ;;  %v2501_v31 = vmul.f32 0.17677669, %v9258_v4 }
 0x39d   : > { %v2114_v60 = vmul.f32 1.442695, %v6474_v13  ;;  %v9316_v37 = vpop.eup %7868  ;;  %v2620_v57 = vmul.f32 1.442695, %v6515_v45  ;;  %3054 = vmatmul.mubr.bf16.gmra.mxu1 %v2166_v1  ;;  %v6475_v7 = vclamps-f32 %v1995_v22, 5.0  ;;  %v3114_v53 = vadd.f32 %v2645_v27, %v2644_v32  ;;  %v1963_v13 = vpop.f32.mrf.mxu0 }
 0x39e   : > { %2861 = vmatmul.mubr.bf16.gmra.mxu0 %v2672_v15  ;;  %v1996_v52 = vmul.f32 0.17677669, %v9269_v51  ;;  %v6516_v50 = vclamps-f32 %v2501_v31, 5.0  ;;  %v3117_v18 = vadd.f32 %v2647_v2, %v2646_v16  ;;  %v2502_v42 = vmul.f32 0.17677669, %v2461_v25  ;;  %v2469_v25 = vpop.f32.mrf.mxu1 }
 0x39f   : > { %v1997_v62 = vmul.f32 0.17677669, %v1957_v21  ;;  %3268 = vmatpush1.bf16.msra.mxu0 %v8869_v29  ;;  %v9320_v12 = vpop.eup %7870  ;;  %7884 = vpow2.f32 %v2112_v0  ;;  %v2116_v4 = vmul.f32 1.442695, %v6475_v7  ;;  %3115 = vadd.xlane.f32.xlu0 %v3114_v53  ;;  %v2503_v8 = vmul.f32 0.17677669, %v2463_v14  ;;  %v1965_v31 = vpop.f32.mrf.mxu0 }
 0x3a0   : > { %v6476_v54 = vclamps-f32 %v1996_v52, 5.0  ;;  %v9322_v15 = vld [vmem:[#allocation3 + $0x34] ss:$-48 sps:$4 sm:$0xff]   ;;  %v9325_v1 = vpop.eup %7872  ;;  %7886 = vpow2.f32 %v2618_v20  ;;  %3118 = vadd.xlane.f32.xlu1 %v3117_v18  ;;  %v2649_v27 = vmul.f32 %v9240_v44, %v9102_v30  ;;  %v2651_v2 = vmul.f32 %v9266_v11, %v9109_v49  ;;  %v9335_v22 = vld [vmem:[#allocation3 + $0x30] ss:$-48 sps:$4 sm:$0xff]   ;;  %v2471_v18 = vpop.f32.mrf.mxu1 }
 0x3a1   : > { %3269 = vmatprep.subr.bf16.mxu0 %v9322_v15  ;;  %v6477_v51 = vclamps-f32 %v1997_v62, 5.0  ;;  %7888 = vpow2.f32 %v2114_v60  ;;  %v2622_v21 = vmul.f32 1.442695, %v6516_v50  ;;  %v6518_v14 = vclamps-f32 %v2503_v8, 5.0  ;;  %v8089_v7 = vld [vmem:[#allocation3 + $0x7c] ss:$-80 sps:$4 sm:$0xff]  }
 0x3a2   : > { %v2142_v0 = vmul.f32 %v9208_v3, %v9104_v40  ;;  %v9333_v32 = vpop.eup %7874  ;;  %7890 = vpow2.f32 %v2620_v57  ;;  %v2118_v16 = vmul.f32 1.442695, %v6476_v54  ;;  %v6517_v20 = vclamps-f32 %v2502_v42, 5.0 }
 0x3a3   : > { %v2675_v45 = vpack.c.bf16 %v2651_v2, %v2649_v27  ;;  %3270 = vmatpush1.bf16.msra.mxu0 %v9335_v22  ;;  %v9338_v44 = vpop.eup %7876  ;;  %7892 = vpow2.f32 %v2116_v4  ;;  %v2120_v11 = vmul.f32 1.442695, %v6477_v51  ;;  %v2143_v60 = vmul.f32 %v9224_v63, %v9102_v30 }
 0x3a4   : > { %v2144_v3 = vmul.f32 %v9245_v38, %v9106_v33  ;;  %3970 = vmatprep.subr.bf16.mxu0 %v8089_v7  ;;  %v9344_v57 = vpop.eup %7878  ;;  %v2626_v42 = vmul.f32 1.442695, %v6518_v14  ;;  %v2145_v53 = vmul.f32 %v9260_v55, %v9109_v49  ;;  %v1998_v52 = vmul.f32 0.17677669, %v1961_v24  ;;  %v1967_v14 = vpop.f32.mrf.mxu0 }
 0x3a5   : > { %2868 = vmatprep.mubr.bf16.mxu0 %v2675_v45  ;;  %v2504_v50 = vmul.f32 0.17677669, %v2467_v5  ;;  %7894 = vpow2.f32 %v2622_v21  ;;  %v2228_v62 = vadd.f32 %v2143_v60, %v2142_v0  ;;  %v2648_v63 = vmul.f32 %v9212_v35, %v9104_v40  ;;  %v2473_v7 = vpop.f32.mrf.mxu1 }
 0x3a6   : > { %v2650_v38 = vmul.f32 %v9255_v34, %v9106_v33  ;;  %7896 = vpow2.f32 %v2118_v16  ;;  %v2231_v4 = vadd.f32 %v2145_v53, %v2144_v3  ;;  %v2169_v54 = vpack.c.bf16 %v2145_v53, %v2143_v60 }
 0x3a7   : > { %v6478_v8 = vclamps-f32 %v1998_v52, 5.0  ;;  %v9352_v51 = vpop.eup %7880  ;;  %7898 = vpow2.f32 %v2120_v11  ;;  %2229 = vadd.xlane.f32.xlu0 %v2228_v62  ;;  %v2168_v24 = vpack.c.bf16 %v2144_v3, %v2142_v0  ;;  %v1999_v5 = vmul.f32 0.17677669, %v1963_v13 }
 0x3a8   : > { %v2674_v55 = vpack.c.bf16 %v2650_v38, %v2648_v63  ;;  %v2624_v21 = vmul.f32 1.442695, %v6517_v20  ;;  %7900 = vpow2.f32 %v2626_v42  ;;  %2232 = vadd.xlane.f32.xlu1 %v2231_v4  ;;  %3061 = vmatprep.mubr.bf16.mxu1 %v2169_v54  ;;  %v6519_v35 = vclamps-f32 %v2504_v50, 5.0 }
 0x3a9   : > { %v2505_v45 = vmul.f32 0.17677669, %v2469_v25  ;;  %v9354_v34 = vpop.eup %7882  ;;  %v2122_v16 = vmul.f32 1.442695, %v6478_v8  ;;  %3062 = vmatmul.mubr.bf16.gmra.mxu1 %v2168_v24  ;;  %v6479_v60 = vclamps-f32 %v1999_v5, 5.0  ;;  %v3120_v53 = vadd.f32 %v2649_v27, %v2648_v63  ;;  %v11362_v63 = vld [vmem:[#allocation39_spill] sm:$0xff] }
 0x3aa   : > { %2869 = vmatmul.mubr.bf16.gmra.mxu0 %v2674_v55  ;;  %v2000_v11 = vmul.f32 0.17677669, %v1965_v31  ;;  %v3123_v62 = vadd.f32 %v2651_v2, %v2650_v38  ;;  %v2506_v0 = vmul.f32 0.17677669, %v2471_v18  ;;  %v2001_v13 = vmul.f32 0.17677669, %v1967_v14 }
 0x3ab   : > { %v6520_v52 = vclamps-f32 %v2505_v45, 5.0  ;;  %v2124_v3 = vmul.f32 1.442695, %v6479_v60  ;;  %3121 = vadd.xlane.f32.xlu0 %v3120_v53  ;;  %v2507_v42 = vmul.f32 0.17677669, %v2473_v7  ;;  %v2653_v25 = vmul.f32 %v9300_v6, %v9111_v41 }
 0x3ac   : > { %v6480_v20 = vclamps-f32 %v2000_v11, 5.0  ;;  %v7885_v50 = vpop.eup %7884  ;;  %7902 = vpow2.f32 %v2624_v21  ;;  %3124 = vadd.xlane.f32.xlu1 %v3123_v62  ;;  %v6481_v54 = vclamps-f32 %v2001_v13, 5.0  ;;  %v9360_v27 = vmul.f32 %v9320_v12, %v9117_v26  ;;  %v11364_v11 = vld [vmem:[#allocation42_spill] sm:$0xff] }
 0x3ad   : > { %v2630_v4 = vmul.f32 1.442695, %v6520_v52  ;;  %v7887_v31 = vpop.eup %7886  ;;  %7904 = vpow2.f32 %v2122_v16  ;;  %v2628_v2 = vmul.f32 1.442695, %v6519_v35  ;;  %v6522_v18 = vclamps-f32 %v2507_v42, 5.0  ;;  %v11363_v16 = vld [vmem:[#allocation40_spill] sm:$0xff] }
 0x3ae   : > { %v2652_v38 = vmul.f32 %v9283_v61, %v11362_v63  ;;  %v7889_v8 = vpop.eup %7888  ;;  %7906 = vpow2.f32 %v2124_v3  ;;  %v6521_v55 = vclamps-f32 %v2506_v0, 5.0  ;;  %v2128_v6 = vmul.f32 1.442695, %v6481_v54  ;;  %v11365_v52 = vld [vmem:[#allocation43_spill] sm:$0xff]  ;;  %v1667_v0 = vld [vmem:[%s8665_s23 + $0x68] sm:$0xff] }
 0x3af   : > { %v2677_v24 = vpack.c.bf16 %v9360_v27, %v2653_v25  ;;  %v9365_v5 = vpop.eup %7890  ;;  %v2126_v14 = vmul.f32 1.442695, %v6480_v20  ;;  %v2634_v21 = vmul.f32 1.442695, %v6522_v18  ;;  %v2146_v45 = vmul.f32 %v9276_v47, %v11362_v63 }
 0x3b0   : > { %v3126_v12 = vadd.f32 %v2653_v25, %v2652_v38  ;;  %v7893_v35 = vpop.eup %7892  ;;  %7908 = vpow2.f32 %v2630_v4  ;;  %v2147_v61 = vmul.f32 %v9294_v10, %v9111_v41  ;;  %v2149_v7 = vmul.f32 %v9316_v37, %v9117_v26 }
 0x3b1   : > { %2876 = vmatprep.mubr.bf16.mxu0 %v2677_v24  ;;  %v2654_v60 = vmul.f32 %v9313_v36, %v11363_v16  ;;  %7910 = vpow2.f32 %v2128_v6  ;;  %v2148_v53 = vmul.f32 %v9309_v59, %v11363_v16  ;;  %v2150_v47 = vmul.f32 %v9325_v1, %v11364_v11 }
 0x3b2   : > { %3127 = vadd.xlane.f32.xlu0 %v3126_v12  ;;  %v2151_v62 = vmul.f32 %v9338_v44, %v11365_v52  ;;  %v7895_v13 = vpop.eup %7894  ;;  %7912 = vpow2.f32 %v2634_v21  ;;  %v2234_v10 = vadd.f32 %v2147_v61, %v2146_v45  ;;  %v2171_v3 = vpack.c.bf16 %v2149_v7, %v2147_v61  ;;  %v11367_v44 = vld [vmem:[#allocation48_spill] sm:$0xff] }
 0x3b3   : > { %v9382_v37 = vunpack.c.h.bf16 %v1667_v0  ;;  %v7897_v20 = vpop.eup %7896  ;;  %v2632_v36 = vmul.f32 1.442695, %v6521_v55  ;;  %v2676_v42 = vpack.c.bf16 %v2654_v60, %v2652_v38  ;;  %v2170_v25 = vpack.c.bf16 %v2148_v53, %v2146_v45  ;;  %v11368_v38 = vld [vmem:[#allocation44_spill] sm:$0xff] }
 0x3b4   : > { %v2240_v4 = vadd.f32 %v2151_v62, %v2150_v47  ;;  %v7899_v54 = vpop.eup %7898  ;;  %7914 = vpow2.f32 %v2628_v2  ;;  %2235 = vadd.xlane.f32.xlu1 %v2234_v10  ;;  %3069 = vmatprep.mubr.bf16.mxu1 %v2171_v3  ;;  %v2237_v59 = vadd.f32 %v2149_v7, %v2148_v53  ;;  %v2657_v1 = vmul.f32 %v9344_v57, %v11365_v52  ;;  %v9677_v52 = vld [vmem:[#allocation4 + $0x10] sm:$0xf] }
 0x3b5   : > { %11366 = vst [vmem:[#allocation52_spill] sm:$0xff] %v9382_v37  ;;  %v9387_v18 = vmul.f32 %v7887_v31, %v11367_v44  ;;  %v7901_v6 = vpop.eup %7900  ;;  %7916 = vpow2.f32 %v2126_v14  ;;  %2877 = vmatmul.mubr.bf16.gmra.mxu0 %v2676_v42  ;;  %3070 = vmatmul.mubr.bf16.gmra.mxu1 %v2170_v25  ;;  %v2153_v55 = vmul.f32 %v7885_v50, %v11367_v44  ;;  %v9413_v25 = vunpack.c.l.bf16 %v1667_v0 }
 0x3b6   : > { %v2152_v24 = vmul.f32 %v9352_v51, %v11368_v38  ;;  %2241 = vadd.xlane.f32.xlu0 %v2240_v4  ;;  %v2656_v21 = vmul.f32 %v9333_v32, %v11364_v11  ;;  %v9396_v57 = vmul.f32 %v7889_v8, %v9281_v19  ;;  %v2155_v31 = vmul.f32 %v7893_v35, %v9288_v46  ;;  %v1668_v35 = vld [vmem:[%s8665_s23 + $0x70] sm:$0xff]  ;;  %v9698_v11 = vld [vmem:[#allocation4 + $0x4c] sm:$0xf] }
 0x3b7   : > { %v2679_v2 = vpack.c.bf16 %v9387_v18, %v2657_v1  ;;  %7918 = vpow2.f32 %v2632_v36  ;;  %v2173_v14 = vpack.c.bf16 %v2153_v55, %v2151_v62  ;;  %v2658_v50 = vmul.f32 %v9354_v34, %v11368_v38  ;;  %11370 = vst [vmem:[#allocation54_spill] sm:$0xff] %v9413_v25 }
 0x3b8   : > { %2238 = vadd.xlane.f32.xlu1 %v2237_v59  ;;  %v3132_v51 = vadd.f32 %v2657_v1, %v2656_v21  ;;  %v2661_v12 = vmul.f32 %v7895_v13, %v9288_v46  ;;  %v9403_v45 = vmul.f32 %v7901_v6, %v9382_v37  ;;  %v2172_v8 = vpack.c.bf16 %v2152_v24, %v2150_v47  ;;  %v1669_v13 = vld [vmem:[%s8665_s23 + $0x78] sm:$0xff] }
 0x3b9   : > { %2884 = vmatprep.mubr.bf16.mxu0 %v2679_v2  ;;  %v7903_v32 = vpop.eup %7902  ;;  %3077 = vmatprep.mubr.bf16.mxu1 %v2173_v14  ;;  %v2157_v61 = vmul.f32 %v7899_v54, %v9382_v37  ;;  %v3129_v53 = vadd.f32 %v9360_v27, %v2654_v60  ;;  %v2246_v34 = vadd.f32 %v2155_v31, %v9396_v57  ;;  %v9410_v10 = vunpack.c.h.bf16 %v1668_v35  ;;  %v11384_v37 = vld [vmem:[#allocation26_spill] sm:$0xff] }
 0x3ba   : > { %v7905_v7 = vpop.eup %7904  ;;  %3133 = vadd.xlane.f32.xlu0 %v3132_v51  ;;  %v2681_v62 = vpack.c.bf16 %v9403_v45, %v2661_v12  ;;  %v2678_v36 = vpack.c.bf16 %v2658_v50, %v2656_v21  ;;  %v9415_v47 = vunpack.c.h.bf16 %v1669_v13  ;;  %v2243_v4 = vadd.f32 %v2153_v55, %v2152_v24  ;;  %v11373_v21 = vld [vmem:[#allocation24_spill] sm:$0xff] }
 0x3bb   : > { %11369 = vst [vmem:[#allocation53_spill] sm:$0xff] %v9410_v10  ;;  %v7907_v3 = vpop.eup %7906  ;;  %v2175_v42 = vpack.c.bf16 %v2157_v61, %v2155_v31  ;;  %v9417_v54 = vunpack.c.l.bf16 %v1668_v35  ;;  %v2156_v60 = vmul.f32 %v7897_v20, %v9413_v25  ;;  %v2660_v1 = vmul.f32 %v9365_v5, %v9281_v19 }
 0x3bc   : > { %11371 = vst [vmem:[#allocation55_spill] sm:$0xff] %v9415_v47  ;;  %3130 = vadd.xlane.f32.xlu1 %v3129_v53  ;;  %v2159_v6 = vmul.f32 %v7907_v3, %v9410_v10  ;;  %v2662_v55 = vmul.f32 %v7903_v32, %v9413_v25  ;;  %vm3182_vm4 = vcmp.ge.s32.totalorder %v11373_v21, 64  ;;  %vm3183_vm5 = vcmp.lt.s32.totalorder %v11373_v21, 96 }
 0x3bd   : > { %11372 = vst [vmem:[#allocation56_spill] sm:$0xff] %v9417_v54  ;;  %v7909_v27 = vpop.eup %7908  ;;  %2885 = vmatmul.mubr.bf16.gmra.mxu0 %v2678_v36  ;;  %3078 = vmatmul.mubr.bf16.gmra.mxu1 %v2172_v8  ;;  %v2158_v0 = vmul.f32 %v7905_v7, %v9417_v54  ;;  %v3138_v20 = vadd.f32 %v2661_v12, %v2660_v1  ;;  %vm3184_vm6 = vmand %vm3182_vm4, %vm3183_vm5  ;;  %vm3897_vm7 = vcmp.ge.s32.totalorder %v11373_v21, 96  ;;  %v9586_v21 = vld [vmem:[#allocation4 + $0x68] sm:$0xf] }
 0x3be   : > { %v7911_v59 = vpop.eup %7910  ;;  %2247 = vadd.xlane.f32.xlu0 %v2246_v34  ;;  %2892 = vmatprep.mubr.bf16.mxu0 %v2681_v62  ;;  %v2665_v31 = vmul.f32 %v7909_v27, %v9410_v10  ;;  %v2174_v51 = vpack.c.bf16 %v2156_v60, %v9396_v57  ;;  %v3135_v35 = vadd.f32 %v9387_v18, %v2658_v50  ;;  %v9432_v62 = vunpack.c.l.bf16 %v1669_v13 }
 0x3bf   : > { %v7913_v2 = vpop.eup %7912  ;;  %3085 = vmatprep.mubr.bf16.mxu1 %v2175_v42  ;;  %v2161_v24 = vmul.f32 %v7911_v59, %v9415_v47  ;;  %v2252_v32 = vadd.f32 %v2159_v6, %v2158_v0  ;;  %v2680_v53 = vpack.c.bf16 %v2662_v55, %v2660_v1  ;;  %v2249_v3 = vadd.f32 %v2157_v61, %v2156_v60  ;;  %v9448_v1 = vld [vmem:[%s8857_s24] sm:$0xf] }
 0x3c0   : > { %2244 = vadd.xlane.f32.xlu1 %v2243_v4  ;;  %v2667_v14 = vmul.f32 %v7913_v2, %v9415_v47  ;;  %11374 = vst [vmem:[#allocation24_spill] sm:$0xff] %v9432_v62  ;;  %v11375_v50 = vmov 0.0   ;;  %v3141_v27 = vadd.f32 %v9403_v45, %v2662_v55 }
 0x3c1   : > { %v7915_v5 = vpop.eup %7914  ;;  %v2177_v34 = vpack.c.bf16 %v2161_v24, %v2159_v6  ;;  %v9439_v36 = vsel %vm3184_vm6, 1.0, %v11375_v50 }
 0x3c2   : > { %v7917_v8 = vpop.eup %7916  ;;  %3139 = vadd.xlane.f32.xlu0 %v3138_v20  ;;  %v2683_v7 = vpack.c.bf16 %v2667_v14, %v2665_v31  ;;  %v2664_v18 = vmul.f32 %v7915_v5, %v9417_v54  ;;  %11376 = vst [vmem:[#allocation57_spill] sm:$0xff] %v9439_v36  ;;  %v9444_v61 = vpack.c.bf16 %v9439_v36, %v9439_v36  ;;  %v11377_v20 = vmov 0   ;;  %v9464_v5 = vld [vmem:[%s8857_s24 + $0xc] sm:$0xf] }
 0x3c3   : > { %v2160_v57 = vmul.f32 %v7917_v8, %v9432_v62  ;;  %v11378_v8 = vld [vmem:[#allocation45_spill] sm:$0xff] }
 0x3c4   : > { %v7919_v12 = vpop.eup %7918  ;;  %3136 = vadd.xlane.f32.xlu1 %v3135_v35  ;;  %v3144_v42 = vadd.f32 %v2665_v31, %v2664_v18  ;;  %v3191_v6 = vmul.bf16 %v9448_v1, %v9444_v61  ;;  %v11379_v35 = vld [vmem:[#allocation46_spill] sm:$0xff]  ;;  %v11383_v36 = vld [vmem:[#allocation25_spill] sm:$0xff] }
 0x3c5   : > { %2893 = vmatmul.mubr.bf16.gmra.mxu0 %v2680_v53  ;;  %3086 = vmatmul.mubr.bf16.gmra.mxu1 %v2174_v51  ;;  %v2666_v13 = vmul.f32 %v7919_v12, %v9432_v62  ;;  %v2176_v4 = vpack.c.bf16 %v2160_v57, %v2158_v0  ;;  %v2255_v59 = vadd.f32 %v2161_v24, %v2160_v57  ;;  %v9453_v0 = vld [vmem:[%s8857_s24 + $0x4] sm:$0xf]  ;;  %v9459_v24 = vld [vmem:[%s8857_s24 + $0x8] sm:$0xf]  ;;  %v9474_v53 = vld [vmem:[%s8857_s24 + $0x10] sm:$0xf] }
 0x3c6   : > { %2253 = vadd.xlane.f32.xlu0 %v2252_v32  ;;  %2900 = vmatprep.mubr.bf16.mxu0 %v2683_v7  ;;  %v3192_v2 = vmul.bf16 %v9453_v0, %v9444_v61  ;;  %v3193_v31 = vmul.bf16 %v9459_v24, %v9444_v61  ;;  %v3194_v51 = vmul.bf16 %v9464_v5, %v9444_v61  ;;  %v11380_v32 = vld [vmem:[#allocation47_spill] sm:$0xff]  ;;  %v11381_v7 = vld [vmem:[#allocation49_spill] sm:$0xff]  ;;  %v9479_v12 = vld [vmem:[%s8857_s24 + $0x14] sm:$0xf] }
 0x3c7   : > { %3093 = vmatprep.mubr.bf16.mxu1 %v2177_v34  ;;  %v2682_v60 = vpack.c.bf16 %v2666_v13, %v2664_v18  ;;  %v3147_v55 = vadd.f32 %v2667_v14, %v2666_v13  ;;  %v3195_v34 = vmul.bf16 %v9474_v53, %v9444_v61  ;;  %v9489_v18 = vld [vmem:[%s8857_s24 + $0x18] sm:$0xf] }
 0x3c8   : > { %2250 = vadd.xlane.f32.xlu1 %v2249_v3  ;;  %v6556_v45 = vcombine.low %v3191_v6, %v3192_v2  ;;  %v6557_v14 = vcombine.low %v3193_v31, %v3194_v51  ;;  %v3196_v3 = vmul.bf16 %v9479_v12, %v9444_v61  ;;  %v3197_v13 = vmul.bf16 %v9489_v18, %v9444_v61  ;;  %v9526_v6 = vld [vmem:[%s8857_s24 + $0x28] sm:$0xf]  ;;  %v9535_v2 = vld [vmem:[#allocation4 + $0x38] sm:$0xf] }
 0x3ca   : > { %3145 = vadd.xlane.f32.xlu0 %v3144_v42  ;;  %v6558_v57 = vcombine.low %v3195_v34, %v3196_v3  ;;  %v9494_v42 = vld [vmem:[%s8857_s24 + $0x1c] sm:$0xf]  ;;  %v9555_v34 = vld [vmem:[#allocation4 + $0x70] sm:$0xf] }
 0x3cb   : > { %v3604_v3 = vmul.bf16 %v9555_v34, %v9444_v61 }
 0x3cc   : > { %3142 = vadd.xlane.f32.xlu1 %v3141_v27  ;;  %v9521_v27 = vld [vmem:[#allocation4 + $0x7c] sm:$0xf] }
 0x3cd   : > { %2901 = vmatmul.mubr.bf16.gmra.mxu0 %v2682_v60  ;;  %3094 = vmatmul.mubr.bf16.gmra.mxu1 %v2176_v4  ;;  %v9509_v4 = vld [vmem:[%s8857_s24 + $0x24] sm:$0xf]  ;;  %v3607_v60 = vmul.bf16 %v9521_v27, %v9444_v61 }
 0x3ce   : > { %3287 = vmatprep.mubr.bf16.mxu0 %v11377_v20 }
 0x3d0   : > { %2256 = vadd.xlane.f32.xlu1 %v2255_v59 }
 0x3d4   : > { %3148 = vadd.xlane.f32.xlu1 %v3147_v55  ;;  %v9539_v55 = vld [vmem:[#allocation4 + $0x3c] sm:$0xf] }
 0x3d5   : > { %3288 = vmatmul.mubr.bf16.vlgmr.msra.gmra.mxu0 %v6556_v45  ;;  %v3590_v45 = vmul.bf16 %v9535_v2, %v9444_v61  ;;  %v3591_v31 = vmul.bf16 %v9539_v55, %v9444_v61 }
 0x3d6   : > { %3971 = vmatpush1.bf16.msra.mxu0 %v11378_v8  ;;  %3297 = vmatprep.mubr.bf16.mxu0 %v11377_v20 }
 0x3d7   : > { %3972 = vmatprep.subr.bf16.mxu0 %v11379_v35  ;;  %v6603_v51 = vcombine.low %v3590_v45, %v3591_v31  ;;  %v9545_v35 = vld [vmem:[%s8857_s24 + $0x30] sm:$0xf]  ;;  %v9583_v31 = vsel %vm3897_vm7, 1.0, %v11375_v50  ;;  %v9598_v50 = vld [vmem:[#allocation4 + $0x2c] sm:$0xf] }
 0x3d8   : > { %11382 = vst [vmem:[#allocation45_spill] sm:$0xff] %v9583_v31 }
 0x3da   : > { %3973 = vmatpush1.bf16.msra.mxu0 %v11380_v32  ;;  %v9550_v32 = vld [vmem:[%s8857_s24 + $0x34] sm:$0xf] }
 0x3db   : > { %3974 = vmatprep.subr.bf16.mxu0 %v11381_v7  ;;  %v3204_v7 = vmul.bf16 %v9550_v32, %v9444_v61 }
 0x3dd   : > { %3298 = vmatmul.mubr.bf16.gmra.mxu0 %v6557_v14  ;;  %v3203_v14 = vmul.bf16 %v9545_v35, %v9444_v61 }
 0x3de   : > { %3307 = vmatprep.mubr.bf16.mxu0 %v11377_v20  ;;  %3975 = vmatpush1.bf16.msra.mxu0 %v9242_v56  ;;  %v3198_v56 = vmul.bf16 %v9494_v42, %v9444_v61 }
 0x3df   : > { %3976 = vmatprep.subr.bf16.mxu0 %v8819_v58 }
 0x3e0   : > { %v6559_v58 = vcombine.low %v3197_v13, %v3198_v56  ;;  %v9563_v56 = vld [vmem:[#allocation4 + $0x30] sm:$0xf] }
 0x3e2   : > { %3977 = vmatpush1.bf16.msra.mxu0 %v8827_v17  ;;  %v9504_v17 = vld [vmem:[%s8857_s24 + $0x20] sm:$0xf] }
 0x3e3   : > { %3978 = vmatprep.subr.bf16.mxu0 %v8831_v48  ;;  %v3199_v48 = vmul.bf16 %v9504_v17, %v9444_v61 }
 0x3e5   : > { %3308 = vmatmul.mubr.bf16.gmra.mxu0 %v6558_v57  ;;  %v9559_v57 = vld [vmem:[#allocation4 + $0x74] sm:$0xf] }
 0x3e6   : > { %3317 = vmatprep.mubr.bf16.mxu0 %v11377_v20  ;;  %3979 = vmatpush1.bf16.msra.mxu0 %v8838_v23  ;;  %v3200_v23 = vmul.bf16 %v9509_v4, %v9444_v61  ;;  %v3605_v13 = vmul.bf16 %v9559_v57, %v9444_v61 }
 0x3e7   : > { %3980 = vmatprep.subr.bf16.mxu0 %v9285_v43  ;;  %v9517_v43 = vld [vmem:[#allocation4 + $0x78] sm:$0xf] }
 0x3ea   : > { %3981 = vmatpush1.bf16.msra.mxu0 %v9306_v39  ;;  %v3606_v39 = vmul.bf16 %v9517_v43, %v9444_v61 }
 0x3eb   : > { %3982 = vmatprep.subr.bf16.mxu0 %v8851_v9  ;;  %v6560_v9 = vcombine.low %v3199_v48, %v3200_v23  ;;  %v9567_v48 = vld [vmem:[#allocation4 + $0x34] sm:$0xf] }
 0x3ec   : > { %v6611_v59 = vcombine.low %v3606_v39, %v3607_v60  ;;  %v3589_v23 = vmul.bf16 %v9567_v48, %v9444_v61  ;;  %v6562_v60 = vcombine.low %v3203_v14, %v3204_v7  ;;  %v9590_v14 = vld [vmem:[#allocation4 + $0x6c] sm:$0xf] }
 0x3ed   : > { %3318 = vmatmul.mubr.bf16.gmra.mxu0 %v6559_v58  ;;  %v3588_v58 = vmul.bf16 %v9563_v56, %v9444_v61  ;;  %v3603_v7 = vmul.bf16 %v9590_v14, %v9444_v61 }
 0x3ee   : > { %3327 = vmatprep.mubr.bf16.mxu0 %v11377_v20  ;;  %3983 = vmatpush1.bf16.msra.mxu0 %v8869_v29  ;;  %v3201_v29 = vmul.bf16 %v9526_v6, %v9444_v61 }
 0x3ef   : > { %3984 = vmatprep.subr.bf16.mxu0 %v9322_v15  ;;  %v9531_v15 = vld [vmem:[%s8857_s24 + $0x2c] sm:$0xf]  ;;  %7148 = vmatprep.subr.bf16.mxu1 %v6611_v59  ;;  %v6602_v39 = vcombine.low %v3588_v58, %v3589_v23  ;;  %v9573_v59 = vld [vmem:[%s8857_s24 + $0x38] sm:$0xf]  ;;  %v3587_v58 = vmul.bf16 %v9598_v50, %v9444_v61 }
 0x3f0   : > { %7149 = vmatpush3.bf16.msra.mxu1 %v6603_v51 }
 0x3f2   : > { %3985 = vmatpush1.bf16.msra.mxu0 %v9335_v22  ;;  %v3202_v22 = vmul.bf16 %v9531_v15, %v9444_v61 }
 0x3f4   : > { %v6561_v8 = vcombine.low %v3201_v29, %v3202_v22  ;;  %v3205_v29 = vmul.bf16 %v9573_v59, %v9444_v61  ;;  %v9578_v22 = vld [vmem:[%s8857_s24 + $0x3c] sm:$0xf] }
 0x3f5   : > { %3328 = vmatmul.mubr.bf16.gmra.mxu0 %v6560_v9  ;;  %v6610_v9 = vcombine.low %v3604_v3, %v3605_v13  ;;  %v3206_v45 = vmul.bf16 %v9578_v22, %v9444_v61  ;;  %v9594_v3 = vld [vmem:[#allocation4 + $0x28] sm:$0xf] }
 0x3f6   : > { %3337 = vmatprep.mubr.bf16.mxu0 %v11377_v20  ;;  %v3586_v13 = vmul.bf16 %v9594_v3, %v9444_v61 }
 0x3f7   : > { %7150 = vmatprep.subr.bf16.mxu1 %v6610_v9 }
 0x3f8   : > { %7151 = vmatpush3.bf16.msra.mxu1 %v6602_v39  ;;  %v6601_v9 = vcombine.low %v3586_v13, %v3587_v58  ;;  %v6563_v39 = vcombine.low %v3205_v29, %v3206_v45  ;;  %v9613_v45 = vld [vmem:[#allocation4 + $0x60] sm:$0xf] }
 0x3f9   : > { %v9621_v58 = vld [vmem:[#allocation4 + $0x20] sm:$0xf] }
 0x3fd   : > { %3338 = vmatmul.mubr.bf16.gmra.mxu0 %v6561_v8  ;;  %v3602_v8 = vmul.bf16 %v9586_v21, %v9444_v61 }
 0x3fe   : > { %3347 = vmatprep.mubr.bf16.mxu0 %v11377_v20 }
 0x3ff   : > { %v6609_v23 = vcombine.low %v3602_v8, %v3603_v7  ;;  %v3600_v7 = vmul.bf16 %v9613_v45, %v9444_v61 }
 0x401   : > { %7152 = vmatprep.subr.bf16.mxu1 %v6609_v23 }
 0x402   : > { %7153 = vmatpush3.bf16.msra.mxu1 %v6601_v9 }
 0x405   : > { %3348 = vmatmul.mubr.bf16.gmra.mxu0 %v6562_v60  ;;  %v9604_v60 = vpack.c.bf16 %v9583_v31, %v9583_v31 }
 0x406   : > { %3357 = vmatprep.mubr.bf16.mxu0 %v11377_v20  ;;  %v2212_v51 = vpop.xlane.xlu0 %2211 }
 0x407   : > { %v2258_v47 = vmul.f32 %v2212_v51, %v11383_v36  ;;  %v3906_v10 = vmul.bf16 %v9448_v1, %v9604_v60  ;;  %v3907_v54 = vmul.bf16 %v9453_v0, %v9604_v60  ;;  %v9617_v51 = vld [vmem:[#allocation4 + $0x64] sm:$0xf]  ;;  %v3584_v1 = vmul.bf16 %v9621_v58, %v9444_v61 }
 0x408   : > { %v3601_v13 = vmul.bf16 %v9617_v51, %v9444_v61  ;;  %v9625_v0 = vld [vmem:[#allocation4 + $0x24] sm:$0xf]  ;;  %v3908_v38 = vmul.bf16 %v9459_v24, %v9604_v60  ;;  %v3916_v41 = vmul.bf16 %v9526_v6, %v9604_v60  ;;  %v3917_v63 = vmul.bf16 %v9531_v15, %v9604_v60 }
 0x409   : > { %v6613_v25 = vcombine.low %v3906_v10, %v3907_v54  ;;  %v9644_v54 = vld [vmem:[#allocation4 + $0x5c] sm:$0xf]  ;;  %v4322_v6 = vmul.bf16 %v9521_v27, %v9604_v60 }
 0x40b   : > { %v3107_v29 = vpop.xlane.xlu1 %3106 }
 0x40c   : > { %v3151_v46 = vmul.f32 %v3107_v29, %v11384_v37 }
 0x40d   : > { %v3104_v62 = vpop.xlane.xlu0 %3103  ;;  %3358 = vmatmul.mubr.bf16.gmra.mxu0 %v6563_v39  ;;  %v6608_v39 = vcombine.low %v3600_v7, %v3601_v13 }
 0x40e   : > { %v3150_v8 = vmul.f32 %v3104_v62, %v11384_v37  ;;  %4002 = vmatprep.mubr.bf16.mxu0 %v11377_v20  ;;  %v3585_v62 = vmul.bf16 %v9625_v0, %v9444_v61 }
 0x40f   : > { %7154 = vmatprep.subr.bf16.mxu1 %v6608_v39  ;;  %v9655_v39 = vld [vmem:[#allocation4 + $0x1c] sm:$0xf] }
 0x410   : > { %v9629_v23 = vadd.f32 %v3150_v8, %v2258_v47  ;;  %v6600_v31 = vcombine.low %v3584_v1, %v3585_v62  ;;  %v3909_v47 = vmul.bf16 %v9464_v5, %v9604_v60  ;;  %v9640_v8 = vld [vmem:[#allocation4 + $0x58] sm:$0xf] }
 0x411   : > { %v2215_v9 = vpop.xlane.xlu0 %2214  ;;  %v3598_v10 = vmul.bf16 %v9640_v8, %v9444_v61  ;;  %v9651_v62 = vld [vmem:[#allocation4 + $0x18] sm:$0xf] }
 0x412   : > { %11385 = vst [vmem:[#allocation46_spill] sm:$0xff] %v9629_v23  ;;  %v2259_v19 = vmul.f32 %v2215_v9, %v11383_v36  ;;  %7155 = vmatpush3.bf16.msra.mxu1 %v6600_v31  ;;  %v6614_v29 = vcombine.low %v3908_v38, %v3909_v47  ;;  %v3582_v9 = vmul.bf16 %v9651_v62, %v9444_v61 }
 0x413   : > { %v3910_v38 = vmul.bf16 %v9474_v53, %v9604_v60  ;;  %v3911_v47 = vmul.bf16 %v9479_v12, %v9604_v60  ;;  %v9673_v53 = vld [vmem:[#allocation4 + $0x54] sm:$0xf] }
 0x414   : > { %v9633_v44 = vadd.f32 %v3151_v46, %v2259_v19  ;;  %v3599_v19 = vmul.bf16 %v9644_v54, %v9444_v61  ;;  %v3597_v12 = vmul.bf16 %v9673_v53, %v9444_v61 }
 0x415   : > { %4003 = vmatmul.mubr.bf16.vlgmr.msra.gmra.mxu0 %v6613_v25 }
 0x416   : > { %11386 = vst [vmem:[#allocation47_spill] sm:$0xff] %v9633_v44  ;;  %4012 = vmatprep.mubr.bf16.mxu0 %v11377_v20  ;;  %v6607_v31 = vcombine.low %v3598_v10, %v3599_v19  ;;  %v3583_v10 = vmul.bf16 %v9655_v39, %v9444_v61  ;;  %v9669_v44 = vld [vmem:[#allocation4 + $0x50] sm:$0xf] }
 0x417   : > { %v2218_v46 = vpop.xlane.xlu0 %2217 }
 0x418   : > { %v2221_v25 = vpop.xlane.xlu1 %2220  ;;  %v2260_v24 = vmul.f32 %v2218_v46, %v11383_v36  ;;  %7156 = vmatprep.subr.bf16.mxu1 %v6607_v31 }
 0x419   : > { %v2261_v5 = vmul.f32 %v2221_v25, %v11383_v36  ;;  %v6599_v25 = vcombine.low %v3582_v9, %v3583_v10  ;;  %v3912_v9 = vmul.bf16 %v9489_v18, %v9604_v60  ;;  %v3913_v10 = vmul.bf16 %v9494_v42, %v9604_v60 }
 0x41b   : > { %7157 = vmatpush3.bf16.msra.mxu1 %v6599_v25 }
 0x41c   : > { %v3110_v7 = vpop.xlane.xlu0 %3109  ;;  %v3113_v1 = vpop.xlane.xlu1 %3112 }
 0x41d   : > { %v3152_v13 = vmul.f32 %v3110_v7, %v11384_v37  ;;  %4013 = vmatmul.mubr.bf16.gmra.mxu0 %v6614_v29  ;;  %v3153_v19 = vmul.f32 %v3113_v1, %v11384_v37  ;;  %v6615_v7 = vcombine.low %v3910_v38, %v3911_v47  ;;  %v3596_v29 = vmul.bf16 %v9669_v44, %v9444_v61 }
 0x41e   : > { %4022 = vmatprep.mubr.bf16.mxu0 %v11377_v20 }
 0x41f   : > { %v9665_v46 = vadd.f32 %v3152_v13, %v2260_v24  ;;  %v9667_v31 = vadd.f32 %v3153_v19, %v2261_v5  ;;  %v6606_v23 = vcombine.low %v3596_v29, %v3597_v12  ;;  %v3580_v24 = vmul.bf16 %v9677_v52, %v9444_v61  ;;  %v9681_v5 = vld [vmem:[#allocation4 + $0x14] sm:$0xf] }
 0x420   : > { %v3581_v13 = vmul.bf16 %v9681_v5, %v9444_v61  ;;  %v6616_v12 = vcombine.low %v3912_v9, %v3913_v10  ;;  %v9706_v9 = vld [vmem:[#allocation4 + $0x8] sm:$0xf]  ;;  %v9710_v10 = vld [vmem:[#allocation4 + $0xc] sm:$0xf] }
 0x421   : > { %11387 = vst [vmem:[#allocation49_spill] sm:$0xff] %v9665_v46  ;;  %11388 = vst [vmem:[#allocation58_spill] sm:$0xff] %v9667_v31  ;;  %7158 = vmatprep.subr.bf16.mxu1 %v6606_v23  ;;  %v9694_v46 = vld [vmem:[#allocation4 + $0x48] sm:$0xf]  ;;  %v3595_v23 = vmul.bf16 %v9698_v11, %v9444_v61 }
 0x422   : > { %v6598_v47 = vcombine.low %v3580_v24, %v3581_v13  ;;  %v3594_v42 = vmul.bf16 %v9694_v46, %v9444_v61 }
 0x424   : > { %v2224_v1 = vpop.xlane.xlu0 %2223  ;;  %7159 = vmatpush3.bf16.msra.mxu1 %v6598_v47  ;;  %v6605_v13 = vcombine.low %v3594_v42, %v3595_v23  ;;  %v3914_v47 = vmul.bf16 %v9504_v17, %v9604_v60  ;;  %v9723_v42 = vld [vmem:[#allocation4 + $0x44] sm:$0xf] }
 0x425   : > { %4023 = vmatmul.mubr.bf16.gmra.mxu0 %v6615_v7  ;;  %v2227_v38 = vpop.xlane.xlu1 %2226  ;;  %v2262_v19 = vmul.f32 %v2224_v1, %v11383_v36 }
 0x426   : > { %4032 = vmatprep.mubr.bf16.mxu0 %v11377_v20  ;;  %v2263_v25 = vmul.f32 %v2227_v38, %v11383_v36  ;;  %v3579_v38 = vmul.bf16 %v9710_v10, %v9444_v61  ;;  %7160 = vmatprep.subr.bf16.mxu1 %v6605_v13  ;;  %v9731_v13 = vld [vmem:[#allocation4 + $0x4] sm:$0xf] }
 0x428   : > { %v3116_v29 = vpop.xlane.xlu0 %3115 }
 0x429   : > { %v3154_v7 = vmul.f32 %v3116_v29, %v11384_v37  ;;  %v3119_v31 = vpop.xlane.xlu1 %3118 }
 0x42a   : > { %v3155_v18 = vmul.f32 %v3119_v31, %v11384_v37  ;;  %v3578_v31 = vmul.bf16 %v9706_v9, %v9444_v61 }
 0x42b   : > { %v9702_v1 = vadd.f32 %v3154_v7, %v2262_v19  ;;  %v3915_v19 = vmul.bf16 %v9509_v4, %v9604_v60  ;;  %v9719_v7 = vld [vmem:[#allocation4 + $0x40] sm:$0xf] }
 0x42c   : > { %v9704_v24 = vadd.f32 %v3155_v18, %v2263_v25  ;;  %v6597_v25 = vcombine.low %v3578_v31, %v3579_v38  ;;  %v3592_v18 = vmul.bf16 %v9719_v7, %v9444_v61  ;;  %v3577_v31 = vmul.bf16 %v9731_v13, %v9444_v61 }
 0x42d   : > { %11389 = vst [vmem:[#allocation59_spill] sm:$0xff] %v9702_v1  ;;  %4033 = vmatmul.mubr.bf16.gmra.mxu0 %v6616_v12  ;;  %v3593_v12 = vmul.bf16 %v9723_v42, %v9444_v61  ;;  %v6617_v17 = vcombine.low %v3914_v47, %v3915_v19 }
 0x42e   : > { %11390 = vst [vmem:[#allocation60_spill] sm:$0xff] %v9704_v24  ;;  %4042 = vmatprep.mubr.bf16.mxu0 %v11377_v20  ;;  %7161 = vmatpush3.bf16.msra.mxu1 %v6597_v25  ;;  %v9727_v24 = vld [vmem:[#allocation4] sm:$0xf] }
 0x42f   : > { %v3576_v4 = vmul.bf16 %v9727_v24, %v9444_v61  ;;  %v6604_v38 = vcombine.low %v3592_v18, %v3593_v12  ;;  %v6618_v12 = vcombine.low %v3916_v41, %v3917_v63 }
 0x430   : > { %v2230_v29 = vpop.xlane.xlu0 %2229 }
 0x431   : > { %v2233_v23 = vpop.xlane.xlu1 %2232  ;;  %v2264_v25 = vmul.f32 %v2230_v29, %v11383_v36  ;;  %v6596_v1 = vcombine.low %v3576_v4, %v3577_v31  ;;  %7162 = vmatprep.subr.bf16.mxu1 %v6604_v38  ;;  %v3918_v4 = vmul.bf16 %v9545_v35, %v9604_v60 }
 0x432   : > { %v2265_v26 = vmul.f32 %v2233_v23, %v11383_v36 }
 0x433   : > { %7163 = vmatpush3.bf16.msra.mxu1 %v6596_v1 }
 0x434   : > { %v3122_v16 = vpop.xlane.xlu0 %3121 }
 0x435   : > { %4043 = vmatmul.mubr.bf16.gmra.mxu0 %v6617_v17  ;;  %v3156_v47 = vmul.f32 %v3122_v16, %v11384_v37  ;;  %v3125_v19 = vpop.xlane.xlu1 %3124  ;;  %v4321_v16 = vmul.bf16 %v9517_v43, %v9604_v60 }
 0x436   : > { %v3157_v61 = vmul.f32 %v3125_v19, %v11384_v37  ;;  %4052 = vmatprep.mubr.bf16.mxu0 %v11377_v20 }
 0x437   : > { %v9744_v29 = vadd.f32 %v3156_v47, %v2264_v25  ;;  %v6668_v15 = vcombine.low %v4321_v16, %v4322_v6 }
 0x438   : > { %v9746_v18 = vadd.f32 %v3157_v61, %v2265_v26  ;;  %v3919_v26 = vmul.bf16 %v9550_v32, %v9604_v60  ;;  %v3920_v61 = vmul.bf16 %v9573_v59, %v9604_v60 }
 0x439   : > { %11391 = vst [vmem:[#allocation61_spill] sm:$0xff] %v9744_v29  ;;  %7212 = vmatprep.subr.bf16.mxu1 %v6668_v15 }
 0x43a   : > { %11392 = vst [vmem:[#allocation62_spill] sm:$0xff] %v9746_v18  ;;  %v6619_v31 = vcombine.low %v3918_v4, %v3919_v26 }
 0x43b   : > { %v3128_v17 = vpop.xlane.xlu0 %3127 }
 0x43c   : > { %v3158_v23 = vmul.f32 %v3128_v17, %v11384_v37 }
 0x43d   : > { %4053 = vmatmul.mubr.bf16.gmra.mxu0 %v6618_v12  ;;  %v2236_v1 = vpop.xlane.xlu1 %2235  ;;  %v3921_v12 = vmul.bf16 %v9578_v22, %v9604_v60 }
 0x43e   : > { %v2266_v41 = vmul.f32 %v2236_v1, %v11383_v36  ;;  %4062 = vmatprep.mubr.bf16.mxu0 %v11377_v20 }
 0x43f   : > { %v2242_v63 = vpop.xlane.xlu0 %2241  ;;  %v6620_v59 = vcombine.low %v3920_v61, %v3921_v12 }
 0x440   : > { %v9759_v43 = vadd.f32 %v3158_v23, %v2266_v41  ;;  %v2268_v38 = vmul.f32 %v2242_v63, %v11383_v36 }
 0x441   : > { %v2239_v27 = vpop.xlane.xlu1 %2238 }
 0x442   : > { %11393 = vst [vmem:[#allocation63_spill] sm:$0xff] %v9759_v43  ;;  %v2267_v47 = vmul.f32 %v2239_v27, %v11383_v36 }
 0x443   : > { %v3134_v25 = vpop.xlane.xlu0 %3133 }
 0x444   : > { %v3160_v35 = vmul.f32 %v3134_v25, %v11384_v37  ;;  %v7036_v19 = vpop.f32.mrf.mxu0 }
 0x445   : > { %4063 = vmatmul.mubr.bf16.gmra.mxu0 %v6619_v31  ;;  %v3131_v32 = vpop.xlane.xlu1 %3130 }
 0x446   : > { %v7100_v17 = vpop.f32.mrf.mxu1  ;;  %v3159_v16 = vmul.f32 %v3131_v32, %v11384_v37  ;;  %v9769_v6 = vadd.f32 %v3160_v35, %v2268_v38  ;;  %4072 = vmatprep.mubr.bf16.mxu0 %v11377_v20  ;;  %v7037_v23 = vpop.f32.mrf.mxu0 }
 0x447   : > { %v2248_v15 = vpop.xlane.xlu0 %2247  ;;  %v7038_v1 = vadd.f32 %v7037_v23, %v7036_v19 }
 0x448   : > { %11394 = vst [vmem:[#allocation64_spill] sm:$0xff] %v9769_v6  ;;  %v7101_v4 = vpop.f32.mrf.mxu1  ;;  %v9772_v26 = vadd.f32 %v3159_v16, %v2267_v47  ;;  %v7039_v63 = vpop.f32.mrf.mxu0  ;;  %v2270_v22 = vmul.f32 %v2248_v15, %v11383_v36 }
 0x449   : > { %v7102_v41 = vadd.f32 %v7101_v4, %v7100_v17  ;;  %v2245_v27 = vpop.xlane.xlu1 %2244 }
 0x44a   : > { %11395 = vst [vmem:[#allocation65_spill] sm:$0xff] %v9772_v26  ;;  %v7103_v31 = vpop.f32.mrf.mxu1  ;;  %v7040_v32 = vpop.f32.mrf.mxu0  ;;  %v2269_v20 = vmul.f32 %v2245_v27, %v11383_v36 }
 0x44b   : > { %v9775_v25 = vadd.f32 %v7102_v41, %v7038_v1  ;;  %v3140_v38 = vpop.xlane.xlu0 %3139  ;;  %v7041_v35 = vadd.f32 %v7040_v32, %v7039_v63 }
 0x44c   : > { %v7104_v6 = vpop.f32.mrf.mxu1  ;;  %v3162_v19 = vmul.f32 %v3140_v38, %v11384_v37 }
 0x44d   : > { %v7105_v23 = vadd.f32 %v7104_v6, %v7103_v31  ;;  %4073 = vmatmul.mubr.bf16.gmra.mxu0 %v6620_v59  ;;  %v3137_v47 = vpop.xlane.xlu1 %3136 }
 0x44e   : > { %v3161_v17 = vmul.f32 %v3137_v47, %v11384_v37  ;;  %v9780_v16 = vadd.f32 %v3162_v19, %v2270_v22 }
 0x44f   : > { %v9782_v61 = vadd.f32 %v7105_v23, %v7041_v35 }
 0x450   : > { %11396 = vst [vmem:[#allocation66_spill] sm:$0xff] %v9780_v16  ;;  %v9784_v12 = vadd.f32 %v3161_v17, %v2269_v20 }
 0x451   : > { %v2251_v15 = vpop.xlane.xlu1 %2250  ;;  %v7106_v1 = vpop.f32.mrf.mxu1 }
 0x452   : > { %11397 = vst [vmem:[#allocation67_spill] sm:$0xff] %v9784_v12  ;;  %v7042_v4 = vpop.f32.mrf.mxu0  ;;  %v2271_v63 = vmul.f32 %v2251_v15, %v11383_v36 }
 0x453   : > { %v7107_v41 = vpop.f32.mrf.mxu1 }
 0x454   : > { %v7043_v27 = vpop.f32.mrf.mxu0  ;;  %v7108_v32 = vadd.f32 %v7107_v41, %v7106_v1 }
 0x455   : > { %v3143_v38 = vpop.xlane.xlu1 %3142  ;;  %v7044_v6 = vadd.f32 %v7043_v27, %v7042_v4  ;;  %v7109_v59 = vpop.f32.mrf.mxu1 }
 0x456   : > { %v3163_v31 = vmul.f32 %v3143_v38, %v11384_v37  ;;  %v7045_v47 = vpop.f32.mrf.mxu0 }
 0x457   : > { %v9788_v22 = vadd.f32 %v7108_v32, %v7044_v6  ;;  %v7110_v35 = vpop.f32.mrf.mxu1 }
 0x458   : > { %v9790_v19 = vadd.f32 %v3163_v31, %v2271_v63  ;;  %v7046_v20 = vpop.f32.mrf.mxu0  ;;  %v7111_v23 = vadd.f32 %v7110_v35, %v7109_v59 }
 0x459   : > { %v7047_v17 = vadd.f32 %v7046_v20, %v7045_v47 }
 0x45a   : > { %11398 = vst [vmem:[#allocation68_spill] sm:$0xff] %v9790_v19 }
 0x45b   : > { %v9792_v16 = vadd.f32 %v7111_v23, %v7047_v17 }
 0x45d   : > { %v7112_v15 = vpop.f32.mrf.mxu1 }
 0x45e   : > { %v7048_v12 = vpop.f32.mrf.mxu0 }
 0x45f   : > { %v7113_v41 = vpop.f32.mrf.mxu1 }
 0x460   : > { %v7049_v36 = vpop.f32.mrf.mxu0  ;;  %v7114_v4 = vadd.f32 %v7113_v41, %v7112_v15 }
 0x461   : > { %v7050_v1 = vadd.f32 %v7049_v36, %v7048_v12  ;;  %v7115_v26 = vpop.f32.mrf.mxu1 }
 0x462   : > { %v7051_v27 = vpop.f32.mrf.mxu0 }
 0x463   : > { %v9794_v38 = vadd.f32 %v7114_v4, %v7050_v1  ;;  %v7116_v37 = vpop.f32.mrf.mxu1 }
 0x464   : > { %v7052_v32 = vpop.f32.mrf.mxu0  ;;  %v7117_v63 = vadd.f32 %v7116_v37, %v7115_v26 }
 0x465   : > { %v7053_v6 = vadd.f32 %v7052_v32, %v7051_v27 }
 0x467   : > { %v9796_v31 = vadd.f32 %v7117_v63, %v7053_v6 }
 0x469   : > { %11399 = vst [vmem:[#allocation69_spill] sm:$0xff] %v9796_v31  ;;  %v7118_v47 = vpop.f32.mrf.mxu1 }
 0x46a   : > { %v7054_v59 = vpop.f32.mrf.mxu0 }
 0x46b   : > { %v7119_v20 = vpop.f32.mrf.mxu1 }
 0x46c   : > { %v7055_v35 = vpop.f32.mrf.mxu0  ;;  %v7120_v17 = vadd.f32 %v7119_v20, %v7118_v47 }
 0x46d   : > { %v7056_v23 = vadd.f32 %v7055_v35, %v7054_v59  ;;  %v7121_v36 = vpop.f32.mrf.mxu1 }
 0x46e   : > { %v7057_v19 = vpop.f32.mrf.mxu0 }
 0x46f   : > { %v9798_v12 = vadd.f32 %v7120_v17, %v7056_v23  ;;  %v7122_v41 = vpop.f32.mrf.mxu1 }
 0x470   : > { %v7058_v15 = vpop.f32.mrf.mxu0  ;;  %v7123_v4 = vadd.f32 %v7122_v41, %v7121_v36 }
 0x471   : > { %11400 = vst [vmem:[#allocation70_spill] sm:$0xff] %v9798_v12  ;;  %v7059_v1 = vadd.f32 %v7058_v15, %v7057_v19 }
 0x473   : > { %v9800_v43 = vadd.f32 %v7123_v4, %v7059_v1 }
 0x475   : > { %11401 = vst [vmem:[#allocation71_spill] sm:$0xff] %v9800_v43  ;;  %v7060_v27 = vpop.f32.mrf.mxu0  ;;  %v7124_v37 = vpop.f32.mrf.mxu1 }
 0x477   : > { %v7061_v26 = vpop.f32.mrf.mxu0  ;;  %v7125_v32 = vpop.f32.mrf.mxu1 }
 0x478   : > { %v7062_v6 = vadd.f32 %v7061_v26, %v7060_v27  ;;  %v7126_v63 = vadd.f32 %v7125_v32, %v7124_v37 }
 0x479   : > { %v7063_v18 = vpop.f32.mrf.mxu0  ;;  %v7127_v29 = vpop.f32.mrf.mxu1 }
 0x47a   : > { %v9802_v59 = vadd.f32 %v7126_v63, %v7062_v6 }
 0x47b   : > { %v7064_v47 = vpop.f32.mrf.mxu0  ;;  %v7128_v35 = vpop.f32.mrf.mxu1 }
 0x47c   : > { %11402 = vst [vmem:[#allocation72_spill] sm:$0xff] %v9802_v59  ;;  %v7065_v20 = vadd.f32 %v7064_v47, %v7063_v18  ;;  %v7129_v23 = vadd.f32 %v7128_v35, %v7127_v29 }
 0x47d   : > { %v7066_v17 = vpop.f32.mrf.mxu0  ;;  %v7130_v12 = vpop.f32.mrf.mxu1 }
 0x47e   : > { %v9804_v19 = vadd.f32 %v7129_v23, %v7065_v20 }
 0x47f   : > { %v7067_v36 = vpop.f32.mrf.mxu0  ;;  %v7131_v15 = vpop.f32.mrf.mxu1 }
 0x480   : > { %11403 = vst [vmem:[#allocation73_spill] sm:$0xff] %v9804_v19  ;;  %v7068_v41 = vadd.f32 %v7067_v36, %v7066_v17  ;;  %v7132_v1 = vadd.f32 %v7131_v15, %v7130_v12 }
 0x481   : > { %v7069_v4 = vpop.f32.mrf.mxu0  ;;  %v7133_v43 = vpop.f32.mrf.mxu1 }
 0x482   : > { %v9806_v27 = vadd.f32 %v7132_v1, %v7068_v41 }
 0x483   : > { %v7070_v37 = vpop.f32.mrf.mxu0  ;;  %v7134_v26 = vpop.f32.mrf.mxu1 }
 0x484   : > { %11404 = vst [vmem:[#allocation74_spill] sm:$0xff] %v9806_v27  ;;  %v7071_v32 = vadd.f32 %v7070_v37, %v7069_v4  ;;  %v7135_v6 = vadd.f32 %v7134_v26, %v7133_v43 }
 0x485   : > { %v7072_v63 = vpop.f32.mrf.mxu0  ;;  %v7136_v59 = vpop.f32.mrf.mxu1 }
 0x486   : > { %v9808_v18 = vadd.f32 %v7135_v6, %v7071_v32 }
 0x487   : > { %v7073_v29 = vpop.f32.mrf.mxu0  ;;  %v7137_v47 = vpop.f32.mrf.mxu1 }
 0x488   : > { %11405 = vst [vmem:[#allocation75_spill] sm:$0xff] %v9808_v18  ;;  %v7074_v35 = vadd.f32 %v7073_v29, %v7072_v63  ;;  %v7138_v20 = vadd.f32 %v7137_v47, %v7136_v59 }
 0x489   : > { %v7075_v23 = vpop.f32.mrf.mxu0  ;;  %v7139_v19 = vpop.f32.mrf.mxu1 }
 0x48a   : > { %v9810_v17 = vadd.f32 %v7138_v20, %v7074_v35 }
 0x48b   : > { %v7076_v12 = vpop.f32.mrf.mxu0  ;;  %v7140_v36 = vpop.f32.mrf.mxu1 }
 0x48c   : > { %11406 = vst [vmem:[#allocation76_spill] sm:$0xff] %v9810_v17  ;;  %v7077_v15 = vadd.f32 %v7076_v12, %v7075_v23  ;;  %v7141_v41 = vadd.f32 %v7140_v36, %v7139_v19 }
 0x48d   : > { %v7078_v1 = vpop.f32.mrf.mxu0  ;;  %v7142_v27 = vpop.f32.mrf.mxu1 }
 0x48e   : > { %v9812_v4 = vadd.f32 %v7141_v41, %v7077_v15 }
 0x48f   : > { %v7079_v43 = vpop.f32.mrf.mxu0  ;;  %v7143_v37 = vpop.f32.mrf.mxu1 }
 0x490   : > { %11407 = vst [vmem:[#allocation77_spill] sm:$0xff] %v9812_v4  ;;  %v7080_v26 = vadd.f32 %v7079_v43, %v7078_v1  ;;  %v7144_v32 = vadd.f32 %v7143_v37, %v7142_v27 }
 0x491   : > { %v7081_v6 = vpop.f32.mrf.mxu0  ;;  %v7145_v18 = vpop.f32.mrf.mxu1 }
 0x492   : > { %v9814_v63 = vadd.f32 %v7144_v32, %v7080_v26 }
 0x493   : > { %v7082_v59 = vpop.f32.mrf.mxu0  ;;  %v7146_v29 = vpop.f32.mrf.mxu1 }
 0x494   : > { %11408 = vst [vmem:[#allocation78_spill] sm:$0xff] %v9814_v63  ;;  %v7083_v47 = vadd.f32 %v7082_v59, %v7081_v6  ;;  %v7147_v35 = vadd.f32 %v7146_v29, %v7145_v18 }
 0x495   : > { %v3289_v20 = vpop.f32.mrf.mxu0 }
 0x496   : > { %v9816_v17 = vadd.f32 %v7147_v35, %v7083_v47  ;;  %v3368_v19 = vmul.f32 0.17677669, %v3289_v20 }
 0x497   : > { %v3291_v23 = vpop.f32.mrf.mxu0 }
 0x498   : > { %11409 = vst [vmem:[#allocation79_spill] sm:$0xff] %v9816_v17  ;;  %v6564_v12 = vclamps-f32 %v3368_v19, 5.0  ;;  %v3369_v36 = vmul.f32 0.17677669, %v3291_v23 }
 0x499   : > { %v3293_v15 = vpop.f32.mrf.mxu0 }
 0x49a   : > { %v3464_v41 = vmul.f32 1.442695, %v6564_v12  ;;  %v6565_v4 = vclamps-f32 %v3369_v36, 5.0  ;;  %v3370_v1 = vmul.f32 0.17677669, %v3293_v15 }
 0x49b   : > { %v3295_v27 = vpop.f32.mrf.mxu0 }
 0x49c   : > { %v3466_v43 = vmul.f32 1.442695, %v6565_v4  ;;  %v6566_v37 = vclamps-f32 %v3370_v1, 5.0  ;;  %v3371_v26 = vmul.f32 0.17677669, %v3295_v27  ;;  %7920 = vpow2.f32 %v3464_v41 }
 0x49d   : > { %v3299_v32 = vpop.f32.mrf.mxu0 }
 0x49e   : > { %7922 = vpow2.f32 %v3466_v43  ;;  %v3468_v6 = vmul.f32 1.442695, %v6566_v37  ;;  %v6567_v18 = vclamps-f32 %v3371_v26, 5.0  ;;  %v3372_v59 = vmul.f32 0.17677669, %v3299_v32 }
 0x49f   : > { %v3301_v29 = vpop.f32.mrf.mxu0  ;;  %v4305_v43 = vmul.bf16 %v9535_v2, %v9604_v60  ;;  %v4306_v37 = vmul.bf16 %v9539_v55, %v9604_v60  ;;  %v4304_v2 = vmul.bf16 %v9567_v48, %v9604_v60 }
 0x4a0   : > { %7924 = vpow2.f32 %v3468_v6  ;;  %v3470_v47 = vmul.f32 1.442695, %v6567_v18  ;;  %v6568_v35 = vclamps-f32 %v3372_v59, 5.0  ;;  %v3373_v20 = vmul.f32 0.17677669, %v3301_v29 }
 0x4a1   : > { %v3303_v19 = vpop.f32.mrf.mxu0  ;;  %v4319_v59 = vmul.bf16 %v9555_v34, %v9604_v60  ;;  %v4320_v29 = vmul.bf16 %v9559_v57, %v9604_v60  ;;  %v4318_v34 = vmul.bf16 %v9590_v14, %v9604_v60 }
 0x4a2   : > { %7926 = vpow2.f32 %v3470_v47  ;;  %v3472_v23 = vmul.f32 1.442695, %v6568_v35  ;;  %v6569_v12 = vclamps-f32 %v3373_v20, 5.0  ;;  %v3374_v36 = vmul.f32 0.17677669, %v3303_v19 }
 0x4a3   : > { %v3305_v15 = vpop.f32.mrf.mxu0  ;;  %v4303_v47 = vmul.bf16 %v9563_v56, %v9604_v60  ;;  %v9834_v48 = vcombine.low %v4319_v59, %v4320_v29 }
 0x4a4   : > { %v3474_v4 = vmul.f32 1.442695, %v6569_v12  ;;  %v6570_v1 = vclamps-f32 %v3374_v36, 5.0  ;;  %v3375_v27 = vmul.f32 0.17677669, %v3305_v15  ;;  %7928 = vpow2.f32 %v3472_v23 }
 0x4a5   : > { %v3309_v41 = vpop.f32.mrf.mxu0  ;;  %v4317_v23 = vmul.bf16 %v9586_v21, %v9604_v60  ;;  %v9840_v14 = vcombine.low %v4303_v47, %v4304_v2  ;;  %v4315_v2 = vmul.bf16 %v9613_v45, %v9604_v60 }
 0x4a6   : > { %7930 = vpow2.f32 %v3474_v4  ;;  %v3476_v26 = vmul.f32 1.442695, %v6570_v1  ;;  %v6571_v32 = vclamps-f32 %v3375_v27, 5.0  ;;  %v3376_v6 = vmul.f32 0.17677669, %v3309_v41 }
 0x4a7   : > { %v3311_v18 = vpop.f32.mrf.mxu0  ;;  %v6660_v1 = vcombine.low %v4305_v43, %v4306_v37  ;;  %v4301_v27 = vmul.bf16 %v9594_v3, %v9604_v60  ;;  %v4302_v41 = vmul.bf16 %v9598_v50, %v9604_v60  ;;  %v9844_v37 = vcombine.low %v4317_v23, %v4318_v34  ;;  %v11413_v34 = vld [vmem:[#allocation30_spill] sm:$0xff] }
 0x4a8   : > { %7932 = vpow2.f32 %v3476_v26  ;;  %v3478_v35 = vmul.f32 1.442695, %v6571_v32  ;;  %v6572_v55 = vclamps-f32 %v3376_v6, 5.0  ;;  %v3377_v20 = vmul.f32 0.17677669, %v3311_v18 }
 0x4a9   : > { %v3313_v19 = vpop.f32.mrf.mxu0  ;;  %v7921_v12 = vpop.eup %7920  ;;  %v9847_v47 = vcombine.low %v4301_v27, %v4302_v41  ;;  %v4300_v27 = vmul.bf16 %v9625_v0, %v9604_v60 }
 0x4aa   : > { %7934 = vpow2.f32 %v3478_v35  ;;  %v3480_v57 = vmul.f32 1.442695, %v6572_v55  ;;  %v6573_v36 = vclamps-f32 %v3377_v20, 5.0  ;;  %v3378_v15 = vmul.f32 0.17677669, %v3313_v19  ;;  %v11410_v35 = vld [vmem:[#allocation27_spill] sm:$0xff] }
 0x4ab   : > { %v7923_v56 = vpop.eup %7922  ;;  %v3315_v4 = vpop.f32.mrf.mxu0  ;;  %v3528_v55 = vmul.f32 %v7921_v12, %v11410_v35  ;;  %v11411_v20 = vld [vmem:[#allocation28_spill] sm:$0xff] }
 0x4ac   : > { %v3482_v21 = vmul.f32 1.442695, %v6573_v36  ;;  %v6574_v26 = vclamps-f32 %v3378_v15, 5.0  ;;  %v3379_v32 = vmul.f32 0.17677669, %v3315_v4  ;;  %7936 = vpow2.f32 %v3480_v57  ;;  %v11412_v15 = vld [vmem:[#allocation29_spill] sm:$0xff] }
 0x4ad   : > { %v7925_v6 = vpop.eup %7924  ;;  %v3319_v18 = vpop.f32.mrf.mxu0  ;;  %v3529_v43 = vmul.f32 %v7923_v56, %v11411_v20 }
 0x4ae   : > { %7938 = vpow2.f32 %v3482_v21  ;;  %v3484_v59 = vmul.f32 1.442695, %v6574_v26  ;;  %v6575_v3 = vclamps-f32 %v3379_v32, 5.0  ;;  %v3380_v29 = vmul.f32 0.17677669, %v3319_v18 }
 0x4af   : > { %v7927_v19 = vpop.eup %7926  ;;  %v3321_v50 = vpop.f32.mrf.mxu0  ;;  %v3817_v36 = vadd.f32 %v3529_v43, %v3528_v55  ;;  %v3530_v4 = vmul.f32 %v7925_v6, %v11412_v15  ;;  %v4316_v26 = vmul.bf16 %v9617_v51, %v9604_v60  ;;  %v4299_v32 = vmul.bf16 %v9621_v58, %v9604_v60 }
 0x4b0   : > { %7940 = vpow2.f32 %v3484_v59  ;;  %v3486_v12 = vmul.f32 1.442695, %v6575_v3  ;;  %v6576_v57 = vclamps-f32 %v3380_v29, 5.0  ;;  %v3381_v56 = vmul.f32 0.17677669, %v3321_v50 }
 0x4b1   : > { %3818 = vadd.xlane.f32.xlu0 %v3817_v36  ;;  %v3323_v23 = vpop.f32.mrf.mxu0  ;;  %v3531_v21 = vmul.f32 %v7927_v19, %v11413_v34  ;;  %v7929_v41 = vpop.eup %7928  ;;  %v4313_v19 = vmul.bf16 %v9640_v8, %v9604_v60  ;;  %v4314_v51 = vmul.bf16 %v9644_v54, %v9604_v60  ;;  %v3560_v63 = vpack.c.bf16 %v3530_v4, %v3528_v55 }
 0x4b2   : > { %7942 = vpow2.f32 %v3486_v12  ;;  %v3488_v45 = vmul.f32 1.442695, %v6576_v57  ;;  %v6577_v6 = vclamps-f32 %v3381_v56, 5.0  ;;  %v3382_v18 = vmul.f32 0.17677669, %v3323_v23  ;;  %v11414_v56 = vld [vmem:[#allocation31_spill] sm:$0xff] }
 0x4b3   : > { %v7931_v59 = vpop.eup %7930  ;;  %v3325_v3 = vpop.f32.mrf.mxu0  ;;  %v3820_v29 = vadd.f32 %v3531_v21, %v3530_v4  ;;  %v3561_v50 = vpack.c.bf16 %v3531_v21, %v3529_v43  ;;  %v3532_v57 = vmul.f32 %v7929_v41, %v9082_v28  ;;  %v9864_v43 = vcombine.low %v4315_v2, %v4316_v26  ;;  %v11415_v4 = vld [vmem:[#allocation33_spill] sm:$0xff]  ;;  %v11416_v26 = vld [vmem:[#allocation32_spill] sm:$0xff] }
 0x4b4   : > { %v3490_v36 = vmul.f32 1.442695, %v6577_v6  ;;  %v6578_v58 = vclamps-f32 %v3382_v18, 5.0  ;;  %v3383_v17 = vmul.f32 0.17677669, %v3325_v3  ;;  %7944 = vpow2.f32 %v3488_v45 }
 0x4b5   : > { %v7933_v0 = vpop.eup %7932  ;;  %3821 = vadd.xlane.f32.xlu1 %v3820_v29  ;;  %3736 = vmatprep.mubr.bf16.mxu1 %v3561_v50  ;;  %v3329_v12 = vpop.f32.mrf.mxu0  ;;  %v3533_v23 = vmul.f32 %v7931_v59, %v11414_v56  ;;  %v9867_v18 = vcombine.low %v4299_v32, %v4300_v27  ;;  %v9869_v3 = vcombine.low %v4313_v19, %v4314_v51 }
 0x4b6   : > { %7946 = vpow2.f32 %v3490_v36  ;;  %v3492_v8 = vmul.f32 1.442695, %v6578_v58  ;;  %v6579_v21 = vclamps-f32 %v3383_v17, 5.0  ;;  %v3384_v31 = vmul.f32 0.17677669, %v3329_v12  ;;  %3737 = vmatmul.mubr.bf16.vlgmr.msra.gmra.mxu1 %v3560_v63 }
 0x4b7   : > { %v7935_v54 = vpop.eup %7934  ;;  %7213 = vmatpush3.bf16.msra.mxu1 %v6660_v1  ;;  %v3331_v6 = vpop.f32.mrf.mxu0  ;;  %v3823_v55 = vadd.f32 %v3533_v23, %v3532_v57  ;;  %v3534_v45 = vmul.f32 %v7933_v0, %v11415_v4  ;;  %v4297_v1 = vmul.bf16 %v9651_v62, %v9604_v60  ;;  %v4298_v29 = vmul.bf16 %v9655_v39, %v9604_v60 }
 0x4b8   : > { %7948 = vpow2.f32 %v3492_v8  ;;  %v3494_v41 = vmul.f32 1.442695, %v6579_v21  ;;  %v6580_v59 = vclamps-f32 %v3384_v31, 5.0  ;;  %v3385_v2 = vmul.f32 0.17677669, %v3331_v6  ;;  %7214 = vmatprep.subr.bf16.mxu1 %v9834_v48 }
 0x4b9   : > { %3824 = vadd.xlane.f32.xlu0 %v3823_v55  ;;  %v3333_v17 = vpop.f32.mrf.mxu0  ;;  %v3535_v63 = vmul.f32 %v7935_v54, %v11416_v26  ;;  %v4311_v32 = vmul.bf16 %v9669_v44, %v9604_v60  ;;  %v7937_v27 = vpop.eup %7936  ;;  %v4312_v62 = vmul.bf16 %v9673_v53, %v9604_v60  ;;  %v4295_v39 = vmul.bf16 %v9677_v52, %v9604_v60 }
 0x4ba   : > { %7950 = vpow2.f32 %v3494_v41  ;;  %v3496_v50 = vmul.f32 1.442695, %v6580_v59  ;;  %v6581_v31 = vclamps-f32 %v3385_v2, 5.0  ;;  %v3386_v19 = vmul.f32 0.17677669, %v3333_v17  ;;  %v11419_v2 = vld [vmem:[#allocation36_spill] sm:$0xff] }
 0x4bb   : > { %v7939_v51 = vpop.eup %7938  ;;  %v3335_v48 = vpop.f32.mrf.mxu0  ;;  %v3826_v36 = vadd.f32 %v3535_v63, %v3534_v45  ;;  %v3563_v58 = vpack.c.bf16 %v3535_v63, %v3533_v23  ;;  %7215 = vmatpush3.bf16.msra.mxu1 %v9840_v14  ;;  %v3562_v8 = vpack.c.bf16 %v3534_v45, %v3532_v57  ;;  %v11417_v23 = vld [vmem:[#allocation34_spill] sm:$0xff]  ;;  %v11418_v14 = vld [vmem:[#allocation35_spill] sm:$0xff]  ;;  %v4296_v53 = vmul.bf16 %v9681_v5, %v9604_v60 }
 0x4bc   : > { %v3498_v0 = vmul.f32 1.442695, %v6581_v31  ;;  %v6582_v12 = vclamps-f32 %v3386_v19, 5.0  ;;  %v3387_v44 = vmul.f32 0.17677669, %v3335_v48  ;;  %7216 = vmatprep.subr.bf16.mxu1 %v9844_v37  ;;  %7952 = vpow2.f32 %v3496_v50 }
 0x4bd   : > { %v7941_v21 = vpop.eup %7940  ;;  %3827 = vadd.xlane.f32.xlu1 %v3826_v36  ;;  %3744 = vmatprep.mubr.bf16.mxu1 %v3563_v58  ;;  %v3339_v54 = vpop.f32.mrf.mxu0  ;;  %v3536_v6 = vmul.f32 %v7937_v27, %v11417_v23  ;;  %v3537_v55 = vmul.f32 %v7939_v51, %v11418_v14  ;;  %v4309_v63 = vmul.bf16 %v9694_v46, %v9604_v60  ;;  %v11420_v51 = vld [vmem:[#allocation37_spill] sm:$0xff] }
 0x4be   : > { %7954 = vpow2.f32 %v3498_v0  ;;  %v3500_v52 = vmul.f32 1.442695, %v6582_v12  ;;  %v6583_v41 = vclamps-f32 %v3387_v44, 5.0  ;;  %v3388_v59 = vmul.f32 0.17677669, %v3339_v54  ;;  %3745 = vmatmul.mubr.bf16.gmra.mxu1 %v3562_v8 }
 0x4bf   : > { %v7943_v57 = vpop.eup %7942  ;;  %v3341_v45 = vpop.f32.mrf.mxu0  ;;  %v3829_v37 = vadd.f32 %v3537_v55, %v3536_v6  ;;  %v3538_v17 = vmul.f32 %v7941_v21, %v11419_v2  ;;  %7217 = vmatpush3.bf16.msra.mxu1 %v9847_v47  ;;  %v4310_v27 = vmul.bf16 %v9698_v11, %v9604_v60  ;;  %v6656_v36 = vcombine.low %v4297_v1, %v4298_v29 }
 0x4c0   : > { %7956 = vpow2.f32 %v3500_v52  ;;  %v3502_v5 = vmul.f32 1.442695, %v6583_v41  ;;  %v6584_v50 = vclamps-f32 %v3388_v59, 5.0  ;;  %v3389_v31 = vmul.f32 0.17677669, %v3341_v45  ;;  %7218 = vmatprep.subr.bf16.mxu1 %v9864_v43 }
 0x4c1   : > { %3830 = vadd.xlane.f32.xlu0 %v3829_v37  ;;  %v3343_v19 = vpop.f32.mrf.mxu0  ;;  %v3539_v48 = vmul.f32 %v7943_v57, %v11420_v51  ;;  %v6663_v58 = vcombine.low %v4311_v32, %v4312_v62  ;;  %v6655_v0 = vcombine.low %v4295_v39, %v4296_v53  ;;  %v7945_v47 = vpop.eup %7944  ;;  %v6662_v52 = vcombine.low %v4309_v63, %v4310_v27 }
 0x4c2   : > { %7958 = vpow2.f32 %v3502_v5  ;;  %v3504_v12 = vmul.f32 1.442695, %v6584_v50  ;;  %v6585_v46 = vclamps-f32 %v3389_v31, 5.0  ;;  %v3390_v44 = vmul.f32 0.17677669, %v3343_v19 }
 0x4c3   : > { %v7947_v8 = vpop.eup %7946  ;;  %v3345_v11 = vpop.f32.mrf.mxu0  ;;  %v3832_v21 = vadd.f32 %v3539_v48, %v3538_v17  ;;  %v3565_v54 = vpack.c.bf16 %v3539_v48, %v3537_v55  ;;  %7219 = vmatpush3.bf16.msra.mxu1 %v9867_v18  ;;  %v4293_v43 = vmul.bf16 %v9706_v9, %v9604_v60  ;;  %v3564_v29 = vpack.c.bf16 %v3538_v17, %v3536_v6 }
 0x4c4   : > { %v3506_v41 = vmul.f32 1.442695, %v6585_v46  ;;  %v6586_v59 = vclamps-f32 %v3390_v44, 5.0  ;;  %v3391_v1 = vmul.f32 0.17677669, %v3345_v11  ;;  %7220 = vmatprep.subr.bf16.mxu1 %v9869_v3  ;;  %7960 = vpow2.f32 %v3504_v12 }
 0x4c5   : > { %v7949_v32 = vpop.eup %7948  ;;  %3833 = vadd.xlane.f32.xlu1 %v3832_v21  ;;  %3752 = vmatprep.mubr.bf16.mxu1 %v3565_v54  ;;  %v3349_v62 = vpop.f32.mrf.mxu0  ;;  %v3540_v39 = vmul.f32 %v7945_v47, %v9104_v40  ;;  %v3541_v55 = vmul.f32 %v7947_v8, %v9102_v30  ;;  %v4294_v18 = vmul.bf16 %v9710_v10, %v9604_v60 }
 0x4c6   : > { %7962 = vpow2.f32 %v3506_v41  ;;  %v3508_v9 = vmul.f32 1.442695, %v6586_v59  ;;  %v6587_v53 = vclamps-f32 %v3391_v1, 5.0  ;;  %v3392_v57 = vmul.f32 0.17677669, %v3349_v62  ;;  %3753 = vmatmul.mubr.bf16.gmra.mxu1 %v3564_v29  ;;  %v11421_v1 = vld [vmem:[#allocation39_spill] sm:$0xff] }
 0x4c7   : > { %v7951_v6 = vpop.eup %7950  ;;  %v3351_v45 = vpop.f32.mrf.mxu0  ;;  %v3835_v3 = vadd.f32 %v3541_v55, %v3540_v39  ;;  %v3542_v37 = vmul.f32 %v7949_v32, %v9106_v33  ;;  %7221 = vmatpush3.bf16.msra.mxu1 %v6656_v36  ;;  %v4307_v17 = vmul.bf16 %v9719_v7, %v9604_v60  ;;  %v4308_v63 = vmul.bf16 %v9723_v42, %v9604_v60  ;;  %v11422_v32 = vld [vmem:[#allocation38_spill] sm:$0xff] }
 0x4c8   : > { %7964 = vpow2.f32 %v3508_v9  ;;  %v3510_v27 = vmul.f32 1.442695, %v6587_v53  ;;  %v6588_v10 = vclamps-f32 %v3392_v57, 5.0  ;;  %v3393_v5 = vmul.f32 0.17677669, %v3351_v45  ;;  %7222 = vmatprep.subr.bf16.mxu1 %v6663_v58  ;;  %v11423_v53 = vld [vmem:[#allocation40_spill] sm:$0xff] }
 0x4c9   : > { %3836 = vadd.xlane.f32.xlu0 %v3835_v3  ;;  %v3353_v50 = vpop.f32.mrf.mxu0  ;;  %v3543_v31 = vmul.f32 %v7951_v6, %v9109_v49  ;;  %v6654_v19 = vcombine.low %v4293_v43, %v4294_v18  ;;  %v4291_v48 = vmul.bf16 %v9727_v24, %v9604_v60  ;;  %v7953_v36 = vpop.eup %7952  ;;  %v6661_v11 = vcombine.low %v4307_v17, %v4308_v63 }
 0x4ca   : > { %7966 = vpow2.f32 %v3510_v27  ;;  %v3512_v47 = vmul.f32 1.442695, %v6588_v10  ;;  %v6589_v7 = vclamps-f32 %v3393_v5, 5.0  ;;  %v3394_v12 = vmul.f32 0.17677669, %v3353_v50 }
 0x4cb   : > { %v7955_v46 = vpop.eup %7954  ;;  %v3355_v42 = vpop.f32.mrf.mxu0  ;;  %v3838_v44 = vadd.f32 %v3543_v31, %v3542_v37  ;;  %v3567_v8 = vpack.c.bf16 %v3543_v31, %v3541_v55  ;;  %7223 = vmatpush3.bf16.msra.mxu1 %v6655_v0  ;;  %v4292_v58 = vmul.bf16 %v9731_v13, %v9604_v60  ;;  %v3566_v41 = vpack.c.bf16 %v3542_v37, %v3540_v39  ;;  %v11424_v37 = vld [vmem:[#allocation41_spill] sm:$0xff] }
 0x4cc   : > { %v3514_v21 = vmul.f32 1.442695, %v6589_v7  ;;  %v6590_v54 = vclamps-f32 %v3394_v12, 5.0  ;;  %v3395_v43 = vmul.f32 0.17677669, %v3355_v42  ;;  %7224 = vmatprep.subr.bf16.mxu1 %v6662_v52  ;;  %7968 = vpow2.f32 %v3512_v47 }
 0x4cd   : > { %v7957_v24 = vpop.eup %7956  ;;  %3839 = vadd.xlane.f32.xlu1 %v3838_v44  ;;  %3760 = vmatprep.mubr.bf16.mxu1 %v3567_v8  ;;  %v3359_v59 = vpop.f32.mrf.mxu0  ;;  %v3544_v29 = vmul.f32 %v7953_v36, %v11421_v1  ;;  %v3545_v62 = vmul.f32 %v7955_v46, %v11422_v32  ;;  %v6653_v52 = vcombine.low %v4291_v48, %v4292_v58  ;;  %v11425_v44 = vld [vmem:[#allocation42_spill] sm:$0xff] }
 0x4ce   : > { %7970 = vpow2.f32 %v3514_v21  ;;  %v3516_v0 = vmul.f32 1.442695, %v6590_v54  ;;  %v6591_v55 = vclamps-f32 %v3395_v43, 5.0  ;;  %v3396_v18 = vmul.f32 0.17677669, %v3359_v59  ;;  %3761 = vmatmul.mubr.bf16.gmra.mxu1 %v3566_v41 }
 0x4cf   : > { %v7959_v60 = vpop.eup %7958  ;;  %v3361_v13 = vpop.f32.mrf.mxu0  ;;  %v3841_v9 = vadd.f32 %v3545_v62, %v3544_v29  ;;  %v3546_v39 = vmul.f32 %v7957_v24, %v11423_v53  ;;  %7225 = vmatpush3.bf16.msra.mxu1 %v6654_v19 }
 0x4d0   : > { %7972 = vpow2.f32 %v3516_v0  ;;  %v3518_v57 = vmul.f32 1.442695, %v6591_v55  ;;  %v6592_v6 = vclamps-f32 %v3396_v18, 5.0  ;;  %v3397_v45 = vmul.f32 0.17677669, %v3361_v13  ;;  %7226 = vmatprep.subr.bf16.mxu1 %v6661_v11  ;;  %v11426_v11 = vld [vmem:[#allocation43_spill] sm:$0xff] }
 0x4d1   : > { %3842 = vadd.xlane.f32.xlu0 %v3841_v9  ;;  %v3363_v3 = vpop.f32.mrf.mxu0  ;;  %v3547_v17 = vmul.f32 %v7959_v60, %v11424_v37  ;;  %v7961_v63 = vpop.eup %7960  ;;  %v3568_v12 = vpack.c.bf16 %v3546_v39, %v3544_v29  ;;  %v11428_v13 = vld [vmem:[#allocation48_spill] sm:$0xff] }
 0x4d2   : > { %7974 = vpow2.f32 %v3518_v57  ;;  %v3520_v27 = vmul.f32 1.442695, %v6592_v6  ;;  %v6593_v10 = vclamps-f32 %v3397_v45, 5.0  ;;  %v3398_v5 = vmul.f32 0.17677669, %v3363_v3 }
 0x4d3   : > { %v7963_v50 = vpop.eup %7962  ;;  %v3365_v31 = vpop.f32.mrf.mxu0  ;;  %v3844_v36 = vadd.f32 %v3547_v17, %v3546_v39  ;;  %v3569_v47 = vpack.c.bf16 %v3547_v17, %v3545_v62  ;;  %7227 = vmatpush3.bf16.msra.mxu1 %v6653_v52  ;;  %v3548_v8 = vmul.f32 %v7961_v63, %v11425_v44  ;;  %v11427_v62 = vld [vmem:[#allocation44_spill] sm:$0xff] }
 0x4d4   : > { %v3522_v19 = vmul.f32 1.442695, %v6593_v10  ;;  %v6594_v48 = vclamps-f32 %v3398_v5, 5.0  ;;  %v3399_v7 = vmul.f32 0.17677669, %v3365_v31  ;;  %7976 = vpow2.f32 %v3520_v27 }
 0x4d5   : > { %v7965_v46 = vpop.eup %7964  ;;  %3845 = vadd.xlane.f32.xlu1 %v3844_v36  ;;  %3768 = vmatprep.mubr.bf16.mxu1 %v3569_v47  ;;  %v4004_v42 = vpop.f32.mrf.mxu0  ;;  %v3549_v58 = vmul.f32 %v7963_v50, %v11426_v11  ;;  %v11429_v47 = vld [vmem:[#allocation50_spill] sm:$0xff] }
 0x4d6   : > { %7978 = vpow2.f32 %v3522_v19  ;;  %v3524_v21 = vmul.f32 1.442695, %v6594_v48  ;;  %v6595_v54 = vclamps-f32 %v3399_v7, 5.0  ;;  %3769 = vmatmul.mubr.bf16.gmra.mxu1 %v3568_v12  ;;  %v4083_v43 = vmul.f32 0.17677669, %v4004_v42  ;;  %v11430_v48 = vld [vmem:[#allocation51_spill] sm:$0xff] }
 0x4d7   : > { %v7967_v41 = vpop.eup %7966  ;;  %v4006_v24 = vpop.f32.mrf.mxu0  ;;  %v3847_v59 = vadd.f32 %v3549_v58, %v3548_v8  ;;  %v3550_v0 = vmul.f32 %v7965_v46, %v11427_v62 }
 0x4d8   : > { %7980 = vpow2.f32 %v3524_v21  ;;  %v3526_v29 = vmul.f32 1.442695, %v6595_v54  ;;  %v6621_v55 = vclamps-f32 %v4083_v43, 5.0  ;;  %v4084_v18 = vmul.f32 0.17677669, %v4006_v24  ;;  %v11431_v43 = vld [vmem:[#allocation54_spill] sm:$0xff] }
 0x4d9   : > { %3848 = vadd.xlane.f32.xlu0 %v3847_v59  ;;  %v4008_v60 = vpop.f32.mrf.mxu0  ;;  %v3551_v9 = vmul.f32 %v7967_v41, %v11428_v13  ;;  %v7969_v39 = vpop.eup %7968  ;;  %v3570_v50 = vpack.c.bf16 %v3550_v0, %v3548_v8 }
 0x4da   : > { %7982 = vpow2.f32 %v3526_v29  ;;  %v4179_v52 = vmul.f32 1.442695, %v6621_v55  ;;  %v6622_v57 = vclamps-f32 %v4084_v18, 5.0  ;;  %v4085_v6 = vmul.f32 0.17677669, %v4008_v60  ;;  %v11432_v29 = vld [vmem:[#allocation52_spill] sm:$0xff] }
 0x4db   : > { %v7971_v45 = vpop.eup %7970  ;;  %v4010_v3 = vpop.f32.mrf.mxu0  ;;  %v3850_v17 = vadd.f32 %v3551_v9, %v3550_v0  ;;  %v3571_v63 = vpack.c.bf16 %v3551_v9, %v3549_v58  ;;  %v3552_v19 = vmul.f32 %v7969_v39, %v11429_v47 }
 0x4dc   : > { %v4181_v27 = vmul.f32 1.442695, %v6622_v57  ;;  %v6623_v10 = vclamps-f32 %v4085_v6, 5.0  ;;  %v4086_v5 = vmul.f32 0.17677669, %v4010_v3  ;;  %7984 = vpow2.f32 %v4179_v52 }
 0x4dd   : > { %v7973_v31 = vpop.eup %7972  ;;  %3851 = vadd.xlane.f32.xlu1 %v3850_v17  ;;  %3776 = vmatprep.mubr.bf16.mxu1 %v3571_v63  ;;  %v4014_v36 = vpop.f32.mrf.mxu0  ;;  %v3553_v7 = vmul.f32 %v7971_v45, %v11430_v48 }
 0x4de   : > { %7986 = vpow2.f32 %v4181_v27  ;;  %v4183_v12 = vmul.f32 1.442695, %v6623_v10  ;;  %v6624_v46 = vclamps-f32 %v4086_v5, 5.0  ;;  %3777 = vmatmul.mubr.bf16.gmra.mxu1 %v3570_v50  ;;  %v4087_v42 = vmul.f32 0.17677669, %v4014_v36  ;;  %v11433_v50 = vld [vmem:[#allocation56_spill] sm:$0xff] }
 0x4df   : > { %v7975_v21 = vpop.eup %7974  ;;  %v4016_v58 = vpop.f32.mrf.mxu0  ;;  %v3853_v54 = vadd.f32 %v3553_v7, %v3552_v19  ;;  %v3554_v41 = vmul.f32 %v7973_v31, %v11431_v43  ;;  %v11434_v36 = vld [vmem:[#allocation53_spill] sm:$0xff] }
 0x4e0   : > { %7988 = vpow2.f32 %v4183_v12  ;;  %v4185_v8 = vmul.f32 1.442695, %v6624_v46  ;;  %v6625_v24 = vclamps-f32 %v4087_v42, 5.0  ;;  %v4088_v59 = vmul.f32 0.17677669, %v4016_v58 }
 0x4e1   : > { %3854 = vadd.xlane.f32.xlu0 %v3853_v54  ;;  %v4018_v0 = vpop.f32.mrf.mxu0  ;;  %v3555_v55 = vmul.f32 %v7975_v21, %v11432_v29  ;;  %v7977_v18 = vpop.eup %7976  ;;  %v3572_v27 = vpack.c.bf16 %v3554_v41, %v3552_v19 }
 0x4e2   : > { %7990 = vpow2.f32 %v4185_v8  ;;  %v4187_v60 = vmul.f32 1.442695, %v6625_v24  ;;  %v6626_v9 = vclamps-f32 %v4088_v59, 5.0  ;;  %v4089_v39 = vmul.f32 0.17677669, %v4018_v0  ;;  %v11435_v8 = vld [vmem:[#allocation24_spill] sm:$0xff] }
 0x4e3   : > { %v7979_v52 = vpop.eup %7978  ;;  %v4020_v57 = vpop.f32.mrf.mxu0  ;;  %v3856_v6 = vadd.f32 %v3555_v55, %v3554_v41  ;;  %v3573_v45 = vpack.c.bf16 %v3555_v55, %v3553_v7  ;;  %v3556_v31 = vmul.f32 %v7977_v18, %v11433_v50  ;;  %v11436_v55 = vld [vmem:[#allocation55_spill] sm:$0xff] }
 0x4e4   : > { %v4189_v3 = vmul.f32 1.442695, %v6626_v9  ;;  %v6627_v17 = vclamps-f32 %v4089_v39, 5.0  ;;  %v4090_v63 = vmul.f32 0.17677669, %v4020_v57  ;;  %7992 = vpow2.f32 %v4187_v60 }
 0x4e5   : > { %v7981_v10 = vpop.eup %7980  ;;  %3857 = vadd.xlane.f32.xlu1 %v3856_v6  ;;  %3784 = vmatprep.mubr.bf16.mxu1 %v3573_v45  ;;  %v4024_v5 = vpop.f32.mrf.mxu0  ;;  %v3557_v12 = vmul.f32 %v7979_v52, %v11434_v36 }
 0x4e6   : > { %7994 = vpow2.f32 %v4189_v3  ;;  %v4191_v46 = vmul.f32 1.442695, %v6627_v17  ;;  %v6628_v42 = vclamps-f32 %v4090_v63, 5.0  ;;  %3785 = vmatmul.mubr.bf16.gmra.mxu1 %v3572_v27  ;;  %v4091_v21 = vmul.f32 0.17677669, %v4024_v5 }
 0x4e7   : > { %v7983_v58 = vpop.eup %7982  ;;  %v4026_v7 = vpop.f32.mrf.mxu0  ;;  %v3859_v54 = vadd.f32 %v3557_v12, %v3556_v31  ;;  %v3558_v24 = vmul.f32 %v7981_v10, %v11435_v8 }
 0x4e8   : > { %7996 = vpow2.f32 %v4191_v46  ;;  %v4193_v19 = vmul.f32 1.442695, %v6628_v42  ;;  %v6629_v41 = vclamps-f32 %v4091_v21, 5.0  ;;  %v4092_v59 = vmul.f32 0.17677669, %v4026_v7 }
 0x4e9   : > { %3860 = vadd.xlane.f32.xlu0 %v3859_v54  ;;  %v4028_v0 = vpop.f32.mrf.mxu0  ;;  %v3559_v18 = vmul.f32 %v7983_v58, %v11436_v55  ;;  %v7985_v60 = vpop.eup %7984  ;;  %v3574_v10 = vpack.c.bf16 %v3558_v24, %v3556_v31 }
 0x4ea   : > { %7998 = vpow2.f32 %v4193_v19  ;;  %v4195_v9 = vmul.f32 1.442695, %v6629_v41  ;;  %v6630_v39 = vclamps-f32 %v4092_v59, 5.0  ;;  %v4093_v52 = vmul.f32 0.17677669, %v4028_v0 }
 0x4eb   : > { %v7987_v57 = vpop.eup %7986  ;;  %v4030_v6 = vpop.f32.mrf.mxu0  ;;  %v3862_v45 = vadd.f32 %v3559_v18, %v3558_v24  ;;  %v3575_v3 = vpack.c.bf16 %v3559_v18, %v3557_v12  ;;  %v4243_v42 = vmul.f32 %v7985_v60, %v11410_v35 }
 0x4ec   : > { %v4197_v17 = vmul.f32 1.442695, %v6630_v39  ;;  %v6631_v63 = vclamps-f32 %v4093_v52, 5.0  ;;  %v4094_v27 = vmul.f32 0.17677669, %v4030_v6  ;;  %8000 = vpow2.f32 %v4195_v9 }
 0x4ed   : > { %v7989_v5 = vpop.eup %7988  ;;  %3863 = vadd.xlane.f32.xlu1 %v3862_v45  ;;  %3792 = vmatprep.mubr.bf16.mxu1 %v3575_v3  ;;  %v4034_v46 = vpop.f32.mrf.mxu0  ;;  %v4244_v21 = vmul.f32 %v7987_v57, %v11411_v20 }
 0x4ee   : > { %8002 = vpow2.f32 %v4197_v17  ;;  %v4199_v58 = vmul.f32 1.442695, %v6631_v63  ;;  %v6632_v7 = vclamps-f32 %v4094_v27, 5.0  ;;  %3793 = vmatmul.mubr.bf16.gmra.mxu1 %v3574_v10  ;;  %v4095_v54 = vmul.f32 0.17677669, %v4034_v46 }
 0x4ef   : > { %v7991_v19 = vpop.eup %7990  ;;  %v4036_v12 = vpop.f32.mrf.mxu0  ;;  %v4532_v41 = vadd.f32 %v4244_v21, %v4243_v42  ;;  %v4245_v59 = vmul.f32 %v7989_v5, %v11412_v15 }
 0x4f0   : > { %8004 = vpow2.f32 %v4199_v58  ;;  %v4201_v31 = vmul.f32 1.442695, %v6632_v7  ;;  %v6633_v24 = vclamps-f32 %v4095_v54, 5.0  ;;  %v4096_v0 = vmul.f32 0.17677669, %v4036_v12 }
 0x4f1   : > { %4533 = vadd.xlane.f32.xlu0 %v4532_v41  ;;  %v4038_v18 = vpop.f32.mrf.mxu0  ;;  %v4246_v35 = vmul.f32 %v7991_v19, %v11413_v34  ;;  %v7993_v60 = vpop.eup %7992  ;;  %v4275_v63 = vpack.c.bf16 %v4245_v59, %v4243_v42 }
 0x4f2   : > { %8006 = vpow2.f32 %v4201_v31  ;;  %v4203_v20 = vmul.f32 1.442695, %v6633_v24  ;;  %v6634_v9 = vclamps-f32 %v4096_v0, 5.0  ;;  %v4097_v39 = vmul.f32 0.17677669, %v4038_v18 }
 0x4f3   : > { %v7995_v52 = vpop.eup %7994  ;;  %v4040_v57 = vpop.f32.mrf.mxu0  ;;  %v4535_v6 = vadd.f32 %v4246_v35, %v4245_v59  ;;  %v4276_v45 = vpack.c.bf16 %v4246_v35, %v4244_v21  ;;  %v4247_v34 = vmul.f32 %v7993_v60, %v9082_v28 }
 0x4f4   : > { %v4205_v3 = vmul.f32 1.442695, %v6634_v9  ;;  %v6635_v17 = vclamps-f32 %v4097_v39, 5.0  ;;  %v4098_v15 = vmul.f32 0.17677669, %v4040_v57  ;;  %8008 = vpow2.f32 %v4203_v20 }
 0x4f5   : > { %v7997_v27 = vpop.eup %7996  ;;  %4536 = vadd.xlane.f32.xlu1 %v4535_v6  ;;  %4451 = vmatprep.mubr.bf16.mxu1 %v4276_v45  ;;  %v4044_v10 = vpop.f32.mrf.mxu0  ;;  %v4248_v5 = vmul.f32 %v7995_v52, %v11414_v56 }
 0x4f6   : > { %8010 = vpow2.f32 %v4205_v3  ;;  %v4207_v46 = vmul.f32 1.442695, %v6635_v17  ;;  %v6636_v58 = vclamps-f32 %v4098_v15, 5.0  ;;  %v4099_v7 = vmul.f32 0.17677669, %v4044_v10  ;;  %4452 = vmatmul.mubr.bf16.vlgmr.msra.gmra.mxu1 %v4275_v63 }
 0x4f7   : > { %v7999_v54 = vpop.eup %7998  ;;  %v4046_v21 = vpop.f32.mrf.mxu0  ;;  %v4538_v19 = vadd.f32 %v4248_v5, %v4247_v34  ;;  %v4249_v12 = vmul.f32 %v7997_v27, %v11415_v4 }
 0x4f8   : > { %8012 = vpow2.f32 %v4207_v46  ;;  %v4209_v42 = vmul.f32 1.442695, %v6636_v58  ;;  %v6637_v41 = vclamps-f32 %v4099_v7, 5.0  ;;  %v4100_v59 = vmul.f32 0.17677669, %v4046_v21 }
 0x4f9   : > { %4539 = vadd.xlane.f32.xlu0 %v4538_v19  ;;  %v4048_v31 = vpop.f32.mrf.mxu0  ;;  %v4250_v28 = vmul.f32 %v7999_v54, %v11416_v26  ;;  %v8001_v24 = vpop.eup %8000  ;;  %v4277_v57 = vpack.c.bf16 %v4249_v12, %v4247_v34 }
 0x4fa   : > { %8014 = vpow2.f32 %v4209_v42  ;;  %v4211_v56 = vmul.f32 1.442695, %v6637_v41  ;;  %v6638_v0 = vclamps-f32 %v4100_v59, 5.0  ;;  %v4101_v18 = vmul.f32 0.17677669, %v4048_v31 }
 0x4fb   : > { %v8003_v35 = vpop.eup %8002  ;;  %v4050_v60 = vpop.f32.mrf.mxu0  ;;  %v4541_v20 = vadd.f32 %v4250_v28, %v4249_v12  ;;  %v4278_v9 = vpack.c.bf16 %v4250_v28, %v4248_v5  ;;  %v4251_v26 = vmul.f32 %v8001_v24, %v11417_v23 }
 0x4fc   : > { %v4213_v39 = vmul.f32 1.442695, %v6638_v0  ;;  %v6639_v52 = vclamps-f32 %v4101_v18, 5.0  ;;  %v4102_v4 = vmul.f32 0.17677669, %v4050_v60  ;;  %8016 = vpow2.f32 %v4211_v56 }
 0x4fd   : > { %v8005_v6 = vpop.eup %8004  ;;  %4542 = vadd.xlane.f32.xlu1 %v4541_v20  ;;  %4459 = vmatprep.mubr.bf16.mxu1 %v4278_v9  ;;  %v4054_v45 = vpop.f32.mrf.mxu0  ;;  %v4252_v3 = vmul.f32 %v8003_v35, %v11418_v14 }
 0x4fe   : > { %8018 = vpow2.f32 %v4213_v39  ;;  %v4215_v17 = vmul.f32 1.442695, %v6639_v52  ;;  %v6640_v15 = vclamps-f32 %v4102_v4, 5.0  ;;  %v4103_v63 = vmul.f32 0.17677669, %v4054_v45  ;;  %4460 = vmatmul.mubr.bf16.gmra.mxu1 %v4277_v57 }
 0x4ff   : > { %v8007_v27 = vpop.eup %8006  ;;  %v4056_v10 = vpop.f32.mrf.mxu0  ;;  %v4544_v5 = vadd.f32 %v4252_v3, %v4251_v26  ;;  %v4253_v46 = vmul.f32 %v8005_v6, %v11419_v2 }
 0x500   : > { %8020 = vpow2.f32 %v4215_v17  ;;  %v4217_v34 = vmul.f32 1.442695, %v6640_v15  ;;  %v6641_v58 = vclamps-f32 %v4103_v63, 5.0  ;;  %v4104_v7 = vmul.f32 0.17677669, %v4056_v10 }
 0x501   : > { %4545 = vadd.xlane.f32.xlu0 %v4544_v5  ;;  %v4058_v54 = vpop.f32.mrf.mxu0  ;;  %v4254_v23 = vmul.f32 %v8007_v27, %v11420_v51  ;;  %v8009_v21 = vpop.eup %8008  ;;  %v4279_v56 = vpack.c.bf16 %v4253_v46, %v4251_v26 }
 0x502   : > { %8022 = vpow2.f32 %v4217_v34  ;;  %v4219_v14 = vmul.f32 1.442695, %v6641_v58  ;;  %v6642_v19 = vclamps-f32 %v4104_v7, 5.0  ;;  %v4105_v12 = vmul.f32 0.17677669, %v4058_v54 }
 0x503   : > { %v8011_v42 = vpop.eup %8010  ;;  %v4060_v41 = vpop.f32.mrf.mxu0  ;;  %v4547_v59 = vadd.f32 %v4254_v23, %v4253_v46  ;;  %v4280_v31 = vpack.c.bf16 %v4254_v23, %v4252_v3  ;;  %v4255_v51 = vmul.f32 %v8009_v21, %v9104_v40 }
 0x504   : > { %v4221_v28 = vmul.f32 1.442695, %v6642_v19  ;;  %v6643_v24 = vclamps-f32 %v4105_v12, 5.0  ;;  %v4106_v2 = vmul.f32 0.17677669, %v4060_v41  ;;  %8024 = vpow2.f32 %v4219_v14 }
 0x505   : > { %v8013_v0 = vpop.eup %8012  ;;  %4548 = vadd.xlane.f32.xlu1 %v4547_v59  ;;  %4467 = vmatprep.mubr.bf16.mxu1 %v4280_v31  ;;  %v4064_v18 = vpop.f32.mrf.mxu0  ;;  %v4256_v35 = vmul.f32 %v8011_v42, %v9102_v30 }
 0x506   : > { %8026 = vpow2.f32 %v4221_v28  ;;  %v4223_v60 = vmul.f32 1.442695, %v6643_v24  ;;  %v6644_v20 = vclamps-f32 %v4106_v2, 5.0  ;;  %v4107_v9 = vmul.f32 0.17677669, %v4064_v18  ;;  %4468 = vmatmul.mubr.bf16.gmra.mxu1 %v4279_v56 }
 0x507   : > { %v8015_v39 = vpop.eup %8014  ;;  %v4066_v52 = vpop.f32.mrf.mxu0  ;;  %v4550_v4 = vadd.f32 %v4256_v35, %v4255_v51  ;;  %v4257_v57 = vmul.f32 %v8013_v0, %v9106_v33 }
 0x508   : > { %8028 = vpow2.f32 %v4223_v60  ;;  %v4225_v6 = vmul.f32 1.442695, %v6644_v20  ;;  %v6645_v45 = vclamps-f32 %v4107_v9, 5.0  ;;  %v4108_v26 = vmul.f32 0.17677669, %v4066_v52 }
 0x509   : > { %4551 = vadd.xlane.f32.xlu0 %v4550_v4  ;;  %v4068_v3 = vpop.f32.mrf.mxu0  ;;  %v4258_v40 = vmul.f32 %v8015_v39, %v9109_v49  ;;  %v8017_v17 = vpop.eup %8016  ;;  %v4281_v34 = vpack.c.bf16 %v4257_v57, %v4255_v51 }
 0x50a   : > { %8030 = vpow2.f32 %v4225_v6  ;;  %v4227_v30 = vmul.f32 1.442695, %v6645_v45  ;;  %v6646_v15 = vclamps-f32 %v4108_v26, 5.0  ;;  %v4109_v63 = vmul.f32 0.17677669, %v4068_v3 }
 0x50b   : > { %v8019_v27 = vpop.eup %8018  ;;  %v4070_v10 = vpop.f32.mrf.mxu0  ;;  %v4553_v5 = vadd.f32 %v4258_v40, %v4257_v57  ;;  %v4282_v46 = vpack.c.bf16 %v4258_v40, %v4256_v35  ;;  %v4259_v49 = vmul.f32 %v8017_v17, %v11421_v1 }
 0x50c   : > { %8032 = vpow2.f32 %v4227_v30  ;;  %v4229_v33 = vmul.f32 1.442695, %v6646_v15  ;;  %v6647_v58 = vclamps-f32 %v4109_v63, 5.0  ;;  %v4110_v7 = vmul.f32 0.17677669, %v4070_v10 }
 0x50d   : > { %v8021_v54 = vpop.eup %8020  ;;  %4554 = vadd.xlane.f32.xlu1 %v4553_v5  ;;  %4475 = vmatprep.mubr.bf16.mxu1 %v4282_v46  ;;  %v4074_v23 = vpop.f32.mrf.mxu0  ;;  %v4260_v21 = vmul.f32 %v8019_v27, %v11422_v32 }
 0x50e   : > { %8034 = vpow2.f32 %v4229_v33  ;;  %v4231_v14 = vmul.f32 1.442695, %v6647_v58  ;;  %v6648_v19 = vclamps-f32 %v4110_v7, 5.0  ;;  %v4111_v12 = vmul.f32 0.17677669, %v4074_v23  ;;  %4476 = vmatmul.mubr.bf16.gmra.mxu1 %v4281_v34 }
 0x50f   : > { %v8023_v42 = vpop.eup %8022  ;;  %v4076_v41 = vpop.f32.mrf.mxu0  ;;  %v4556_v59 = vadd.f32 %v4260_v21, %v4259_v49  ;;  %v4261_v31 = vmul.f32 %v8021_v54, %v11423_v53 }
 0x510   : > { %8036 = vpow2.f32 %v4231_v14  ;;  %v4233_v28 = vmul.f32 1.442695, %v6648_v19  ;;  %v6649_v24 = vclamps-f32 %v4111_v12, 5.0  ;;  %v4112_v2 = vmul.f32 0.17677669, %v4076_v41 }
 0x511   : > { %4557 = vadd.xlane.f32.xlu0 %v4556_v59  ;;  %v4078_v56 = vpop.f32.mrf.mxu0  ;;  %v4262_v1 = vmul.f32 %v8023_v42, %v11424_v37  ;;  %v8025_v0 = vpop.eup %8024  ;;  %v4283_v20 = vpack.c.bf16 %v4261_v31, %v4259_v49 }
 0x512   : > { %8038 = vpow2.f32 %v4233_v28  ;;  %v4235_v32 = vmul.f32 1.442695, %v6649_v24  ;;  %v6650_v18 = vclamps-f32 %v4112_v2, 5.0  ;;  %v4113_v51 = vmul.f32 0.17677669, %v4078_v56  ;;  %v7789_v28 = vld [vmem:[#allocation12 + $0x10] sm:$0xff]  }
 0x513   : > { %v8027_v35 = vpop.eup %8026  ;;  %v4080_v60 = vpop.f32.mrf.mxu0  ;;  %v4559_v9 = vadd.f32 %v4262_v1, %v4261_v31  ;;  %v4284_v39 = vpack.c.bf16 %v4262_v1, %v4260_v21  ;;  %v4263_v6 = vmul.f32 %v8025_v0, %v11425_v44  ;;  %v7784_v31 = vld [vmem:[#allocation12 + $0x38] sm:$0xff]   ;;  %v7790_v24 = vld [vmem:[#allocation12 + $0x8] sm:$0xff]   ;;  %v7791_v2 = vld [vmem:[#allocation12] sm:$0xff]  }
 0x514   : > { %8040 = vpow2.f32 %v4235_v32  ;;  %v4237_v53 = vmul.f32 1.442695, %v6650_v18  ;;  %v6651_v52 = vclamps-f32 %v4113_v51, 5.0  ;;  %v4114_v4 = vmul.f32 0.17677669, %v4080_v60  ;;  %7452 = vmatprep.subr.bf16.mxu0 %v7784_v31  ;;  %7500 = vmatprep.subr.bf16.mxu1 %v7784_v31  ;;  %v9963_v32 = vpop.xlane.xlu0 %2253  ;;  %v9968_v60 = vpop.xlane.xlu1 %2256 }
 0x515   : > { %v8029_v57 = vpop.eup %8028  ;;  %4560 = vadd.xlane.f32.xlu1 %v4559_v9  ;;  %4483 = vmatprep.mubr.bf16.mxu1 %v4284_v39  ;;  %v4264_v37 = vmul.f32 %v8027_v35, %v11426_v11 }
 0x516   : > { %8042 = vpow2.f32 %v4237_v53  ;;  %v4239_v45 = vmul.f32 1.442695, %v6651_v52  ;;  %v6652_v26 = vclamps-f32 %v4114_v4, 5.0  ;;  %4484 = vmatmul.mubr.bf16.gmra.mxu1 %v4283_v20  ;;  %v4265_v30 = vmul.f32 %v8029_v57, %v11427_v62  ;;  %7453 = vmatpush3.bf16.msra.mxu0 %v7784_v31 }
 0x517   : > { %v8031_v3 = vpop.eup %8030  ;;  %v4562_v40 = vadd.f32 %v4264_v37, %v4263_v6  ;;  %7508 = vmatpush3.bf16.msra.mxu1 %v7784_v31 }
 0x518   : > { %8044 = vpow2.f32 %v4239_v45  ;;  %v4241_v17 = vmul.f32 1.442695, %v6652_v26  ;;  %v4266_v15 = vmul.f32 %v8031_v3, %v11428_v13  ;;  %v4285_v5 = vpack.c.bf16 %v4265_v30, %v4263_v6  ;;  %v9973_v53 = vpop.xlane.xlu0 %3145  ;;  %v9975_v6 = vpop.xlane.xlu1 %3148 }
 0x519   : > { %v8033_v63 = vpop.eup %8032  ;;  %4563 = vadd.xlane.f32.xlu0 %v4562_v40 }
 0x51a   : > { %8046 = vpow2.f32 %v4241_v17  ;;  %v4565_v27 = vadd.f32 %v4266_v15, %v4265_v30  ;;  %v4286_v10 = vpack.c.bf16 %v4266_v15, %v4264_v37  ;;  %v4267_v11 = vmul.f32 %v8033_v63, %v11429_v47 }
 0x51b   : > { %v8035_v44 = vpop.eup %8034 }
 0x51c   : > { %4566 = vadd.xlane.f32.xlu1 %v4565_v27  ;;  %4491 = vmatprep.mubr.bf16.mxu1 %v4286_v10  ;;  %v4268_v46 = vmul.f32 %v8035_v44, %v11430_v48 }
 0x51d   : > { %v8037_v34 = vpop.eup %8036 }
 0x51e   : > { %4492 = vmatmul.mubr.bf16.gmra.mxu1 %v4285_v5  ;;  %v4568_v33 = vadd.f32 %v4268_v46, %v4267_v11  ;;  %v4269_v62 = vmul.f32 %v8037_v34, %v11431_v43  ;;  %v11437_v34 = vld [vmem:[#allocation69_spill] sm:$0xff] }
 0x51f   : > { %v8039_v58 = vpop.eup %8038 }
 0x520   : > { %4569 = vadd.xlane.f32.xlu0 %v4568_v33  ;;  %v4270_v13 = vmul.f32 %v8039_v58, %v11432_v29  ;;  %v4287_v21 = vpack.c.bf16 %v4269_v62, %v4267_v11 }
 0x521   : > { %v8041_v7 = vpop.eup %8040 }
 0x522   : > { %v4571_v54 = vadd.f32 %v4270_v13, %v4269_v62  ;;  %v4288_v23 = vpack.c.bf16 %v4270_v13, %v4268_v46  ;;  %v4271_v47 = vmul.f32 %v8041_v7, %v11433_v50  ;;  %v7785_v50 = vld [vmem:[#allocation12 + $0x30] sm:$0xff]  }
 0x523   : > { %v8043_v49 = vpop.eup %8042  ;;  %7454 = vmatprep.subr.bf16.mxu0 %v7785_v50  ;;  %7501 = vmatprep.subr.bf16.mxu1 %v7785_v50 }
 0x524   : > { %4572 = vadd.xlane.f32.xlu1 %v4571_v54  ;;  %4499 = vmatprep.mubr.bf16.mxu1 %v4288_v23  ;;  %v4272_v48 = vmul.f32 %v8043_v49, %v11434_v36  ;;  %v7786_v36 = vld [vmem:[#allocation12 + $0x28] sm:$0xff]   ;;  %v11438_v54 = vld [vmem:[#allocation70_spill] sm:$0xff] }
 0x525   : > { %v8045_v14 = vpop.eup %8044  ;;  %7455 = vmatpush3.bf16.msra.mxu0 %v7785_v50  ;;  %7509 = vmatpush3.bf16.msra.mxu1 %v7785_v50 }
 0x526   : > { %4500 = vmatmul.mubr.bf16.gmra.mxu1 %v4287_v21  ;;  %v4574_v19 = vadd.f32 %v4272_v48, %v4271_v47  ;;  %v4273_v43 = vmul.f32 %v8045_v14, %v11435_v8  ;;  %7456 = vmatprep.subr.bf16.mxu0 %v7786_v36  ;;  %v7787_v8 = vld [vmem:[#allocation12 + $0x20] sm:$0xff]   ;;  %v11439_v14 = vld [vmem:[#allocation71_spill] sm:$0xff] }
 0x527   : > { %v8047_v12 = vpop.eup %8046  ;;  %7502 = vmatprep.subr.bf16.mxu1 %v7786_v36 }
 0x528   : > { %4575 = vadd.xlane.f32.xlu0 %v4574_v19  ;;  %v4274_v29 = vmul.f32 %v8047_v12, %v11436_v55  ;;  %v4289_v59 = vpack.c.bf16 %v4273_v43, %v4271_v47  ;;  %v7788_v55 = vld [vmem:[#allocation12 + $0x18] sm:$0xff]  }
 0x529   : > { %7457 = vmatpush3.bf16.msra.mxu0 %v7786_v36  ;;  %7510 = vmatpush3.bf16.msra.mxu1 %v7786_v36 }
 0x52a   : > { %v4577_v42 = vadd.f32 %v4274_v29, %v4273_v43  ;;  %v4290_v41 = vpack.c.bf16 %v4274_v29, %v4272_v48  ;;  %7458 = vmatprep.subr.bf16.mxu0 %v7787_v8  ;;  %7503 = vmatprep.subr.bf16.mxu1 %v7787_v8 }
 0x52c   : > { %4578 = vadd.xlane.f32.xlu1 %v4577_v42  ;;  %4507 = vmatprep.mubr.bf16.mxu1 %v4290_v41 }
 0x52d   : > { %7459 = vmatpush3.bf16.msra.mxu0 %v7787_v8  ;;  %7511 = vmatpush3.bf16.msra.mxu1 %v7787_v8 }
 0x52e   : > { %4508 = vmatmul.mubr.bf16.gmra.mxu1 %v4289_v59  ;;  %7460 = vmatprep.subr.bf16.mxu0 %v7788_v55  ;;  %v11440_v59 = vld [vmem:[#allocation72_spill] sm:$0xff] }
 0x52f   : > { %7504 = vmatprep.subr.bf16.mxu1 %v7788_v55 }
 0x531   : > { %7461 = vmatpush3.bf16.msra.mxu0 %v7788_v55  ;;  %7512 = vmatpush3.bf16.msra.mxu1 %v7788_v55 }
 0x532   : > { %7462 = vmatprep.subr.bf16.mxu0 %v7789_v28  ;;  %7505 = vmatprep.subr.bf16.mxu1 %v7789_v28 }
 0x535   : > { %7463 = vmatpush3.bf16.msra.mxu0 %v7789_v28  ;;  %7513 = vmatpush3.bf16.msra.mxu1 %v7789_v28 }
 0x536   : > { %7464 = vmatprep.subr.bf16.mxu0 %v7790_v24  ;;  %7506 = vmatprep.subr.bf16.mxu1 %v7790_v24 }
 0x539   : > { %7465 = vmatpush3.bf16.msra.mxu0 %v7790_v24  ;;  %7514 = vmatpush3.bf16.msra.mxu1 %v7790_v24  ;;  %v11441_v24 = vld [vmem:[#allocation73_spill] sm:$0xff] }
 0x53a   : > { %7466 = vmatprep.subr.bf16.mxu0 %v7791_v2  ;;  %7507 = vmatprep.subr.bf16.mxu1 %v7791_v2 }
 0x53d   : > { %7467 = vmatpush3.bf16.msra.mxu0 %v7791_v2  ;;  %7515 = vmatpush3.bf16.msra.mxu1 %v7791_v2 }
 0x53e   : > { %v3822_v40 = vpop.xlane.xlu1 %3821 }
 0x546   : > { %v9983_v27 = vpop.xlane.xlu1 %3827 }
 0x54e   : > { %v9990_v46 = vpop.xlane.xlu1 %3833 }
 0x556   : > { %v9997_v7 = vpop.xlane.xlu1 %3839 }
 0x55e   : > { %v10004_v48 = vpop.xlane.xlu1 %3845 }
 0x566   : > { %v10011_v41 = vpop.xlane.xlu1 %3851 }
 0x56e   : > { %v10018_v28 = vpop.xlane.xlu1 %3857 }
 0x576   : > { %v7164_v56 = vpop.f32.mrf.mxu1 }
 0x578   : > { %v7165_v1 = vpop.f32.mrf.mxu1 }
 0x579   : > { %v7166_v0 = vadd.f32 %v7165_v1, %v7164_v56 }
 0x57a   : > { %v7167_v18 = vpop.f32.mrf.mxu1 }
 0x57b   : > { %v9966_v51 = vadd.f32 %v7166_v0, %v9775_v25  ;;  %v3819_v25 = vpop.xlane.xlu0 %3818 }
 0x57c   : > { %v7168_v35 = vpop.f32.mrf.mxu1 }
 0x57d   : > { %v7169_v20 = vadd.f32 %v7168_v35, %v7167_v18  ;;  %v10025_v35 = vpop.xlane.xlu1 %3863 }
 0x57e   : > { %v7170_v9 = vpop.f32.mrf.mxu1 }
 0x57f   : > { %v9971_v39 = vadd.f32 %v7169_v20, %v9782_v61  ;;  %v3825_v61 = vpop.xlane.xlu0 %3824  ;;  %v11442_v20 = vld [vmem:[#allocation74_spill] sm:$0xff] }
 0x580   : > { %v7171_v52 = vpop.f32.mrf.mxu1 }
 0x581   : > { %v7172_v4 = vadd.f32 %v7171_v52, %v7170_v9 }
 0x582   : > { %v7173_v57 = vpop.f32.mrf.mxu1 }
 0x583   : > { %v9978_v37 = vadd.f32 %v7172_v4, %v9788_v22  ;;  %v9988_v44 = vpop.xlane.xlu0 %3830 }
 0x584   : > { %v7174_v45 = vpop.f32.mrf.mxu1 }
 0x585   : > { %v7175_v26 = vadd.f32 %v7174_v45, %v7173_v57  ;;  %v11443_v57 = vld [vmem:[#allocation57_spill] sm:$0xff] }
 0x586   : > { %v7176_v3 = vpop.f32.mrf.mxu1  ;;  %v3865_v45 = vmul.f32 %v3819_v25, %v11443_v57 }
 0x587   : > { %v9981_v17 = vadd.f32 %v7175_v26, %v9792_v16  ;;  %v9995_v16 = vpop.xlane.xlu0 %3836 }
 0x588   : > { %v7177_v30 = vpop.f32.mrf.mxu1 }
 0x589   : > { %v7178_v15 = vadd.f32 %v7177_v30, %v7176_v3  ;;  %v11444_v30 = vld [vmem:[#allocation45_spill] sm:$0xff] }
 0x58a   : > { %v7179_v63 = vpop.f32.mrf.mxu1 }
 0x58b   : > { %v9986_v10 = vadd.f32 %v7178_v15, %v9794_v38  ;;  %v10002_v23 = vpop.xlane.xlu0 %3842 }
 0x58c   : > { %v7180_v22 = vpop.f32.mrf.mxu1 }
 0x58d   : > { %v7181_v5 = vadd.f32 %v7180_v22, %v7179_v63  ;;  %v11445_v63 = vld [vmem:[#allocation75_spill] sm:$0xff] }
 0x58e   : > { %v7182_v11 = vpop.f32.mrf.mxu1 }
 0x58f   : > { %v9993_v33 = vadd.f32 %v7181_v5, %v11437_v34  ;;  %v10009_v12 = vpop.xlane.xlu0 %3848  ;;  %v4537_v5 = vpop.xlane.xlu1 %4536  ;;  %v11446_v34 = vld [vmem:[#allocation46_spill] sm:$0xff] }
 0x590   : > { %v7183_v58 = vpop.f32.mrf.mxu1 }
 0x591   : > { %v7184_v62 = vadd.f32 %v7183_v58, %v7182_v11  ;;  %v3881_v58 = vadd.f32 %v3865_v45, %v11446_v34  ;;  %v11452_v34 = vld [vmem:[#allocation58_spill] sm:$0xff] }
 0x592   : > { %v7185_v13 = vpop.f32.mrf.mxu1 }
 0x593   : > { %v10000_v38 = vadd.f32 %v7184_v62, %v11438_v54  ;;  %v10016_v50 = vpop.xlane.xlu0 %3854  ;;  %v3866_v62 = vmul.f32 %v3822_v40, %v11443_v57 }
 0x594   : > { %v7186_v49 = vpop.f32.mrf.mxu1 }
 0x595   : > { %v7187_v21 = vadd.f32 %v7186_v49, %v7185_v13 }
 0x596   : > { %v7188_v47 = vpop.f32.mrf.mxu1 }
 0x597   : > { %v10007_v19 = vadd.f32 %v7187_v21, %v11439_v14  ;;  %v10023_v56 = vpop.xlane.xlu0 %3860  ;;  %v4581_v21 = vmul.f32 %v4537_v5, %v11444_v30 }
 0x598   : > { %v7189_v43 = vpop.f32.mrf.mxu1 }
 0x599   : > { %v7190_v29 = vadd.f32 %v7189_v43, %v7188_v47  ;;  %v11447_v47 = vld [vmem:[#allocation76_spill] sm:$0xff] }
 0x59a   : > { %v7191_v42 = vpop.f32.mrf.mxu1 }
 0x59b   : > { %v10014_v31 = vadd.f32 %v7190_v29, %v11440_v59  ;;  %v4534_v52 = vpop.xlane.xlu0 %4533  ;;  %v11448_v29 = vld [vmem:[#allocation47_spill] sm:$0xff]  ;;  %v3867_v59 = vmul.f32 %v3825_v61, %v11443_v57 }
 0x59c   : > { %v7192_v36 = vpop.f32.mrf.mxu1  ;;  %v4580_v15 = vmul.f32 %v4534_v52, %v11444_v30 }
 0x59d   : > { %v7193_v8 = vadd.f32 %v7192_v36, %v7191_v42  ;;  %v3882_v42 = vadd.f32 %v3866_v62, %v11448_v29  ;;  %v3869_v62 = vmul.f32 %v9988_v44, %v11443_v57 }
 0x59e   : > { %v7194_v55 = vpop.f32.mrf.mxu1  ;;  %v4596_v49 = vadd.f32 %v4580_v15, %v3881_v58  ;;  %v11451_v15 = vld [vmem:[#allocation78_spill] sm:$0xff] }
 0x59f   : > { %v10021_v2 = vadd.f32 %v7193_v8, %v11441_v24  ;;  %v4540_v14 = vpop.xlane.xlu0 %4539  ;;  %v11449_v24 = vld [vmem:[#allocation77_spill] sm:$0xff] }
 0x5a0   : > { %v7195_v1 = vpop.f32.mrf.mxu1  ;;  %8048 = vrcp.f32 %v4596_v49  ;;  %v4582_v40 = vmul.f32 %v4540_v14, %v11444_v30 }
 0x5a1   : > { %v7196_v0 = vadd.f32 %v7195_v1, %v7194_v55  ;;  %v4597_v55 = vadd.f32 %v4581_v21, %v3882_v42  ;;  %v11454_v42 = vld [vmem:[#allocation59_spill] sm:$0xff] }
 0x5a2   : > { %v7197_v18 = vpop.f32.mrf.mxu1 }
 0x5a3   : > { %v10028_v9 = vadd.f32 %v7196_v0, %v11442_v20  ;;  %v4543_v0 = vpop.xlane.xlu1 %4542  ;;  %v11450_v20 = vld [vmem:[#allocation49_spill] sm:$0xff]  ;;  %8050 = vrcp.f32 %v4597_v55  ;;  %v4546_v5 = vpop.xlane.xlu0 %4545 }
 0x5a4   : > { %v7198_v4 = vpop.f32.mrf.mxu1  ;;  %v3883_v52 = vadd.f32 %v3867_v59, %v11450_v20  ;;  %v4584_v49 = vmul.f32 %v4546_v5, %v11444_v30  ;;  %v3885_v59 = vadd.f32 %v3869_v62, %v11454_v42  ;;  %v3872_v62 = vmul.f32 %v9997_v7, %v11443_v57  ;;  %v11457_v42 = vld [vmem:[#allocation62_spill] sm:$0xff] }
 0x5a5   : > { %v7199_v26 = vadd.f32 %v7198_v4, %v7197_v18  ;;  %v3868_v4 = vmul.f32 %v9983_v27, %v11443_v57 }
 0x5a6   : > { %v7200_v3 = vpop.f32.mrf.mxu1  ;;  %v4598_v61 = vadd.f32 %v4582_v40, %v3883_v52  ;;  %v4600_v55 = vadd.f32 %v4584_v49, %v3885_v59  ;;  %v3888_v59 = vadd.f32 %v3872_v62, %v11457_v42 }
 0x5a7   : > { %v10033_v22 = vadd.f32 %v7199_v26, %v11445_v63  ;;  %v3884_v58 = vadd.f32 %v3868_v4, %v11452_v34  ;;  %v4549_v21 = vpop.xlane.xlu1 %4548  ;;  %v4552_v20 = vpop.xlane.xlu0 %4551  ;;  %v3871_v4 = vmul.f32 %v9995_v16, %v11443_v57  ;;  %v11456_v34 = vld [vmem:[#allocation61_spill] sm:$0xff] }
 0x5a8   : > { %v7201_v11 = vpop.f32.mrf.mxu1  ;;  %8052 = vrcp.f32 %v4598_v61 }
 0x5a9   : > { %v7202_v13 = vadd.f32 %v7201_v11, %v7200_v3  ;;  %v4583_v3 = vmul.f32 %v4543_v0, %v11444_v30  ;;  %v11455_v0 = vld [vmem:[#allocation60_spill] sm:$0xff] }
 0x5aa   : > { %v7203_v54 = vpop.f32.mrf.mxu1 }
 0x5ab   : > { %v10039_v25 = vadd.f32 %v7202_v13, %v11447_v47  ;;  %v4599_v27 = vadd.f32 %v4583_v3, %v3884_v58  ;;  %v11453_v47 = vld [vmem:[#allocation79_spill] sm:$0xff]  ;;  %v4586_v3 = vmul.f32 %v4552_v20, %v11444_v30  ;;  %v3887_v58 = vadd.f32 %v3871_v4, %v11456_v34 }
 0x5ac   : > { %v7204_v43 = vpop.f32.mrf.mxu1 }
 0x5ad   : > { %v7205_v36 = vadd.f32 %v7204_v43, %v7203_v54  ;;  %v3870_v43 = vmul.f32 %v9990_v46, %v11443_v57  ;;  %8054 = vrcp.f32 %v4599_v27  ;;  %v4602_v27 = vadd.f32 %v4586_v3, %v3887_v58 }
 0x5ae   : > { %v7206_v8 = vpop.f32.mrf.mxu1  ;;  %8056 = vrcp.f32 %v4600_v55 }
 0x5af   : > { %v10045_v1 = vadd.f32 %v7205_v36, %v11449_v24  ;;  %v8049_v24 = vpop.eup %8048 }
 0x5b0   : > { %v7207_v18 = vpop.f32.mrf.mxu1  ;;  %v8051_v5 = vpop.eup %8050 }
 0x5b1   : > { %v7208_v45 = vadd.f32 %v7207_v18, %v7206_v8  ;;  %v4585_v8 = vmul.f32 %v4549_v21, %v11444_v30  ;;  %v3886_v18 = vadd.f32 %v3870_v43, %v11455_v0 }
 0x5b2   : > { %v7209_v26 = vpop.f32.mrf.mxu1 }
 0x5b3   : > { %v10052_v63 = vadd.f32 %v7208_v45, %v11451_v15 }
 0x5b4   : > { %v7210_v11 = vpop.f32.mrf.mxu1 }
 0x5b5   : > { %v7211_v13 = vadd.f32 %v7210_v11, %v7209_v26  ;;  %v4601_v26 = vadd.f32 %v4585_v8, %v3886_v18  ;;  %v4555_v11 = vpop.xlane.xlu1 %4554  ;;  %v8053_v43 = vpop.eup %8052  ;;  %v3874_v18 = vmul.f32 %v10004_v48, %v11443_v57  ;;  %v3875_v48 = vmul.f32 %v10009_v12, %v11443_v57 }
 0x5b6   : > { %v7228_v54 = vpop.f32.mrf.mxu1  ;;  %v4587_v49 = vmul.f32 %v4555_v11, %v11444_v30  ;;  %v11459_v11 = vld [vmem:[#allocation65_spill] sm:$0xff] }
 0x5b7   : > { %v10059_v14 = vadd.f32 %v7211_v13, %v11453_v47  ;;  %8058 = vrcp.f32 %v4601_v26 }
 0x5b8   : > { %v7229_v29 = vpop.f32.mrf.mxu1  ;;  %8060 = vrcp.f32 %v4602_v27  ;;  %v4603_v55 = vadd.f32 %v4587_v49, %v3888_v59 }
 0x5b9   : > { %v7230_v36 = vadd.f32 %v7229_v29, %v7228_v54 }
 0x5ba   : > { %v7231_v44 = vpop.f32.mrf.mxu1  ;;  %v8055_v0 = vpop.eup %8054  ;;  %8062 = vrcp.f32 %v4603_v55 }
 0x5bb   : > { %v4516_v40 = vadd.f32 %v7230_v36, %v9966_v51  ;;  %v3873_v36 = vmul.f32 %v10002_v23, %v11443_v57 }
 0x5bc   : > { %v7232_v52 = vpop.f32.mrf.mxu1 }
 0x5bd   : > { %v4628_v46 = vmul.f32 %v8049_v24, %v4516_v40  ;;  %v7233_v45 = vadd.f32 %v7232_v52, %v7231_v44  ;;  %v4561_v24 = vpop.xlane.xlu1 %4560  ;;  %v11458_v52 = vld [vmem:[#allocation63_spill] sm:$0xff] }
 0x5be   : > { %v7234_v61 = vpop.f32.mrf.mxu1  ;;  %v3889_v4 = vadd.f32 %v3873_v36, %v11458_v52 }
 0x5bf   : > { %v4517_v15 = vadd.f32 %v7233_v45, %v9971_v39  ;;  %v4558_v39 = vpop.xlane.xlu0 %4557  ;;  %v4589_v45 = vmul.f32 %v4561_v24, %v11444_v30 }
 0x5c0   : > { %v7235_v51 = vpop.f32.mrf.mxu1  ;;  %v4588_v40 = vmul.f32 %v4558_v39, %v11444_v30  ;;  %v3876_v39 = vmul.f32 %v10011_v41, %v11443_v57 }
 0x5c1   : > { %v4629_v13 = vmul.f32 %v8051_v5, %v4517_v15  ;;  %v7236_v54 = vadd.f32 %v7235_v51, %v7234_v61  ;;  %v8057_v5 = vpop.eup %8056 }
 0x5c2   : > { %v7237_v16 = vpop.f32.mrf.mxu1  ;;  %v4604_v61 = vadd.f32 %v4588_v40, %v3889_v4  ;;  %v11461_v40 = vld [vmem:[#allocation67_spill] sm:$0xff] }
 0x5c3   : > { %v4518_v21 = vadd.f32 %v7236_v54, %v9978_v37  ;;  %v4644_v47 = vpack.c.bf16 %v4629_v13, %v4628_v46  ;;  %v4564_v51 = vpop.xlane.xlu0 %4563  ;;  %v3892_v24 = vadd.f32 %v3876_v39, %v11461_v40 }
 0x5c4   : > { %v7238_v29 = vpop.f32.mrf.mxu1  ;;  %8064 = vrcp.f32 %v4604_v61  ;;  %v4590_v27 = vmul.f32 %v4564_v51, %v11444_v30 }
 0x5c5   : > { %v4630_v8 = vmul.f32 %v8053_v43, %v4518_v21  ;;  %v7239_v7 = vadd.f32 %v7238_v29, %v7237_v16  ;;  %7468 = vmatprep.mubr.bf16.mxu0 %v4644_v47  ;;  %v8059_v16 = vpop.eup %8058  ;;  %v11460_v47 = vld [vmem:[#allocation64_spill] sm:$0xff] }
 0x5c6   : > { %v7240_v44 = vpop.f32.mrf.mxu1  ;;  %v3891_v43 = vadd.f32 %v3875_v48, %v11460_v47 }
 0x5c7   : > { %v4519_v37 = vadd.f32 %v7239_v7, %v9981_v17  ;;  %v3890_v17 = vadd.f32 %v3874_v18, %v11459_v11  ;;  %v4570_v55 = vpop.xlane.xlu0 %4569  ;;  %v11464_v11 = vld [vmem:[#allocation26_spill] sm:$0xff] }
 0x5c8   : > { %v7241_v20 = vpop.f32.mrf.mxu1  ;;  %v4606_v59 = vadd.f32 %v4590_v27, %v3891_v43  ;;  %v4592_v52 = vmul.f32 %v4570_v55, %v11444_v30  ;;  %v3879_v27 = vmul.f32 %v10023_v56, %v11443_v57 }
 0x5c9   : > { %v4631_v46 = vmul.f32 %v8055_v0, %v4519_v37  ;;  %v7242_v23 = vadd.f32 %v7241_v20, %v7240_v44  ;;  %v4605_v13 = vadd.f32 %v4589_v45, %v3890_v17  ;;  %v8061_v44 = vpop.eup %8060  ;;  %v3877_v37 = vmul.f32 %v10016_v50, %v11443_v57 }
 0x5ca   : > { %v7243_v26 = vpop.f32.mrf.mxu1  ;;  %v3164_v17 = vmul.f32 %v9973_v53, %v11464_v11 }
 0x5cb   : > { %v4645_v3 = vpack.c.bf16 %v4631_v46, %v4630_v8  ;;  %v4520_v15 = vadd.f32 %v7242_v23, %v9986_v10  ;;  %v4567_v10 = vpop.xlane.xlu1 %4566  ;;  %8066 = vrcp.f32 %v4605_v13  ;;  %v8063_v46 = vpop.eup %8062  ;;  %v3878_v23 = vmul.f32 %v10018_v28, %v11443_v57 }
 0x5cc   : > { %v7244_v34 = vpop.f32.mrf.mxu1  ;;  %v4591_v36 = vmul.f32 %v4567_v10, %v11444_v30  ;;  %8068 = vrcp.f32 %v4606_v59  ;;  %v3165_v10 = vmul.f32 %v9975_v6, %v11464_v11  ;;  %v3880_v59 = vmul.f32 %v10025_v35, %v11443_v57 }
 0x5cd   : > { %v4632_v58 = vmul.f32 %v8057_v5, %v4520_v15  ;;  %v7245_v62 = vadd.f32 %v7244_v34, %v7243_v26  ;;  %7469 = vmatmul.mubr.bf16.vlgmr.msra.gmra.mxu0 %v4645_v3  ;;  %v11462_v26 = vld [vmem:[#allocation66_spill] sm:$0xff]  ;;  %v11463_v15 = vld [vmem:[#allocation25_spill] sm:$0xff] }
 0x5ce   : > { %v7246_v54 = vpop.f32.mrf.mxu1  ;;  %v4607_v20 = vadd.f32 %v4591_v36, %v3892_v24  ;;  %v3893_v61 = vadd.f32 %v3877_v37, %v11462_v26  ;;  %v2272_v5 = vmul.f32 %v9963_v32, %v11463_v15  ;;  %v2273_v53 = vmul.f32 %v9968_v60, %v11463_v15 }
 0x5cf   : > { %v4521_v49 = vadd.f32 %v7245_v62, %v9993_v33  ;;  %v4573_v4 = vpop.xlane.xlu1 %4572  ;;  %v11465_v62 = vld [vmem:[#allocation68_spill] sm:$0xff] }
 0x5d0   : > { %v7247_v21 = vpop.f32.mrf.mxu1  ;;  %v4593_v51 = vmul.f32 %v4573_v4, %v11444_v30  ;;  %8070 = vrcp.f32 %v4607_v20  ;;  %v3894_v13 = vadd.f32 %v3878_v23, %v11465_v62  ;;  %v3180_v43 = vadd.f32 %v3164_v17, %v2272_v5 }
 0x5d1   : > { %v4633_v29 = vmul.f32 %v8059_v16, %v4521_v49  ;;  %v7248_v12 = vadd.f32 %v7247_v21, %v7246_v54  ;;  %v8065_v28 = vpop.eup %8064  ;;  %v4576_v54 = vpop.xlane.xlu0 %4575 }
 0x5d2   : > { %v7249_v42 = vpop.f32.mrf.mxu1  ;;  %v4609_v21 = vadd.f32 %v4593_v51, %v3894_v13  ;;  %v4594_v39 = vmul.f32 %v4576_v54, %v11444_v30 }
 0x5d3   : > { %v4522_v8 = vadd.f32 %v7248_v12, %v10000_v38  ;;  %v4646_v7 = vpack.c.bf16 %v4633_v29, %v4632_v58  ;;  %v4579_v12 = vpop.xlane.xlu1 %4578 }
 0x5d4   : > { %v7250_v33 = vpop.f32.mrf.mxu1 }
 0x5d5   : > { %v4634_v0 = vmul.f32 %v8061_v44, %v4522_v8  ;;  %v7251_v41 = vadd.f32 %v7250_v33, %v7249_v42  ;;  %7472 = vmatprep.mubr.bf16.mxu0 %v4646_v7  ;;  %v3895_v42 = vadd.f32 %v3879_v27, %v3180_v43  ;;  %v3181_v8 = vadd.f32 %v3165_v10, %v2273_v53  ;;  %v4821_v27 = vld [vmem:[%s10134_s21] sm:$0xff]  ;;  %v4824_v10 = vld [vmem:[%s10134_s21 + $0x18] sm:$0xff]  ;;  %v4822_v43 = vld [vmem:[%s10134_s21 + $0x8] sm:$0xff] }
 0x5d6   : > { %v7252_v18 = vpop.f32.mrf.mxu1  ;;  %v4595_v44 = vmul.f32 %v4579_v12, %v11444_v30 }
 0x5d7   : > { %v4523_v38 = vadd.f32 %v7251_v41, %v10007_v19  ;;  %v4608_v19 = vadd.f32 %v4592_v52, %v3893_v61  ;;  %v4610_v7 = vadd.f32 %v4594_v39, %v3895_v42  ;;  %v4827_v42 = vld [vmem:[%s10134_s21 + $0x30] sm:$0xff] }
 0x5d8   : > { %v7253_v45 = vpop.f32.mrf.mxu1 }
 0x5d9   : > { %v4635_v3 = vmul.f32 %v8063_v46, %v4523_v38  ;;  %v7254_v50 = vadd.f32 %v7253_v45, %v7252_v18  ;;  %8072 = vrcp.f32 %v4608_v19 }
 0x5da   : > { %v7255_v34 = vpop.f32.mrf.mxu1  ;;  %8074 = vrcp.f32 %v4609_v21 }
 0x5db   : > { %v4647_v48 = vpack.c.bf16 %v4635_v3, %v4634_v0  ;;  %v4524_v58 = vadd.f32 %v7254_v50, %v10014_v31  ;;  %v8067_v31 = vpop.eup %8066  ;;  %8076 = vrcp.f32 %v4610_v7 }
 0x5dc   : > { %v7256_v16 = vpop.f32.mrf.mxu1  ;;  %v8069_v40 = vpop.eup %8068 }
 0x5dd   : > { %v4636_v32 = vmul.f32 %v8065_v28, %v4524_v58  ;;  %v7257_v49 = vadd.f32 %v7256_v16, %v7255_v34  ;;  %7473 = vmatmul.mubr.bf16.gmra.mxu0 %v4647_v48  ;;  %v8071_v18 = vpop.eup %8070 }
 0x5de   : > { %v7258_v47 = vpop.f32.mrf.mxu1 }
 0x5df   : > { %v4525_v29 = vadd.f32 %v7257_v49, %v10021_v2  ;;  %v3896_v2 = vadd.f32 %v3880_v59, %v3181_v8 }
 0x5e0   : > { %v7259_v56 = vpop.f32.mrf.mxu1 }
 0x5e1   : > { %v4637_v36 = vmul.f32 %v8067_v31, %v4525_v29  ;;  %v7260_v60 = vadd.f32 %v7259_v56, %v7258_v47  ;;  %v4611_v35 = vadd.f32 %v4595_v44, %v3896_v2  ;;  %v4828_v44 = vld [vmem:[%s10134_s21 + $0x38] sm:$0xff] }
 0x5e2   : > { %v7261_v6 = vpop.f32.mrf.mxu1 }
 0x5e3   : > { %v4526_v55 = vadd.f32 %v7260_v60, %v10028_v9  ;;  %v4648_v33 = vpack.c.bf16 %v4637_v36, %v4636_v32  ;;  %8078 = vrcp.f32 %v4611_v35  ;;  %v4825_v60 = vld [vmem:[%s10134_s21 + $0x20] sm:$0xff]  ;;  %v4831_v35 = vld [vmem:[%s10134_s21 + $0x50] sm:$0xff] }
 0x5e4   : > { %v7262_v24 = vpop.f32.mrf.mxu1 }
 0x5e5   : > { %v4638_v37 = vmul.f32 %v8069_v40, %v4526_v55  ;;  %v7263_v0 = vadd.f32 %v7262_v24, %v7261_v6  ;;  %7476 = vmatprep.mubr.bf16.mxu1 %v4648_v33  ;;  %v4826_v24 = vld [vmem:[%s10134_s21 + $0x28] sm:$0xff] }
 0x5e6   : > { %v7264_v41 = vpop.f32.mrf.mxu1  ;;  %v8073_v46 = vpop.eup %8072 }
 0x5e7   : > { %v4527_v57 = vadd.f32 %v7263_v0, %v10033_v22  ;;  %v8075_v3 = vpop.eup %8074 }
 0x5e8   : > { %v7265_v20 = vpop.f32.mrf.mxu1  ;;  %v8077_v34 = vpop.eup %8076 }
 0x5e9   : > { %v4639_v52 = vmul.f32 %v8071_v18, %v4527_v57  ;;  %v7266_v4 = vadd.f32 %v7265_v20, %v7264_v41  ;;  %v4829_v20 = vld [vmem:[%s10134_s21 + $0x40] sm:$0xff] }
 0x5ea   : > { %v7267_v38 = vpop.f32.mrf.mxu1 }
 0x5eb   : > { %v4649_v30 = vpack.c.bf16 %v4639_v52, %v4638_v37  ;;  %v4528_v9 = vadd.f32 %v7266_v4, %v10039_v25 }
 0x5ec   : > { %v7268_v23 = vpop.f32.mrf.mxu1 }
 0x5ed   : > { %v4640_v45 = vmul.f32 %v8073_v46, %v4528_v9  ;;  %v7269_v26 = vadd.f32 %v7268_v23, %v7267_v38  ;;  %7477 = vmatmul.mubr.bf16.vlgmr.msra.gmra.mxu1 %v4649_v30  ;;  %v4832_v30 = vld [vmem:[%s10134_s21 + $0x58] sm:$0xff] }
 0x5ee   : > { %v7270_v61 = vpop.f32.mrf.mxu1 }
 0x5ef   : > { %v4529_v50 = vadd.f32 %v7269_v26, %v10045_v1  ;;  %v10131_v1 = vld [vmem:[%s11205_s4] ss:$0 sm:$0xff] }
 0x5f0   : > { %v7271_v15 = vpop.f32.mrf.mxu1  ;;  %v8079_v28 = vpop.eup %8078 }
 0x5f1   : > { %v4641_v22 = vmul.f32 %v8075_v3, %v4529_v50  ;;  %v7272_v5 = vadd.f32 %v7271_v15, %v7270_v61  ;;  %v4835_v15 = vld [vmem:[%s10134_s21 + $0x70] sm:$0xff] }
 0x5f2   : > { %v7273_v11 = vpop.f32.mrf.mxu1 }
 0x5f3   : > { %v4530_v17 = vadd.f32 %v7272_v5, %v10052_v63  ;;  %v4650_v51 = vpack.c.bf16 %v4641_v22, %v4640_v45  ;;  %v4823_v63 = vld [vmem:[%s10134_s21 + $0x10] sm:$0xff]  ;;  %v4830_v45 = vld [vmem:[%s10134_s21 + $0x48] sm:$0xff] }
 0x5f4   : > { %v7274_v19 = vpop.f32.mrf.mxu1 }
 0x5f5   : > { %v4642_v25 = vmul.f32 %v8077_v34, %v4530_v17  ;;  %v7275_v48 = vadd.f32 %v7274_v19, %v7273_v11  ;;  %7480 = vmatprep.mubr.bf16.mxu1 %v4650_v51  ;;  %v4833_v11 = vld [vmem:[%s10134_s21 + $0x60] sm:$0xff]  ;;  %v4836_v19 = vld [vmem:[%s10134_s21 + $0x78] sm:$0xff] }
 0x5f7   : > { %v4531_v58 = vadd.f32 %v7275_v48, %v10059_v14 }
 0x5f9   : > { %v4643_v62 = vmul.f32 %v8079_v28, %v4531_v58  ;;  %v4834_v28 = vld [vmem:[%s10134_s21 + $0x68] sm:$0xff] }
 0x5fb   : > { %v4651_v13 = vpack.c.bf16 %v4643_v62, %v4642_v25 }
 0x5fd   : > { %7481 = vmatmul.mubr.bf16.gmra.mxu1 %v4651_v13 }
 0x68d   : > { %v7470_v54 = vpop.f32.mrf.mxu0 }
 0x68e   : > { %v4766_v14 = vadd.f32 %v7470_v54, %v10131_v1 }
 0x68f   : > { %v4757_v16 = vpop.f32.mrf.mxu0 }
 0x690   : > { %v4839_v32 = vadd.f32 %v4823_v63, %v4766_v14  ;;  %v4758_v49 = vadd.f32 %v10131_v1, %v4757_v16 }
 0x691   : > { %v7471_v53 = vpop.f32.mrf.mxu0 }
 0x692   : > { %4856 = vst [vmem:[%s10142_s0 + $0x10] sm:$0xff] %v4839_v32  ;;  %v4837_v21 = vadd.f32 %v4821_v27, %v4758_v49  ;;  %v4769_v47 = vadd.f32 %v7471_v53, %v10131_v1 }
 0x693   : > { %v4760_v31 = vpop.f32.mrf.mxu0 }
 0x694   : > { %4854 = vst [vmem:[%s10142_s0] sm:$0xff] %v4837_v21  ;;  %v4840_v39 = vadd.f32 %v4824_v10, %v4769_v47  ;;  %v4761_v29 = vadd.f32 %v10131_v1, %v4760_v31 }
 0x696   : > { %4857 = vst [vmem:[%s10142_s0 + $0x18] sm:$0xff] %v4840_v39  ;;  %v4838_v12 = vadd.f32 %v4822_v43, %v4761_v29 }
 0x698   : > { %4855 = vst [vmem:[%s10142_s0 + $0x8] sm:$0xff] %v4838_v12 }
 0x69d   : > { %v7474_v56 = vpop.f32.mrf.mxu0 }
 0x69e   : > { %v4782_v59 = vadd.f32 %v7474_v56, %v10131_v1 }
 0x69f   : > { %v4773_v36 = vpop.f32.mrf.mxu0 }
 0x6a0   : > { %v4843_v8 = vadd.f32 %v4827_v42, %v4782_v59  ;;  %v4774_v6 = vadd.f32 %v10131_v1, %v4773_v36 }
 0x6a1   : > { %v7475_v7 = vpop.f32.mrf.mxu0 }
 0x6a2   : > { %4860 = vst [vmem:[%s10142_s0 + $0x30] sm:$0xff] %v4843_v8  ;;  %v4841_v55 = vadd.f32 %v4825_v60, %v4774_v6  ;;  %v4785_v33 = vadd.f32 %v7475_v7, %v10131_v1 }
 0x6a3   : > { %v4776_v40 = vpop.f32.mrf.mxu0 }
 0x6a4   : > { %4858 = vst [vmem:[%s10142_s0 + $0x20] sm:$0xff] %v4841_v55  ;;  %v4844_v2 = vadd.f32 %v4828_v44, %v4785_v33  ;;  %v4777_v37 = vadd.f32 %v10131_v1, %v4776_v40 }
 0x6a6   : > { %4861 = vst [vmem:[%s10142_s0 + $0x38] sm:$0xff] %v4844_v2  ;;  %v4842_v0 = vadd.f32 %v4826_v24, %v4777_v37 }
 0x6a8   : > { %4859 = vst [vmem:[%s10142_s0 + $0x28] sm:$0xff] %v4842_v0 }
 0x6ad   : > { %v7478_v41 = vpop.f32.mrf.mxu1 }
 0x6ae   : > { %v4798_v57 = vadd.f32 %v7478_v41, %v10131_v1 }
 0x6af   : > { %v4789_v18 = vpop.f32.mrf.mxu1 }
 0x6b0   : > { %v4847_v52 = vadd.f32 %v4831_v35, %v4798_v57  ;;  %v4790_v4 = vadd.f32 %v10131_v1, %v4789_v18 }
 0x6b1   : > { %v7479_v38 = vpop.f32.mrf.mxu1 }
 0x6b2   : > { %4864 = vst [vmem:[%s10142_s0 + $0x50] sm:$0xff] %v4847_v52  ;;  %v4845_v9 = vadd.f32 %v4829_v20, %v4790_v4  ;;  %v4801_v46 = vadd.f32 %v7479_v38, %v10131_v1 }
 0x6b3   : > { %v4792_v23 = vpop.f32.mrf.mxu1 }
 0x6b4   : > { %4862 = vst [vmem:[%s10142_s0 + $0x40] sm:$0xff] %v4845_v9  ;;  %v4848_v26 = vadd.f32 %v4832_v30, %v4801_v46  ;;  %v4793_v61 = vadd.f32 %v10131_v1, %v4792_v23 }
 0x6b6   : > { %4865 = vst [vmem:[%s10142_s0 + $0x58] sm:$0xff] %v4848_v26  ;;  %v4846_v3 = vadd.f32 %v4830_v45, %v4793_v61 }
 0x6b8   : > { %4863 = vst [vmem:[%s10142_s0 + $0x48] sm:$0xff] %v4846_v3 }
 0x6bd   : > { %v7482_v50 = vpop.f32.mrf.mxu1 }
 0x6be   : > { %v4814_v22 = vadd.f32 %v7482_v50, %v10131_v1 }
 0x6bf   : > { %v4805_v5 = vpop.f32.mrf.mxu1 }
 0x6c0   : > { %v4851_v17 = vadd.f32 %v4835_v15, %v4814_v22  ;;  %v4806_v51 = vadd.f32 %v10131_v1, %v4805_v5 }
 0x6c1   : > { %v7483_v34 = vpop.f32.mrf.mxu1 }
 0x6c2   : > { %4868 = vst [vmem:[%s10142_s0 + $0x70] sm:$0xff] %v4851_v17  ;;  %v4849_v25 = vadd.f32 %v4833_v11, %v4806_v51  ;;  %v4817_v48 = vadd.f32 %v7483_v34, %v10131_v1 }
 0x6c3   : > { %v4808_v58 = vpop.f32.mrf.mxu1 }
 0x6c4   : > { %4866 = vst [vmem:[%s10142_s0 + $0x60] sm:$0xff] %v4849_v25  ;;  %v4852_v62 = vadd.f32 %v4836_v19, %v4817_v48  ;;  %v4809_v13 = vadd.f32 %v10131_v1, %v4808_v58  ;;  %4873 = sbr.rel (%p6678_p5) target bundleno = 2602 (0xa2a), region = 104 }
 0x6c6   : > { %4869 = vst [vmem:[%s10142_s0 + $0x78] sm:$0xff] %v4852_v62  ;;  %v4850_v54 = vadd.f32 %v4834_v28, %v4809_v13 }
 0x6c8   : > { %4867 = vst [vmem:[%s10142_s0 + $0x68] sm:$0xff] %v4850_v54 }
 0x6c9   : > { %v8138_v63 = vld [vmem:[#allocation14 + $0x74] ss:$8 sps:$4 sm:$0xff]   ;;  %v8140_v14 = vld [vmem:[#allocation14 + $0x70] ss:$8 sps:$4 sm:$0xff]   ;;  %v8435_v16 = vmov 0  }
 0x6ca   : > { %5315 = vmatprep.mubr.bf16.mxu0 %v8435_v16  ;;  %5283 = vmatprep.subr.bf16.mxu0 %v8138_v63  ;;  %v8141_v27 = vld [vmem:[#allocation14 + $0x64] ss:$8 sps:$4 sm:$0xff]   ;;  %v8143_v32 = vld [vmem:[#allocation14 + $0x60] ss:$8 sps:$4 sm:$0xff]   ;;  %v8144_v49 = vld [vmem:[#allocation14 + $0x54] ss:$8 sps:$4 sm:$0xff]  }
 0x6cb   : > { %5284 = vmatpush1.bf16.msra.mxu0 %v8140_v14  ;;  %v8146_v53 = vld [vmem:[#allocation14 + $0x50] ss:$8 sps:$4 sm:$0xff]   ;;  %v8147_v1 = vld [vmem:[#allocation14 + $0x44] ss:$8 sps:$4 sm:$0xff]   ;;  %v8149_v21 = vld [vmem:[#allocation14 + $0x40] ss:$8 sps:$4 sm:$0xff]  }
 0x6cc   : > { %5285 = vmatprep.subr.bf16.mxu0 %v8141_v27  ;;  %v8150_v43 = vld [vmem:[#allocation14 + $0x34] ss:$8 sps:$4 sm:$0xff]   ;;  %v8152_v56 = vld [vmem:[#allocation14 + $0x30] ss:$8 sps:$4 sm:$0xff]   ;;  %v8153_v59 = vld [vmem:[#allocation14 + $0x24] ss:$8 sps:$4 sm:$0xff]  }
 0x6cd   : > { %v8155_v6 = vld [vmem:[#allocation14 + $0x20] ss:$8 sps:$4 sm:$0xff]   ;;  %v8156_v44 = vld [vmem:[#allocation14 + $0x14] ss:$8 sps:$4 sm:$0xff]   ;;  %v8158_v40 = vld [vmem:[#allocation14 + $0x10] ss:$8 sps:$4 sm:$0xff]  }
 0x6ce   : > { %v8159_v2 = vld [vmem:[#allocation14 + $0x4] ss:$8 sps:$4 sm:$0xff]   ;;  %v8161_v35 = vld [vmem:[#allocation14] ss:$8 sps:$4 sm:$0xff]  }
 0x6cf   : > { %5286 = vmatpush1.bf16.msra.mxu0 %v8143_v32  ;;  %v10189_v10 = vld [vmem:[#allocation5] sm:$0xff]  ;;  %v10191_v47 = vld [vmem:[#allocation5 + $0x8] sm:$0xff]  ;;  %v10193_v31 = vld [vmem:[#allocation5 + $0x10] sm:$0xff] }
 0x6d0   : > { %5287 = vmatprep.subr.bf16.mxu0 %v8144_v49  ;;  %v4906_v39 = vadd.f32 %v10191_v47, %v10189_v10  ;;  %v10197_v29 = vld [vmem:[#allocation5 + $0x18] sm:$0xff]  ;;  %v10200_v42 = vld [vmem:[#allocation5 + $0x20] sm:$0xff]  ;;  %v10203_v60 = vld [vmem:[#allocation5 + $0x28] sm:$0xff] }
 0x6d1   : > { %v10206_v7 = vld [vmem:[#allocation5 + $0x30] sm:$0xff]  ;;  %v10208_v55 = vld [vmem:[#allocation5 + $0x38] sm:$0xff]  ;;  %v10211_v24 = vld [vmem:[#allocation5 + $0x40] sm:$0xff] }
 0x6d2   : > { %v4907_v12 = vadd.f32 %v4906_v39, %v10193_v31  ;;  %v10214_v0 = vld [vmem:[#allocation5 + $0x48] sm:$0xff]  ;;  %v10217_v57 = vld [vmem:[#allocation5 + $0x50] sm:$0xff]  ;;  %v10220_v20 = vld [vmem:[#allocation5 + $0x58] sm:$0xff] }
 0x6d3   : > { %5288 = vmatpush1.bf16.msra.mxu0 %v8146_v53  ;;  %v10223_v4 = vld [vmem:[#allocation5 + $0x60] sm:$0xff]  ;;  %v10227_v9 = vld [vmem:[#allocation5 + $0x68] sm:$0xff]  ;;  %v10230_v23 = vld [vmem:[#allocation5 + $0x70] sm:$0xff] }
 0x6d4   : > { %5289 = vmatprep.subr.bf16.mxu0 %v8147_v1  ;;  %v4908_v36 = vadd.f32 %v4907_v12, %v10197_v29  ;;  %v10233_v26 = vld [vmem:[#allocation5 + $0x78] sm:$0xff]  ;;  %v10236_v3 = vld [vmem:[#allocation5 + $0x80] sm:$0xff]  ;;  %v10239_v15 = vld [vmem:[#allocation5 + $0x88] sm:$0xff] }
 0x6d5   : > { %v10242_v5 = vld [vmem:[#allocation5 + $0x90] sm:$0xff]  ;;  %v10245_v17 = vld [vmem:[#allocation5 + $0x98] sm:$0xff]  ;;  %v10248_v34 = vld [vmem:[#allocation5 + $0xa0] sm:$0xff] }
 0x6d6   : > { %v4909_v8 = vadd.f32 %v4908_v36, %v10200_v42  ;;  %v10251_v25 = vld [vmem:[#allocation5 + $0xa8] sm:$0xff]  ;;  %v10254_v58 = vld [vmem:[#allocation5 + $0xb0] sm:$0xff]  ;;  %v10257_v62 = vld [vmem:[#allocation5 + $0xb8] sm:$0xff] }
 0x6d7   : > { %5290 = vmatpush1.bf16.msra.mxu0 %v8149_v21  ;;  %v10260_v54 = vld [vmem:[#allocation5 + $0xc0] sm:$0xff]  ;;  %v10263_v14 = vld [vmem:[#allocation5 + $0xc8] sm:$0xff]  ;;  %v10266_v32 = vld [vmem:[#allocation5 + $0xd0] sm:$0xff] }
 0x6d8   : > { %5291 = vmatprep.subr.bf16.mxu0 %v8150_v43  ;;  %v4910_v33 = vadd.f32 %v4909_v8, %v10203_v60  ;;  %v10269_v53 = vld [vmem:[#allocation5 + $0xd8] sm:$0xff]  ;;  %v10272_v21 = vld [vmem:[#allocation5 + $0xe0] sm:$0xff]  ;;  %v10275_v39 = vld [vmem:[#allocation5 + $0xe8] sm:$0xff] }
 0x6d9   : > { %v10281_v36 = vld [vmem:[#allocation5 + $0xf8] sm:$0xff] }
 0x6da   : > { %v4911_v37 = vadd.f32 %v4910_v33, %v10206_v7 }
 0x6db   : > { %5292 = vmatpush1.bf16.msra.mxu0 %v8152_v56  ;;  %v10278_v56 = vld [vmem:[#allocation5 + $0xf0] sm:$0xff] }
 0x6dc   : > { %5293 = vmatprep.subr.bf16.mxu0 %v8153_v59  ;;  %v4912_v41 = vadd.f32 %v4911_v37, %v10208_v55 }
 0x6de   : > { %v4913_v18 = vadd.f32 %v4912_v41, %v10211_v24 }
 0x6df   : > { %5294 = vmatpush1.bf16.msra.mxu0 %v8155_v6 }
 0x6e0   : > { %5295 = vmatprep.subr.bf16.mxu0 %v8156_v44  ;;  %v4914_v52 = vadd.f32 %v4913_v18, %v10214_v0 }
 0x6e2   : > { %v4915_v38 = vadd.f32 %v4914_v52, %v10217_v57 }
 0x6e3   : > { %5296 = vmatpush1.bf16.msra.mxu0 %v8158_v40 }
 0x6e4   : > { %5297 = vmatprep.subr.bf16.mxu0 %v8159_v2  ;;  %v4916_v30 = vadd.f32 %v4915_v38, %v10220_v20 }
 0x6e6   : > { %v4917_v46 = vadd.f32 %v4916_v30, %v10223_v4 }
 0x6e7   : > { %5298 = vmatpush1.bf16.msra.mxu0 %v8161_v35 }
 0x6e8   : > { %v4918_v45 = vadd.f32 %v4917_v46, %v10227_v9 }
 0x6ea   : > { %v4919_v61 = vadd.f32 %v4918_v45, %v10230_v23 }
 0x6ec   : > { %v4920_v50 = vadd.f32 %v4919_v61, %v10233_v26 }
 0x6ee   : > { %v4921_v22 = vadd.f32 %v4920_v50, %v10236_v3 }
 0x6f0   : > { %v4922_v11 = vadd.f32 %v4921_v22, %v10239_v15 }
 0x6f2   : > { %v4923_v51 = vadd.f32 %v4922_v11, %v10242_v5 }
 0x6f4   : > { %v4924_v19 = vadd.f32 %v4923_v51, %v10245_v17 }
 0x6f6   : > { %v4925_v48 = vadd.f32 %v4924_v19, %v10248_v34 }
 0x6f8   : > { %v4926_v28 = vadd.f32 %v4925_v48, %v10251_v25 }
 0x6fa   : > { %v4927_v13 = vadd.f32 %v4926_v28, %v10254_v58 }
 0x6fc   : > { %v4928_v63 = vadd.f32 %v4927_v13, %v10257_v62 }
 0x6fe   : > { %v4929_v27 = vadd.f32 %v4928_v63, %v10260_v54 }
 0x700   : > { %v4930_v49 = vadd.f32 %v4929_v27, %v10263_v14 }
 0x702   : > { %v4931_v1 = vadd.f32 %v4930_v49, %v10266_v32 }
 0x704   : > { %v4932_v43 = vadd.f32 %v4931_v1, %v10269_v53 }
 0x706   : > { %v4933_v12 = vadd.f32 %v4932_v43, %v10272_v21 }
 0x708   : > { %v4934_v59 = vadd.f32 %v4933_v12, %v10275_v39 }
 0x70a   : > { %v4935_v8 = vadd.f32 %v4934_v59, %v10278_v56 }
 0x70c   : > { %v4936_v6 = vadd.f32 %v4935_v8, %v10281_v36 }
 0x70e   : > { %v4937_v44 = vrot.slane %v4936_v6, 4 }
 0x710   : > { %v4938_v33 = vadd.f32 %v4937_v44, %v4936_v6 }
 0x712   : > { %v4939_v40 = vrot.slane %v4938_v33, 2 }
 0x714   : > { %v4940_v2 = vadd.f32 %v4939_v40, %v4938_v33 }
 0x716   : > { %v4941_v37 = vrot.slane %v4940_v2, 1 }
 0x718   : > { %v4942_v41 = vadd.f32 %v4941_v37, %v4940_v2 }
 0x71a   : > { %v10285_v35 = vmul.f32 0.00390625, %v4942_v41 }
 0x71c   : > { %v10289_v18 = vsub.f32 %v10189_v10, %v10285_v35  ;;  %v10293_v52 = vsub.f32 %v10191_v47, %v10285_v35  ;;  %v10297_v38 = vsub.f32 %v10193_v31, %v10285_v35  ;;  %v10301_v30 = vsub.f32 %v10197_v29, %v10285_v35 }
 0x71d   : > { %v10309_v10 = vsub.f32 %v10200_v42, %v10285_v35  ;;  %v10315_v31 = vsub.f32 %v10203_v60, %v10285_v35  ;;  %v10321_v50 = vsub.f32 %v10206_v7, %v10285_v35  ;;  %v10327_v11 = vsub.f32 %v10208_v55, %v10285_v35 }
 0x71e   : > { %v4977_v46 = vmul.f32 %v10289_v18, %v10289_v18  ;;  %v4978_v45 = vmul.f32 %v10293_v52, %v10293_v52  ;;  %v4979_v47 = vmul.f32 %v10297_v38, %v10297_v38  ;;  %v4980_v29 = vmul.f32 %v10301_v30, %v10301_v30 }
 0x71f   : > { %v4981_v22 = vmul.f32 %v10309_v10, %v10309_v10  ;;  %v4982_v60 = vmul.f32 %v10315_v31, %v10315_v31  ;;  %v10333_v19 = vsub.f32 %v10211_v24, %v10285_v35  ;;  %v4983_v7 = vmul.f32 %v10321_v50, %v10321_v50 }
 0x720   : > { %v5009_v61 = vadd.f32 %v4978_v45, %v4977_v46  ;;  %v10339_v28 = vsub.f32 %v10214_v0, %v10285_v35  ;;  %v4984_v55 = vmul.f32 %v10327_v11, %v10327_v11  ;;  %v10345_v63 = vsub.f32 %v10217_v57, %v10285_v35 }
 0x721   : > { %v4985_v24 = vmul.f32 %v10333_v19, %v10333_v19  ;;  %v10351_v49 = vsub.f32 %v10220_v20, %v10285_v35  ;;  %v10357_v43 = vsub.f32 %v10223_v4, %v10285_v35  ;;  %v10363_v59 = vsub.f32 %v10227_v9, %v10285_v35 }
 0x722   : > { %v5010_v42 = vadd.f32 %v5009_v61, %v4979_v47  ;;  %v4986_v0 = vmul.f32 %v10339_v28, %v10339_v28  ;;  %v4987_v57 = vmul.f32 %v10345_v63, %v10345_v63  ;;  %v10369_v6 = vsub.f32 %v10230_v23, %v10285_v35 }
 0x723   : > { %v4988_v20 = vmul.f32 %v10351_v49, %v10351_v49  ;;  %v4989_v4 = vmul.f32 %v10357_v43, %v10357_v43  ;;  %v10375_v33 = vsub.f32 %v10233_v26, %v10285_v35  ;;  %v4990_v9 = vmul.f32 %v10363_v59, %v10363_v59 }
 0x724   : > { %v5011_v51 = vadd.f32 %v5010_v42, %v4980_v29  ;;  %v10381_v2 = vsub.f32 %v10236_v3, %v10285_v35  ;;  %v4991_v23 = vmul.f32 %v10369_v6, %v10369_v6  ;;  %v10387_v41 = vsub.f32 %v10239_v15, %v10285_v35 }
 0x725   : > { %v4992_v26 = vmul.f32 %v10375_v33, %v10375_v33  ;;  %v10393_v45 = vsub.f32 %v10242_v5, %v10285_v35  ;;  %v10399_v29 = vsub.f32 %v10245_v17, %v10285_v35 }
 0x726   : > { %v5012_v48 = vadd.f32 %v5011_v51, %v4981_v22  ;;  %v4993_v3 = vmul.f32 %v10381_v2, %v10381_v2  ;;  %v4994_v15 = vmul.f32 %v10387_v41, %v10387_v41  ;;  %v10405_v22 = vsub.f32 %v10248_v34, %v10285_v35 }
 0x727   : > { %v4995_v5 = vmul.f32 %v10393_v45, %v10393_v45  ;;  %v4996_v17 = vmul.f32 %v10399_v29, %v10399_v29 }
 0x728   : > { %v5013_v13 = vadd.f32 %v5012_v48, %v4982_v60  ;;  %v10411_v60 = vsub.f32 %v10251_v25, %v10285_v35  ;;  %v4997_v34 = vmul.f32 %v10405_v22, %v10405_v22 }
 0x72a   : > { %v5014_v27 = vadd.f32 %v5013_v13, %v4983_v7  ;;  %v10417_v7 = vsub.f32 %v10254_v58, %v10285_v35  ;;  %v4998_v25 = vmul.f32 %v10411_v60, %v10411_v60 }
 0x72c   : > { %v5015_v1 = vadd.f32 %v5014_v27, %v4984_v55  ;;  %v10423_v55 = vsub.f32 %v10257_v62, %v10285_v35  ;;  %v4999_v58 = vmul.f32 %v10417_v7, %v10417_v7 }
 0x72e   : > { %v5016_v12 = vadd.f32 %v5015_v1, %v4985_v24  ;;  %v10429_v24 = vsub.f32 %v10260_v54, %v10285_v35  ;;  %v5000_v62 = vmul.f32 %v10423_v55, %v10423_v55 }
 0x730   : > { %v5017_v8 = vadd.f32 %v5016_v12, %v4986_v0  ;;  %v10435_v0 = vsub.f32 %v10263_v14, %v10285_v35  ;;  %v5001_v54 = vmul.f32 %v10429_v24, %v10429_v24 }
 0x732   : > { %v5018_v44 = vadd.f32 %v5017_v8, %v4987_v57  ;;  %v10441_v57 = vsub.f32 %v10266_v32, %v10285_v35  ;;  %v5002_v14 = vmul.f32 %v10435_v0, %v10435_v0 }
 0x734   : > { %v5019_v40 = vadd.f32 %v5018_v44, %v4988_v20  ;;  %v10447_v20 = vsub.f32 %v10269_v53, %v10285_v35  ;;  %v5003_v32 = vmul.f32 %v10441_v57, %v10441_v57 }
 0x736   : > { %v5020_v37 = vadd.f32 %v5019_v40, %v4989_v4  ;;  %v10453_v4 = vsub.f32 %v10272_v21, %v10285_v35  ;;  %v5004_v53 = vmul.f32 %v10447_v20, %v10447_v20 }
 0x738   : > { %v5021_v46 = vadd.f32 %v5020_v37, %v4990_v9  ;;  %v10459_v9 = vsub.f32 %v10275_v39, %v10285_v35  ;;  %v5005_v21 = vmul.f32 %v10453_v4, %v10453_v4 }
 0x73a   : > { %v5022_v47 = vadd.f32 %v5021_v46, %v4991_v23  ;;  %v10465_v23 = vsub.f32 %v10278_v56, %v10285_v35  ;;  %v5006_v39 = vmul.f32 %v10459_v9, %v10459_v9 }
 0x73c   : > { %v5023_v61 = vadd.f32 %v5022_v47, %v4992_v26  ;;  %v10471_v26 = vsub.f32 %v10281_v36, %v10285_v35 }
 0x73e   : > { %v5024_v42 = vadd.f32 %v5023_v61, %v4993_v3  ;;  %v5007_v3 = vmul.f32 %v10465_v23, %v10465_v23  ;;  %v5008_v56 = vmul.f32 %v10471_v26, %v10471_v26 }
 0x740   : > { %v5025_v51 = vadd.f32 %v5024_v42, %v4994_v15 }
 0x742   : > { %v5026_v48 = vadd.f32 %v5025_v51, %v4995_v5 }
 0x744   : > { %v5027_v13 = vadd.f32 %v5026_v48, %v4996_v17 }
 0x746   : > { %v5028_v27 = vadd.f32 %v5027_v13, %v4997_v34 }
 0x748   : > { %v5029_v1 = vadd.f32 %v5028_v27, %v4998_v25 }
 0x74a   : > { %v5030_v12 = vadd.f32 %v5029_v1, %v4999_v58  ;;  %v10484_v58 = vld [vmem:[%s11206_s5] ss:$0 sm:$0xff] }
 0x74c   : > { %v5031_v8 = vadd.f32 %v5030_v12, %v5000_v62  ;;  %v8162_v12 = vld [vmem:[#allocation15 + $0x78] sm:$0xff]  }
 0x74d   : > { %7292 = vmatprep.subr.bf16.mxu1 %v8162_v12  ;;  %v8171_v12 = vld [vmem:[#allocation15 + $0x18] sm:$0xff]  }
 0x74e   : > { %v5032_v44 = vadd.f32 %v5031_v8, %v5001_v54  ;;  %v8164_v8 = vld [vmem:[#allocation15 + $0x70] sm:$0xff]  }
 0x750   : > { %v5033_v40 = vadd.f32 %v5032_v44, %v5002_v14  ;;  %v8163_v14 = vld [vmem:[#allocation15 + $0x38] sm:$0xff]  }
 0x751   : > { %7293 = vmatpush3.bf16.msra.mxu1 %v8163_v14 }
 0x752   : > { %v5034_v37 = vadd.f32 %v5033_v40, %v5003_v32  ;;  %v10497_v32 = vld [vmem:[%s11207_s6] ss:$0 sm:$0xff]  ;;  %7294 = vmatprep.subr.bf16.mxu1 %v8164_v8 }
 0x754   : > { %v5035_v46 = vadd.f32 %v5034_v37, %v5004_v53 }
 0x756   : > { %v5036_v47 = vadd.f32 %v5035_v46, %v5005_v21  ;;  %v8166_v46 = vld [vmem:[#allocation15 + $0x68] sm:$0xff]  }
 0x758   : > { %v5037_v15 = vadd.f32 %v5036_v47, %v5006_v39  ;;  %v8167_v47 = vld [vmem:[#allocation15 + $0x28] sm:$0xff]  }
 0x75a   : > { %v5038_v61 = vadd.f32 %v5037_v15, %v5007_v3 }
 0x75c   : > { %v5039_v5 = vadd.f32 %v5038_v61, %v5008_v56 }
 0x75e   : > { %v5040_v42 = vrot.slane %v5039_v5, 4 }
 0x760   : > { %v5041_v17 = vadd.f32 %v5040_v42, %v5039_v5  ;;  %v8169_v42 = vld [vmem:[#allocation15 + $0x20] sm:$0xff]  }
 0x762   : > { %v5042_v51 = vrot.slane %v5041_v17, 2 }
 0x764   : > { %v5043_v34 = vadd.f32 %v5042_v51, %v5041_v17 }
 0x766   : > { %v5044_v36 = vrot.slane %v5043_v34, 1 }
 0x768   : > { %v5045_v35 = vadd.f32 %v5044_v36, %v5043_v34 }
 0x76a   : > { %v5046_v48 = vmul.f32 0.00390625, %v5045_v35 }
 0x76c   : > { %v5047_v25 = vadd.f32 1e-05, %v5046_v48 }
 0x76e   : > { %8178 = vrsqrt.f32 %v5047_v25 }
 0x77b   : > { %v10479_v13 = vpop.eup %8178 }
 0x77c   : > { %v5049_v27 = vmul.f32 %v10479_v13, %v10289_v18  ;;  %v5050_v62 = vmul.f32 %v10479_v13, %v10293_v52  ;;  %v5051_v1 = vmul.f32 %v10479_v13, %v10297_v38  ;;  %v5052_v54 = vmul.f32 %v10479_v13, %v10301_v30  ;;  %v8165_v52 = vld [vmem:[#allocation15 + $0x30] sm:$0xff]  }
 0x77d   : > { %v5053_v21 = vmul.f32 %v10479_v13, %v10309_v10  ;;  %v5054_v39 = vmul.f32 %v10479_v13, %v10315_v31  ;;  %v5055_v3 = vmul.f32 %v10479_v13, %v10321_v50  ;;  %7295 = vmatpush3.bf16.msra.mxu1 %v8165_v52  ;;  %v8168_v10 = vld [vmem:[#allocation15 + $0x60] sm:$0xff]   ;;  %v5056_v31 = vmul.f32 %v10479_v13, %v10327_v11 }
 0x77e   : > { %v5088_v44 = vmul.f32 %v10484_v58, %v5049_v27  ;;  %v5089_v18 = vmul.f32 %v10484_v58, %v5050_v62  ;;  %v5090_v53 = vmul.f32 %v10484_v58, %v5051_v1  ;;  %v5091_v40 = vmul.f32 %v10484_v58, %v5052_v54  ;;  %7296 = vmatprep.subr.bf16.mxu1 %v8166_v46  ;;  %v8170_v27 = vld [vmem:[#allocation15 + $0x58] sm:$0xff]  }
 0x77f   : > { %v5092_v61 = vmul.f32 %v10484_v58, %v5053_v21  ;;  %v5093_v5 = vmul.f32 %v10484_v58, %v5054_v39  ;;  %v5094_v50 = vmul.f32 %v10484_v58, %v5055_v3  ;;  %v5065_v51 = vmul.f32 %v10479_v13, %v10381_v2 }
 0x780   : > { %v10502_v38 = vadd.f32 %v10497_v32, %v5088_v44  ;;  %v10505_v30 = vadd.f32 %v10497_v32, %v5089_v18  ;;  %v10518_v56 = vadd.f32 %v10497_v32, %v5090_v53  ;;  %v10521_v15 = vadd.f32 %v10497_v32, %v5091_v40 }
 0x781   : > { %7297 = vmatpush3.bf16.msra.mxu1 %v8167_v47  ;;  %v10534_v34 = vadd.f32 %v10497_v32, %v5092_v61  ;;  %v5095_v36 = vmul.f32 %v10484_v58, %v5056_v31  ;;  %v5066_v11 = vmul.f32 %v10479_v13, %v10387_v41  ;;  %v10540_v35 = vadd.f32 %v10497_v32, %v5093_v5 }
 0x782   : > { %v5159_v37 = vpack.c.bf16 %v10505_v30, %v10502_v38  ;;  %v5160_v17 = vpack.c.bf16 %v10521_v15, %v10518_v56  ;;  %7298 = vmatprep.subr.bf16.mxu1 %v8168_v10  ;;  %v5104_v48 = vmul.f32 %v10484_v58, %v5065_v51  ;;  %v5067_v25 = vmul.f32 %v10479_v13, %v10393_v45 }
 0x783   : > { %v5068_v2 = vmul.f32 %v10479_v13, %v10399_v29  ;;  %v10548_v62 = vadd.f32 %v10497_v32, %v5094_v50  ;;  %v5105_v1 = vmul.f32 %v10484_v58, %v5066_v11  ;;  %v5069_v41 = vmul.f32 %v10479_v13, %v10405_v22 }
 0x784   : > { %5316 = vmatmul.mubr.bf16.vlgmr.msra.gmra.mxu0 %v5159_v37  ;;  %v5070_v54 = vmul.f32 %v10479_v13, %v10411_v60  ;;  %v10556_v45 = vadd.f32 %v10497_v32, %v5104_v48  ;;  %v5106_v29 = vmul.f32 %v10484_v58, %v5067_v25  ;;  %v5071_v8 = vmul.f32 %v10479_v13, %v10417_v7 }
 0x785   : > { %5325 = vmatprep.mubr.bf16.mxu0 %v8435_v16  ;;  %7299 = vmatpush3.bf16.msra.mxu1 %v8169_v42  ;;  %v5107_v14 = vmul.f32 %v10484_v58, %v5068_v2  ;;  %v10564_v22 = vadd.f32 %v10497_v32, %v5105_v1  ;;  %v5108_v60 = vmul.f32 %v10484_v58, %v5069_v41 }
 0x786   : > { %v5109_v44 = vmul.f32 %v10484_v58, %v5070_v54  ;;  %v5072_v18 = vmul.f32 %v10479_v13, %v10423_v55  ;;  %v10571_v52 = vadd.f32 %v10497_v32, %v5106_v29  ;;  %v5110_v7 = vmul.f32 %v10484_v58, %v5071_v8  ;;  %7300 = vmatprep.subr.bf16.mxu1 %v8170_v27 }
 0x787   : > { %v10574_v53 = vadd.f32 %v10497_v32, %v5107_v14  ;;  %v5073_v40 = vmul.f32 %v10479_v13, %v10429_v24  ;;  %v10580_v21 = vadd.f32 %v10497_v32, %v5095_v36  ;;  %v10583_v37 = vadd.f32 %v10497_v32, %v5108_v60 }
 0x788   : > { %v10586_v55 = vadd.f32 %v10497_v32, %v5109_v44  ;;  %v5111_v39 = vmul.f32 %v10484_v58, %v5072_v18  ;;  %v5161_v46 = vpack.c.bf16 %v10540_v35, %v10534_v34  ;;  %v10592_v3 = vadd.f32 %v10497_v32, %v5110_v7 }
 0x789   : > { %7301 = vmatpush3.bf16.msra.mxu1 %v8171_v12  ;;  %v5074_v24 = vmul.f32 %v10479_v13, %v10435_v0  ;;  %v5112_v47 = vmul.f32 %v10484_v58, %v5073_v40  ;;  %v5057_v10 = vmul.f32 %v10479_v13, %v10333_v19  ;;  %v5075_v31 = vmul.f32 %v10479_v13, %v10441_v57 }
 0x78a   : > { %11466 = vst [vmem:[#allocation80_spill] sm:$0xff] %v10586_v55  ;;  %11467 = vst [vmem:[#allocation81_spill] sm:$0xff] %v10592_v3  ;;  %v10600_v61 = vadd.f32 %v10497_v32, %v5111_v39  ;;  %v5076_v5 = vmul.f32 %v10479_v13, %v10447_v20  ;;  %v5077_v0 = vmul.f32 %v10479_v13, %v10453_v4 }
 0x78b   : > { %v5113_v50 = vmul.f32 %v10484_v58, %v5074_v24  ;;  %v10608_v42 = vadd.f32 %v10497_v32, %v5112_v47  ;;  %v5078_v19 = vmul.f32 %v10479_v13, %v10459_v9  ;;  %v5114_v51 = vmul.f32 %v10484_v58, %v5075_v31 }
 0x78c   : > { %5326 = vmatmul.mubr.bf16.gmra.mxu0 %v5160_v17  ;;  %11468 = vst [vmem:[#allocation82_spill] sm:$0xff] %v10600_v61  ;;  %v5058_v17 = vmul.f32 %v10479_v13, %v10339_v28  ;;  %v5115_v57 = vmul.f32 %v10484_v58, %v5076_v5  ;;  %v5079_v20 = vmul.f32 %v10479_v13, %v10465_v23 }
 0x78d   : > { %5335 = vmatprep.mubr.bf16.mxu0 %v8435_v16  ;;  %11469 = vst [vmem:[#allocation83_spill] sm:$0xff] %v10608_v42  ;;  %v10621_v36 = vadd.f32 %v10497_v32, %v5113_v50  ;;  %v5116_v11 = vmul.f32 %v10484_v58, %v5077_v0  ;;  %v5117_v4 = vmul.f32 %v10484_v58, %v5078_v19 }
 0x78e   : > { %v5080_v9 = vmul.f32 %v10479_v13, %v10471_v26  ;;  %v10629_v28 = vadd.f32 %v10497_v32, %v5114_v51  ;;  %v10632_v48 = vadd.f32 %v10497_v32, %v5115_v57  ;;  %v5118_v23 = vmul.f32 %v10484_v58, %v5079_v20  ;;  %v8174_v51 = vld [vmem:[#allocation15 + $0x48] sm:$0xff]   ;;  %v8176_v20 = vld [vmem:[#allocation15 + $0x40] sm:$0xff]  }
 0x78f   : > { %11470 = vst [vmem:[#allocation84_spill] sm:$0xff] %v10621_v36  ;;  %v10636_v25 = vadd.f32 %v10497_v32, %v5116_v11  ;;  %v10639_v2 = vadd.f32 %v10497_v32, %v5117_v4  ;;  %v5162_v1 = vpack.c.bf16 %v10580_v21, %v10548_v62  ;;  %v5096_v41 = vmul.f32 %v10484_v58, %v5057_v10  ;;  %v8175_v57 = vld [vmem:[#allocation15 + $0x8] sm:$0xff]   ;;  %v8177_v11 = vld [vmem:[#allocation15] sm:$0xff]  }
 0x790   : > { %11471 = vst [vmem:[#allocation85_spill] sm:$0xff] %v10629_v28  ;;  %11472 = vst [vmem:[#allocation86_spill] sm:$0xff] %v10632_v48  ;;  %v5119_v27 = vmul.f32 %v10484_v58, %v5080_v9  ;;  %v10643_v26 = vadd.f32 %v10497_v32, %v5118_v23  ;;  %v5097_v54 = vmul.f32 %v10484_v58, %v5058_v17 }
 0x791   : > { %11473 = vst [vmem:[#allocation87_spill] sm:$0xff] %v10636_v25  ;;  %11474 = vst [vmem:[#allocation88_spill] sm:$0xff] %v10639_v2  ;;  %v10653_v29 = vadd.f32 %v10497_v32, %v5096_v41  ;;  %v5059_v8 = vmul.f32 %v10479_v13, %v10345_v63  ;;  %v5060_v60 = vmul.f32 %v10479_v13, %v10351_v49 }
 0x792   : > { %11475 = vst [vmem:[#allocation89_spill] sm:$0xff] %v10643_v26  ;;  %v10650_v12 = vadd.f32 %v10497_v32, %v5119_v27  ;;  %v10656_v14 = vadd.f32 %v10497_v32, %v5097_v54  ;;  %v5061_v63 = vmul.f32 %v10479_v13, %v10357_v43  ;;  %v5062_v49 = vmul.f32 %v10479_v13, %v10363_v59 }
 0x793   : > { %v5098_v18 = vmul.f32 %v10484_v58, %v5059_v8  ;;  %v5099_v7 = vmul.f32 %v10484_v58, %v5060_v60  ;;  %v5063_v43 = vmul.f32 %v10479_v13, %v10369_v6  ;;  %v5064_v59 = vmul.f32 %v10479_v13, %v10375_v33  ;;  %v8172_v13 = vld [vmem:[#allocation15 + $0x50] sm:$0xff]  }
 0x794   : > { %5336 = vmatmul.mubr.bf16.gmra.mxu0 %v5161_v46  ;;  %11476 = vst [vmem:[#allocation90_spill] sm:$0xff] %v10650_v12  ;;  %v5163_v44 = vpack.c.bf16 %v10656_v14, %v10653_v29  ;;  %v5100_v24 = vmul.f32 %v10484_v58, %v5061_v63  ;;  %v5101_v47 = vmul.f32 %v10484_v58, %v5062_v49  ;;  %v11477_v54 = vlaneseq }
 0x795   : > { %5345 = vmatprep.mubr.bf16.mxu0 %v8435_v16  ;;  %v10668_v40 = vadd.f32 %v10497_v32, %v5098_v18  ;;  %v10671_v39 = vadd.f32 %v10497_v32, %v5099_v7  ;;  %v5102_v50 = vmul.f32 %v10484_v58, %v5063_v43  ;;  %v5103_v0 = vmul.f32 %v10484_v58, %v5064_v59  ;;  %v8173_v58 = vld [vmem:[#allocation15 + $0x10] sm:$0xff]   ;;  %v5191_v18 = vld [vmem:[%s11209_s8] sm:$0x3] }
 0x796   : > { %v10683_v10 = vadd.f32 %v10497_v32, %v5100_v24  ;;  %v10686_v31 = vadd.f32 %v10497_v32, %v5101_v47  ;;  %v5167_v33 = vpack.c.bf16 %v10564_v22, %v10556_v45  ;;  %7302 = vmatprep.subr.bf16.mxu1 %v8172_v13  ;;  %v5169_v4 = vpack.c.bf16 %v10586_v55, %v10583_v37 }
 0x797   : > { %v5164_v46 = vpack.c.bf16 %v10671_v39, %v10668_v40  ;;  %v10698_v19 = vadd.f32 %v10497_v32, %v5102_v50  ;;  %v10701_v17 = vadd.f32 %v10497_v32, %v5103_v0  ;;  %7303 = vmatpush3.bf16.msra.mxu1 %v8173_v58  ;;  %v5168_v32 = vpack.c.bf16 %v10574_v53, %v10571_v52 }
 0x798   : > { %v5165_v5 = vpack.c.bf16 %v10686_v31, %v10683_v10  ;;  %7304 = vmatprep.subr.bf16.mxu1 %v8174_v51  ;;  %v5170_v9 = vpack.c.bf16 %v10600_v61, %v10592_v3  ;;  %v5171_v23 = vpack.c.bf16 %v10621_v36, %v10608_v42  ;;  %v5172_v27 = vpack.c.bf16 %v10632_v48, %v10629_v28 }
 0x799   : > { %v5166_v6 = vpack.c.bf16 %v10701_v17, %v10698_v19  ;;  %v5174_v41 = vpack.c.bf16 %v10650_v12, %v10643_v26  ;;  %v5194_v8 = vshrl.u32 %v11477_v54, 7  ;;  %v10809_v26 = vld [vmem:[%s11211_s10] ss:$0 sm:$0xff] }
 0x79b   : > { %7305 = vmatpush3.bf16.msra.mxu1 %v8175_v57  ;;  %v5199_v60 = vsub.s32 1, %v5194_v8 }
 0x79c   : > { %5346 = vmatmul.mubr.bf16.gmra.mxu0 %v5162_v1  ;;  %7306 = vmatprep.subr.bf16.mxu1 %v8176_v20  ;;  %v5173_v1 = vpack.c.bf16 %v10639_v2, %v10636_v25 }
 0x79d   : > { %5355 = vmatprep.mubr.bf16.mxu0 %v8435_v16  ;;  %v10734_v63 = vrot.slane %v5191_v18, %v5199_v60 }
 0x79f   : > { %7307 = vmatpush3.bf16.msra.mxu1 %v8177_v11 }
 0x7a4   : > { %5356 = vmatmul.mubr.bf16.gmra.mxu0 %v5163_v44  ;;  %v5195_v44 = vsub.s32 0, %v5194_v8 }
 0x7a5   : > { %5365 = vmatprep.mubr.bf16.mxu0 %v8435_v16 }
 0x7a6   : > { %v10736_v49 = vrot.slane %v5191_v18, %v5195_v44 }
 0x7ac   : > { %5366 = vmatmul.mubr.bf16.gmra.mxu0 %v5164_v46 }
 0x7ad   : > { %5375 = vmatprep.mubr.bf16.mxu0 %v8435_v16 }
 0x7b4   : > { %5376 = vmatmul.mubr.bf16.gmra.mxu0 %v5165_v5 }
 0x7b5   : > { %5385 = vmatprep.mubr.bf16.mxu0 %v8435_v16 }
 0x7bc   : > { %5386 = vmatmul.mubr.bf16.gmra.mxu0 %v5166_v6 }
 0x7bd   : > { %5395 = vmatprep.mubr.bf16.mxu0 %v8435_v16 }
 0x7c4   : > { %5396 = vmatmul.mubr.bf16.gmra.mxu0 %v5167_v33 }
 0x7c5   : > { %5405 = vmatprep.mubr.bf16.mxu0 %v8435_v16 }
 0x7cc   : > { %5406 = vmatmul.mubr.bf16.gmra.mxu0 %v5168_v32 }
 0x7cd   : > { %5415 = vmatprep.mubr.bf16.mxu0 %v8435_v16 }
 0x7d4   : > { %5416 = vmatmul.mubr.bf16.gmra.mxu0 %v5169_v4 }
 0x7d5   : > { %5425 = vmatprep.mubr.bf16.mxu0 %v8435_v16 }
 0x7dc   : > { %5426 = vmatmul.mubr.bf16.gmra.mxu0 %v5170_v9 }
 0x7dd   : > { %5435 = vmatprep.mubr.bf16.mxu0 %v8435_v16 }
 0x7e4   : > { %5436 = vmatmul.mubr.bf16.gmra.mxu0 %v5171_v23 }
 0x7e5   : > { %5445 = vmatprep.mubr.bf16.mxu0 %v8435_v16 }
 0x7ec   : > { %5446 = vmatmul.mubr.bf16.gmra.mxu0 %v5172_v27 }
 0x7ed   : > { %5455 = vmatprep.mubr.bf16.mxu0 %v8435_v16 }
 0x7f4   : > { %5456 = vmatmul.mubr.bf16.gmra.mxu0 %v5173_v1 }
 0x7f5   : > { %5465 = vmatprep.mubr.bf16.mxu0 %v8435_v16 }
 0x7fc   : > { %5466 = vmatmul.mubr.bf16.gmra.mxu0 %v5174_v41 }
 0x844   : > { %v5317_v7 = vpop.f32.mrf.mxu0 }
 0x845   : > { %v5318_v43 = vadd.f32 %v5317_v7, %v10736_v49 }
 0x846   : > { %v5319_v46 = vpop.f32.mrf.mxu0 }
 0x847   : > { %v5320_v16 = vadd.f32 %v5319_v46, %v10734_v63  ;;  %v5476_v13 = vmax.f32 %v5318_v43, 0.0 }
 0x848   : > { %v5321_v24 = vpop.f32.mrf.mxu0 }
 0x849   : > { %v5322_v47 = vadd.f32 %v5321_v24, %v10736_v49  ;;  %v5477_v6 = vmax.f32 %v5320_v16, 0.0 }
 0x84a   : > { %v5323_v59 = vpop.f32.mrf.mxu0 }
 0x84b   : > { %v5324_v5 = vadd.f32 %v5323_v59, %v10734_v63  ;;  %v5478_v50 = vmax.f32 %v5322_v47, 0.0 }
 0x84c   : > { %v5327_v0 = vpop.f32.mrf.mxu0 }
 0x84d   : > { %v5479_v33 = vmax.f32 %v5324_v5, 0.0  ;;  %v5540_v51 = vpack.c.bf16 %v5478_v50, %v5476_v13  ;;  %v5328_v4 = vadd.f32 %v5327_v0, %v10736_v49 }
 0x84e   : > { %v5329_v58 = vpop.f32.mrf.mxu0 }
 0x84f   : > { %v5541_v32 = vpack.c.bf16 %v5479_v33, %v5477_v6  ;;  %v5330_v20 = vadd.f32 %v5329_v58, %v10734_v63  ;;  %v5480_v8 = vmax.f32 %v5328_v4, 0.0 }
 0x850   : > { %v5331_v57 = vpop.f32.mrf.mxu0 }
 0x851   : > { %v5332_v11 = vadd.f32 %v5331_v57, %v10736_v49  ;;  %5739 = vmatprep.mubr.bf16.mxu1 %v5541_v32  ;;  %v5481_v41 = vmax.f32 %v5330_v20, 0.0 }
 0x852   : > { %v5333_v9 = vpop.f32.mrf.mxu0  ;;  %5740 = vmatmul.mubr.bf16.vlgmr.msra.gmra.mxu1 %v5540_v51 }
 0x853   : > { %v5334_v23 = vadd.f32 %v5333_v9, %v10734_v63  ;;  %v5482_v27 = vmax.f32 %v5332_v11, 0.0 }
 0x854   : > { %v5337_v1 = vpop.f32.mrf.mxu0 }
 0x855   : > { %v5483_v54 = vmax.f32 %v5334_v23, 0.0  ;;  %v5542_v18 = vpack.c.bf16 %v5482_v27, %v5480_v8  ;;  %v5338_v16 = vadd.f32 %v5337_v1, %v10736_v49 }
 0x856   : > { %v5339_v60 = vpop.f32.mrf.mxu0 }
 0x857   : > { %v5543_v44 = vpack.c.bf16 %v5483_v54, %v5481_v41  ;;  %v5340_v46 = vadd.f32 %v5339_v60, %v10734_v63  ;;  %v5484_v6 = vmax.f32 %v5338_v16, 0.0 }
 0x858   : > { %v5341_v7 = vpop.f32.mrf.mxu0 }
 0x859   : > { %v5342_v24 = vadd.f32 %v5341_v7, %v10736_v49  ;;  %5747 = vmatprep.mubr.bf16.mxu1 %v5543_v44  ;;  %v5485_v50 = vmax.f32 %v5340_v46, 0.0 }
 0x85a   : > { %v5343_v47 = vpop.f32.mrf.mxu0  ;;  %5748 = vmatmul.mubr.bf16.gmra.mxu1 %v5542_v18 }
 0x85b   : > { %v5344_v43 = vadd.f32 %v5343_v47, %v10734_v63  ;;  %v5486_v59 = vmax.f32 %v5342_v24, 0.0 }
 0x85c   : > { %v5347_v5 = vpop.f32.mrf.mxu0 }
 0x85d   : > { %v5487_v0 = vmax.f32 %v5344_v43, 0.0  ;;  %v5544_v58 = vpack.c.bf16 %v5486_v59, %v5484_v6  ;;  %v5348_v20 = vadd.f32 %v5347_v5, %v10736_v49 }
 0x85e   : > { %v5349_v33 = vpop.f32.mrf.mxu0 }
 0x85f   : > { %v5545_v13 = vpack.c.bf16 %v5487_v0, %v5485_v50  ;;  %v5350_v51 = vadd.f32 %v5349_v33, %v10734_v63  ;;  %v5488_v41 = vmax.f32 %v5348_v20, 0.0 }
 0x860   : > { %v5351_v32 = vpop.f32.mrf.mxu0 }
 0x861   : > { %v5352_v57 = vadd.f32 %v5351_v32, %v10736_v49  ;;  %5755 = vmatprep.mubr.bf16.mxu1 %v5545_v13  ;;  %v5489_v27 = vmax.f32 %v5350_v51, 0.0 }
 0x862   : > { %v5353_v11 = vpop.f32.mrf.mxu0  ;;  %5756 = vmatmul.mubr.bf16.gmra.mxu1 %v5544_v58 }
 0x863   : > { %v5354_v4 = vadd.f32 %v5353_v11, %v10734_v63  ;;  %v5490_v9 = vmax.f32 %v5352_v57, 0.0 }
 0x864   : > { %v5357_v23 = vpop.f32.mrf.mxu0 }
 0x865   : > { %v5491_v1 = vmax.f32 %v5354_v4, 0.0  ;;  %v5546_v60 = vpack.c.bf16 %v5490_v9, %v5488_v41  ;;  %v5358_v46 = vadd.f32 %v5357_v23, %v10736_v49 }
 0x866   : > { %v5359_v54 = vpop.f32.mrf.mxu0 }
 0x867   : > { %v5547_v8 = vpack.c.bf16 %v5491_v1, %v5489_v27  ;;  %v5360_v18 = vadd.f32 %v5359_v54, %v10734_v63  ;;  %v5492_v50 = vmax.f32 %v5358_v46, 0.0 }
 0x868   : > { %v5361_v44 = vpop.f32.mrf.mxu0 }
 0x869   : > { %v5362_v7 = vadd.f32 %v5361_v44, %v10736_v49  ;;  %5763 = vmatprep.mubr.bf16.mxu1 %v5547_v8  ;;  %v5493_v59 = vmax.f32 %v5360_v18, 0.0 }
 0x86a   : > { %v5363_v24 = vpop.f32.mrf.mxu0  ;;  %5764 = vmatmul.mubr.bf16.gmra.mxu1 %v5546_v60 }
 0x86b   : > { %v5364_v16 = vadd.f32 %v5363_v24, %v10734_v63  ;;  %v5494_v47 = vmax.f32 %v5362_v7, 0.0 }
 0x86c   : > { %v5367_v43 = vpop.f32.mrf.mxu0 }
 0x86d   : > { %v5495_v5 = vmax.f32 %v5364_v16, 0.0  ;;  %v5548_v33 = vpack.c.bf16 %v5494_v47, %v5492_v50  ;;  %v5368_v51 = vadd.f32 %v5367_v43, %v10736_v49 }
 0x86e   : > { %v5369_v0 = vpop.f32.mrf.mxu0 }
 0x86f   : > { %v5549_v6 = vpack.c.bf16 %v5495_v5, %v5493_v59  ;;  %v5370_v58 = vadd.f32 %v5369_v0, %v10734_v63  ;;  %v5496_v27 = vmax.f32 %v5368_v51, 0.0 }
 0x870   : > { %v5371_v13 = vpop.f32.mrf.mxu0 }
 0x871   : > { %v5372_v32 = vadd.f32 %v5371_v13, %v10736_v49  ;;  %5771 = vmatprep.mubr.bf16.mxu1 %v5549_v6  ;;  %v5497_v9 = vmax.f32 %v5370_v58, 0.0 }
 0x872   : > { %v5373_v57 = vpop.f32.mrf.mxu0  ;;  %5772 = vmatmul.mubr.bf16.gmra.mxu1 %v5548_v33 }
 0x873   : > { %v5374_v20 = vadd.f32 %v5373_v57, %v10734_v63  ;;  %v5498_v11 = vmax.f32 %v5372_v32, 0.0 }
 0x874   : > { %v5377_v4 = vpop.f32.mrf.mxu0 }
 0x875   : > { %v5499_v23 = vmax.f32 %v5374_v20, 0.0  ;;  %v5550_v54 = vpack.c.bf16 %v5498_v11, %v5496_v27  ;;  %v5378_v18 = vadd.f32 %v5377_v4, %v10736_v49 }
 0x876   : > { %v5379_v1 = vpop.f32.mrf.mxu0 }
 0x877   : > { %v5551_v41 = vpack.c.bf16 %v5499_v23, %v5497_v9  ;;  %v5380_v60 = vadd.f32 %v5379_v1, %v10734_v63  ;;  %v5500_v59 = vmax.f32 %v5378_v18, 0.0 }
 0x878   : > { %v5381_v8 = vpop.f32.mrf.mxu0 }
 0x879   : > { %v5382_v44 = vadd.f32 %v5381_v8, %v10736_v49  ;;  %5779 = vmatprep.mubr.bf16.mxu1 %v5551_v41  ;;  %v5501_v47 = vmax.f32 %v5380_v60, 0.0 }
 0x87a   : > { %v5383_v7 = vpop.f32.mrf.mxu0  ;;  %5780 = vmatmul.mubr.bf16.gmra.mxu1 %v5550_v54 }
 0x87b   : > { %v5384_v46 = vadd.f32 %v5383_v7, %v10734_v63  ;;  %v5502_v24 = vmax.f32 %v5382_v44, 0.0 }
 0x87c   : > { %v5387_v16 = vpop.f32.mrf.mxu0 }
 0x87d   : > { %v5503_v43 = vmax.f32 %v5384_v46, 0.0  ;;  %v5552_v0 = vpack.c.bf16 %v5502_v24, %v5500_v59  ;;  %v5388_v58 = vadd.f32 %v5387_v16, %v10736_v49 }
 0x87e   : > { %v5389_v5 = vpop.f32.mrf.mxu0 }
 0x87f   : > { %v5553_v50 = vpack.c.bf16 %v5503_v43, %v5501_v47  ;;  %v5390_v33 = vadd.f32 %v5389_v5, %v10734_v63  ;;  %v5504_v9 = vmax.f32 %v5388_v58, 0.0 }
 0x880   : > { %v5391_v6 = vpop.f32.mrf.mxu0 }
 0x881   : > { %v5392_v13 = vadd.f32 %v5391_v6, %v10736_v49  ;;  %5787 = vmatprep.mubr.bf16.mxu1 %v5553_v50  ;;  %v5505_v11 = vmax.f32 %v5390_v33, 0.0 }
 0x882   : > { %v5393_v32 = vpop.f32.mrf.mxu0  ;;  %5788 = vmatmul.mubr.bf16.gmra.mxu1 %v5552_v0 }
 0x883   : > { %v5394_v51 = vadd.f32 %v5393_v32, %v10734_v63  ;;  %v5506_v57 = vmax.f32 %v5392_v13, 0.0 }
 0x884   : > { %v5397_v20 = vpop.f32.mrf.mxu0 }
 0x885   : > { %v5507_v4 = vmax.f32 %v5394_v51, 0.0  ;;  %v5554_v1 = vpack.c.bf16 %v5506_v57, %v5504_v9  ;;  %v5398_v60 = vadd.f32 %v5397_v20, %v10736_v49 }
 0x886   : > { %v5399_v23 = vpop.f32.mrf.mxu0 }
 0x887   : > { %v5555_v27 = vpack.c.bf16 %v5507_v4, %v5505_v11  ;;  %v5400_v54 = vadd.f32 %v5399_v23, %v10734_v63  ;;  %v5508_v47 = vmax.f32 %v5398_v60, 0.0 }
 0x888   : > { %v5401_v41 = vpop.f32.mrf.mxu0 }
 0x889   : > { %v5402_v8 = vadd.f32 %v5401_v41, %v10736_v49  ;;  %5795 = vmatprep.mubr.bf16.mxu1 %v5555_v27  ;;  %v5509_v24 = vmax.f32 %v5400_v54, 0.0 }
 0x88a   : > { %v5403_v44 = vpop.f32.mrf.mxu0  ;;  %5796 = vmatmul.mubr.bf16.gmra.mxu1 %v5554_v1 }
 0x88b   : > { %v5404_v18 = vadd.f32 %v5403_v44, %v10734_v63  ;;  %v5510_v7 = vmax.f32 %v5402_v8, 0.0 }
 0x88c   : > { %v5407_v46 = vpop.f32.mrf.mxu0 }
 0x88d   : > { %v5511_v16 = vmax.f32 %v5404_v18, 0.0  ;;  %v5556_v5 = vpack.c.bf16 %v5510_v7, %v5508_v47  ;;  %v5408_v33 = vadd.f32 %v5407_v46, %v10736_v49 }
 0x88e   : > { %v5409_v43 = vpop.f32.mrf.mxu0 }
 0x88f   : > { %v5557_v59 = vpack.c.bf16 %v5511_v16, %v5509_v24  ;;  %v5410_v0 = vadd.f32 %v5409_v43, %v10734_v63  ;;  %v5512_v11 = vmax.f32 %v5408_v33, 0.0 }
 0x890   : > { %v5411_v50 = vpop.f32.mrf.mxu0 }
 0x891   : > { %v5412_v6 = vadd.f32 %v5411_v50, %v10736_v49  ;;  %5803 = vmatprep.mubr.bf16.mxu1 %v5557_v59  ;;  %v5513_v57 = vmax.f32 %v5410_v0, 0.0 }
 0x892   : > { %v5413_v13 = vpop.f32.mrf.mxu0  ;;  %5804 = vmatmul.mubr.bf16.gmra.mxu1 %v5556_v5 }
 0x893   : > { %v5414_v58 = vadd.f32 %v5413_v13, %v10734_v63  ;;  %v5514_v32 = vmax.f32 %v5412_v6, 0.0 }
 0x894   : > { %v5417_v51 = vpop.f32.mrf.mxu0 }
 0x895   : > { %v5515_v20 = vmax.f32 %v5414_v58, 0.0  ;;  %v5558_v23 = vpack.c.bf16 %v5514_v32, %v5512_v11  ;;  %v5418_v54 = vadd.f32 %v5417_v51, %v10736_v49 }
 0x896   : > { %v5419_v4 = vpop.f32.mrf.mxu0 }
 0x897   : > { %v5559_v9 = vpack.c.bf16 %v5515_v20, %v5513_v57  ;;  %v5420_v1 = vadd.f32 %v5419_v4, %v10734_v63  ;;  %v5516_v24 = vmax.f32 %v5418_v54, 0.0 }
 0x898   : > { %v5421_v27 = vpop.f32.mrf.mxu0 }
 0x899   : > { %v5422_v41 = vadd.f32 %v5421_v27, %v10736_v49  ;;  %5811 = vmatprep.mubr.bf16.mxu1 %v5559_v9  ;;  %v5517_v7 = vmax.f32 %v5420_v1, 0.0 }
 0x89a   : > { %v5423_v8 = vpop.f32.mrf.mxu0  ;;  %5812 = vmatmul.mubr.bf16.gmra.mxu1 %v5558_v23 }
 0x89b   : > { %v5424_v60 = vadd.f32 %v5423_v8, %v10734_v63  ;;  %v5518_v44 = vmax.f32 %v5422_v41, 0.0 }
 0x89c   : > { %v5427_v18 = vpop.f32.mrf.mxu0 }
 0x89d   : > { %v5519_v46 = vmax.f32 %v5424_v60, 0.0  ;;  %v5560_v43 = vpack.c.bf16 %v5518_v44, %v5516_v24  ;;  %v5428_v0 = vadd.f32 %v5427_v18, %v10736_v49 }
 0x89e   : > { %v5429_v16 = vpop.f32.mrf.mxu0 }
 0x89f   : > { %v5561_v47 = vpack.c.bf16 %v5519_v46, %v5517_v7  ;;  %v5430_v5 = vadd.f32 %v5429_v16, %v10734_v63  ;;  %v5520_v57 = vmax.f32 %v5428_v0, 0.0 }
 0x8a0   : > { %v5431_v59 = vpop.f32.mrf.mxu0 }
 0x8a1   : > { %v5432_v50 = vadd.f32 %v5431_v59, %v10736_v49  ;;  %5819 = vmatprep.mubr.bf16.mxu1 %v5561_v47  ;;  %v5521_v32 = vmax.f32 %v5430_v5, 0.0 }
 0x8a2   : > { %v5433_v6 = vpop.f32.mrf.mxu0  ;;  %5820 = vmatmul.mubr.bf16.gmra.mxu1 %v5560_v43 }
 0x8a3   : > { %v5434_v33 = vadd.f32 %v5433_v6, %v10734_v63  ;;  %v5522_v13 = vmax.f32 %v5432_v50, 0.0 }
 0x8a4   : > { %v5437_v58 = vpop.f32.mrf.mxu0 }
 0x8a5   : > { %v5523_v51 = vmax.f32 %v5434_v33, 0.0  ;;  %v5562_v4 = vpack.c.bf16 %v5522_v13, %v5520_v57  ;;  %v5438_v1 = vadd.f32 %v5437_v58, %v10736_v49 }
 0x8a6   : > { %v5439_v20 = vpop.f32.mrf.mxu0 }
 0x8a7   : > { %v5563_v11 = vpack.c.bf16 %v5523_v51, %v5521_v32  ;;  %v5440_v23 = vadd.f32 %v5439_v20, %v10734_v63  ;;  %v5524_v7 = vmax.f32 %v5438_v1, 0.0 }
 0x8a8   : > { %v5441_v9 = vpop.f32.mrf.mxu0 }
 0x8a9   : > { %v5442_v27 = vadd.f32 %v5441_v9, %v10736_v49  ;;  %5827 = vmatprep.mubr.bf16.mxu1 %v5563_v11  ;;  %v5525_v44 = vmax.f32 %v5440_v23, 0.0 }
 0x8aa   : > { %v5443_v41 = vpop.f32.mrf.mxu0  ;;  %5828 = vmatmul.mubr.bf16.gmra.mxu1 %v5562_v4 }
 0x8ab   : > { %v5444_v54 = vadd.f32 %v5443_v41, %v10734_v63  ;;  %v5526_v8 = vmax.f32 %v5442_v27, 0.0 }
 0x8ac   : > { %v5447_v60 = vpop.f32.mrf.mxu0 }
 0x8ad   : > { %v5527_v18 = vmax.f32 %v5444_v54, 0.0  ;;  %v5564_v16 = vpack.c.bf16 %v5526_v8, %v5524_v7  ;;  %v5448_v5 = vadd.f32 %v5447_v60, %v10736_v49 }
 0x8ae   : > { %v5449_v46 = vpop.f32.mrf.mxu0 }
 0x8af   : > { %v5565_v24 = vpack.c.bf16 %v5527_v18, %v5525_v44  ;;  %v5450_v43 = vadd.f32 %v5449_v46, %v10734_v63  ;;  %v5528_v32 = vmax.f32 %v5448_v5, 0.0 }
 0x8b0   : > { %v5451_v47 = vpop.f32.mrf.mxu0 }
 0x8b1   : > { %v5452_v59 = vadd.f32 %v5451_v47, %v10736_v49  ;;  %5835 = vmatprep.mubr.bf16.mxu1 %v5565_v24  ;;  %v5529_v13 = vmax.f32 %v5450_v43, 0.0 }
 0x8b2   : > { %v5453_v50 = vpop.f32.mrf.mxu0  ;;  %5836 = vmatmul.mubr.bf16.gmra.mxu1 %v5564_v16 }
 0x8b3   : > { %v5454_v0 = vadd.f32 %v5453_v50, %v10734_v63  ;;  %v5530_v6 = vmax.f32 %v5452_v59, 0.0 }
 0x8b4   : > { %v5457_v33 = vpop.f32.mrf.mxu0 }
 0x8b5   : > { %v5531_v58 = vmax.f32 %v5454_v0, 0.0  ;;  %v5566_v20 = vpack.c.bf16 %v5530_v6, %v5528_v32  ;;  %v5458_v23 = vadd.f32 %v5457_v33, %v10736_v49 }
 0x8b6   : > { %v5459_v51 = vpop.f32.mrf.mxu0 }
 0x8b7   : > { %v5567_v57 = vpack.c.bf16 %v5531_v58, %v5529_v13  ;;  %v5460_v4 = vadd.f32 %v5459_v51, %v10734_v63  ;;  %v5532_v44 = vmax.f32 %v5458_v23, 0.0 }
 0x8b8   : > { %v5461_v11 = vpop.f32.mrf.mxu0 }
 0x8b9   : > { %v5462_v9 = vadd.f32 %v5461_v11, %v10736_v49  ;;  %5843 = vmatprep.mubr.bf16.mxu1 %v5567_v57  ;;  %v5533_v8 = vmax.f32 %v5460_v4, 0.0 }
 0x8ba   : > { %v5463_v27 = vpop.f32.mrf.mxu0  ;;  %5844 = vmatmul.mubr.bf16.gmra.mxu1 %v5566_v20 }
 0x8bb   : > { %v5464_v1 = vadd.f32 %v5463_v27, %v10734_v63  ;;  %v5534_v41 = vmax.f32 %v5462_v9, 0.0 }
 0x8bc   : > { %v5467_v54 = vpop.f32.mrf.mxu0 }
 0x8bd   : > { %v5535_v60 = vmax.f32 %v5464_v1, 0.0  ;;  %v5568_v46 = vpack.c.bf16 %v5534_v41, %v5532_v44  ;;  %v5468_v43 = vadd.f32 %v5467_v54, %v10736_v49 }
 0x8be   : > { %v5469_v18 = vpop.f32.mrf.mxu0 }
 0x8bf   : > { %v5569_v7 = vpack.c.bf16 %v5535_v60, %v5533_v8  ;;  %v5470_v16 = vadd.f32 %v5469_v18, %v10734_v63  ;;  %v5536_v33 = vmax.f32 %v5468_v43, 0.0 }
 0x8c0   : > { %v5471_v24 = vpop.f32.mrf.mxu0 }
 0x8c1   : > { %v5472_v47 = vadd.f32 %v5471_v24, %v10736_v49  ;;  %5851 = vmatprep.mubr.bf16.mxu1 %v5569_v7  ;;  %v5537_v0 = vmax.f32 %v5470_v16, 0.0 }
 0x8c2   : > { %v5473_v59 = vpop.f32.mrf.mxu0  ;;  %5852 = vmatmul.mubr.bf16.gmra.mxu1 %v5568_v46 }
 0x8c3   : > { %v5474_v5 = vadd.f32 %v5473_v59, %v10734_v63  ;;  %v5538_v50 = vmax.f32 %v5472_v47, 0.0 }
 0x8c5   : > { %v5539_v6 = vmax.f32 %v5474_v5, 0.0  ;;  %v5570_v58 = vpack.c.bf16 %v5538_v50, %v5536_v33 }
 0x8c7   : > { %v5571_v13 = vpack.c.bf16 %v5539_v6, %v5537_v0 }
 0x8c9   : > { %5859 = vmatprep.mubr.bf16.mxu1 %v5571_v13 }
 0x8ca   : > { %5860 = vmatmul.mubr.bf16.gmra.mxu1 %v5570_v58 }
 0x912   : > { %v7308_v32 = vpop.f32.mrf.mxu1 }
 0x914   : > { %v7309_v51 = vpop.f32.mrf.mxu1 }
 0x915   : > { %v7310_v57 = vadd.f32 %v7309_v51, %v7308_v32 }
 0x916   : > { %v7311_v20 = vpop.f32.mrf.mxu1 }
 0x917   : > { %v5742_v36 = vadd.f32 %v7310_v57, %v10809_v26 }
 0x918   : > { %v7312_v11 = vpop.f32.mrf.mxu1 }
 0x919   : > { %v7313_v32 = vadd.f32 %v7312_v11, %v7311_v20  ;;  %v10823_v55 = vadd.f32 %v5742_v36, %v10502_v38 }
 0x91a   : > { %v7314_v4 = vpop.f32.mrf.mxu1 }
 0x91b   : > { %v5745_v25 = vadd.f32 %v7313_v32, %v10809_v26 }
 0x91c   : > { %v7315_v9 = vpop.f32.mrf.mxu1 }
 0x91d   : > { %v7316_v12 = vadd.f32 %v7315_v9, %v7314_v4  ;;  %v10819_v11 = vadd.f32 %v5745_v25, %v10505_v30 }
 0x91e   : > { %v7317_v49 = vpop.f32.mrf.mxu1 }
 0x91f   : > { %v5750_v42 = vadd.f32 %v7316_v12, %v10809_v26 }
 0x920   : > { %v7318_v23 = vpop.f32.mrf.mxu1 }
 0x921   : > { %v7319_v48 = vadd.f32 %v7318_v23, %v7317_v49  ;;  %v10826_v49 = vadd.f32 %v5750_v42, %v10518_v56 }
 0x922   : > { %v7320_v27 = vpop.f32.mrf.mxu1 }
 0x923   : > { %v5753_v4 = vadd.f32 %v7319_v48, %v10809_v26 }
 0x924   : > { %v7321_v1 = vpop.f32.mrf.mxu1 }
 0x925   : > { %v7322_v61 = vadd.f32 %v7321_v1, %v7320_v27  ;;  %v5900_v27 = vadd.f32 %v10819_v11, %v10823_v55  ;;  %v10832_v30 = vadd.f32 %v5753_v4, %v10521_v15 }
 0x926   : > { %v7323_v63 = vpop.f32.mrf.mxu1 }
 0x927   : > { %v5758_v57 = vadd.f32 %v7322_v61, %v10809_v26  ;;  %v5901_v38 = vadd.f32 %v5900_v27, %v10826_v49 }
 0x928   : > { %v7324_v41 = vpop.f32.mrf.mxu1 }
 0x929   : > { %v7325_v9 = vadd.f32 %v7324_v41, %v7323_v63  ;;  %v10837_v36 = vadd.f32 %v5758_v57, %v10534_v34  ;;  %v5902_v63 = vadd.f32 %v5901_v38, %v10832_v30 }
 0x92a   : > { %v7326_v54 = vpop.f32.mrf.mxu1 }
 0x92b   : > { %v5761_v48 = vadd.f32 %v7325_v9, %v10809_v26 }
 0x92c   : > { %v7327_v8 = vpop.f32.mrf.mxu1 }
 0x92d   : > { %v7328_v23 = vadd.f32 %v7327_v8, %v7326_v54  ;;  %v10842_v41 = vadd.f32 %v5761_v48, %v10540_v35 }
 0x92e   : > { %v7329_v60 = vpop.f32.mrf.mxu1 }
 0x92f   : > { %v5766_v56 = vadd.f32 %v7328_v23, %v10809_v26 }
 0x930   : > { %v7330_v44 = vpop.f32.mrf.mxu1 }
 0x931   : > { %v7331_v25 = vadd.f32 %v7330_v44, %v7329_v60  ;;  %v5903_v60 = vadd.f32 %v5902_v63, %v10837_v36  ;;  %v10847_v44 = vadd.f32 %v5766_v56, %v10548_v62 }
 0x932   : > { %v7332_v18 = vpop.f32.mrf.mxu1 }
 0x933   : > { %v5769_v15 = vadd.f32 %v7331_v25, %v10809_v26 }
 0x934   : > { %v7333_v7 = vpop.f32.mrf.mxu1 }
 0x935   : > { %v7334_v61 = vadd.f32 %v7333_v7, %v7332_v18  ;;  %v5904_v18 = vadd.f32 %v5903_v60, %v10842_v41  ;;  %v10852_v7 = vadd.f32 %v5769_v15, %v10580_v21 }
 0x936   : > { %v7335_v46 = vpop.f32.mrf.mxu1 }
 0x937   : > { %v5774_v34 = vadd.f32 %v7334_v61, %v10809_v26 }
 0x938   : > { %v7336_v24 = vpop.f32.mrf.mxu1 }
 0x939   : > { %v7337_v54 = vadd.f32 %v7336_v24, %v7335_v46  ;;  %v5905_v46 = vadd.f32 %v5904_v18, %v10847_v44  ;;  %v10857_v24 = vadd.f32 %v5774_v34, %v10653_v29 }
 0x93a   : > { %v7338_v16 = vpop.f32.mrf.mxu1 }
 0x93b   : > { %v5777_v35 = vadd.f32 %v7337_v54, %v10809_v26 }
 0x93c   : > { %v7339_v47 = vpop.f32.mrf.mxu1 }
 0x93d   : > { %v7340_v32 = vadd.f32 %v7339_v47, %v7338_v16  ;;  %v5906_v16 = vadd.f32 %v5905_v46, %v10852_v7  ;;  %v10862_v47 = vadd.f32 %v5777_v35, %v10656_v14 }
 0x93e   : > { %v7341_v43 = vpop.f32.mrf.mxu1 }
 0x93f   : > { %v5782_v62 = vadd.f32 %v7340_v32, %v10809_v26 }
 0x940   : > { %v7342_v59 = vpop.f32.mrf.mxu1 }
 0x941   : > { %v7343_v9 = vadd.f32 %v7342_v59, %v7341_v43  ;;  %v5907_v43 = vadd.f32 %v5906_v16, %v10857_v24  ;;  %v10867_v59 = vadd.f32 %v5782_v62, %v10668_v40 }
 0x942   : > { %v7344_v5 = vpop.f32.mrf.mxu1 }
 0x943   : > { %v5785_v21 = vadd.f32 %v7343_v9, %v10809_v26 }
 0x944   : > { %v7345_v50 = vpop.f32.mrf.mxu1 }
 0x945   : > { %v7346_v23 = vadd.f32 %v7345_v50, %v7344_v5  ;;  %v5908_v5 = vadd.f32 %v5907_v43, %v10862_v47  ;;  %v10872_v50 = vadd.f32 %v5785_v21, %v10671_v39 }
 0x946   : > { %v7347_v0 = vpop.f32.mrf.mxu1 }
 0x947   : > { %v5790_v29 = vadd.f32 %v7346_v23, %v10809_v26  ;;  %v5909_v61 = vadd.f32 %v5908_v5, %v10867_v59 }
 0x948   : > { %v7348_v6 = vpop.f32.mrf.mxu1 }
 0x949   : > { %v7349_v48 = vadd.f32 %v7348_v6, %v7347_v0  ;;  %v10879_v40 = vadd.f32 %v5790_v29, %v10683_v10  ;;  %v5910_v15 = vadd.f32 %v5909_v61, %v10872_v50 }
 0x94a   : > { %v7350_v33 = vpop.f32.mrf.mxu1 }
 0x94b   : > { %v5793_v14 = vadd.f32 %v7349_v48, %v10809_v26  ;;  %v5911_v60 = vadd.f32 %v5910_v15, %v10879_v40 }
 0x94c   : > { %v7351_v13 = vpop.f32.mrf.mxu1 }
 0x94d   : > { %v7352_v38 = vadd.f32 %v7351_v13, %v7350_v33  ;;  %v10885_v39 = vadd.f32 %v5793_v14, %v10686_v31  ;;  %v11478_v14 = vld [vmem:[#allocation80_spill] sm:$0xff] }
 0x94e   : > { %v10802_v58 = vpop.f32.mrf.mxu1 }
 0x94f   : > { %v5798_v63 = vadd.f32 %v7352_v38, %v10809_v26 }
 0x950   : > { %v10804_v51 = vpop.f32.mrf.mxu1 }
 0x951   : > { %v7355_v0 = vadd.f32 %v10804_v51, %v10802_v58  ;;  %v10891_v10 = vadd.f32 %v5798_v63, %v10698_v19 }
 0x952   : > { %v10811_v2 = vpop.f32.mrf.mxu1 }
 0x953   : > { %v5801_v54 = vadd.f32 %v7355_v0, %v10809_v26 }
 0x954   : > { %v7357_v28 = vpop.f32.mrf.mxu1 }
 0x955   : > { %v7358_v33 = vadd.f32 %v7357_v28, %v10811_v2  ;;  %v5912_v2 = vadd.f32 %v5911_v60, %v10885_v39  ;;  %v10896_v18 = vadd.f32 %v5801_v54, %v10701_v17 }
 0x956   : > { %v10816_v20 = vpop.f32.mrf.mxu1 }
 0x957   : > { %v5806_v34 = vadd.f32 %v7358_v33, %v10809_v26  ;;  %v11479_v33 = vld [vmem:[#allocation81_spill] sm:$0xff] }
 0x958   : > { %v7360_v3 = vpop.f32.mrf.mxu1 }
 0x959   : > { %v7361_v58 = vadd.f32 %v7360_v3, %v10816_v20  ;;  %v5913_v3 = vadd.f32 %v5912_v2, %v10891_v10  ;;  %v10901_v20 = vadd.f32 %v5806_v34, %v10556_v45 }
 0x95a   : > { %v7362_v12 = vpop.f32.mrf.mxu1 }
 0x95b   : > { %v5809_v31 = vadd.f32 %v7361_v58, %v10809_v26 }
 0x95c   : > { %v7363_v1 = vpop.f32.mrf.mxu1 }
 0x95d   : > { %v7364_v32 = vadd.f32 %v7363_v1, %v7362_v12  ;;  %v5914_v12 = vadd.f32 %v5913_v3, %v10896_v18  ;;  %v10906_v1 = vadd.f32 %v5809_v31, %v10564_v22  ;;  %v11481_v31 = vld [vmem:[#allocation83_spill] sm:$0xff] }
 0x95e   : > { %v7365_v42 = vpop.f32.mrf.mxu1 }
 0x95f   : > { %v5814_v19 = vadd.f32 %v7364_v32, %v10809_v26 }
 0x960   : > { %v7366_v8 = vpop.f32.mrf.mxu1 }
 0x961   : > { %v7367_v35 = vadd.f32 %v7366_v8, %v7365_v42  ;;  %v5915_v42 = vadd.f32 %v5914_v12, %v10901_v20  ;;  %v10911_v8 = vadd.f32 %v5814_v19, %v10571_v52 }
 0x962   : > { %v7368_v4 = vpop.f32.mrf.mxu1 }
 0x963   : > { %v5817_v17 = vadd.f32 %v7367_v35, %v10809_v26 }
 0x964   : > { %v7369_v57 = vpop.f32.mrf.mxu1 }
 0x965   : > { %v7370_v46 = vadd.f32 %v7369_v57, %v7368_v4  ;;  %v5916_v4 = vadd.f32 %v5915_v42, %v10906_v1  ;;  %v10916_v57 = vadd.f32 %v5817_v17, %v10574_v53  ;;  %v11483_v42 = vld [vmem:[#allocation85_spill] sm:$0xff] }
 0x966   : > { %v7371_v27 = vpop.f32.mrf.mxu1 }
 0x967   : > { %v5822_v45 = vadd.f32 %v7370_v46, %v10809_v26 }
 0x968   : > { %v7372_v25 = vpop.f32.mrf.mxu1 }
 0x969   : > { %v7373_v23 = vadd.f32 %v7372_v25, %v7371_v27  ;;  %v5917_v27 = vadd.f32 %v5916_v4, %v10911_v8  ;;  %v10921_v25 = vadd.f32 %v5822_v45, %v10583_v37 }
 0x96a   : > { %v7374_v56 = vpop.f32.mrf.mxu1 }
 0x96b   : > { %v5825_v22 = vadd.f32 %v7373_v23, %v10809_v26 }
 0x96c   : > { %v7375_v6 = vpop.f32.mrf.mxu1 }
 0x96d   : > { %v7376_v21 = vadd.f32 %v7375_v6, %v7374_v56  ;;  %v5918_v56 = vadd.f32 %v5917_v27, %v10916_v57  ;;  %v10926_v0 = vadd.f32 %v5825_v22, %v11478_v14 }
 0x96e   : > { %v7377_v13 = vpop.f32.mrf.mxu1 }
 0x96f   : > { %v5830_v52 = vadd.f32 %v7376_v21, %v10809_v26  ;;  %v5919_v63 = vadd.f32 %v5918_v56, %v10921_v25 }
 0x970   : > { %v7378_v51 = vpop.f32.mrf.mxu1 }
 0x971   : > { %v7379_v43 = vadd.f32 %v7378_v51, %v7377_v13  ;;  %v10931_v13 = vadd.f32 %v5830_v52, %v11479_v33  ;;  %v5920_v58 = vadd.f32 %v5919_v63, %v10926_v0  ;;  %v11480_v51 = vld [vmem:[#allocation82_spill] sm:$0xff] }
 0x972   : > { %v7380_v28 = vpop.f32.mrf.mxu1 }
 0x973   : > { %v5833_v53 = vadd.f32 %v7379_v43, %v10809_v26  ;;  %v5921_v2 = vadd.f32 %v5920_v58, %v10931_v13  ;;  %v11484_v43 = vld [vmem:[#allocation86_spill] sm:$0xff] }
 0x974   : > { %v7381_v9 = vpop.f32.mrf.mxu1 }
 0x975   : > { %v7382_v38 = vadd.f32 %v7381_v9, %v7380_v28  ;;  %v10936_v60 = vadd.f32 %v5833_v53, %v11480_v51 }
 0x976   : > { %v7383_v62 = vpop.f32.mrf.mxu1 }
 0x977   : > { %v5838_v37 = vadd.f32 %v7382_v38, %v10809_v26  ;;  %v5922_v46 = vadd.f32 %v5921_v2, %v10936_v60  ;;  %v11488_v2 = vld [vmem:[#allocation90_spill] sm:$0xff] }
 0x978   : > { %v7384_v16 = vpop.f32.mrf.mxu1 }
 0x979   : > { %v7385_v6 = vadd.f32 %v7384_v16, %v7383_v62  ;;  %v10941_v35 = vadd.f32 %v5838_v37, %v11481_v31  ;;  %v11482_v62 = vld [vmem:[#allocation84_spill] sm:$0xff] }
 0x97a   : > { %v7386_v48 = vpop.f32.mrf.mxu1 }
 0x97b   : > { %v5841_v34 = vadd.f32 %v7385_v6, %v10809_v26  ;;  %v5923_v16 = vadd.f32 %v5922_v46, %v10941_v35 }
 0x97c   : > { %v7387_v29 = vpop.f32.mrf.mxu1 }
 0x97d   : > { %v7388_v15 = vadd.f32 %v7387_v29, %v7386_v48  ;;  %v10946_v12 = vadd.f32 %v5841_v34, %v11482_v62 }
 0x97e   : > { %v7389_v5 = vpop.f32.mrf.mxu1 }
 0x97f   : > { %v5846_v9 = vadd.f32 %v7388_v15, %v10809_v26  ;;  %v5924_v22 = vadd.f32 %v5923_v16, %v10946_v12 }
 0x980   : > { %v7390_v61 = vpop.f32.mrf.mxu1 }
 0x981   : > { %v7391_v32 = vadd.f32 %v7390_v61, %v7389_v5  ;;  %v10951_v45 = vadd.f32 %v5846_v9, %v11483_v42  ;;  %v11485_v5 = vld [vmem:[#allocation87_spill] sm:$0xff]  ;;  %v11486_v61 = vld [vmem:[#allocation88_spill] sm:$0xff] }
 0x982   : > { %v7392_v54 = vpop.f32.mrf.mxu1 }
 0x983   : > { %v5849_v17 = vadd.f32 %v7391_v32, %v10809_v26  ;;  %v5925_v38 = vadd.f32 %v5924_v22, %v10951_v45 }
 0x984   : > { %v7393_v28 = vpop.f32.mrf.mxu1 }
 0x985   : > { %v7394_v3 = vadd.f32 %v7393_v28, %v7392_v54  ;;  %v10956_v29 = vadd.f32 %v5849_v17, %v11484_v43  ;;  %v11487_v54 = vld [vmem:[#allocation89_spill] sm:$0xff] }
 0x986   : > { %v7395_v19 = vpop.f32.mrf.mxu1 }
 0x987   : > { %v5854_v21 = vadd.f32 %v7394_v3, %v10809_v26  ;;  %v5926_v6 = vadd.f32 %v5925_v38, %v10956_v29 }
 0x988   : > { %v7396_v23 = vpop.f32.mrf.mxu1 }
 0x989   : > { %v7397_v48 = vadd.f32 %v7396_v23, %v7395_v19  ;;  %v10961_v56 = vadd.f32 %v5854_v21, %v11485_v5 }
 0x98a   : > { %v7398_v4 = vpop.f32.mrf.mxu1 }
 0x98b   : > { %v5857_v27 = vadd.f32 %v7397_v48, %v10809_v26  ;;  %v5927_v15 = vadd.f32 %v5926_v6, %v10961_v56 }
 0x98c   : > { %v7399_v52 = vpop.f32.mrf.mxu1 }
 0x98d   : > { %v7400_v14 = vadd.f32 %v7399_v52, %v7398_v4  ;;  %v10965_v63 = vadd.f32 %v5857_v27, %v11486_v61 }
 0x98e   : > { %v7401_v53 = vpop.f32.mrf.mxu1 }
 0x98f   : > { %v5862_v33 = vadd.f32 %v7400_v14, %v10809_v26  ;;  %v5928_v34 = vadd.f32 %v5927_v15, %v10965_v63 }
 0x990   : > { %v7402_v37 = vpop.f32.mrf.mxu1 }
 0x991   : > { %v10970_v58 = vadd.f32 %v5862_v33, %v11487_v54  ;;  %v7403_v51 = vadd.f32 %v7402_v37, %v7401_v53 }
 0x993   : > { %v5865_v32 = vadd.f32 %v7403_v51, %v10809_v26  ;;  %v5929_v28 = vadd.f32 %v5928_v34, %v10970_v58 }
 0x995   : > { %v10976_v31 = vadd.f32 %v5865_v32, %v11488_v2 }
 0x997   : > { %v5930_v9 = vadd.f32 %v5929_v28, %v10976_v31 }
 0x999   : > { %v5931_v3 = vrot.slane %v5930_v9, 4 }
 0x99b   : > { %v5932_v19 = vadd.f32 %v5931_v3, %v5930_v9 }
 0x99d   : > { %v5933_v46 = vrot.slane %v5932_v19, 2 }
 0x99f   : > { %v5934_v62 = vadd.f32 %v5933_v46, %v5932_v19 }
 0x9a1   : > { %v5935_v17 = vrot.slane %v5934_v62, 1 }
 0x9a3   : > { %v5936_v23 = vadd.f32 %v5935_v17, %v5934_v62 }
 0x9a5   : > { %v10979_v16 = vmul.f32 0.00390625, %v5936_v23 }
 0x9a7   : > { %v10983_v42 = vsub.f32 %v10823_v55, %v10979_v16  ;;  %v10987_v26 = vsub.f32 %v10819_v11, %v10979_v16  ;;  %v10991_v21 = vsub.f32 %v10826_v49, %v10979_v16  ;;  %v10999_v22 = vsub.f32 %v10832_v30, %v10979_v16 }
 0x9a8   : > { %v11003_v55 = vsub.f32 %v10837_v36, %v10979_v16  ;;  %v11009_v49 = vsub.f32 %v10842_v41, %v10979_v16  ;;  %v11015_v30 = vsub.f32 %v10847_v44, %v10979_v16  ;;  %v11021_v5 = vsub.f32 %v10852_v7, %v10979_v16 }
 0x9a9   : > { %v5970_v48 = vmul.f32 %v10983_v42, %v10983_v42  ;;  %v5971_v4 = vmul.f32 %v10987_v26, %v10987_v26  ;;  %v5972_v11 = vmul.f32 %v10991_v21, %v10991_v21  ;;  %v5973_v27 = vmul.f32 %v10999_v22, %v10999_v22 }
 0x9aa   : > { %v5974_v36 = vmul.f32 %v11003_v55, %v11003_v55  ;;  %v5975_v41 = vmul.f32 %v11009_v49, %v11009_v49  ;;  %v11027_v53 = vsub.f32 %v10857_v24, %v10979_v16  ;;  %v5976_v44 = vmul.f32 %v11015_v30, %v11015_v30 }
 0x9ab   : > { %v6002_v43 = vadd.f32 %v5971_v4, %v5970_v48  ;;  %v11033_v61 = vsub.f32 %v10862_v47, %v10979_v16  ;;  %v5977_v7 = vmul.f32 %v11021_v5, %v11021_v5  ;;  %v11039_v37 = vsub.f32 %v10867_v59, %v10979_v16 }
 0x9ac   : > { %v5978_v24 = vmul.f32 %v11027_v53, %v11027_v53  ;;  %v11045_v54 = vsub.f32 %v10872_v50, %v10979_v16  ;;  %v11051_v34 = vsub.f32 %v10879_v40, %v10979_v16  ;;  %v11057_v28 = vsub.f32 %v10885_v39, %v10979_v16 }
 0x9ad   : > { %v6003_v52 = vadd.f32 %v6002_v43, %v5972_v11  ;;  %v5979_v47 = vmul.f32 %v11033_v61, %v11033_v61  ;;  %v5980_v59 = vmul.f32 %v11039_v37, %v11039_v37  ;;  %v11063_v9 = vsub.f32 %v10891_v10, %v10979_v16 }
 0x9ae   : > { %v5981_v50 = vmul.f32 %v11045_v54, %v11045_v54  ;;  %v5982_v40 = vmul.f32 %v11051_v34, %v11051_v34  ;;  %v11069_v19 = vsub.f32 %v10896_v18, %v10979_v16  ;;  %v5983_v39 = vmul.f32 %v11057_v28, %v11057_v28 }
 0x9af   : > { %v6004_v38 = vadd.f32 %v6003_v52, %v5973_v27  ;;  %v11075_v62 = vsub.f32 %v10901_v20, %v10979_v16  ;;  %v5984_v10 = vmul.f32 %v11063_v9, %v11063_v9  ;;  %v11081_v23 = vsub.f32 %v10906_v1, %v10979_v16 }
 0x9b0   : > { %v5985_v18 = vmul.f32 %v11069_v19, %v11069_v19  ;;  %v11087_v4 = vsub.f32 %v10911_v8, %v10979_v16  ;;  %v11093_v43 = vsub.f32 %v10916_v57, %v10979_v16  ;;  %v11099_v52 = vsub.f32 %v10921_v25, %v10979_v16 }
 0x9b1   : > { %v6005_v14 = vadd.f32 %v6004_v38, %v5974_v36  ;;  %v5986_v20 = vmul.f32 %v11075_v62, %v11075_v62  ;;  %v5987_v1 = vmul.f32 %v11081_v23, %v11081_v23  ;;  %v11105_v38 = vsub.f32 %v10926_v0, %v10979_v16 }
 0x9b2   : > { %v5988_v8 = vmul.f32 %v11087_v4, %v11087_v4  ;;  %v5989_v57 = vmul.f32 %v11093_v43, %v11093_v43  ;;  %v5990_v25 = vmul.f32 %v11099_v52, %v11099_v52 }
 0x9b3   : > { %v6006_v6 = vadd.f32 %v6005_v14, %v5975_v41  ;;  %v11111_v14 = vsub.f32 %v10931_v13, %v10979_v16  ;;  %v5991_v0 = vmul.f32 %v11105_v38, %v11105_v38 }
 0x9b5   : > { %v6007_v33 = vadd.f32 %v6006_v6, %v5976_v44  ;;  %v11117_v6 = vsub.f32 %v10936_v60, %v10979_v16  ;;  %v5992_v13 = vmul.f32 %v11111_v14, %v11111_v14 }
 0x9b7   : > { %v6008_v15 = vadd.f32 %v6007_v33, %v5977_v7  ;;  %v11123_v33 = vsub.f32 %v10941_v35, %v10979_v16  ;;  %v5965_v35 = vsub.f32 %v10956_v29, %v10979_v16  ;;  %v5969_v29 = vsub.f32 %v10976_v31, %v10979_v16 }
 0x9b9   : > { %v6009_v51 = vadd.f32 %v6008_v15, %v5978_v24  ;;  %v5963_v15 = vsub.f32 %v10946_v12, %v10979_v16 }
 0x9bb   : > { %v6010_v32 = vadd.f32 %v6009_v51, %v5979_v47  ;;  %v5993_v47 = vmul.f32 %v11117_v6, %v11117_v6  ;;  %v5964_v51 = vsub.f32 %v10951_v45, %v10979_v16  ;;  %v5968_v45 = vsub.f32 %v10970_v58, %v10979_v16 }
 0x9bd   : > { %v6011_v2 = vadd.f32 %v6010_v32, %v5980_v59  ;;  %v5994_v59 = vmul.f32 %v11123_v33, %v11123_v33  ;;  %v5996_v12 = vmul.f32 %v5964_v51, %v5964_v51 }
 0x9bf   : > { %v6012_v3 = vadd.f32 %v6011_v2, %v5981_v50  ;;  %v5995_v50 = vmul.f32 %v5963_v15, %v5963_v15 }
 0x9c1   : > { %v6013_v46 = vadd.f32 %v6012_v3, %v5982_v40  ;;  %v5966_v40 = vsub.f32 %v10961_v56, %v10979_v16  ;;  %v6001_v56 = vmul.f32 %v5969_v29, %v5969_v29 }
 0x9c3   : > { %v6014_v17 = vadd.f32 %v6013_v46, %v5983_v39  ;;  %v5967_v39 = vsub.f32 %v10965_v63, %v10979_v16  ;;  %v5997_v46 = vmul.f32 %v5965_v35, %v5965_v35 }
 0x9c5   : > { %v6015_v48 = vadd.f32 %v6014_v17, %v5984_v10  ;;  %v5998_v17 = vmul.f32 %v5966_v40, %v5966_v40 }
 0x9c7   : > { %v6016_v11 = vadd.f32 %v6015_v48, %v5985_v18  ;;  %v5999_v48 = vmul.f32 %v5967_v39, %v5967_v39 }
 0x9c9   : > { %v6017_v27 = vadd.f32 %v6016_v11, %v5986_v20  ;;  %v6000_v11 = vmul.f32 %v5968_v45, %v5968_v45 }
 0x9cb   : > { %v6018_v36 = vadd.f32 %v6017_v27, %v5987_v1 }
 0x9cd   : > { %v6019_v41 = vadd.f32 %v6018_v36, %v5988_v8 }
 0x9cf   : > { %v6020_v44 = vadd.f32 %v6019_v41, %v5989_v57 }
 0x9d1   : > { %v6021_v7 = vadd.f32 %v6020_v44, %v5990_v25 }
 0x9d3   : > { %v6022_v24 = vadd.f32 %v6021_v7, %v5991_v0 }
 0x9d5   : > { %v6023_v60 = vadd.f32 %v6022_v24, %v5992_v13 }
 0x9d7   : > { %v6024_v32 = vadd.f32 %v6023_v60, %v5993_v47 }
 0x9d9   : > { %v6025_v2 = vadd.f32 %v6024_v32, %v5994_v59 }
 0x9db   : > { %v6026_v3 = vadd.f32 %v6025_v2, %v5995_v50 }
 0x9dd   : > { %v6027_v10 = vadd.f32 %v6026_v3, %v5996_v12 }
 0x9df   : > { %v6028_v18 = vadd.f32 %v6027_v10, %v5997_v46 }
 0x9e1   : > { %v6029_v20 = vadd.f32 %v6028_v18, %v5998_v17 }
 0x9e3   : > { %v6030_v1 = vadd.f32 %v6029_v20, %v5999_v48 }
 0x9e5   : > { %v6031_v27 = vadd.f32 %v6030_v1, %v6000_v11 }
 0x9e7   : > { %v6032_v8 = vadd.f32 %v6031_v27, %v6001_v56 }
 0x9e9   : > { %v6033_v36 = vrot.slane %v6032_v8, 4 }
 0x9eb   : > { %v6034_v57 = vadd.f32 %v6033_v36, %v6032_v8 }
 0x9ed   : > { %v6035_v63 = vrot.slane %v6034_v57, 2 }
 0x9ef   : > { %v6036_v41 = vadd.f32 %v6035_v63, %v6034_v57  ;;  %v6715_v63 = vld [vmem:[%s11213_s12] ss:$0 sm:$0xff] }
 0x9f1   : > { %v6037_v25 = vrot.slane %v6036_v41, 1 }
 0x9f3   : > { %v6038_v44 = vadd.f32 %v6037_v25, %v6036_v41 }
 0x9f5   : > { %v6039_v0 = vmul.f32 0.00390625, %v6038_v44 }
 0x9f7   : > { %v6040_v58 = vadd.f32 1e-05, %v6039_v0 }
 0x9f9   : > { %8180 = vrsqrt.f32 %v6040_v58 }
 0xa06   : > { %v8181_v7 = vpop.eup %8180 }
 0xa07   : > { %v6042_v13 = vmul.f32 %v8181_v7, %v10983_v42  ;;  %v6043_v31 = vmul.f32 %v8181_v7, %v10987_v26  ;;  %v6044_v16 = vmul.f32 %v8181_v7, %v10991_v21  ;;  %v6045_v24 = vmul.f32 %v8181_v7, %v10999_v22 }
 0xa08   : > { %v6046_v47 = vmul.f32 %v8181_v7, %v11003_v55  ;;  %v6047_v60 = vmul.f32 %v8181_v7, %v11009_v49  ;;  %v6048_v59 = vmul.f32 %v8181_v7, %v11015_v30  ;;  %v6049_v32 = vmul.f32 %v8181_v7, %v11021_v5 }
 0xa09   : > { %v6050_v50 = vmul.f32 %v8181_v7, %v11027_v53  ;;  %v6051_v2 = vmul.f32 %v8181_v7, %v11033_v61  ;;  %v6052_v42 = vmul.f32 %v8181_v7, %v11039_v37  ;;  %v6053_v26 = vmul.f32 %v8181_v7, %v11045_v54 }
 0xa0a   : > { %v6054_v21 = vmul.f32 %v8181_v7, %v11051_v34  ;;  %v6055_v22 = vmul.f32 %v8181_v7, %v11057_v28  ;;  %v6056_v55 = vmul.f32 %v8181_v7, %v11063_v9  ;;  %v6057_v49 = vmul.f32 %v8181_v7, %v11069_v19  ;;  %v6714_v9 = vld [vmem:[%s11212_s11] ss:$0 sm:$0xff] }
 0xa0b   : > { %v6058_v30 = vmul.f32 %v8181_v7, %v11075_v62  ;;  %v6059_v5 = vmul.f32 %v8181_v7, %v11081_v23  ;;  %v6060_v53 = vmul.f32 %v8181_v7, %v11087_v4  ;;  %v6061_v61 = vmul.f32 %v8181_v7, %v11093_v43 }
 0xa0c   : > { %v6062_v37 = vmul.f32 %v8181_v7, %v11099_v52  ;;  %v6063_v54 = vmul.f32 %v8181_v7, %v11105_v38  ;;  %v6064_v34 = vmul.f32 %v8181_v7, %v11111_v14  ;;  %v6065_v28 = vmul.f32 %v8181_v7, %v11117_v6 }
 0xa0d   : > { %v6066_v19 = vmul.f32 %v8181_v7, %v11123_v33  ;;  %v6067_v62 = vmul.f32 %v8181_v7, %v5963_v15  ;;  %v6068_v23 = vmul.f32 %v8181_v7, %v5964_v51  ;;  %v6069_v12 = vmul.f32 %v8181_v7, %v5965_v35 }
 0xa0e   : > { %v6070_v4 = vmul.f32 %v8181_v7, %v5966_v40  ;;  %v6071_v3 = vmul.f32 %v8181_v7, %v5967_v39  ;;  %v6072_v43 = vmul.f32 %v8181_v7, %v5968_v45  ;;  %v6073_v46 = vmul.f32 %v8181_v7, %v5969_v29 }
 0xa0f   : > { %v6081_v52 = vmul.f32 %v6714_v9, %v6042_v13  ;;  %v6082_v10 = vmul.f32 %v6714_v9, %v6043_v31  ;;  %v6083_v38 = vmul.f32 %v6714_v9, %v6044_v16  ;;  %v6084_v17 = vmul.f32 %v6714_v9, %v6045_v24 }
 0xa10   : > { %v6085_v14 = vmul.f32 %v6714_v9, %v6046_v47  ;;  %v6086_v18 = vmul.f32 %v6714_v9, %v6047_v60  ;;  %v6087_v6 = vmul.f32 %v6714_v9, %v6048_v59  ;;  %v6088_v48 = vmul.f32 %v6714_v9, %v6049_v32 }
 0xa11   : > { %v6089_v20 = vmul.f32 %v6714_v9, %v6050_v50  ;;  %v6090_v11 = vmul.f32 %v6714_v9, %v6051_v2  ;;  %v6091_v1 = vmul.f32 %v6714_v9, %v6052_v42  ;;  %v6092_v56 = vmul.f32 %v6714_v9, %v6053_v26 }
 0xa12   : > { %v6093_v33 = vmul.f32 %v6714_v9, %v6054_v21  ;;  %v6094_v15 = vmul.f32 %v6714_v9, %v6055_v22  ;;  %v6095_v51 = vmul.f32 %v6714_v9, %v6056_v55  ;;  %v6096_v35 = vmul.f32 %v6714_v9, %v6057_v49 }
 0xa13   : > { %v6097_v40 = vmul.f32 %v6714_v9, %v6058_v30  ;;  %v6098_v39 = vmul.f32 %v6714_v9, %v6059_v5  ;;  %v6099_v45 = vmul.f32 %v6714_v9, %v6060_v53  ;;  %v6100_v29 = vmul.f32 %v6714_v9, %v6061_v61 }
 0xa14   : > { %v6101_v27 = vmul.f32 %v6714_v9, %v6062_v37  ;;  %v6102_v8 = vmul.f32 %v6714_v9, %v6063_v54  ;;  %v6103_v36 = vmul.f32 %v6714_v9, %v6064_v34  ;;  %v6104_v57 = vmul.f32 %v6714_v9, %v6065_v28 }
 0xa15   : > { %v6105_v41 = vmul.f32 %v6714_v9, %v6066_v19  ;;  %v6106_v25 = vmul.f32 %v6714_v9, %v6067_v62  ;;  %v6107_v44 = vmul.f32 %v6714_v9, %v6068_v23  ;;  %v6108_v0 = vmul.f32 %v6714_v9, %v6069_v12 }
 0xa16   : > { %v6109_v58 = vmul.f32 %v6714_v9, %v6070_v4  ;;  %v6110_v7 = vmul.f32 %v6714_v9, %v6071_v3  ;;  %v6111_v13 = vmul.f32 %v6714_v9, %v6072_v43  ;;  %v6112_v31 = vmul.f32 %v6714_v9, %v6073_v46 }
 0xa17   : > { %v6120_v16 = vadd.f32 %v6715_v63, %v6081_v52  ;;  %v6121_v24 = vadd.f32 %v6715_v63, %v6082_v10  ;;  %v6122_v47 = vadd.f32 %v6715_v63, %v6083_v38  ;;  %v6123_v60 = vadd.f32 %v6715_v63, %v6084_v17 }
 0xa18   : > { %v6124_v59 = vadd.f32 %v6715_v63, %v6085_v14  ;;  %v6125_v32 = vadd.f32 %v6715_v63, %v6086_v18  ;;  %v6126_v50 = vadd.f32 %v6715_v63, %v6087_v6  ;;  %v6127_v2 = vadd.f32 %v6715_v63, %v6088_v48 }
 0xa19   : > { %v6128_v42 = vadd.f32 %v6715_v63, %v6089_v20  ;;  %v6129_v26 = vadd.f32 %v6715_v63, %v6090_v11  ;;  %v6130_v21 = vadd.f32 %v6715_v63, %v6091_v1  ;;  %v6131_v22 = vadd.f32 %v6715_v63, %v6092_v56  ;;  %6152 = vst [vmem:[#allocation17] sm:$0xff] %v6120_v16 }
 0xa1a   : > { %6153 = vst [vmem:[#allocation17 + $0x8] sm:$0xff] %v6121_v24  ;;  %6154 = vst [vmem:[#allocation17 + $0x10] sm:$0xff] %v6122_v47  ;;  %v6132_v55 = vadd.f32 %v6715_v63, %v6093_v33  ;;  %v6133_v49 = vadd.f32 %v6715_v63, %v6094_v15  ;;  %v6134_v30 = vadd.f32 %v6715_v63, %v6095_v51 }
 0xa1b   : > { %6155 = vst [vmem:[#allocation17 + $0x18] sm:$0xff] %v6123_v60  ;;  %v6135_v5 = vadd.f32 %v6715_v63, %v6096_v35  ;;  %6156 = vst [vmem:[#allocation17 + $0x20] sm:$0xff] %v6124_v59  ;;  %v6136_v53 = vadd.f32 %v6715_v63, %v6097_v40  ;;  %v6137_v61 = vadd.f32 %v6715_v63, %v6098_v39 }
 0xa1c   : > { %6157 = vst [vmem:[#allocation17 + $0x28] sm:$0xff] %v6125_v32  ;;  %6158 = vst [vmem:[#allocation17 + $0x30] sm:$0xff] %v6126_v50  ;;  %v6138_v37 = vadd.f32 %v6715_v63, %v6099_v45  ;;  %v6139_v54 = vadd.f32 %v6715_v63, %v6100_v29  ;;  %v6140_v34 = vadd.f32 %v6715_v63, %v6101_v27 }
 0xa1d   : > { %6159 = vst [vmem:[#allocation17 + $0x38] sm:$0xff] %v6127_v2  ;;  %6160 = vst [vmem:[#allocation17 + $0x40] sm:$0xff] %v6128_v42  ;;  %v6141_v28 = vadd.f32 %v6715_v63, %v6102_v8  ;;  %v6142_v9 = vadd.f32 %v6715_v63, %v6103_v36  ;;  %v6143_v19 = vadd.f32 %v6715_v63, %v6104_v57 }
 0xa1e   : > { %6161 = vst [vmem:[#allocation17 + $0x48] sm:$0xff] %v6129_v26  ;;  %6162 = vst [vmem:[#allocation17 + $0x50] sm:$0xff] %v6130_v21  ;;  %v6144_v62 = vadd.f32 %v6715_v63, %v6105_v41  ;;  %v6145_v23 = vadd.f32 %v6715_v63, %v6106_v25  ;;  %v6146_v12 = vadd.f32 %v6715_v63, %v6107_v44 }
 0xa1f   : > { %6163 = vst [vmem:[#allocation17 + $0x58] sm:$0xff] %v6131_v22  ;;  %6164 = vst [vmem:[#allocation17 + $0x60] sm:$0xff] %v6132_v55  ;;  %v6147_v4 = vadd.f32 %v6715_v63, %v6108_v0  ;;  %v6148_v3 = vadd.f32 %v6715_v63, %v6109_v58  ;;  %v6149_v43 = vadd.f32 %v6715_v63, %v6110_v7 }
 0xa20   : > { %6165 = vst [vmem:[#allocation17 + $0x68] sm:$0xff] %v6133_v49  ;;  %6166 = vst [vmem:[#allocation17 + $0x70] sm:$0xff] %v6134_v30  ;;  %v6150_v46 = vadd.f32 %v6715_v63, %v6111_v13  ;;  %v6151_v52 = vadd.f32 %v6715_v63, %v6112_v31 }
 0xa21   : > { %6167 = vst [vmem:[#allocation17 + $0x78] sm:$0xff] %v6135_v5  ;;  %6168 = vst [vmem:[#allocation17 + $0x80] sm:$0xff] %v6136_v53 }
 0xa22   : > { %6169 = vst [vmem:[#allocation17 + $0x88] sm:$0xff] %v6137_v61  ;;  %6170 = vst [vmem:[#allocation17 + $0x90] sm:$0xff] %v6138_v37 }
 0xa23   : > { %6171 = vst [vmem:[#allocation17 + $0x98] sm:$0xff] %v6139_v54  ;;  %6172 = vst [vmem:[#allocation17 + $0xa0] sm:$0xff] %v6140_v34 }
 0xa24   : > { %6173 = vst [vmem:[#allocation17 + $0xa8] sm:$0xff] %v6141_v28  ;;  %6174 = vst [vmem:[#allocation17 + $0xb0] sm:$0xff] %v6142_v9 }
 0xa25   : > { %6175 = vst [vmem:[#allocation17 + $0xb8] sm:$0xff] %v6143_v19  ;;  %6176 = vst [vmem:[#allocation17 + $0xc0] sm:$0xff] %v6144_v62 }
 0xa26   : > { %6177 = vst [vmem:[#allocation17 + $0xc8] sm:$0xff] %v6145_v23  ;;  %6178 = vst [vmem:[#allocation17 + $0xd0] sm:$0xff] %v6146_v12 }
 0xa27   : > { %6179 = vst [vmem:[#allocation17 + $0xd8] sm:$0xff] %v6147_v4  ;;  %6180 = vst [vmem:[#allocation17 + $0xe0] sm:$0xff] %v6148_v3 }
 0xa28   : > { %6181 = vst [vmem:[#allocation17 + $0xe8] sm:$0xff] %v6149_v43  ;;  %6182 = vst [vmem:[#allocation17 + $0xf0] sm:$0xff] %v6150_v46 }
 0xa29   : > { %6183 = vst [vmem:[#allocation17 + $0xf8] sm:$0xff] %v6151_v52 }
 0xa2a PF: > { %p7573_p12 = scmp.eq.s32.totalorder %s8528_s29, 1  ;;  %s8436_s18 = smov [#allocation17]  }
 0xa2b   : > { %s6190_s21 = sshll.u32 %s8436_s18, 4  ;;  %s6191_s21 = int_to_ptr.vmem [resolvable:$true] %s6190_s21 }
 0xa2c   : > { %s8340_s0 = scalar_lea.vmem %s6191_s21, 4096  ;;  %p8347_p7 = scmp.lt.s32.totalorder %s6191_s21, %s6191_s21 }
 0xa2d   : > { %p8341_p2 = scmp.ne.s32.totalorder %s6191_s21, %s8340_s0  ;;  %p8348_p6 = scmp.lt.s32.totalorder %s8340_s0, %s8340_s0 }
 0xa2f   : > { %p8342_p0 = pnand %p8341_p2, %p7573_p12  ;;  %p8349_p8 = por %p8348_p6, %p8347_p7 }
 0xa31   : > { %p8343_p3 = pneg %p8342_p0 }
 0xa33   : > { %p8350_p10 = pnand %p8349_p8, %p8343_p3 }
 0xa35   : > { %8353 = shalt.err (!%p8350_p10)
}
 0xa36   : > { %s8437_s28 = smov 128   ;;  %s8438_s2 = smov 8  }
 0xa37   : > { %7539 = dma.vmem_to_hbm [thread:$0]  (%p7573_p12), %s6191_s21, 4096, %s11214_s13, [#allocation8], %s8437_s28, %s8437_s28, %s8438_s2  }
 0xa38   : > { %8401 = dma.done.wait (%p7573_p12), [#allocation8], 4096  }
 0xa39   : > { %8403 = vsyncadd (%p7573_p12), [#allocation8], 4294963200 }
 0xa3a PF: > { %p27_p11 = scmp.ge.s32.totalorder %s8607_s20, 4   ;;  %s11489_s25 = smov %s8410_s26 }
 0xa3b   : > { %s11490_s26 = smov %s8414_s27  ;;  %s11491_s27 = smov %s8617_s19 }
 0xa3c   : > { %s11492_s28 = smov %s8607_s20  ;;  %29 = sbr.rel (!%p27_p11) target bundleno = 11 (0xb), region = 141 }
 0xa41   :  { %6206 = vsyncpa [#allocation7], 1 }
 0xa42   :  { %6208 = vsyncpa [#allocation7 + $0x1], 1 }
 0xa43   :  { %6209 = vsyncpa [#allocation10], 1 }
 0xa44   :  { %6211 = vsyncpa [#allocation10 + $0x1], 1 }
 0xa45   :  { %6212 = vsyncpa [#allocation13], 1 }
 0xa46   :  { %6213 = vsyncpa [#allocation16], 1 }
 0xa47   :  { %6214 = vsyncpa [#allocation8], 1 }
 0xa48   :  { %6216 = vsyncpa [#allocation8 + $0x1], 1 }

</bundles_post_ra>
